<compile_context>
chip_gen: v7x
topology: tpu7x:2x2x1
jax: 0.10.0
libtpu: 0.0.40
codegen_flags: <defaults>
</compile_context>

<pallas_src>
import jax
import jax.numpy as jnp
from jax.experimental import pallas as pl
from jax.experimental.pallas import tpu as pltpu


# ----------------------------- helpers -------------------------------------

def _round_up(x, m):
    return (x + m - 1) // m * m


def _pad2d(x, shape):
    return jnp.pad(x, ((0, shape[0] - x.shape[0]), (0, shape[1] - x.shape[1])))


def _pick_tk(k_pad, max_tk=1024):
    """Largest multiple of 128 that divides k_pad and is <= max_tk."""
    nk = k_pad // 128
    best = 1
    for d in range(1, nk + 1):
        if nk % d == 0 and d * 128 <= max_tk:
            best = d
    return best * 128


# --------------------------- Pallas kernels ---------------------------------

def _make_conv_bn_kernel(apply_relu, has_residual):
    """Tiled matmul (im2col conv) accumulating into the resident output block,
    with fused BN scale/bias, optional residual add, optional ReLU epilogue."""

    def _epilogue(acc, s, b, r):
        y = acc * s + b                       # folded BatchNorm (f32)
        if has_residual:
            y = y + r                         # residual add (BasicBlock skip)
        if apply_relu:
            y = jnp.maximum(y, 0.0)
        return y

    if has_residual:
        def kernel(p_ref, w_ref, s_ref, b_ref, r_ref, o_ref):
            k = pl.program_id(1)

            @pl.when(k == 0)
            def _():
                o_ref[...] = jnp.zeros_like(o_ref)

            o_ref[...] += jnp.dot(p_ref[...], w_ref[...],
                                  preferred_element_type=jnp.float32)

            @pl.when(k == pl.num_programs(1) - 1)
            def _():
                o_ref[...] = _epilogue(o_ref[...], s_ref[...], b_ref[...],
                                       r_ref[...])
    else:
        def kernel(p_ref, w_ref, s_ref, b_ref, o_ref):
            k = pl.program_id(1)

            @pl.when(k == 0)
            def _():
                o_ref[...] = jnp.zeros_like(o_ref)

            o_ref[...] += jnp.dot(p_ref[...], w_ref[...],
                                  preferred_element_type=jnp.float32)

            @pl.when(k == pl.num_programs(1) - 1)
            def _():
                o_ref[...] = _epilogue(o_ref[...], s_ref[...], b_ref[...],
                                       None)
    return kernel


def _maxpool_kernel(x_ref, o_ref):
    # x_ref: (9, tr, 128) -- 9 shifted window views; elementwise max over them.
    acc = x_ref[0]
    for i in range(1, x_ref.shape[0]):
        acc = jnp.maximum(acc, x_ref[i])
    o_ref[...] = acc


def _avgpool_kernel(x_ref, o_ref):
    # x_ref: (N, H*W, C) -> mean over spatial axis (adaptive avg pool to 1x1).
    o_ref[...] = jnp.mean(x_ref[...], axis=1)


# ------------------------ conv+bn(+relu)(+res) wrapper ----------------------

def conv_bn(x, w, scale, bias, *, stride, padding, relu=True, residual=None):
    """x: (N,H,W,Cin) f32; w: (KH,KW,Cin,Cout); scale/bias: (Cout,).

    Computes conv2d (no bias) followed by folded BN affine, optional residual
    add and optional ReLU.  The matmul + epilogue run in a Pallas kernel:
    grid = (M tiles [parallel], K tiles [arbitrary]); each output block is a
    full lane-dense (tm, C_pad) slab used as the f32 accumulator.
    """
    N, H, W, Cin = x.shape
    KH, KW, _, Cout = w.shape
    Ho = (H + 2 * padding - KH) // stride + 1
    Wo = (W + 2 * padding - KW) // stride + 1

    # im2col (plain-JAX glue) in bf16 to halve the duplicated-patch HBM traffic.
    # Patch column ordering is [kh, kw, ci] to match w.reshape.
    # TODO(synk): avoid materializing the KH*KW-duplicated im2col tensor in HBM
    #             by streaming shifted strided windows of the padded input
    #             directly from the BlockSpec index_map.
    xp = jnp.pad(x, ((0, 0), (padding, padding), (padding, padding), (0, 0)))
    cols = []
    for kh in range(KH):
        for kw in range(KW):
            cols.append(xp[:, kh:kh + stride * Ho:stride,
                            kw:kw + stride * Wo:stride, :])
    patches = jnp.concatenate(cols, axis=-1).reshape(
        N * Ho * Wo, KH * KW * Cin).astype(jnp.bfloat16)
    wmat = w.reshape(KH * KW * Cin, Cout).astype(jnp.bfloat16)

    M, K = patches.shape
    K_pad = _round_up(K, 128)
    C_pad = _round_up(Cout, 128)
    tm = min(256, _round_up(M, 16))          # bf16 sublane tile = 16
    M_pad = _round_up(M, tm)
    tk = _pick_tk(K_pad)

    patches_p = _pad2d(patches, (M_pad, K_pad))
    w_p = _pad2d(wmat, (K_pad, C_pad))
    s_p = jnp.pad(scale, (0, C_pad - Cout))[None, :].astype(jnp.float32)
    b_p = jnp.pad(bias, (0, C_pad - Cout))[None, :].astype(jnp.float32)

    has_res = residual is not None
    in_specs = [
        pl.BlockSpec((tm, tk), lambda i, k: (i, k)),       # patches (bf16)
        pl.BlockSpec((tk, C_pad), lambda i, k: (k, 0)),    # weights (bf16)
        pl.BlockSpec((1, C_pad), lambda i, k: (0, 0)),     # BN scale (f32)
        pl.BlockSpec((1, C_pad), lambda i, k: (0, 0)),     # BN bias  (f32)
    ]
    args = [patches_p, w_p, s_p, b_p]
    if has_res:
        res_p = _pad2d(residual.reshape(M, Cout).astype(jnp.float32),
                       (M_pad, C_pad))
        in_specs.append(pl.BlockSpec((tm, C_pad), lambda i, k: (i, 0)))
        args.append(res_p)

    n_m = M_pad // tm
    n_k = K_pad // tk

    # Explicit VMEM budget (double-buffered tiles + headroom), kept well under
    # v7x's 64 MiB physical VMEM.
    vmem_bytes = 2 * (tm * tk * 2 + tk * C_pad * 2 + 2 * C_pad * 4
                      + tm * C_pad * 4)
    if has_res:
        vmem_bytes += 2 * tm * C_pad * 4
    vmem_bytes = int(min(max(2 * vmem_bytes, 16 << 20), 48 << 20))

    cost = pl.CostEstimate(
        flops=2 * M_pad * K_pad * C_pad,
        transcendentals=0,
        bytes_accessed=(M_pad * K_pad * 2             # patches streamed once
                        + n_m * K_pad * C_pad * 2     # weights per M-tile
                        + (1 + int(has_res)) * M_pad * C_pad * 4))

    out = pl.pallas_call(
        _make_conv_bn_kernel(relu, has_res),
        out_shape=jax.ShapeDtypeStruct((M_pad, C_pad), jnp.float32),
        grid_spec=pltpu.PrefetchScalarGridSpec(
            num_scalar_prefetch=0,
            grid=(n_m, n_k),
            in_specs=in_specs,
            out_specs=pl.BlockSpec((tm, C_pad), lambda i, k: (i, 0))),
        compiler_params=pltpu.CompilerParams(
            dimension_semantics=("parallel", "arbitrary"),
            vmem_limit_bytes=vmem_bytes),
        cost_estimate=cost,
    )(*args)

    return out[:M, :Cout].reshape(N, Ho, Wo, Cout)


def maxpool_3x3_s2_p1(x):
    N, H, W, C = x.shape
    Ho = (H + 2 - 3) // 2 + 1
    Wo = (W + 2 - 3) // 2 + 1
    xp = jnp.pad(x, ((0, 0), (1, 1), (1, 1), (0, 0)),
                 constant_values=-jnp.inf)
    views = [xp[:, kh:kh + 2 * Ho:2, kw:kw + 2 * Wo:2, :]
             for kh in range(3) for kw in range(3)]
    stacked = jnp.stack(views, axis=0).reshape(9, -1)      # (9, total)
    total = stacked.shape[1]

    # Lane-dense view: the max is purely elementwise, so compute on
    # (rows, 128) tiles and tile rows over a grid to bound VMEM.
    rows = pl.cdiv(total, 128)
    tr = min(512, _round_up(rows, 8))
    rows_pad = _round_up(rows, tr)
    stacked = jnp.pad(stacked, ((0, 0), (0, rows_pad * 128 - total)))
    stacked = stacked.reshape(9, rows_pad, 128)

    out = pl.pallas_call(
        _maxpool_kernel,
        out_shape=jax.ShapeDtypeStruct((rows_pad, 128), jnp.float32),
        grid_spec=pltpu.PrefetchScalarGridSpec(
            num_scalar_prefetch=0,
            grid=(rows_pad // tr,),
            in_specs=[pl.BlockSpec((9, tr, 128), lambda i: (0, i, 0))],
            out_specs=pl.BlockSpec((tr, 128), lambda i: (i, 0))),
        compiler_params=pltpu.CompilerParams(
            dimension_semantics=("parallel",)),
    )(stacked)
    return out.reshape(-1)[:total].reshape(N, Ho, Wo, C)


def global_avgpool_flatten(x):
    N, H, W, C = x.shape
    x2 = x.reshape(N, H * W, C)
    return pl.pallas_call(
        _avgpool_kernel,
        out_shape=jax.ShapeDtypeStruct((N, C), jnp.float32),
    )(x2)


# ------------------------------ model --------------------------------------

def basic_block(x, blk, stride):
    identity = x
    out = conv_bn(x, blk['w1'], blk['s1'], blk['b1'],
                  stride=stride, padding=1, relu=True)
    if 'wd' in blk:
        identity = conv_bn(x, blk['wd'], blk['sd'], blk['bd'],
                           stride=stride, padding=0, relu=False)
    # conv2 + bn2 + residual add + relu, all fused in one kernel epilogue
    out = conv_bn(out, blk['w2'], blk['s2'], blk['b2'],
                  stride=1, padding=1, relu=True, residual=identity)
    return out


def resnet_feature_forward(x_nchw, params):
    x = jnp.transpose(x_nchw, (0, 2, 3, 1)).astype(jnp.float32)   # NCHW -> NHWC
    x = conv_bn(x, params['conv1_w'], params['conv1_s'], params['conv1_b'],
                stride=2, padding=3, relu=True)
    x = maxpool_3x3_s2_p1(x)
    strides = {1: 1, 2: 2, 3: 2, 4: 2}
    for li in (1, 2, 3, 4):
        blocks = params[f'layer{li}']
        x = basic_block(x, blocks[0], strides[li])
        for blk in blocks[1:]:
            x = basic_block(x, blk, 1)
    return global_avgpool_flatten(x)                               # (N, 512)


# --------------------------- parameter init ---------------------------------

def _kaiming(key, kh, kw, cin, cout):
    fan_out = cout * kh * kw
    std = (2.0 / fan_out) ** 0.5
    return jax.random.normal(key, (kh, kw, cin, cout), jnp.float32) * std


def make_params(key):
    eps = 1e-5
    bn_scale = lambda c: jnp.full((c,), (1.0 + eps) ** -0.5, jnp.float32)
    bn_bias = lambda c: jnp.zeros((c,), jnp.float32)
    keys = iter(jax.random.split(key, 64))

    params = {
        'conv1_w': _kaiming(next(keys), 7, 7, 3, 64),
        'conv1_s': bn_scale(64),
        'conv1_b': bn_bias(64),
    }
    inplanes = 64
    cfg = [(64, 2, 1), (128, 2, 2), (256, 2, 2), (512, 2, 2)]   # ResNet-18
    for li, (planes, nblocks, stride) in enumerate(cfg, start=1):
        blocks = []
        for bi in range(nblocks):
            s = stride if bi == 0 else 1
            blk = {
                'w1': _kaiming(next(keys), 3, 3, inplanes, planes),
                's1': bn_scale(planes), 'b1': bn_bias(planes),
                'w2': _kaiming(next(keys), 3, 3, planes, planes),
                's2': bn_scale(planes), 'b2': bn_bias(planes),
            }
            if s != 1 or inplanes != planes:
                blk['wd'] = _kaiming(next(keys), 1, 1, inplanes, planes)
                blk['sd'] = bn_scale(planes)
                blk['bd'] = bn_bias(planes)
            blocks.append(blk)
            inplanes = planes
        params[f'layer{li}'] = blocks
    return params


# ------------------------------- main ---------------------------------------

if __name__ == "__main__":
    key = jax.random.PRNGKey(0)
    kx, kp = jax.random.split(key)
    # PyTorch-style NCHW input: batch=2, 3 channels (conv1 expects 3), 32x32.
    x = jax.random.normal(kx, (2, 3, 32, 32), jnp.float32)
    params = make_params(kp)

    forward = jax.jit(resnet_feature_forward)
    feats = forward(x, params)
    feats = jax.block_until_ready(feats)
    assert feats.shape == (2, 512), feats.shape
    assert jnp.all(jnp.isfinite(feats))
    print("KERNEL_OK")
</pallas_src>

<mosaic_0001>
module attributes {stable_mosaic.version = 11 : i64} {
  func.func @kernel(%arg0: i32, %arg1: i32, %arg2: memref<256x256xbf16, #tpu.memory_space<vmem>>, %arg3: memref<256x128xbf16, #tpu.memory_space<vmem>>, %arg4: memref<1x128xf32, #tpu.memory_space<vmem>>, %arg5: memref<1x128xf32, #tpu.memory_space<vmem>>, %arg6: memref<256x128xf32, #tpu.memory_space<vmem>>) attributes {dimension_semantics = [#tpu.dimension_semantics<parallel>, #tpu.dimension_semantics<arbitrary>], iteration_bounds = array<i64: 2, 1>, scalar_prefetch = 0 : i64, scratch_operands = 0 : i64, tpu.core_type = #tpu.core_type<tc>, window_params = [{transform_indices = @transform_0, window_bounds = array<i64: 256, 256>}, {transform_indices = @transform_1, window_bounds = array<i64: 256, 128>}, {pipeline_mode = #tpu.pipeline_mode<synchronous>, transform_indices = @transform_2, window_bounds = array<i64: 1, 128>}, {pipeline_mode = #tpu.pipeline_mode<synchronous>, transform_indices = @transform_3, window_bounds = array<i64: 1, 128>}, {transform_indices = @transform_4, window_bounds = array<i64: 256, 128>}]} {
    %c0_i32 = arith.constant 0 : i32
    %0 = arith.cmpi eq, %arg1, %c0_i32 : i32
    %1 = arith.extui %0 : i1 to i32
    %c0_i32_0 = arith.constant 0 : i32
    %2 = arith.cmpi ne, %1, %c0_i32_0 : i32
    scf.if %2 {
      %cst_10 = arith.constant 0.000000e+00 : f32
      %12 = vector.broadcast %cst_10 : f32 to vector<256x128xf32>
      %c0_11 = arith.constant 0 : index
      %c0_12 = arith.constant 0 : index
      %13 = vector.load %arg6[%c0_11, %c0_12] : memref<256x128xf32, #tpu.memory_space<vmem>>, vector<256x128xf32>
      tpu.vector_store %arg6[%c0_11, %c0_12], %12 {strides = array<i32>} : memref<256x128xf32, #tpu.memory_space<vmem>>, vector<256x128xf32>,
    } else {
    }
    %c0 = arith.constant 0 : index
    %c0_1 = arith.constant 0 : index
    %3 = vector.load %arg6[%c0, %c0_1] : memref<256x128xf32, #tpu.memory_space<vmem>>, vector<256x128xf32>
    %c0_2 = arith.constant 0 : index
    %c0_3 = arith.constant 0 : index
    %4 = vector.load %arg2[%c0_2, %c0_3] : memref<256x256xbf16, #tpu.memory_space<vmem>>, vector<256x256xbf16>
    %c0_4 = arith.constant 0 : index
    %c0_5 = arith.constant 0 : index
    %5 = vector.load %arg3[%c0_4, %c0_5] : memref<256x128xbf16, #tpu.memory_space<vmem>>, vector<256x128xbf16>
    %cst = arith.constant dense<0.000000e+00> : vector<256x128xf32>
    %6 = tpu.matmul %4, %5, %cst {dimension_numbers = #tpu.dot_dimension_numbers<[1], [0], [0], [1], [0, 0, 1, 1], [], []>} : vector<256x256xbf16>, vector<256x128xbf16>, vector<256x128xf32> -> vector<256x128xf32>
    %7 = arith.addf %3, %6 : vector<256x128xf32>
    %c0_6 = arith.constant 0 : index
    %c0_7 = arith.constant 0 : index
    %8 = vector.load %arg6[%c0_6, %c0_7] : memref<256x128xf32, #tpu.memory_space<vmem>>, vector<256x128xf32>
    tpu.vector_store %arg6[%c0_6, %c0_7], %7 {strides = array<i32>} : memref<256x128xf32, #tpu.memory_space<vmem>>, vector<256x128xf32>,
    %c0_i32_8 = arith.constant 0 : i32
    %9 = arith.cmpi eq, %arg1, %c0_i32_8 : i32
    %10 = arith.extui %9 : i1 to i32
    %c0_i32_9 = arith.constant 0 : i32
    %11 = arith.cmpi ne, %10, %c0_i32_9 : i32
    scf.if %11 {
      %c0_10 = arith.constant 0 : index
      %c0_11 = arith.constant 0 : index
      %12 = vector.load %arg6[%c0_10, %c0_11] : memref<256x128xf32, #tpu.memory_space<vmem>>, vector<256x128xf32>
      %c0_12 = arith.constant 0 : index
      %c0_13 = arith.constant 0 : index
      %13 = vector.load %arg4[%c0_12, %c0_13] : memref<1x128xf32, #tpu.memory_space<vmem>>, vector<1x128xf32>
      %c0_14 = arith.constant 0 : index
      %c0_15 = arith.constant 0 : index
      %14 = vector.load %arg5[%c0_14, %c0_15] : memref<1x128xf32, #tpu.memory_space<vmem>>, vector<1x128xf32>
      %15 = vector.broadcast %13 : vector<1x128xf32> to vector<256x128xf32>
      %16 = arith.mulf %12, %15 : vector<256x128xf32>
      %17 = vector.broadcast %14 : vector<1x128xf32> to vector<256x128xf32>
      %18 = arith.addf %16, %17 : vector<256x128xf32>
      %cst_16 = arith.constant 0.000000e+00 : f32
      %19 = vector.broadcast %cst_16 : f32 to vector<256x128xf32>
      %20 = arith.maximumf %18, %19 : vector<256x128xf32>
      %c0_17 = arith.constant 0 : index
      %c0_18 = arith.constant 0 : index
      %21 = vector.load %arg6[%c0_17, %c0_18] : memref<256x128xf32, #tpu.memory_space<vmem>>, vector<256x128xf32>
      tpu.vector_store %arg6[%c0_17, %c0_18], %20 {strides = array<i32>} : memref<256x128xf32, #tpu.memory_space<vmem>>, vector<256x128xf32>,
    } else {
    }
    return
  }
  func.func @transform_0(%arg0: i32, %arg1: i32) -> (i32, i32) {
    %c0_i32 = arith.constant 0 : i32
    return %arg0, %arg1 : i32, i32
  }
  func.func @transform_1(%arg0: i32, %arg1: i32) -> (i32, i32) {
    %c0_i32 = arith.constant 0 : i32
    %c0_i32_0 = arith.constant 0 : i32
    return %arg1, %c0_i32 : i32, i32
  }
  func.func @transform_2(%arg0: i32, %arg1: i32) -> (i32, i32) {
    %c0_i32 = arith.constant 0 : i32
    %c0_i32_0 = arith.constant 0 : i32
    %c0_i32_1 = arith.constant 0 : i32
    return %c0_i32, %c0_i32_0 : i32, i32
  }
  func.func @transform_3(%arg0: i32, %arg1: i32) -> (i32, i32) {
    %c0_i32 = arith.constant 0 : i32
    %c0_i32_0 = arith.constant 0 : i32
    %c0_i32_1 = arith.constant 0 : i32
    return %c0_i32, %c0_i32_0 : i32, i32
  }
  func.func @transform_4(%arg0: i32, %arg1: i32) -> (i32, i32) {
    %c0_i32 = arith.constant 0 : i32
    %c0_i32_0 = arith.constant 0 : i32
    return %arg0, %c0_i32 : i32, i32
  }
}

module attributes {stable_mosaic.version = 11 : i64} {
  func.func @_maxpool_kernel(%arg0: i32, %arg1: memref<9x64x128xf32, #tpu.memory_space<vmem>>, %arg2: memref<64x128xf32, #tpu.memory_space<vmem>>) attributes {dimension_semantics = [#tpu.dimension_semantics<parallel>], iteration_bounds = array<i64: 1>, scalar_prefetch = 0 : i64, scratch_operands = 0 : i64, tpu.core_type = #tpu.core_type<tc>, window_params = [{transform_indices = @transform_0, window_bounds = array<i64: 9, 64, 128>}, {transform_indices = @transform_1, window_bounds = array<i64: 64, 128>}]} {
    %c0 = arith.constant 0 : index
    %c0_0 = arith.constant 0 : index
    %c0_1 = arith.constant 0 : index
    %0 = vector.load %arg1[%c0, %c0_0, %c0_1] : memref<9x64x128xf32, #tpu.memory_space<vmem>>, vector<1x64x128xf32>
    %1 = vector.shape_cast %0 : vector<1x64x128xf32> to vector<64x128xf32>
    %c1 = arith.constant 1 : index
    %c0_2 = arith.constant 0 : index
    %c0_3 = arith.constant 0 : index
    %2 = vector.load %arg1[%c1, %c0_2, %c0_3] : memref<9x64x128xf32, #tpu.memory_space<vmem>>, vector<1x64x128xf32>
    %3 = vector.shape_cast %2 : vector<1x64x128xf32> to vector<64x128xf32>
    %4 = arith.maximumf %1, %3 : vector<64x128xf32>
    %c2 = arith.constant 2 : index
    %c0_4 = arith.constant 0 : index
    %c0_5 = arith.constant 0 : index
    %5 = vector.load %arg1[%c2, %c0_4, %c0_5] : memref<9x64x128xf32, #tpu.memory_space<vmem>>, vector<1x64x128xf32>
    %6 = vector.shape_cast %5 : vector<1x64x128xf32> to vector<64x128xf32>
    %7 = arith.maximumf %4, %6 : vector<64x128xf32>
    %c3 = arith.constant 3 : index
    %c0_6 = arith.constant 0 : index
    %c0_7 = arith.constant 0 : index
    %8 = vector.load %arg1[%c3, %c0_6, %c0_7] : memref<9x64x128xf32, #tpu.memory_space<vmem>>, vector<1x64x128xf32>
    %9 = vector.shape_cast %8 : vector<1x64x128xf32> to vector<64x128xf32>
    %10 = arith.maximumf %7, %9 : vector<64x128xf32>
    %c4 = arith.constant 4 : index
    %c0_8 = arith.constant 0 : index
    %c0_9 = arith.constant 0 : index
    %11 = vector.load %arg1[%c4, %c0_8, %c0_9] : memref<9x64x128xf32, #tpu.memory_space<vmem>>, vector<1x64x128xf32>
    %12 = vector.shape_cast %11 : vector<1x64x128xf32> to vector<64x128xf32>
    %13 = arith.maximumf %10, %12 : vector<64x128xf32>
    %c5 = arith.constant 5 : index
    %c0_10 = arith.constant 0 : index
    %c0_11 = arith.constant 0 : index
    %14 = vector.load %arg1[%c5, %c0_10, %c0_11] : memref<9x64x128xf32, #tpu.memory_space<vmem>>, vector<1x64x128xf32>
    %15 = vector.shape_cast %14 : vector<1x64x128xf32> to vector<64x128xf32>
    %16 = arith.maximumf %13, %15 : vector<64x128xf32>
    %c6 = arith.constant 6 : index
    %c0_12 = arith.constant 0 : index
    %c0_13 = arith.constant 0 : index
    %17 = vector.load %arg1[%c6, %c0_12, %c0_13] : memref<9x64x128xf32, #tpu.memory_space<vmem>>, vector<1x64x128xf32>
    %18 = vector.shape_cast %17 : vector<1x64x128xf32> to vector<64x128xf32>
    %19 = arith.maximumf %16, %18 : vector<64x128xf32>
    %c7 = arith.constant 7 : index
    %c0_14 = arith.constant 0 : index
    %c0_15 = arith.constant 0 : index
    %20 = vector.load %arg1[%c7, %c0_14, %c0_15] : memref<9x64x128xf32, #tpu.memory_space<vmem>>, vector<1x64x128xf32>
    %21 = vector.shape_cast %20 : vector<1x64x128xf32> to vector<64x128xf32>
    %22 = arith.maximumf %19, %21 : vector<64x128xf32>
    %c8 = arith.constant 8 : index
    %c0_16 = arith.constant 0 : index
    %c0_17 = arith.constant 0 : index
    %23 = vector.load %arg1[%c8, %c0_16, %c0_17] : memref<9x64x128xf32, #tpu.memory_space<vmem>>, vector<1x64x128xf32>
    %24 = vector.shape_cast %23 : vector<1x64x128xf32> to vector<64x128xf32>
    %25 = arith.maximumf %22, %24 : vector<64x128xf32>
    %c0_18 = arith.constant 0 : index
    %c0_19 = arith.constant 0 : index
    %26 = vector.load %arg2[%c0_18, %c0_19] : memref<64x128xf32, #tpu.memory_space<vmem>>, vector<64x128xf32>
    tpu.vector_store %arg2[%c0_18, %c0_19], %25 {strides = array<i32>} : memref<64x128xf32, #tpu.memory_space<vmem>>, vector<64x128xf32>,
    return
  }
  func.func @transform_0(%arg0: i32) -> (i32, i32, i32) {
    %c0_i32 = arith.constant 0 : i32
    %c0_i32_0 = arith.constant 0 : i32
    %c0_i32_1 = arith.constant 0 : i32
    return %c0_i32, %arg0, %c0_i32_0 : i32, i32, i32
  }
  func.func @transform_1(%arg0: i32) -> (i32, i32) {
    %c0_i32 = arith.constant 0 : i32
    %c0_i32_0 = arith.constant 0 : i32
    return %arg0, %c0_i32 : i32, i32
  }
}

module attributes {stable_mosaic.version = 11 : i64} {
  func.func @kernel(%arg0: i32, %arg1: i32, %arg2: memref<128x640xbf16, #tpu.memory_space<vmem>>, %arg3: memref<640x128xbf16, #tpu.memory_space<vmem>>, %arg4: memref<1x128xf32, #tpu.memory_space<vmem>>, %arg5: memref<1x128xf32, #tpu.memory_space<vmem>>, %arg6: memref<128x128xf32, #tpu.memory_space<vmem>>) attributes {dimension_semantics = [#tpu.dimension_semantics<parallel>, #tpu.dimension_semantics<arbitrary>], iteration_bounds = array<i64: 1, 1>, scalar_prefetch = 0 : i64, scratch_operands = 0 : i64, tpu.core_type = #tpu.core_type<tc>, window_params = [{transform_indices = @transform_0, window_bounds = array<i64: 128, 640>}, {transform_indices = @transform_1, window_bounds = array<i64: 640, 128>}, {pipeline_mode = #tpu.pipeline_mode<synchronous>, transform_indices = @transform_2, window_bounds = array<i64: 1, 128>}, {pipeline_mode = #tpu.pipeline_mode<synchronous>, transform_indices = @transform_3, window_bounds = array<i64: 1, 128>}, {transform_indices = @transform_4, window_bounds = array<i64: 128, 128>}]} {
    %c0_i32 = arith.constant 0 : i32
    %0 = arith.cmpi eq, %arg1, %c0_i32 : i32
    %1 = arith.extui %0 : i1 to i32
    %c0_i32_0 = arith.constant 0 : i32
    %2 = arith.cmpi ne, %1, %c0_i32_0 : i32
    scf.if %2 {
      %cst_10 = arith.constant 0.000000e+00 : f32
      %12 = vector.broadcast %cst_10 : f32 to vector<128x128xf32>
      %c0_11 = arith.constant 0 : index
      %c0_12 = arith.constant 0 : index
      %13 = vector.load %arg6[%c0_11, %c0_12] : memref<128x128xf32, #tpu.memory_space<vmem>>, vector<128x128xf32>
      tpu.vector_store %arg6[%c0_11, %c0_12], %12 {strides = array<i32>} : memref<128x128xf32, #tpu.memory_space<vmem>>, vector<128x128xf32>,
    } else {
    }
    %c0 = arith.constant 0 : index
    %c0_1 = arith.constant 0 : index
    %3 = vector.load %arg6[%c0, %c0_1] : memref<128x128xf32, #tpu.memory_space<vmem>>, vector<128x128xf32>
    %c0_2 = arith.constant 0 : index
    %c0_3 = arith.constant 0 : index
    %4 = vector.load %arg2[%c0_2, %c0_3] : memref<128x640xbf16, #tpu.memory_space<vmem>>, vector<128x640xbf16>
    %c0_4 = arith.constant 0 : index
    %c0_5 = arith.constant 0 : index
    %5 = vector.load %arg3[%c0_4, %c0_5] : memref<640x128xbf16, #tpu.memory_space<vmem>>, vector<640x128xbf16>
    %cst = arith.constant dense<0.000000e+00> : vector<128x128xf32>
    %6 = tpu.matmul %4, %5, %cst {dimension_numbers = #tpu.dot_dimension_numbers<[1], [0], [0], [1], [0, 0, 1, 1], [], []>} : vector<128x640xbf16>, vector<640x128xbf16>, vector<128x128xf32> -> vector<128x128xf32>
    %7 = arith.addf %3, %6 : vector<128x128xf32>
    %c0_6 = arith.constant 0 : index
    %c0_7 = arith.constant 0 : index
    %8 = vector.load %arg6[%c0_6, %c0_7] : memref<128x128xf32, #tpu.memory_space<vmem>>, vector<128x128xf32>
    tpu.vector_store %arg6[%c0_6, %c0_7], %7 {strides = array<i32>} : memref<128x128xf32, #tpu.memory_space<vmem>>, vector<128x128xf32>,
    %c0_i32_8 = arith.constant 0 : i32
    %9 = arith.cmpi eq, %arg1, %c0_i32_8 : i32
    %10 = arith.extui %9 : i1 to i32
    %c0_i32_9 = arith.constant 0 : i32
    %11 = arith.cmpi ne, %10, %c0_i32_9 : i32
    scf.if %11 {
      %c0_10 = arith.constant 0 : index
      %c0_11 = arith.constant 0 : index
      %12 = vector.load %arg6[%c0_10, %c0_11] : memref<128x128xf32, #tpu.memory_space<vmem>>, vector<128x128xf32>
      %c0_12 = arith.constant 0 : index
      %c0_13 = arith.constant 0 : index
      %13 = vector.load %arg4[%c0_12, %c0_13] : memref<1x128xf32, #tpu.memory_space<vmem>>, vector<1x128xf32>
      %c0_14 = arith.constant 0 : index
      %c0_15 = arith.constant 0 : index
      %14 = vector.load %arg5[%c0_14, %c0_15] : memref<1x128xf32, #tpu.memory_space<vmem>>, vector<1x128xf32>
      %15 = vector.broadcast %13 : vector<1x128xf32> to vector<128x128xf32>
      %16 = arith.mulf %12, %15 : vector<128x128xf32>
      %17 = vector.broadcast %14 : vector<1x128xf32> to vector<128x128xf32>
      %18 = arith.addf %16, %17 : vector<128x128xf32>
      %cst_16 = arith.constant 0.000000e+00 : f32
      %19 = vector.broadcast %cst_16 : f32 to vector<128x128xf32>
      %20 = arith.maximumf %18, %19 : vector<128x128xf32>
      %c0_17 = arith.constant 0 : index
      %c0_18 = arith.constant 0 : index
      %21 = vector.load %arg6[%c0_17, %c0_18] : memref<128x128xf32, #tpu.memory_space<vmem>>, vector<128x128xf32>
      tpu.vector_store %arg6[%c0_17, %c0_18], %20 {strides = array<i32>} : memref<128x128xf32, #tpu.memory_space<vmem>>, vector<128x128xf32>,
    } else {
    }
    return
  }
  func.func @transform_0(%arg0: i32, %arg1: i32) -> (i32, i32) {
    %c0_i32 = arith.constant 0 : i32
    return %arg0, %arg1 : i32, i32
  }
  func.func @transform_1(%arg0: i32, %arg1: i32) -> (i32, i32) {
    %c0_i32 = arith.constant 0 : i32
    %c0_i32_0 = arith.constant 0 : i32
    return %arg1, %c0_i32 : i32, i32
  }
  func.func @transform_2(%arg0: i32, %arg1: i32) -> (i32, i32) {
    %c0_i32 = arith.constant 0 : i32
    %c0_i32_0 = arith.constant 0 : i32
    %c0_i32_1 = arith.constant 0 : i32
    return %c0_i32, %c0_i32_0 : i32, i32
  }
  func.func @transform_3(%arg0: i32, %arg1: i32) -> (i32, i32) {
    %c0_i32 = arith.constant 0 : i32
    %c0_i32_0 = arith.constant 0 : i32
    %c0_i32_1 = arith.constant 0 : i32
    return %c0_i32, %c0_i32_0 : i32, i32
  }
  func.func @transform_4(%arg0: i32, %arg1: i32) -> (i32, i32) {
    %c0_i32 = arith.constant 0 : i32
    %c0_i32_0 = arith.constant 0 : i32
    return %arg0, %c0_i32 : i32, i32
  }
}

module attributes {stable_mosaic.version = 11 : i64} {
  func.func @kernel(%arg0: i32, %arg1: i32, %arg2: memref<128x640xbf16, #tpu.memory_space<vmem>>, %arg3: memref<640x128xbf16, #tpu.memory_space<vmem>>, %arg4: memref<1x128xf32, #tpu.memory_space<vmem>>, %arg5: memref<1x128xf32, #tpu.memory_space<vmem>>, %arg6: memref<128x128xf32, #tpu.memory_space<vmem>>, %arg7: memref<128x128xf32, #tpu.memory_space<vmem>>) attributes {dimension_semantics = [#tpu.dimension_semantics<parallel>, #tpu.dimension_semantics<arbitrary>], iteration_bounds = array<i64: 1, 1>, scalar_prefetch = 0 : i64, scratch_operands = 0 : i64, tpu.core_type = #tpu.core_type<tc>, window_params = [{transform_indices = @transform_0, window_bounds = array<i64: 128, 640>}, {transform_indices = @transform_1, window_bounds = array<i64: 640, 128>}, {pipeline_mode = #tpu.pipeline_mode<synchronous>, transform_indices = @transform_2, window_bounds = array<i64: 1, 128>}, {pipeline_mode = #tpu.pipeline_mode<synchronous>, transform_indices = @transform_3, window_bounds = array<i64: 1, 128>}, {transform_indices = @transform_4, window_bounds = array<i64: 128, 128>}, {transform_indices = @transform_5, window_bounds = array<i64: 128, 128>}]} {
    %c0_i32 = arith.constant 0 : i32
    %0 = arith.cmpi eq, %arg1, %c0_i32 : i32
    %1 = arith.extui %0 : i1 to i32
    %c0_i32_0 = arith.constant 0 : i32
    %2 = arith.cmpi ne, %1, %c0_i32_0 : i32
    scf.if %2 {
      %cst_10 = arith.constant 0.000000e+00 : f32
      %12 = vector.broadcast %cst_10 : f32 to vector<128x128xf32>
      %c0_11 = arith.constant 0 : index
      %c0_12 = arith.constant 0 : index
      %13 = vector.load %arg7[%c0_11, %c0_12] : memref<128x128xf32, #tpu.memory_space<vmem>>, vector<128x128xf32>
      tpu.vector_store %arg7[%c0_11, %c0_12], %12 {strides = array<i32>} : memref<128x128xf32, #tpu.memory_space<vmem>>, vector<128x128xf32>,
    } else {
    }
    %c0 = arith.constant 0 : index
    %c0_1 = arith.constant 0 : index
    %3 = vector.load %arg7[%c0, %c0_1] : memref<128x128xf32, #tpu.memory_space<vmem>>, vector<128x128xf32>
    %c0_2 = arith.constant 0 : index
    %c0_3 = arith.constant 0 : index
    %4 = vector.load %arg2[%c0_2, %c0_3] : memref<128x640xbf16, #tpu.memory_space<vmem>>, vector<128x640xbf16>
    %c0_4 = arith.constant 0 : index
    %c0_5 = arith.constant 0 : index
    %5 = vector.load %arg3[%c0_4, %c0_5] : memref<640x128xbf16, #tpu.memory_space<vmem>>, vector<640x128xbf16>
    %cst = arith.constant dense<0.000000e+00> : vector<128x128xf32>
    %6 = tpu.matmul %4, %5, %cst {dimension_numbers = #tpu.dot_dimension_numbers<[1], [0], [0], [1], [0, 0, 1, 1], [], []>} : vector<128x640xbf16>, vector<640x128xbf16>, vector<128x128xf32> -> vector<128x128xf32>
    %7 = arith.addf %3, %6 : vector<128x128xf32>
    %c0_6 = arith.constant 0 : index
    %c0_7 = arith.constant 0 : index
    %8 = vector.load %arg7[%c0_6, %c0_7] : memref<128x128xf32, #tpu.memory_space<vmem>>, vector<128x128xf32>
    tpu.vector_store %arg7[%c0_6, %c0_7], %7 {strides = array<i32>} : memref<128x128xf32, #tpu.memory_space<vmem>>, vector<128x128xf32>,
    %c0_i32_8 = arith.constant 0 : i32
    %9 = arith.cmpi eq, %arg1, %c0_i32_8 : i32
    %10 = arith.extui %9 : i1 to i32
    %c0_i32_9 = arith.constant 0 : i32
    %11 = arith.cmpi ne, %10, %c0_i32_9 : i32
    scf.if %11 {
      %c0_10 = arith.constant 0 : index
      %c0_11 = arith.constant 0 : index
      %12 = vector.load %arg7[%c0_10, %c0_11] : memref<128x128xf32, #tpu.memory_space<vmem>>, vector<128x128xf32>
      %c0_12 = arith.constant 0 : index
      %c0_13 = arith.constant 0 : index
      %13 = vector.load %arg4[%c0_12, %c0_13] : memref<1x128xf32, #tpu.memory_space<vmem>>, vector<1x128xf32>
      %c0_14 = arith.constant 0 : index
      %c0_15 = arith.constant 0 : index
      %14 = vector.load %arg5[%c0_14, %c0_15] : memref<1x128xf32, #tpu.memory_space<vmem>>, vector<1x128xf32>
      %c0_16 = arith.constant 0 : index
      %c0_17 = arith.constant 0 : index
      %15 = vector.load %arg6[%c0_16, %c0_17] : memref<128x128xf32, #tpu.memory_space<vmem>>, vector<128x128xf32>
      %16 = vector.broadcast %13 : vector<1x128xf32> to vector<128x128xf32>
      %17 = arith.mulf %12, %16 : vector<128x128xf32>
      %18 = vector.broadcast %14 : vector<1x128xf32> to vector<128x128xf32>
      %19 = arith.addf %17, %18 : vector<128x128xf32>
      %20 = arith.addf %19, %15 : vector<128x128xf32>
      %cst_18 = arith.constant 0.000000e+00 : f32
      %21 = vector.broadcast %cst_18 : f32 to vector<128x128xf32>
      %22 = arith.maximumf %20, %21 : vector<128x128xf32>
      %c0_19 = arith.constant 0 : index
      %c0_20 = arith.constant 0 : index
      %23 = vector.load %arg7[%c0_19, %c0_20] : memref<128x128xf32, #tpu.memory_space<vmem>>, vector<128x128xf32>
      tpu.vector_store %arg7[%c0_19, %c0_20], %22 {strides = array<i32>} : memref<128x128xf32, #tpu.memory_space<vmem>>, vector<128x128xf32>,
    } else {
    }
    return
  }
  func.func @transform_0(%arg0: i32, %arg1: i32) -> (i32, i32) {
    %c0_i32 = arith.constant 0 : i32
    return %arg0, %arg1 : i32, i32
  }
  func.func @transform_1(%arg0: i32, %arg1: i32) -> (i32, i32) {
    %c0_i32 = arith.constant 0 : i32
    %c0_i32_0 = arith.constant 0 : i32
    return %arg1, %c0_i32 : i32, i32
  }
  func.func @transform_2(%arg0: i32, %arg1: i32) -> (i32, i32) {
    %c0_i32 = arith.constant 0 : i32
    %c0_i32_0 = arith.constant 0 : i32
    %c0_i32_1 = arith.constant 0 : i32
    return %c0_i32, %c0_i32_0 : i32, i32
  }
  func.func @transform_3(%arg0: i32, %arg1: i32) -> (i32, i32) {
    %c0_i32 = arith.constant 0 : i32
    %c0_i32_0 = arith.constant 0 : i32
    %c0_i32_1 = arith.constant 0 : i32
    return %c0_i32, %c0_i32_0 : i32, i32
  }
  func.func @transform_4(%arg0: i32, %arg1: i32) -> (i32, i32) {
    %c0_i32 = arith.constant 0 : i32
    %c0_i32_0 = arith.constant 0 : i32
    return %arg0, %c0_i32 : i32, i32
  }
  func.func @transform_5(%arg0: i32, %arg1: i32) -> (i32, i32) {
    %c0_i32 = arith.constant 0 : i32
    %c0_i32_0 = arith.constant 0 : i32
    return %arg0, %c0_i32 : i32, i32
  }
}

module attributes {stable_mosaic.version = 11 : i64} {
  func.func @kernel(%arg0: i32, %arg1: i32, %arg2: memref<32x640xbf16, #tpu.memory_space<vmem>>, %arg3: memref<640x128xbf16, #tpu.memory_space<vmem>>, %arg4: memref<1x128xf32, #tpu.memory_space<vmem>>, %arg5: memref<1x128xf32, #tpu.memory_space<vmem>>, %arg6: memref<32x128xf32, #tpu.memory_space<vmem>>) attributes {dimension_semantics = [#tpu.dimension_semantics<parallel>, #tpu.dimension_semantics<arbitrary>], iteration_bounds = array<i64: 1, 1>, scalar_prefetch = 0 : i64, scratch_operands = 0 : i64, tpu.core_type = #tpu.core_type<tc>, window_params = [{transform_indices = @transform_0, window_bounds = array<i64: 32, 640>}, {transform_indices = @transform_1, window_bounds = array<i64: 640, 128>}, {pipeline_mode = #tpu.pipeline_mode<synchronous>, transform_indices = @transform_2, window_bounds = array<i64: 1, 128>}, {pipeline_mode = #tpu.pipeline_mode<synchronous>, transform_indices = @transform_3, window_bounds = array<i64: 1, 128>}, {transform_indices = @transform_4, window_bounds = array<i64: 32, 128>}]} {
    %c0_i32 = arith.constant 0 : i32
    %0 = arith.cmpi eq, %arg1, %c0_i32 : i32
    %1 = arith.extui %0 : i1 to i32
    %c0_i32_0 = arith.constant 0 : i32
    %2 = arith.cmpi ne, %1, %c0_i32_0 : i32
    scf.if %2 {
      %cst_10 = arith.constant 0.000000e+00 : f32
      %12 = vector.broadcast %cst_10 : f32 to vector<32x128xf32>
      %c0_11 = arith.constant 0 : index
      %c0_12 = arith.constant 0 : index
      %13 = vector.load %arg6[%c0_11, %c0_12] : memref<32x128xf32, #tpu.memory_space<vmem>>, vector<32x128xf32>
      tpu.vector_store %arg6[%c0_11, %c0_12], %12 {strides = array<i32>} : memref<32x128xf32, #tpu.memory_space<vmem>>, vector<32x128xf32>,
    } else {
    }
    %c0 = arith.constant 0 : index
    %c0_1 = arith.constant 0 : index
    %3 = vector.load %arg6[%c0, %c0_1] : memref<32x128xf32, #tpu.memory_space<vmem>>, vector<32x128xf32>
    %c0_2 = arith.constant 0 : index
    %c0_3 = arith.constant 0 : index
    %4 = vector.load %arg2[%c0_2, %c0_3] : memref<32x640xbf16, #tpu.memory_space<vmem>>, vector<32x640xbf16>
    %c0_4 = arith.constant 0 : index
    %c0_5 = arith.constant 0 : index
    %5 = vector.load %arg3[%c0_4, %c0_5] : memref<640x128xbf16, #tpu.memory_space<vmem>>, vector<640x128xbf16>
    %cst = arith.constant dense<0.000000e+00> : vector<32x128xf32>
    %6 = tpu.matmul %4, %5, %cst {dimension_numbers = #tpu.dot_dimension_numbers<[1], [0], [0], [1], [0, 0, 1, 1], [], []>} : vector<32x640xbf16>, vector<640x128xbf16>, vector<32x128xf32> -> vector<32x128xf32>
    %7 = arith.addf %3, %6 : vector<32x128xf32>
    %c0_6 = arith.constant 0 : index
    %c0_7 = arith.constant 0 : index
    %8 = vector.load %arg6[%c0_6, %c0_7] : memref<32x128xf32, #tpu.memory_space<vmem>>, vector<32x128xf32>
    tpu.vector_store %arg6[%c0_6, %c0_7], %7 {strides = array<i32>} : memref<32x128xf32, #tpu.memory_space<vmem>>, vector<32x128xf32>,
    %c0_i32_8 = arith.constant 0 : i32
    %9 = arith.cmpi eq, %arg1, %c0_i32_8 : i32
    %10 = arith.extui %9 : i1 to i32
    %c0_i32_9 = arith.constant 0 : i32
    %11 = arith.cmpi ne, %10, %c0_i32_9 : i32
    scf.if %11 {
      %c0_10 = arith.constant 0 : index
      %c0_11 = arith.constant 0 : index
      %12 = vector.load %arg6[%c0_10, %c0_11] : memref<32x128xf32, #tpu.memory_space<vmem>>, vector<32x128xf32>
      %c0_12 = arith.constant 0 : index
      %c0_13 = arith.constant 0 : index
      %13 = vector.load %arg4[%c0_12, %c0_13] : memref<1x128xf32, #tpu.memory_space<vmem>>, vector<1x128xf32>
      %c0_14 = arith.constant 0 : index
      %c0_15 = arith.constant 0 : index
      %14 = vector.load %arg5[%c0_14, %c0_15] : memref<1x128xf32, #tpu.memory_space<vmem>>, vector<1x128xf32>
      %15 = vector.broadcast %13 : vector<1x128xf32> to vector<32x128xf32>
      %16 = arith.mulf %12, %15 : vector<32x128xf32>
      %17 = vector.broadcast %14 : vector<1x128xf32> to vector<32x128xf32>
      %18 = arith.addf %16, %17 : vector<32x128xf32>
      %cst_16 = arith.constant 0.000000e+00 : f32
      %19 = vector.broadcast %cst_16 : f32 to vector<32x128xf32>
      %20 = arith.maximumf %18, %19 : vector<32x128xf32>
      %c0_17 = arith.constant 0 : index
      %c0_18 = arith.constant 0 : index
      %21 = vector.load %arg6[%c0_17, %c0_18] : memref<32x128xf32, #tpu.memory_space<vmem>>, vector<32x128xf32>
      tpu.vector_store %arg6[%c0_17, %c0_18], %20 {strides = array<i32>} : memref<32x128xf32, #tpu.memory_space<vmem>>, vector<32x128xf32>,
    } else {
    }
    return
  }
  func.func @transform_0(%arg0: i32, %arg1: i32) -> (i32, i32) {
    %c0_i32 = arith.constant 0 : i32
    return %arg0, %arg1 : i32, i32
  }
  func.func @transform_1(%arg0: i32, %arg1: i32) -> (i32, i32) {
    %c0_i32 = arith.constant 0 : i32
    %c0_i32_0 = arith.constant 0 : i32
    return %arg1, %c0_i32 : i32, i32
  }
  func.func @transform_2(%arg0: i32, %arg1: i32) -> (i32, i32) {
    %c0_i32 = arith.constant 0 : i32
    %c0_i32_0 = arith.constant 0 : i32
    %c0_i32_1 = arith.constant 0 : i32
    return %c0_i32, %c0_i32_0 : i32, i32
  }
  func.func @transform_3(%arg0: i32, %arg1: i32) -> (i32, i32) {
    %c0_i32 = arith.constant 0 : i32
    %c0_i32_0 = arith.constant 0 : i32
    %c0_i32_1 = arith.constant 0 : i32
    return %c0_i32, %c0_i32_0 : i32, i32
  }
  func.func @transform_4(%arg0: i32, %arg1: i32) -> (i32, i32) {
    %c0_i32 = arith.constant 0 : i32
    %c0_i32_0 = arith.constant 0 : i32
    return %arg0, %c0_i32 : i32, i32
  }
}

module attributes {stable_mosaic.version = 11 : i64} {
  func.func @kernel(%arg0: i32, %arg1: i32, %arg2: memref<32x128xbf16, #tpu.memory_space<vmem>>, %arg3: memref<128x128xbf16, #tpu.memory_space<vmem>>, %arg4: memref<1x128xf32, #tpu.memory_space<vmem>>, %arg5: memref<1x128xf32, #tpu.memory_space<vmem>>, %arg6: memref<32x128xf32, #tpu.memory_space<vmem>>) attributes {dimension_semantics = [#tpu.dimension_semantics<parallel>, #tpu.dimension_semantics<arbitrary>], iteration_bounds = array<i64: 1, 1>, scalar_prefetch = 0 : i64, scratch_operands = 0 : i64, tpu.core_type = #tpu.core_type<tc>, window_params = [{transform_indices = @transform_0, window_bounds = array<i64: 32, 128>}, {transform_indices = @transform_1, window_bounds = array<i64: 128, 128>}, {pipeline_mode = #tpu.pipeline_mode<synchronous>, transform_indices = @transform_2, window_bounds = array<i64: 1, 128>}, {pipeline_mode = #tpu.pipeline_mode<synchronous>, transform_indices = @transform_3, window_bounds = array<i64: 1, 128>}, {transform_indices = @transform_4, window_bounds = array<i64: 32, 128>}]} {
    %c0_i32 = arith.constant 0 : i32
    %0 = arith.cmpi eq, %arg1, %c0_i32 : i32
    %1 = arith.extui %0 : i1 to i32
    %c0_i32_0 = arith.constant 0 : i32
    %2 = arith.cmpi ne, %1, %c0_i32_0 : i32
    scf.if %2 {
      %cst_10 = arith.constant 0.000000e+00 : f32
      %12 = vector.broadcast %cst_10 : f32 to vector<32x128xf32>
      %c0_11 = arith.constant 0 : index
      %c0_12 = arith.constant 0 : index
      %13 = vector.load %arg6[%c0_11, %c0_12] : memref<32x128xf32, #tpu.memory_space<vmem>>, vector<32x128xf32>
      tpu.vector_store %arg6[%c0_11, %c0_12], %12 {strides = array<i32>} : memref<32x128xf32, #tpu.memory_space<vmem>>, vector<32x128xf32>,
    } else {
    }
    %c0 = arith.constant 0 : index
    %c0_1 = arith.constant 0 : index
    %3 = vector.load %arg6[%c0, %c0_1] : memref<32x128xf32, #tpu.memory_space<vmem>>, vector<32x128xf32>
    %c0_2 = arith.constant 0 : index
    %c0_3 = arith.constant 0 : index
    %4 = vector.load %arg2[%c0_2, %c0_3] : memref<32x128xbf16, #tpu.memory_space<vmem>>, vector<32x128xbf16>
    %c0_4 = arith.constant 0 : index
    %c0_5 = arith.constant 0 : index
    %5 = vector.load %arg3[%c0_4, %c0_5] : memref<128x128xbf16, #tpu.memory_space<vmem>>, vector<128x128xbf16>
    %cst = arith.constant dense<0.000000e+00> : vector<32x128xf32>
    %6 = tpu.matmul %4, %5, %cst {dimension_numbers = #tpu.dot_dimension_numbers<[1], [0], [0], [1], [0, 0, 1, 1], [], []>} : vector<32x128xbf16>, vector<128x128xbf16>, vector<32x128xf32> -> vector<32x128xf32>
    %7 = arith.addf %3, %6 : vector<32x128xf32>
    %c0_6 = arith.constant 0 : index
    %c0_7 = arith.constant 0 : index
    %8 = vector.load %arg6[%c0_6, %c0_7] : memref<32x128xf32, #tpu.memory_space<vmem>>, vector<32x128xf32>
    tpu.vector_store %arg6[%c0_6, %c0_7], %7 {strides = array<i32>} : memref<32x128xf32, #tpu.memory_space<vmem>>, vector<32x128xf32>,
    %c0_i32_8 = arith.constant 0 : i32
    %9 = arith.cmpi eq, %arg1, %c0_i32_8 : i32
    %10 = arith.extui %9 : i1 to i32
    %c0_i32_9 = arith.constant 0 : i32
    %11 = arith.cmpi ne, %10, %c0_i32_9 : i32
    scf.if %11 {
      %c0_10 = arith.constant 0 : index
      %c0_11 = arith.constant 0 : index
      %12 = vector.load %arg6[%c0_10, %c0_11] : memref<32x128xf32, #tpu.memory_space<vmem>>, vector<32x128xf32>
      %c0_12 = arith.constant 0 : index
      %c0_13 = arith.constant 0 : index
      %13 = vector.load %arg4[%c0_12, %c0_13] : memref<1x128xf32, #tpu.memory_space<vmem>>, vector<1x128xf32>
      %c0_14 = arith.constant 0 : index
      %c0_15 = arith.constant 0 : index
      %14 = vector.load %arg5[%c0_14, %c0_15] : memref<1x128xf32, #tpu.memory_space<vmem>>, vector<1x128xf32>
      %15 = vector.broadcast %13 : vector<1x128xf32> to vector<32x128xf32>
      %16 = arith.mulf %12, %15 : vector<32x128xf32>
      %17 = vector.broadcast %14 : vector<1x128xf32> to vector<32x128xf32>
      %18 = arith.addf %16, %17 : vector<32x128xf32>
      %c0_16 = arith.constant 0 : index
      %c0_17 = arith.constant 0 : index
      %19 = vector.load %arg6[%c0_16, %c0_17] : memref<32x128xf32, #tpu.memory_space<vmem>>, vector<32x128xf32>
      tpu.vector_store %arg6[%c0_16, %c0_17], %18 {strides = array<i32>} : memref<32x128xf32, #tpu.memory_space<vmem>>, vector<32x128xf32>,
    } else {
    }
    return
  }
  func.func @transform_0(%arg0: i32, %arg1: i32) -> (i32, i32) {
    %c0_i32 = arith.constant 0 : i32
    return %arg0, %arg1 : i32, i32
  }
  func.func @transform_1(%arg0: i32, %arg1: i32) -> (i32, i32) {
    %c0_i32 = arith.constant 0 : i32
    %c0_i32_0 = arith.constant 0 : i32
    return %arg1, %c0_i32 : i32, i32
  }
  func.func @transform_2(%arg0: i32, %arg1: i32) -> (i32, i32) {
    %c0_i32 = arith.constant 0 : i32
    %c0_i32_0 = arith.constant 0 : i32
    %c0_i32_1 = arith.constant 0 : i32
    return %c0_i32, %c0_i32_0 : i32, i32
  }
  func.func @transform_3(%arg0: i32, %arg1: i32) -> (i32, i32) {
    %c0_i32 = arith.constant 0 : i32
    %c0_i32_0 = arith.constant 0 : i32
    %c0_i32_1 = arith.constant 0 : i32
    return %c0_i32, %c0_i32_0 : i32, i32
  }
  func.func @transform_4(%arg0: i32, %arg1: i32) -> (i32, i32) {
    %c0_i32 = arith.constant 0 : i32
    %c0_i32_0 = arith.constant 0 : i32
    return %arg0, %c0_i32 : i32, i32
  }
}

module attributes {stable_mosaic.version = 11 : i64} {
  func.func @kernel(%arg0: i32, %arg1: i32, %arg2: memref<32x384xbf16, #tpu.memory_space<vmem>>, %arg3: memref<384x128xbf16, #tpu.memory_space<vmem>>, %arg4: memref<1x128xf32, #tpu.memory_space<vmem>>, %arg5: memref<1x128xf32, #tpu.memory_space<vmem>>, %arg6: memref<32x128xf32, #tpu.memory_space<vmem>>, %arg7: memref<32x128xf32, #tpu.memory_space<vmem>>) attributes {dimension_semantics = [#tpu.dimension_semantics<parallel>, #tpu.dimension_semantics<arbitrary>], iteration_bounds = array<i64: 1, 3>, scalar_prefetch = 0 : i64, scratch_operands = 0 : i64, tpu.core_type = #tpu.core_type<tc>, window_params = [{transform_indices = @transform_0, window_bounds = array<i64: 32, 384>}, {transform_indices = @transform_1, window_bounds = array<i64: 384, 128>}, {pipeline_mode = #tpu.pipeline_mode<synchronous>, transform_indices = @transform_2, window_bounds = array<i64: 1, 128>}, {pipeline_mode = #tpu.pipeline_mode<synchronous>, transform_indices = @transform_3, window_bounds = array<i64: 1, 128>}, {transform_indices = @transform_4, window_bounds = array<i64: 32, 128>}, {transform_indices = @transform_5, window_bounds = array<i64: 32, 128>}]} {
    %c0_i32 = arith.constant 0 : i32
    %0 = arith.cmpi eq, %arg1, %c0_i32 : i32
    %1 = arith.extui %0 : i1 to i32
    %c0_i32_0 = arith.constant 0 : i32
    %2 = arith.cmpi ne, %1, %c0_i32_0 : i32
    scf.if %2 {
      %cst_9 = arith.constant 0.000000e+00 : f32
      %12 = vector.broadcast %cst_9 : f32 to vector<32x128xf32>
      %c0_10 = arith.constant 0 : index
      %c0_11 = arith.constant 0 : index
      %13 = vector.load %arg7[%c0_10, %c0_11] : memref<32x128xf32, #tpu.memory_space<vmem>>, vector<32x128xf32>
      tpu.vector_store %arg7[%c0_10, %c0_11], %12 {strides = array<i32>} : memref<32x128xf32, #tpu.memory_space<vmem>>, vector<32x128xf32>,
    } else {
    }
    %c0 = arith.constant 0 : index
    %c0_1 = arith.constant 0 : index
    %3 = vector.load %arg7[%c0, %c0_1] : memref<32x128xf32, #tpu.memory_space<vmem>>, vector<32x128xf32>
    %c0_2 = arith.constant 0 : index
    %c0_3 = arith.constant 0 : index
    %4 = vector.load %arg2[%c0_2, %c0_3] : memref<32x384xbf16, #tpu.memory_space<vmem>>, vector<32x384xbf16>
    %c0_4 = arith.constant 0 : index
    %c0_5 = arith.constant 0 : index
    %5 = vector.load %arg3[%c0_4, %c0_5] : memref<384x128xbf16, #tpu.memory_space<vmem>>, vector<384x128xbf16>
    %cst = arith.constant dense<0.000000e+00> : vector<32x128xf32>
    %6 = tpu.matmul %4, %5, %cst {dimension_numbers = #tpu.dot_dimension_numbers<[1], [0], [0], [1], [0, 0, 1, 1], [], []>} : vector<32x384xbf16>, vector<384x128xbf16>, vector<32x128xf32> -> vector<32x128xf32>
    %7 = arith.addf %3, %6 : vector<32x128xf32>
    %c0_6 = arith.constant 0 : index
    %c0_7 = arith.constant 0 : index
    %8 = vector.load %arg7[%c0_6, %c0_7] : memref<32x128xf32, #tpu.memory_space<vmem>>, vector<32x128xf32>
    tpu.vector_store %arg7[%c0_6, %c0_7], %7 {strides = array<i32>} : memref<32x128xf32, #tpu.memory_space<vmem>>, vector<32x128xf32>,
    %c2_i32 = arith.constant 2 : i32
    %9 = arith.cmpi eq, %arg1, %c2_i32 : i32
    %10 = arith.extui %9 : i1 to i32
    %c0_i32_8 = arith.constant 0 : i32
    %11 = arith.cmpi ne, %10, %c0_i32_8 : i32
    scf.if %11 {
      %c0_9 = arith.constant 0 : index
      %c0_10 = arith.constant 0 : index
      %12 = vector.load %arg7[%c0_9, %c0_10] : memref<32x128xf32, #tpu.memory_space<vmem>>, vector<32x128xf32>
      %c0_11 = arith.constant 0 : index
      %c0_12 = arith.constant 0 : index
      %13 = vector.load %arg4[%c0_11, %c0_12] : memref<1x128xf32, #tpu.memory_space<vmem>>, vector<1x128xf32>
      %c0_13 = arith.constant 0 : index
      %c0_14 = arith.constant 0 : index
      %14 = vector.load %arg5[%c0_13, %c0_14] : memref<1x128xf32, #tpu.memory_space<vmem>>, vector<1x128xf32>
      %c0_15 = arith.constant 0 : index
      %c0_16 = arith.constant 0 : index
      %15 = vector.load %arg6[%c0_15, %c0_16] : memref<32x128xf32, #tpu.memory_space<vmem>>, vector<32x128xf32>
      %16 = vector.broadcast %13 : vector<1x128xf32> to vector<32x128xf32>
      %17 = arith.mulf %12, %16 : vector<32x128xf32>
      %18 = vector.broadcast %14 : vector<1x128xf32> to vector<32x128xf32>
      %19 = arith.addf %17, %18 : vector<32x128xf32>
      %20 = arith.addf %19, %15 : vector<32x128xf32>
      %cst_17 = arith.constant 0.000000e+00 : f32
      %21 = vector.broadcast %cst_17 : f32 to vector<32x128xf32>
      %22 = arith.maximumf %20, %21 : vector<32x128xf32>
      %c0_18 = arith.constant 0 : index
      %c0_19 = arith.constant 0 : index
      %23 = vector.load %arg7[%c0_18, %c0_19] : memref<32x128xf32, #tpu.memory_space<vmem>>, vector<32x128xf32>
      tpu.vector_store %arg7[%c0_18, %c0_19], %22 {strides = array<i32>} : memref<32x128xf32, #tpu.memory_space<vmem>>, vector<32x128xf32>,
    } else {
    }
    return
  }
  func.func @transform_0(%arg0: i32, %arg1: i32) -> (i32, i32) {
    %c0_i32 = arith.constant 0 : i32
    return %arg0, %arg1 : i32, i32
  }
  func.func @transform_1(%arg0: i32, %arg1: i32) -> (i32, i32) {
    %c0_i32 = arith.constant 0 : i32
    %c0_i32_0 = arith.constant 0 : i32
    return %arg1, %c0_i32 : i32, i32
  }
  func.func @transform_2(%arg0: i32, %arg1: i32) -> (i32, i32) {
    %c0_i32 = arith.constant 0 : i32
    %c0_i32_0 = arith.constant 0 : i32
    %c0_i32_1 = arith.constant 0 : i32
    return %c0_i32, %c0_i32_0 : i32, i32
  }
  func.func @transform_3(%arg0: i32, %arg1: i32) -> (i32, i32) {
    %c0_i32 = arith.constant 0 : i32
    %c0_i32_0 = arith.constant 0 : i32
    %c0_i32_1 = arith.constant 0 : i32
    return %c0_i32, %c0_i32_0 : i32, i32
  }
  func.func @transform_4(%arg0: i32, %arg1: i32) -> (i32, i32) {
    %c0_i32 = arith.constant 0 : i32
    %c0_i32_0 = arith.constant 0 : i32
    return %arg0, %c0_i32 : i32, i32
  }
  func.func @transform_5(%arg0: i32, %arg1: i32) -> (i32, i32) {
    %c0_i32 = arith.constant 0 : i32
    %c0_i32_0 = arith.constant 0 : i32
    return %arg0, %c0_i32 : i32, i32
  }
}

module attributes {stable_mosaic.version = 11 : i64} {
  func.func @kernel(%arg0: i32, %arg1: i32, %arg2: memref<32x384xbf16, #tpu.memory_space<vmem>>, %arg3: memref<384x128xbf16, #tpu.memory_space<vmem>>, %arg4: memref<1x128xf32, #tpu.memory_space<vmem>>, %arg5: memref<1x128xf32, #tpu.memory_space<vmem>>, %arg6: memref<32x128xf32, #tpu.memory_space<vmem>>) attributes {dimension_semantics = [#tpu.dimension_semantics<parallel>, #tpu.dimension_semantics<arbitrary>], iteration_bounds = array<i64: 1, 3>, scalar_prefetch = 0 : i64, scratch_operands = 0 : i64, tpu.core_type = #tpu.core_type<tc>, window_params = [{transform_indices = @transform_0, window_bounds = array<i64: 32, 384>}, {transform_indices = @transform_1, window_bounds = array<i64: 384, 128>}, {pipeline_mode = #tpu.pipeline_mode<synchronous>, transform_indices = @transform_2, window_bounds = array<i64: 1, 128>}, {pipeline_mode = #tpu.pipeline_mode<synchronous>, transform_indices = @transform_3, window_bounds = array<i64: 1, 128>}, {transform_indices = @transform_4, window_bounds = array<i64: 32, 128>}]} {
    %c0_i32 = arith.constant 0 : i32
    %0 = arith.cmpi eq, %arg1, %c0_i32 : i32
    %1 = arith.extui %0 : i1 to i32
    %c0_i32_0 = arith.constant 0 : i32
    %2 = arith.cmpi ne, %1, %c0_i32_0 : i32
    scf.if %2 {
      %cst_9 = arith.constant 0.000000e+00 : f32
      %12 = vector.broadcast %cst_9 : f32 to vector<32x128xf32>
      %c0_10 = arith.constant 0 : index
      %c0_11 = arith.constant 0 : index
      %13 = vector.load %arg6[%c0_10, %c0_11] : memref<32x128xf32, #tpu.memory_space<vmem>>, vector<32x128xf32>
      tpu.vector_store %arg6[%c0_10, %c0_11], %12 {strides = array<i32>} : memref<32x128xf32, #tpu.memory_space<vmem>>, vector<32x128xf32>,
    } else {
    }
    %c0 = arith.constant 0 : index
    %c0_1 = arith.constant 0 : index
    %3 = vector.load %arg6[%c0, %c0_1] : memref<32x128xf32, #tpu.memory_space<vmem>>, vector<32x128xf32>
    %c0_2 = arith.constant 0 : index
    %c0_3 = arith.constant 0 : index
    %4 = vector.load %arg2[%c0_2, %c0_3] : memref<32x384xbf16, #tpu.memory_space<vmem>>, vector<32x384xbf16>
    %c0_4 = arith.constant 0 : index
    %c0_5 = arith.constant 0 : index
    %5 = vector.load %arg3[%c0_4, %c0_5] : memref<384x128xbf16, #tpu.memory_space<vmem>>, vector<384x128xbf16>
    %cst = arith.constant dense<0.000000e+00> : vector<32x128xf32>
    %6 = tpu.matmul %4, %5, %cst {dimension_numbers = #tpu.dot_dimension_numbers<[1], [0], [0], [1], [0, 0, 1, 1], [], []>} : vector<32x384xbf16>, vector<384x128xbf16>, vector<32x128xf32> -> vector<32x128xf32>
    %7 = arith.addf %3, %6 : vector<32x128xf32>
    %c0_6 = arith.constant 0 : index
    %c0_7 = arith.constant 0 : index
    %8 = vector.load %arg6[%c0_6, %c0_7] : memref<32x128xf32, #tpu.memory_space<vmem>>, vector<32x128xf32>
    tpu.vector_store %arg6[%c0_6, %c0_7], %7 {strides = array<i32>} : memref<32x128xf32, #tpu.memory_space<vmem>>, vector<32x128xf32>,
    %c2_i32 = arith.constant 2 : i32
    %9 = arith.cmpi eq, %arg1, %c2_i32 : i32
    %10 = arith.extui %9 : i1 to i32
    %c0_i32_8 = arith.constant 0 : i32
    %11 = arith.cmpi ne, %10, %c0_i32_8 : i32
    scf.if %11 {
      %c0_9 = arith.constant 0 : index
      %c0_10 = arith.constant 0 : index
      %12 = vector.load %arg6[%c0_9, %c0_10] : memref<32x128xf32, #tpu.memory_space<vmem>>, vector<32x128xf32>
      %c0_11 = arith.constant 0 : index
      %c0_12 = arith.constant 0 : index
      %13 = vector.load %arg4[%c0_11, %c0_12] : memref<1x128xf32, #tpu.memory_space<vmem>>, vector<1x128xf32>
      %c0_13 = arith.constant 0 : index
      %c0_14 = arith.constant 0 : index
      %14 = vector.load %arg5[%c0_13, %c0_14] : memref<1x128xf32, #tpu.memory_space<vmem>>, vector<1x128xf32>
      %15 = vector.broadcast %13 : vector<1x128xf32> to vector<32x128xf32>
      %16 = arith.mulf %12, %15 : vector<32x128xf32>
      %17 = vector.broadcast %14 : vector<1x128xf32> to vector<32x128xf32>
      %18 = arith.addf %16, %17 : vector<32x128xf32>
      %cst_15 = arith.constant 0.000000e+00 : f32
      %19 = vector.broadcast %cst_15 : f32 to vector<32x128xf32>
      %20 = arith.maximumf %18, %19 : vector<32x128xf32>
      %c0_16 = arith.constant 0 : index
      %c0_17 = arith.constant 0 : index
      %21 = vector.load %arg6[%c0_16, %c0_17] : memref<32x128xf32, #tpu.memory_space<vmem>>, vector<32x128xf32>
      tpu.vector_store %arg6[%c0_16, %c0_17], %20 {strides = array<i32>} : memref<32x128xf32, #tpu.memory_space<vmem>>, vector<32x128xf32>,
    } else {
    }
    return
  }
  func.func @transform_0(%arg0: i32, %arg1: i32) -> (i32, i32) {
    %c0_i32 = arith.constant 0 : i32
    return %arg0, %arg1 : i32, i32
  }
  func.func @transform_1(%arg0: i32, %arg1: i32) -> (i32, i32) {
    %c0_i32 = arith.constant 0 : i32
    %c0_i32_0 = arith.constant 0 : i32
    return %arg1, %c0_i32 : i32, i32
  }
  func.func @transform_2(%arg0: i32, %arg1: i32) -> (i32, i32) {
    %c0_i32 = arith.constant 0 : i32
    %c0_i32_0 = arith.constant 0 : i32
    %c0_i32_1 = arith.constant 0 : i32
    return %c0_i32, %c0_i32_0 : i32, i32
  }
  func.func @transform_3(%arg0: i32, %arg1: i32) -> (i32, i32) {
    %c0_i32 = arith.constant 0 : i32
    %c0_i32_0 = arith.constant 0 : i32
    %c0_i32_1 = arith.constant 0 : i32
    return %c0_i32, %c0_i32_0 : i32, i32
  }
  func.func @transform_4(%arg0: i32, %arg1: i32) -> (i32, i32) {
    %c0_i32 = arith.constant 0 : i32
    %c0_i32_0 = arith.constant 0 : i32
    return %arg0, %c0_i32 : i32, i32
  }
}

module attributes {stable_mosaic.version = 11 : i64} {
  func.func @kernel(%arg0: i32, %arg1: i32, %arg2: memref<16x384xbf16, #tpu.memory_space<vmem>>, %arg3: memref<384x256xbf16, #tpu.memory_space<vmem>>, %arg4: memref<1x256xf32, #tpu.memory_space<vmem>>, %arg5: memref<1x256xf32, #tpu.memory_space<vmem>>, %arg6: memref<16x256xf32, #tpu.memory_space<vmem>>) attributes {dimension_semantics = [#tpu.dimension_semantics<parallel>, #tpu.dimension_semantics<arbitrary>], iteration_bounds = array<i64: 1, 3>, scalar_prefetch = 0 : i64, scratch_operands = 0 : i64, tpu.core_type = #tpu.core_type<tc>, window_params = [{transform_indices = @transform_0, window_bounds = array<i64: 16, 384>}, {transform_indices = @transform_1, window_bounds = array<i64: 384, 256>}, {pipeline_mode = #tpu.pipeline_mode<synchronous>, transform_indices = @transform_2, window_bounds = array<i64: 1, 256>}, {pipeline_mode = #tpu.pipeline_mode<synchronous>, transform_indices = @transform_3, window_bounds = array<i64: 1, 256>}, {transform_indices = @transform_4, window_bounds = array<i64: 16, 256>}]} {
    %c0_i32 = arith.constant 0 : i32
    %0 = arith.cmpi eq, %arg1, %c0_i32 : i32
    %1 = arith.extui %0 : i1 to i32
    %c0_i32_0 = arith.constant 0 : i32
    %2 = arith.cmpi ne, %1, %c0_i32_0 : i32
    scf.if %2 {
      %cst_9 = arith.constant 0.000000e+00 : f32
      %12 = vector.broadcast %cst_9 : f32 to vector<16x256xf32>
      %c0_10 = arith.constant 0 : index
      %c0_11 = arith.constant 0 : index
      %13 = vector.load %arg6[%c0_10, %c0_11] : memref<16x256xf32, #tpu.memory_space<vmem>>, vector<16x256xf32>
      tpu.vector_store %arg6[%c0_10, %c0_11], %12 {strides = array<i32>} : memref<16x256xf32, #tpu.memory_space<vmem>>, vector<16x256xf32>,
    } else {
    }
    %c0 = arith.constant 0 : index
    %c0_1 = arith.constant 0 : index
    %3 = vector.load %arg6[%c0, %c0_1] : memref<16x256xf32, #tpu.memory_space<vmem>>, vector<16x256xf32>
    %c0_2 = arith.constant 0 : index
    %c0_3 = arith.constant 0 : index
    %4 = vector.load %arg2[%c0_2, %c0_3] : memref<16x384xbf16, #tpu.memory_space<vmem>>, vector<16x384xbf16>
    %c0_4 = arith.constant 0 : index
    %c0_5 = arith.constant 0 : index
    %5 = vector.load %arg3[%c0_4, %c0_5] : memref<384x256xbf16, #tpu.memory_space<vmem>>, vector<384x256xbf16>
    %cst = arith.constant dense<0.000000e+00> : vector<16x256xf32>
    %6 = tpu.matmul %4, %5, %cst {dimension_numbers = #tpu.dot_dimension_numbers<[1], [0], [0], [1], [0, 0, 1, 1], [], []>} : vector<16x384xbf16>, vector<384x256xbf16>, vector<16x256xf32> -> vector<16x256xf32>
    %7 = arith.addf %3, %6 : vector<16x256xf32>
    %c0_6 = arith.constant 0 : index
    %c0_7 = arith.constant 0 : index
    %8 = vector.load %arg6[%c0_6, %c0_7] : memref<16x256xf32, #tpu.memory_space<vmem>>, vector<16x256xf32>
    tpu.vector_store %arg6[%c0_6, %c0_7], %7 {strides = array<i32>} : memref<16x256xf32, #tpu.memory_space<vmem>>, vector<16x256xf32>,
    %c2_i32 = arith.constant 2 : i32
    %9 = arith.cmpi eq, %arg1, %c2_i32 : i32
    %10 = arith.extui %9 : i1 to i32
    %c0_i32_8 = arith.constant 0 : i32
    %11 = arith.cmpi ne, %10, %c0_i32_8 : i32
    scf.if %11 {
      %c0_9 = arith.constant 0 : index
      %c0_10 = arith.constant 0 : index
      %12 = vector.load %arg6[%c0_9, %c0_10] : memref<16x256xf32, #tpu.memory_space<vmem>>, vector<16x256xf32>
      %c0_11 = arith.constant 0 : index
      %c0_12 = arith.constant 0 : index
      %13 = vector.load %arg4[%c0_11, %c0_12] : memref<1x256xf32, #tpu.memory_space<vmem>>, vector<1x256xf32>
      %c0_13 = arith.constant 0 : index
      %c0_14 = arith.constant 0 : index
      %14 = vector.load %arg5[%c0_13, %c0_14] : memref<1x256xf32, #tpu.memory_space<vmem>>, vector<1x256xf32>
      %15 = vector.broadcast %13 : vector<1x256xf32> to vector<16x256xf32>
      %16 = arith.mulf %12, %15 : vector<16x256xf32>
      %17 = vector.broadcast %14 : vector<1x256xf32> to vector<16x256xf32>
      %18 = arith.addf %16, %17 : vector<16x256xf32>
      %cst_15 = arith.constant 0.000000e+00 : f32
      %19 = vector.broadcast %cst_15 : f32 to vector<16x256xf32>
      %20 = arith.maximumf %18, %19 : vector<16x256xf32>
      %c0_16 = arith.constant 0 : index
      %c0_17 = arith.constant 0 : index
      %21 = vector.load %arg6[%c0_16, %c0_17] : memref<16x256xf32, #tpu.memory_space<vmem>>, vector<16x256xf32>
      tpu.vector_store %arg6[%c0_16, %c0_17], %20 {strides = array<i32>} : memref<16x256xf32, #tpu.memory_space<vmem>>, vector<16x256xf32>,
    } else {
    }
    return
  }
  func.func @transform_0(%arg0: i32, %arg1: i32) -> (i32, i32) {
    %c0_i32 = arith.constant 0 : i32
    return %arg0, %arg1 : i32, i32
  }
  func.func @transform_1(%arg0: i32, %arg1: i32) -> (i32, i32) {
    %c0_i32 = arith.constant 0 : i32
    %c0_i32_0 = arith.constant 0 : i32
    return %arg1, %c0_i32 : i32, i32
  }
  func.func @transform_2(%arg0: i32, %arg1: i32) -> (i32, i32) {
    %c0_i32 = arith.constant 0 : i32
    %c0_i32_0 = arith.constant 0 : i32
    %c0_i32_1 = arith.constant 0 : i32
    return %c0_i32, %c0_i32_0 : i32, i32
  }
  func.func @transform_3(%arg0: i32, %arg1: i32) -> (i32, i32) {
    %c0_i32 = arith.constant 0 : i32
    %c0_i32_0 = arith.constant 0 : i32
    %c0_i32_1 = arith.constant 0 : i32
    return %c0_i32, %c0_i32_0 : i32, i32
  }
  func.func @transform_4(%arg0: i32, %arg1: i32) -> (i32, i32) {
    %c0_i32 = arith.constant 0 : i32
    %c0_i32_0 = arith.constant 0 : i32
    return %arg0, %c0_i32 : i32, i32
  }
}

module attributes {stable_mosaic.version = 11 : i64} {
  func.func @kernel(%arg0: i32, %arg1: i32, %arg2: memref<16x768xbf16, #tpu.memory_space<vmem>>, %arg3: memref<768x256xbf16, #tpu.memory_space<vmem>>, %arg4: memref<1x256xf32, #tpu.memory_space<vmem>>, %arg5: memref<1x256xf32, #tpu.memory_space<vmem>>, %arg6: memref<16x256xf32, #tpu.memory_space<vmem>>, %arg7: memref<16x256xf32, #tpu.memory_space<vmem>>) attributes {dimension_semantics = [#tpu.dimension_semantics<parallel>, #tpu.dimension_semantics<arbitrary>], iteration_bounds = array<i64: 1, 3>, scalar_prefetch = 0 : i64, scratch_operands = 0 : i64, tpu.core_type = #tpu.core_type<tc>, window_params = [{transform_indices = @transform_0, window_bounds = array<i64: 16, 768>}, {transform_indices = @transform_1, window_bounds = array<i64: 768, 256>}, {pipeline_mode = #tpu.pipeline_mode<synchronous>, transform_indices = @transform_2, window_bounds = array<i64: 1, 256>}, {pipeline_mode = #tpu.pipeline_mode<synchronous>, transform_indices = @transform_3, window_bounds = array<i64: 1, 256>}, {transform_indices = @transform_4, window_bounds = array<i64: 16, 256>}, {transform_indices = @transform_5, window_bounds = array<i64: 16, 256>}]} {
    %c0_i32 = arith.constant 0 : i32
    %0 = arith.cmpi eq, %arg1, %c0_i32 : i32
    %1 = arith.extui %0 : i1 to i32
    %c0_i32_0 = arith.constant 0 : i32
    %2 = arith.cmpi ne, %1, %c0_i32_0 : i32
    scf.if %2 {
      %cst_9 = arith.constant 0.000000e+00 : f32
      %12 = vector.broadcast %cst_9 : f32 to vector<16x256xf32>
      %c0_10 = arith.constant 0 : index
      %c0_11 = arith.constant 0 : index
      %13 = vector.load %arg7[%c0_10, %c0_11] : memref<16x256xf32, #tpu.memory_space<vmem>>, vector<16x256xf32>
      tpu.vector_store %arg7[%c0_10, %c0_11], %12 {strides = array<i32>} : memref<16x256xf32, #tpu.memory_space<vmem>>, vector<16x256xf32>,
    } else {
    }
    %c0 = arith.constant 0 : index
    %c0_1 = arith.constant 0 : index
    %3 = vector.load %arg7[%c0, %c0_1] : memref<16x256xf32, #tpu.memory_space<vmem>>, vector<16x256xf32>
    %c0_2 = arith.constant 0 : index
    %c0_3 = arith.constant 0 : index
    %4 = vector.load %arg2[%c0_2, %c0_3] : memref<16x768xbf16, #tpu.memory_space<vmem>>, vector<16x768xbf16>
    %c0_4 = arith.constant 0 : index
    %c0_5 = arith.constant 0 : index
    %5 = vector.load %arg3[%c0_4, %c0_5] : memref<768x256xbf16, #tpu.memory_space<vmem>>, vector<768x256xbf16>
    %cst = arith.constant dense<0.000000e+00> : vector<16x256xf32>
    %6 = tpu.matmul %4, %5, %cst {dimension_numbers = #tpu.dot_dimension_numbers<[1], [0], [0], [1], [0, 0, 1, 1], [], []>} : vector<16x768xbf16>, vector<768x256xbf16>, vector<16x256xf32> -> vector<16x256xf32>
    %7 = arith.addf %3, %6 : vector<16x256xf32>
    %c0_6 = arith.constant 0 : index
    %c0_7 = arith.constant 0 : index
    %8 = vector.load %arg7[%c0_6, %c0_7] : memref<16x256xf32, #tpu.memory_space<vmem>>, vector<16x256xf32>
    tpu.vector_store %arg7[%c0_6, %c0_7], %7 {strides = array<i32>} : memref<16x256xf32, #tpu.memory_space<vmem>>, vector<16x256xf32>,
    %c2_i32 = arith.constant 2 : i32
    %9 = arith.cmpi eq, %arg1, %c2_i32 : i32
    %10 = arith.extui %9 : i1 to i32
    %c0_i32_8 = arith.constant 0 : i32
    %11 = arith.cmpi ne, %10, %c0_i32_8 : i32
    scf.if %11 {
      %c0_9 = arith.constant 0 : index
      %c0_10 = arith.constant 0 : index
      %12 = vector.load %arg7[%c0_9, %c0_10] : memref<16x256xf32, #tpu.memory_space<vmem>>, vector<16x256xf32>
      %c0_11 = arith.constant 0 : index
      %c0_12 = arith.constant 0 : index
      %13 = vector.load %arg4[%c0_11, %c0_12] : memref<1x256xf32, #tpu.memory_space<vmem>>, vector<1x256xf32>
      %c0_13 = arith.constant 0 : index
      %c0_14 = arith.constant 0 : index
      %14 = vector.load %arg5[%c0_13, %c0_14] : memref<1x256xf32, #tpu.memory_space<vmem>>, vector<1x256xf32>
      %c0_15 = arith.constant 0 : index
      %c0_16 = arith.constant 0 : index
      %15 = vector.load %arg6[%c0_15, %c0_16] : memref<16x256xf32, #tpu.memory_space<vmem>>, vector<16x256xf32>
      %16 = vector.broadcast %13 : vector<1x256xf32> to vector<16x256xf32>
      %17 = arith.mulf %12, %16 : vector<16x256xf32>
      %18 = vector.broadcast %14 : vector<1x256xf32> to vector<16x256xf32>
      %19 = arith.addf %17, %18 : vector<16x256xf32>
      %20 = arith.addf %19, %15 : vector<16x256xf32>
      %cst_17 = arith.constant 0.000000e+00 : f32
      %21 = vector.broadcast %cst_17 : f32 to vector<16x256xf32>
      %22 = arith.maximumf %20, %21 : vector<16x256xf32>
      %c0_18 = arith.constant 0 : index
      %c0_19 = arith.constant 0 : index
      %23 = vector.load %arg7[%c0_18, %c0_19] : memref<16x256xf32, #tpu.memory_space<vmem>>, vector<16x256xf32>
      tpu.vector_store %arg7[%c0_18, %c0_19], %22 {strides = array<i32>} : memref<16x256xf32, #tpu.memory_space<vmem>>, vector<16x256xf32>,
    } else {
    }
    return
  }
  func.func @transform_0(%arg0: i32, %arg1: i32) -> (i32, i32) {
    %c0_i32 = arith.constant 0 : i32
    return %arg0, %arg1 : i32, i32
  }
  func.func @transform_1(%arg0: i32, %arg1: i32) -> (i32, i32) {
    %c0_i32 = arith.constant 0 : i32
    %c0_i32_0 = arith.constant 0 : i32
    return %arg1, %c0_i32 : i32, i32
  }
  func.func @transform_2(%arg0: i32, %arg1: i32) -> (i32, i32) {
    %c0_i32 = arith.constant 0 : i32
    %c0_i32_0 = arith.constant 0 : i32
    %c0_i32_1 = arith.constant 0 : i32
    return %c0_i32, %c0_i32_0 : i32, i32
  }
  func.func @transform_3(%arg0: i32, %arg1: i32) -> (i32, i32) {
    %c0_i32 = arith.constant 0 : i32
    %c0_i32_0 = arith.constant 0 : i32
    %c0_i32_1 = arith.constant 0 : i32
    return %c0_i32, %c0_i32_0 : i32, i32
  }
  func.func @transform_4(%arg0: i32, %arg1: i32) -> (i32, i32) {
    %c0_i32 = arith.constant 0 : i32
    %c0_i32_0 = arith.constant 0 : i32
    return %arg0, %c0_i32 : i32, i32
  }
  func.func @transform_5(%arg0: i32, %arg1: i32) -> (i32, i32) {
    %c0_i32 = arith.constant 0 : i32
    %c0_i32_0 = arith.constant 0 : i32
    return %arg0, %c0_i32 : i32, i32
  }
}

module attributes {stable_mosaic.version = 11 : i64} {
  func.func @kernel(%arg0: i32, %arg1: i32, %arg2: memref<16x128xbf16, #tpu.memory_space<vmem>>, %arg3: memref<128x256xbf16, #tpu.memory_space<vmem>>, %arg4: memref<1x256xf32, #tpu.memory_space<vmem>>, %arg5: memref<1x256xf32, #tpu.memory_space<vmem>>, %arg6: memref<16x256xf32, #tpu.memory_space<vmem>>) attributes {dimension_semantics = [#tpu.dimension_semantics<parallel>, #tpu.dimension_semantics<arbitrary>], iteration_bounds = array<i64: 1, 1>, scalar_prefetch = 0 : i64, scratch_operands = 0 : i64, tpu.core_type = #tpu.core_type<tc>, window_params = [{transform_indices = @transform_0, window_bounds = array<i64: 16, 128>}, {transform_indices = @transform_1, window_bounds = array<i64: 128, 256>}, {pipeline_mode = #tpu.pipeline_mode<synchronous>, transform_indices = @transform_2, window_bounds = array<i64: 1, 256>}, {pipeline_mode = #tpu.pipeline_mode<synchronous>, transform_indices = @transform_3, window_bounds = array<i64: 1, 256>}, {transform_indices = @transform_4, window_bounds = array<i64: 16, 256>}]} {
    %c0_i32 = arith.constant 0 : i32
    %0 = arith.cmpi eq, %arg1, %c0_i32 : i32
    %1 = arith.extui %0 : i1 to i32
    %c0_i32_0 = arith.constant 0 : i32
    %2 = arith.cmpi ne, %1, %c0_i32_0 : i32
    scf.if %2 {
      %cst_10 = arith.constant 0.000000e+00 : f32
      %12 = vector.broadcast %cst_10 : f32 to vector<16x256xf32>
      %c0_11 = arith.constant 0 : index
      %c0_12 = arith.constant 0 : index
      %13 = vector.load %arg6[%c0_11, %c0_12] : memref<16x256xf32, #tpu.memory_space<vmem>>, vector<16x256xf32>
      tpu.vector_store %arg6[%c0_11, %c0_12], %12 {strides = array<i32>} : memref<16x256xf32, #tpu.memory_space<vmem>>, vector<16x256xf32>,
    } else {
    }
    %c0 = arith.constant 0 : index
    %c0_1 = arith.constant 0 : index
    %3 = vector.load %arg6[%c0, %c0_1] : memref<16x256xf32, #tpu.memory_space<vmem>>, vector<16x256xf32>
    %c0_2 = arith.constant 0 : index
    %c0_3 = arith.constant 0 : index
    %4 = vector.load %arg2[%c0_2, %c0_3] : memref<16x128xbf16, #tpu.memory_space<vmem>>, vector<16x128xbf16>
    %c0_4 = arith.constant 0 : index
    %c0_5 = arith.constant 0 : index
    %5 = vector.load %arg3[%c0_4, %c0_5] : memref<128x256xbf16, #tpu.memory_space<vmem>>, vector<128x256xbf16>
    %cst = arith.constant dense<0.000000e+00> : vector<16x256xf32>
    %6 = tpu.matmul %4, %5, %cst {dimension_numbers = #tpu.dot_dimension_numbers<[1], [0], [0], [1], [0, 0, 1, 1], [], []>} : vector<16x128xbf16>, vector<128x256xbf16>, vector<16x256xf32> -> vector<16x256xf32>
    %7 = arith.addf %3, %6 : vector<16x256xf32>
    %c0_6 = arith.constant 0 : index
    %c0_7 = arith.constant 0 : index
    %8 = vector.load %arg6[%c0_6, %c0_7] : memref<16x256xf32, #tpu.memory_space<vmem>>, vector<16x256xf32>
    tpu.vector_store %arg6[%c0_6, %c0_7], %7 {strides = array<i32>} : memref<16x256xf32, #tpu.memory_space<vmem>>, vector<16x256xf32>,
    %c0_i32_8 = arith.constant 0 : i32
    %9 = arith.cmpi eq, %arg1, %c0_i32_8 : i32
    %10 = arith.extui %9 : i1 to i32
    %c0_i32_9 = arith.constant 0 : i32
    %11 = arith.cmpi ne, %10, %c0_i32_9 : i32
    scf.if %11 {
      %c0_10 = arith.constant 0 : index
      %c0_11 = arith.constant 0 : index
      %12 = vector.load %arg6[%c0_10, %c0_11] : memref<16x256xf32, #tpu.memory_space<vmem>>, vector<16x256xf32>
      %c0_12 = arith.constant 0 : index
      %c0_13 = arith.constant 0 : index
      %13 = vector.load %arg4[%c0_12, %c0_13] : memref<1x256xf32, #tpu.memory_space<vmem>>, vector<1x256xf32>
      %c0_14 = arith.constant 0 : index
      %c0_15 = arith.constant 0 : index
      %14 = vector.load %arg5[%c0_14, %c0_15] : memref<1x256xf32, #tpu.memory_space<vmem>>, vector<1x256xf32>
      %15 = vector.broadcast %13 : vector<1x256xf32> to vector<16x256xf32>
      %16 = arith.mulf %12, %15 : vector<16x256xf32>
      %17 = vector.broadcast %14 : vector<1x256xf32> to vector<16x256xf32>
      %18 = arith.addf %16, %17 : vector<16x256xf32>
      %c0_16 = arith.constant 0 : index
      %c0_17 = arith.constant 0 : index
      %19 = vector.load %arg6[%c0_16, %c0_17] : memref<16x256xf32, #tpu.memory_space<vmem>>, vector<16x256xf32>
      tpu.vector_store %arg6[%c0_16, %c0_17], %18 {strides = array<i32>} : memref<16x256xf32, #tpu.memory_space<vmem>>, vector<16x256xf32>,
    } else {
    }
    return
  }
  func.func @transform_0(%arg0: i32, %arg1: i32) -> (i32, i32) {
    %c0_i32 = arith.constant 0 : i32
    return %arg0, %arg1 : i32, i32
  }
  func.func @transform_1(%arg0: i32, %arg1: i32) -> (i32, i32) {
    %c0_i32 = arith.constant 0 : i32
    %c0_i32_0 = arith.constant 0 : i32
    return %arg1, %c0_i32 : i32, i32
  }
  func.func @transform_2(%arg0: i32, %arg1: i32) -> (i32, i32) {
    %c0_i32 = arith.constant 0 : i32
    %c0_i32_0 = arith.constant 0 : i32
    %c0_i32_1 = arith.constant 0 : i32
    return %c0_i32, %c0_i32_0 : i32, i32
  }
  func.func @transform_3(%arg0: i32, %arg1: i32) -> (i32, i32) {
    %c0_i32 = arith.constant 0 : i32
    %c0_i32_0 = arith.constant 0 : i32
    %c0_i32_1 = arith.constant 0 : i32
    return %c0_i32, %c0_i32_0 : i32, i32
  }
  func.func @transform_4(%arg0: i32, %arg1: i32) -> (i32, i32) {
    %c0_i32 = arith.constant 0 : i32
    %c0_i32_0 = arith.constant 0 : i32
    return %arg0, %c0_i32 : i32, i32
  }
}

module attributes {stable_mosaic.version = 11 : i64} {
  func.func @kernel(%arg0: i32, %arg1: i32, %arg2: memref<16x768xbf16, #tpu.memory_space<vmem>>, %arg3: memref<768x256xbf16, #tpu.memory_space<vmem>>, %arg4: memref<1x256xf32, #tpu.memory_space<vmem>>, %arg5: memref<1x256xf32, #tpu.memory_space<vmem>>, %arg6: memref<16x256xf32, #tpu.memory_space<vmem>>) attributes {dimension_semantics = [#tpu.dimension_semantics<parallel>, #tpu.dimension_semantics<arbitrary>], iteration_bounds = array<i64: 1, 3>, scalar_prefetch = 0 : i64, scratch_operands = 0 : i64, tpu.core_type = #tpu.core_type<tc>, window_params = [{transform_indices = @transform_0, window_bounds = array<i64: 16, 768>}, {transform_indices = @transform_1, window_bounds = array<i64: 768, 256>}, {pipeline_mode = #tpu.pipeline_mode<synchronous>, transform_indices = @transform_2, window_bounds = array<i64: 1, 256>}, {pipeline_mode = #tpu.pipeline_mode<synchronous>, transform_indices = @transform_3, window_bounds = array<i64: 1, 256>}, {transform_indices = @transform_4, window_bounds = array<i64: 16, 256>}]} {
    %c0_i32 = arith.constant 0 : i32
    %0 = arith.cmpi eq, %arg1, %c0_i32 : i32
    %1 = arith.extui %0 : i1 to i32
    %c0_i32_0 = arith.constant 0 : i32
    %2 = arith.cmpi ne, %1, %c0_i32_0 : i32
    scf.if %2 {
      %cst_9 = arith.constant 0.000000e+00 : f32
      %12 = vector.broadcast %cst_9 : f32 to vector<16x256xf32>
      %c0_10 = arith.constant 0 : index
      %c0_11 = arith.constant 0 : index
      %13 = vector.load %arg6[%c0_10, %c0_11] : memref<16x256xf32, #tpu.memory_space<vmem>>, vector<16x256xf32>
      tpu.vector_store %arg6[%c0_10, %c0_11], %12 {strides = array<i32>} : memref<16x256xf32, #tpu.memory_space<vmem>>, vector<16x256xf32>,
    } else {
    }
    %c0 = arith.constant 0 : index
    %c0_1 = arith.constant 0 : index
    %3 = vector.load %arg6[%c0, %c0_1] : memref<16x256xf32, #tpu.memory_space<vmem>>, vector<16x256xf32>
    %c0_2 = arith.constant 0 : index
    %c0_3 = arith.constant 0 : index
    %4 = vector.load %arg2[%c0_2, %c0_3] : memref<16x768xbf16, #tpu.memory_space<vmem>>, vector<16x768xbf16>
    %c0_4 = arith.constant 0 : index
    %c0_5 = arith.constant 0 : index
    %5 = vector.load %arg3[%c0_4, %c0_5] : memref<768x256xbf16, #tpu.memory_space<vmem>>, vector<768x256xbf16>
    %cst = arith.constant dense<0.000000e+00> : vector<16x256xf32>
    %6 = tpu.matmul %4, %5, %cst {dimension_numbers = #tpu.dot_dimension_numbers<[1], [0], [0], [1], [0, 0, 1, 1], [], []>} : vector<16x768xbf16>, vector<768x256xbf16>, vector<16x256xf32> -> vector<16x256xf32>
    %7 = arith.addf %3, %6 : vector<16x256xf32>
    %c0_6 = arith.constant 0 : index
    %c0_7 = arith.constant 0 : index
    %8 = vector.load %arg6[%c0_6, %c0_7] : memref<16x256xf32, #tpu.memory_space<vmem>>, vector<16x256xf32>
    tpu.vector_store %arg6[%c0_6, %c0_7], %7 {strides = array<i32>} : memref<16x256xf32, #tpu.memory_space<vmem>>, vector<16x256xf32>,
    %c2_i32 = arith.constant 2 : i32
    %9 = arith.cmpi eq, %arg1, %c2_i32 : i32
    %10 = arith.extui %9 : i1 to i32
    %c0_i32_8 = arith.constant 0 : i32
    %11 = arith.cmpi ne, %10, %c0_i32_8 : i32
    scf.if %11 {
      %c0_9 = arith.constant 0 : index
      %c0_10 = arith.constant 0 : index
      %12 = vector.load %arg6[%c0_9, %c0_10] : memref<16x256xf32, #tpu.memory_space<vmem>>, vector<16x256xf32>
      %c0_11 = arith.constant 0 : index
      %c0_12 = arith.constant 0 : index
      %13 = vector.load %arg4[%c0_11, %c0_12] : memref<1x256xf32, #tpu.memory_space<vmem>>, vector<1x256xf32>
      %c0_13 = arith.constant 0 : index
      %c0_14 = arith.constant 0 : index
      %14 = vector.load %arg5[%c0_13, %c0_14] : memref<1x256xf32, #tpu.memory_space<vmem>>, vector<1x256xf32>
      %15 = vector.broadcast %13 : vector<1x256xf32> to vector<16x256xf32>
      %16 = arith.mulf %12, %15 : vector<16x256xf32>
      %17 = vector.broadcast %14 : vector<1x256xf32> to vector<16x256xf32>
      %18 = arith.addf %16, %17 : vector<16x256xf32>
      %cst_15 = arith.constant 0.000000e+00 : f32
      %19 = vector.broadcast %cst_15 : f32 to vector<16x256xf32>
      %20 = arith.maximumf %18, %19 : vector<16x256xf32>
      %c0_16 = arith.constant 0 : index
      %c0_17 = arith.constant 0 : index
      %21 = vector.load %arg6[%c0_16, %c0_17] : memref<16x256xf32, #tpu.memory_space<vmem>>, vector<16x256xf32>
      tpu.vector_store %arg6[%c0_16, %c0_17], %20 {strides = array<i32>} : memref<16x256xf32, #tpu.memory_space<vmem>>, vector<16x256xf32>,
    } else {
    }
    return
  }
  func.func @transform_0(%arg0: i32, %arg1: i32) -> (i32, i32) {
    %c0_i32 = arith.constant 0 : i32
    return %arg0, %arg1 : i32, i32
  }
  func.func @transform_1(%arg0: i32, %arg1: i32) -> (i32, i32) {
    %c0_i32 = arith.constant 0 : i32
    %c0_i32_0 = arith.constant 0 : i32
    return %arg1, %c0_i32 : i32, i32
  }
  func.func @transform_2(%arg0: i32, %arg1: i32) -> (i32, i32) {
    %c0_i32 = arith.constant 0 : i32
    %c0_i32_0 = arith.constant 0 : i32
    %c0_i32_1 = arith.constant 0 : i32
    return %c0_i32, %c0_i32_0 : i32, i32
  }
  func.func @transform_3(%arg0: i32, %arg1: i32) -> (i32, i32) {
    %c0_i32 = arith.constant 0 : i32
    %c0_i32_0 = arith.constant 0 : i32
    %c0_i32_1 = arith.constant 0 : i32
    return %c0_i32, %c0_i32_0 : i32, i32
  }
  func.func @transform_4(%arg0: i32, %arg1: i32) -> (i32, i32) {
    %c0_i32 = arith.constant 0 : i32
    %c0_i32_0 = arith.constant 0 : i32
    return %arg0, %c0_i32 : i32, i32
  }
}

module attributes {stable_mosaic.version = 11 : i64} {
  func.func @kernel(%arg0: i32, %arg1: i32, %arg2: memref<16x768xbf16, #tpu.memory_space<vmem>>, %arg3: memref<768x512xbf16, #tpu.memory_space<vmem>>, %arg4: memref<1x512xf32, #tpu.memory_space<vmem>>, %arg5: memref<1x512xf32, #tpu.memory_space<vmem>>, %arg6: memref<16x512xf32, #tpu.memory_space<vmem>>) attributes {dimension_semantics = [#tpu.dimension_semantics<parallel>, #tpu.dimension_semantics<arbitrary>], iteration_bounds = array<i64: 1, 3>, scalar_prefetch = 0 : i64, scratch_operands = 0 : i64, tpu.core_type = #tpu.core_type<tc>, window_params = [{transform_indices = @transform_0, window_bounds = array<i64: 16, 768>}, {transform_indices = @transform_1, window_bounds = array<i64: 768, 512>}, {pipeline_mode = #tpu.pipeline_mode<synchronous>, transform_indices = @transform_2, window_bounds = array<i64: 1, 512>}, {pipeline_mode = #tpu.pipeline_mode<synchronous>, transform_indices = @transform_3, window_bounds = array<i64: 1, 512>}, {transform_indices = @transform_4, window_bounds = array<i64: 16, 512>}]} {
    %c0_i32 = arith.constant 0 : i32
    %0 = arith.cmpi eq, %arg1, %c0_i32 : i32
    %1 = arith.extui %0 : i1 to i32
    %c0_i32_0 = arith.constant 0 : i32
    %2 = arith.cmpi ne, %1, %c0_i32_0 : i32
    scf.if %2 {
      %cst_9 = arith.constant 0.000000e+00 : f32
      %12 = vector.broadcast %cst_9 : f32 to vector<16x512xf32>
      %c0_10 = arith.constant 0 : index
      %c0_11 = arith.constant 0 : index
      %13 = vector.load %arg6[%c0_10, %c0_11] : memref<16x512xf32, #tpu.memory_space<vmem>>, vector<16x512xf32>
      tpu.vector_store %arg6[%c0_10, %c0_11], %12 {strides = array<i32>} : memref<16x512xf32, #tpu.memory_space<vmem>>, vector<16x512xf32>,
    } else {
    }
    %c0 = arith.constant 0 : index
    %c0_1 = arith.constant 0 : index
    %3 = vector.load %arg6[%c0, %c0_1] : memref<16x512xf32, #tpu.memory_space<vmem>>, vector<16x512xf32>
    %c0_2 = arith.constant 0 : index
    %c0_3 = arith.constant 0 : index
    %4 = vector.load %arg2[%c0_2, %c0_3] : memref<16x768xbf16, #tpu.memory_space<vmem>>, vector<16x768xbf16>
    %c0_4 = arith.constant 0 : index
    %c0_5 = arith.constant 0 : index
    %5 = vector.load %arg3[%c0_4, %c0_5] : memref<768x512xbf16, #tpu.memory_space<vmem>>, vector<768x512xbf16>
    %cst = arith.constant dense<0.000000e+00> : vector<16x512xf32>
    %6 = tpu.matmul %4, %5, %cst {dimension_numbers = #tpu.dot_dimension_numbers<[1], [0], [0], [1], [0, 0, 1, 1], [], []>} : vector<16x768xbf16>, vector<768x512xbf16>, vector<16x512xf32> -> vector<16x512xf32>
    %7 = arith.addf %3, %6 : vector<16x512xf32>
    %c0_6 = arith.constant 0 : index
    %c0_7 = arith.constant 0 : index
    %8 = vector.load %arg6[%c0_6, %c0_7] : memref<16x512xf32, #tpu.memory_space<vmem>>, vector<16x512xf32>
    tpu.vector_store %arg6[%c0_6, %c0_7], %7 {strides = array<i32>} : memref<16x512xf32, #tpu.memory_space<vmem>>, vector<16x512xf32>,
    %c2_i32 = arith.constant 2 : i32
    %9 = arith.cmpi eq, %arg1, %c2_i32 : i32
    %10 = arith.extui %9 : i1 to i32
    %c0_i32_8 = arith.constant 0 : i32
    %11 = arith.cmpi ne, %10, %c0_i32_8 : i32
    scf.if %11 {
      %c0_9 = arith.constant 0 : index
      %c0_10 = arith.constant 0 : index
      %12 = vector.load %arg6[%c0_9, %c0_10] : memref<16x512xf32, #tpu.memory_space<vmem>>, vector<16x512xf32>
      %c0_11 = arith.constant 0 : index
      %c0_12 = arith.constant 0 : index
      %13 = vector.load %arg4[%c0_11, %c0_12] : memref<1x512xf32, #tpu.memory_space<vmem>>, vector<1x512xf32>
      %c0_13 = arith.constant 0 : index
      %c0_14 = arith.constant 0 : index
      %14 = vector.load %arg5[%c0_13, %c0_14] : memref<1x512xf32, #tpu.memory_space<vmem>>, vector<1x512xf32>
      %15 = vector.broadcast %13 : vector<1x512xf32> to vector<16x512xf32>
      %16 = arith.mulf %12, %15 : vector<16x512xf32>
      %17 = vector.broadcast %14 : vector<1x512xf32> to vector<16x512xf32>
      %18 = arith.addf %16, %17 : vector<16x512xf32>
      %cst_15 = arith.constant 0.000000e+00 : f32
      %19 = vector.broadcast %cst_15 : f32 to vector<16x512xf32>
      %20 = arith.maximumf %18, %19 : vector<16x512xf32>
      %c0_16 = arith.constant 0 : index
      %c0_17 = arith.constant 0 : index
      %21 = vector.load %arg6[%c0_16, %c0_17] : memref<16x512xf32, #tpu.memory_space<vmem>>, vector<16x512xf32>
      tpu.vector_store %arg6[%c0_16, %c0_17], %20 {strides = array<i32>} : memref<16x512xf32, #tpu.memory_space<vmem>>, vector<16x512xf32>,
    } else {
    }
    return
  }
  func.func @transform_0(%arg0: i32, %arg1: i32) -> (i32, i32) {
    %c0_i32 = arith.constant 0 : i32
    return %arg0, %arg1 : i32, i32
  }
  func.func @transform_1(%arg0: i32, %arg1: i32) -> (i32, i32) {
    %c0_i32 = arith.constant 0 : i32
    %c0_i32_0 = arith.constant 0 : i32
    return %arg1, %c0_i32 : i32, i32
  }
  func.func @transform_2(%arg0: i32, %arg1: i32) -> (i32, i32) {
    %c0_i32 = arith.constant 0 : i32
    %c0_i32_0 = arith.constant 0 : i32
    %c0_i32_1 = arith.constant 0 : i32
    return %c0_i32, %c0_i32_0 : i32, i32
  }
  func.func @transform_3(%arg0: i32, %arg1: i32) -> (i32, i32) {
    %c0_i32 = arith.constant 0 : i32
    %c0_i32_0 = arith.constant 0 : i32
    %c0_i32_1 = arith.constant 0 : i32
    return %c0_i32, %c0_i32_0 : i32, i32
  }
  func.func @transform_4(%arg0: i32, %arg1: i32) -> (i32, i32) {
    %c0_i32 = arith.constant 0 : i32
    %c0_i32_0 = arith.constant 0 : i32
    return %arg0, %c0_i32 : i32, i32
  }
}

module attributes {stable_mosaic.version = 11 : i64} {
  func.func @kernel(%arg0: i32, %arg1: i32, %arg2: memref<16x256xbf16, #tpu.memory_space<vmem>>, %arg3: memref<256x512xbf16, #tpu.memory_space<vmem>>, %arg4: memref<1x512xf32, #tpu.memory_space<vmem>>, %arg5: memref<1x512xf32, #tpu.memory_space<vmem>>, %arg6: memref<16x512xf32, #tpu.memory_space<vmem>>) attributes {dimension_semantics = [#tpu.dimension_semantics<parallel>, #tpu.dimension_semantics<arbitrary>], iteration_bounds = array<i64: 1, 1>, scalar_prefetch = 0 : i64, scratch_operands = 0 : i64, tpu.core_type = #tpu.core_type<tc>, window_params = [{transform_indices = @transform_0, window_bounds = array<i64: 16, 256>}, {transform_indices = @transform_1, window_bounds = array<i64: 256, 512>}, {pipeline_mode = #tpu.pipeline_mode<synchronous>, transform_indices = @transform_2, window_bounds = array<i64: 1, 512>}, {pipeline_mode = #tpu.pipeline_mode<synchronous>, transform_indices = @transform_3, window_bounds = array<i64: 1, 512>}, {transform_indices = @transform_4, window_bounds = array<i64: 16, 512>}]} {
    %c0_i32 = arith.constant 0 : i32
    %0 = arith.cmpi eq, %arg1, %c0_i32 : i32
    %1 = arith.extui %0 : i1 to i32
    %c0_i32_0 = arith.constant 0 : i32
    %2 = arith.cmpi ne, %1, %c0_i32_0 : i32
    scf.if %2 {
      %cst_10 = arith.constant 0.000000e+00 : f32
      %12 = vector.broadcast %cst_10 : f32 to vector<16x512xf32>
      %c0_11 = arith.constant 0 : index
      %c0_12 = arith.constant 0 : index
      %13 = vector.load %arg6[%c0_11, %c0_12] : memref<16x512xf32, #tpu.memory_space<vmem>>, vector<16x512xf32>
      tpu.vector_store %arg6[%c0_11, %c0_12], %12 {strides = array<i32>} : memref<16x512xf32, #tpu.memory_space<vmem>>, vector<16x512xf32>,
    } else {
    }
    %c0 = arith.constant 0 : index
    %c0_1 = arith.constant 0 : index
    %3 = vector.load %arg6[%c0, %c0_1] : memref<16x512xf32, #tpu.memory_space<vmem>>, vector<16x512xf32>
    %c0_2 = arith.constant 0 : index
    %c0_3 = arith.constant 0 : index
    %4 = vector.load %arg2[%c0_2, %c0_3] : memref<16x256xbf16, #tpu.memory_space<vmem>>, vector<16x256xbf16>
    %c0_4 = arith.constant 0 : index
    %c0_5 = arith.constant 0 : index
    %5 = vector.load %arg3[%c0_4, %c0_5] : memref<256x512xbf16, #tpu.memory_space<vmem>>, vector<256x512xbf16>
    %cst = arith.constant dense<0.000000e+00> : vector<16x512xf32>
    %6 = tpu.matmul %4, %5, %cst {dimension_numbers = #tpu.dot_dimension_numbers<[1], [0], [0], [1], [0, 0, 1, 1], [], []>} : vector<16x256xbf16>, vector<256x512xbf16>, vector<16x512xf32> -> vector<16x512xf32>
    %7 = arith.addf %3, %6 : vector<16x512xf32>
    %c0_6 = arith.constant 0 : index
    %c0_7 = arith.constant 0 : index
    %8 = vector.load %arg6[%c0_6, %c0_7] : memref<16x512xf32, #tpu.memory_space<vmem>>, vector<16x512xf32>
    tpu.vector_store %arg6[%c0_6, %c0_7], %7 {strides = array<i32>} : memref<16x512xf32, #tpu.memory_space<vmem>>, vector<16x512xf32>,
    %c0_i32_8 = arith.constant 0 : i32
    %9 = arith.cmpi eq, %arg1, %c0_i32_8 : i32
    %10 = arith.extui %9 : i1 to i32
    %c0_i32_9 = arith.constant 0 : i32
    %11 = arith.cmpi ne, %10, %c0_i32_9 : i32
    scf.if %11 {
      %c0_10 = arith.constant 0 : index
      %c0_11 = arith.constant 0 : index
      %12 = vector.load %arg6[%c0_10, %c0_11] : memref<16x512xf32, #tpu.memory_space<vmem>>, vector<16x512xf32>
      %c0_12 = arith.constant 0 : index
      %c0_13 = arith.constant 0 : index
      %13 = vector.load %arg4[%c0_12, %c0_13] : memref<1x512xf32, #tpu.memory_space<vmem>>, vector<1x512xf32>
      %c0_14 = arith.constant 0 : index
      %c0_15 = arith.constant 0 : index
      %14 = vector.load %arg5[%c0_14, %c0_15] : memref<1x512xf32, #tpu.memory_space<vmem>>, vector<1x512xf32>
      %15 = vector.broadcast %13 : vector<1x512xf32> to vector<16x512xf32>
      %16 = arith.mulf %12, %15 : vector<16x512xf32>
      %17 = vector.broadcast %14 : vector<1x512xf32> to vector<16x512xf32>
      %18 = arith.addf %16, %17 : vector<16x512xf32>
      %c0_16 = arith.constant 0 : index
      %c0_17 = arith.constant 0 : index
      %19 = vector.load %arg6[%c0_16, %c0_17] : memref<16x512xf32, #tpu.memory_space<vmem>>, vector<16x512xf32>
      tpu.vector_store %arg6[%c0_16, %c0_17], %18 {strides = array<i32>} : memref<16x512xf32, #tpu.memory_space<vmem>>, vector<16x512xf32>,
    } else {
    }
    return
  }
  func.func @transform_0(%arg0: i32, %arg1: i32) -> (i32, i32) {
    %c0_i32 = arith.constant 0 : i32
    return %arg0, %arg1 : i32, i32
  }
  func.func @transform_1(%arg0: i32, %arg1: i32) -> (i32, i32) {
    %c0_i32 = arith.constant 0 : i32
    %c0_i32_0 = arith.constant 0 : i32
    return %arg1, %c0_i32 : i32, i32
  }
  func.func @transform_2(%arg0: i32, %arg1: i32) -> (i32, i32) {
    %c0_i32 = arith.constant 0 : i32
    %c0_i32_0 = arith.constant 0 : i32
    %c0_i32_1 = arith.constant 0 : i32
    return %c0_i32, %c0_i32_0 : i32, i32
  }
  func.func @transform_3(%arg0: i32, %arg1: i32) -> (i32, i32) {
    %c0_i32 = arith.constant 0 : i32
    %c0_i32_0 = arith.constant 0 : i32
    %c0_i32_1 = arith.constant 0 : i32
    return %c0_i32, %c0_i32_0 : i32, i32
  }
  func.func @transform_4(%arg0: i32, %arg1: i32) -> (i32, i32) {
    %c0_i32 = arith.constant 0 : i32
    %c0_i32_0 = arith.constant 0 : i32
    return %arg0, %c0_i32 : i32, i32
  }
}

module attributes {stable_mosaic.version = 11 : i64} {
  func.func @kernel(%arg0: i32, %arg1: i32, %arg2: memref<16x768xbf16, #tpu.memory_space<vmem>>, %arg3: memref<768x512xbf16, #tpu.memory_space<vmem>>, %arg4: memref<1x512xf32, #tpu.memory_space<vmem>>, %arg5: memref<1x512xf32, #tpu.memory_space<vmem>>, %arg6: memref<16x512xf32, #tpu.memory_space<vmem>>, %arg7: memref<16x512xf32, #tpu.memory_space<vmem>>) attributes {dimension_semantics = [#tpu.dimension_semantics<parallel>, #tpu.dimension_semantics<arbitrary>], iteration_bounds = array<i64: 1, 6>, scalar_prefetch = 0 : i64, scratch_operands = 0 : i64, tpu.core_type = #tpu.core_type<tc>, window_params = [{transform_indices = @transform_0, window_bounds = array<i64: 16, 768>}, {transform_indices = @transform_1, window_bounds = array<i64: 768, 512>}, {pipeline_mode = #tpu.pipeline_mode<synchronous>, transform_indices = @transform_2, window_bounds = array<i64: 1, 512>}, {pipeline_mode = #tpu.pipeline_mode<synchronous>, transform_indices = @transform_3, window_bounds = array<i64: 1, 512>}, {transform_indices = @transform_4, window_bounds = array<i64: 16, 512>}, {transform_indices = @transform_5, window_bounds = array<i64: 16, 512>}]} {
    %c0_i32 = arith.constant 0 : i32
    %0 = arith.cmpi eq, %arg1, %c0_i32 : i32
    %1 = arith.extui %0 : i1 to i32
    %c0_i32_0 = arith.constant 0 : i32
    %2 = arith.cmpi ne, %1, %c0_i32_0 : i32
    scf.if %2 {
      %cst_9 = arith.constant 0.000000e+00 : f32
      %12 = vector.broadcast %cst_9 : f32 to vector<16x512xf32>
      %c0_10 = arith.constant 0 : index
      %c0_11 = arith.constant 0 : index
      %13 = vector.load %arg7[%c0_10, %c0_11] : memref<16x512xf32, #tpu.memory_space<vmem>>, vector<16x512xf32>
      tpu.vector_store %arg7[%c0_10, %c0_11], %12 {strides = array<i32>} : memref<16x512xf32, #tpu.memory_space<vmem>>, vector<16x512xf32>,
    } else {
    }
    %c0 = arith.constant 0 : index
    %c0_1 = arith.constant 0 : index
    %3 = vector.load %arg7[%c0, %c0_1] : memref<16x512xf32, #tpu.memory_space<vmem>>, vector<16x512xf32>
    %c0_2 = arith.constant 0 : index
    %c0_3 = arith.constant 0 : index
    %4 = vector.load %arg2[%c0_2, %c0_3] : memref<16x768xbf16, #tpu.memory_space<vmem>>, vector<16x768xbf16>
    %c0_4 = arith.constant 0 : index
    %c0_5 = arith.constant 0 : index
    %5 = vector.load %arg3[%c0_4, %c0_5] : memref<768x512xbf16, #tpu.memory_space<vmem>>, vector<768x512xbf16>
    %cst = arith.constant dense<0.000000e+00> : vector<16x512xf32>
    %6 = tpu.matmul %4, %5, %cst {dimension_numbers = #tpu.dot_dimension_numbers<[1], [0], [0], [1], [0, 0, 1, 1], [], []>} : vector<16x768xbf16>, vector<768x512xbf16>, vector<16x512xf32> -> vector<16x512xf32>
    %7 = arith.addf %3, %6 : vector<16x512xf32>
    %c0_6 = arith.constant 0 : index
    %c0_7 = arith.constant 0 : index
    %8 = vector.load %arg7[%c0_6, %c0_7] : memref<16x512xf32, #tpu.memory_space<vmem>>, vector<16x512xf32>
    tpu.vector_store %arg7[%c0_6, %c0_7], %7 {strides = array<i32>} : memref<16x512xf32, #tpu.memory_space<vmem>>, vector<16x512xf32>,
    %c5_i32 = arith.constant 5 : i32
    %9 = arith.cmpi eq, %arg1, %c5_i32 : i32
    %10 = arith.extui %9 : i1 to i32
    %c0_i32_8 = arith.constant 0 : i32
    %11 = arith.cmpi ne, %10, %c0_i32_8 : i32
    scf.if %11 {
      %c0_9 = arith.constant 0 : index
      %c0_10 = arith.constant 0 : index
      %12 = vector.load %arg7[%c0_9, %c0_10] : memref<16x512xf32, #tpu.memory_space<vmem>>, vector<16x512xf32>
      %c0_11 = arith.constant 0 : index
      %c0_12 = arith.constant 0 : index
      %13 = vector.load %arg4[%c0_11, %c0_12] : memref<1x512xf32, #tpu.memory_space<vmem>>, vector<1x512xf32>
      %c0_13 = arith.constant 0 : index
      %c0_14 = arith.constant 0 : index
      %14 = vector.load %arg5[%c0_13, %c0_14] : memref<1x512xf32, #tpu.memory_space<vmem>>, vector<1x512xf32>
      %c0_15 = arith.constant 0 : index
      %c0_16 = arith.constant 0 : index
      %15 = vector.load %arg6[%c0_15, %c0_16] : memref<16x512xf32, #tpu.memory_space<vmem>>, vector<16x512xf32>
      %16 = vector.broadcast %13 : vector<1x512xf32> to vector<16x512xf32>
      %17 = arith.mulf %12, %16 : vector<16x512xf32>
      %18 = vector.broadcast %14 : vector<1x512xf32> to vector<16x512xf32>
      %19 = arith.addf %17, %18 : vector<16x512xf32>
      %20 = arith.addf %19, %15 : vector<16x512xf32>
      %cst_17 = arith.constant 0.000000e+00 : f32
      %21 = vector.broadcast %cst_17 : f32 to vector<16x512xf32>
      %22 = arith.maximumf %20, %21 : vector<16x512xf32>
      %c0_18 = arith.constant 0 : index
      %c0_19 = arith.constant 0 : index
      %23 = vector.load %arg7[%c0_18, %c0_19] : memref<16x512xf32, #tpu.memory_space<vmem>>, vector<16x512xf32>
      tpu.vector_store %arg7[%c0_18, %c0_19], %22 {strides = array<i32>} : memref<16x512xf32, #tpu.memory_space<vmem>>, vector<16x512xf32>,
    } else {
    }
    return
  }
  func.func @transform_0(%arg0: i32, %arg1: i32) -> (i32, i32) {
    %c0_i32 = arith.constant 0 : i32
    return %arg0, %arg1 : i32, i32
  }
  func.func @transform_1(%arg0: i32, %arg1: i32) -> (i32, i32) {
    %c0_i32 = arith.constant 0 : i32
    %c0_i32_0 = arith.constant 0 : i32
    return %arg1, %c0_i32 : i32, i32
  }
  func.func @transform_2(%arg0: i32, %arg1: i32) -> (i32, i32) {
    %c0_i32 = arith.constant 0 : i32
    %c0_i32_0 = arith.constant 0 : i32
    %c0_i32_1 = arith.constant 0 : i32
    return %c0_i32, %c0_i32_0 : i32, i32
  }
  func.func @transform_3(%arg0: i32, %arg1: i32) -> (i32, i32) {
    %c0_i32 = arith.constant 0 : i32
    %c0_i32_0 = arith.constant 0 : i32
    %c0_i32_1 = arith.constant 0 : i32
    return %c0_i32, %c0_i32_0 : i32, i32
  }
  func.func @transform_4(%arg0: i32, %arg1: i32) -> (i32, i32) {
    %c0_i32 = arith.constant 0 : i32
    %c0_i32_0 = arith.constant 0 : i32
    return %arg0, %c0_i32 : i32, i32
  }
  func.func @transform_5(%arg0: i32, %arg1: i32) -> (i32, i32) {
    %c0_i32 = arith.constant 0 : i32
    %c0_i32_0 = arith.constant 0 : i32
    return %arg0, %c0_i32 : i32, i32
  }
}

module attributes {stable_mosaic.version = 11 : i64} {
  func.func @kernel(%arg0: i32, %arg1: i32, %arg2: memref<16x768xbf16, #tpu.memory_space<vmem>>, %arg3: memref<768x512xbf16, #tpu.memory_space<vmem>>, %arg4: memref<1x512xf32, #tpu.memory_space<vmem>>, %arg5: memref<1x512xf32, #tpu.memory_space<vmem>>, %arg6: memref<16x512xf32, #tpu.memory_space<vmem>>) attributes {dimension_semantics = [#tpu.dimension_semantics<parallel>, #tpu.dimension_semantics<arbitrary>], iteration_bounds = array<i64: 1, 6>, scalar_prefetch = 0 : i64, scratch_operands = 0 : i64, tpu.core_type = #tpu.core_type<tc>, window_params = [{transform_indices = @transform_0, window_bounds = array<i64: 16, 768>}, {transform_indices = @transform_1, window_bounds = array<i64: 768, 512>}, {pipeline_mode = #tpu.pipeline_mode<synchronous>, transform_indices = @transform_2, window_bounds = array<i64: 1, 512>}, {pipeline_mode = #tpu.pipeline_mode<synchronous>, transform_indices = @transform_3, window_bounds = array<i64: 1, 512>}, {transform_indices = @transform_4, window_bounds = array<i64: 16, 512>}]} {
    %c0_i32 = arith.constant 0 : i32
    %0 = arith.cmpi eq, %arg1, %c0_i32 : i32
    %1 = arith.extui %0 : i1 to i32
    %c0_i32_0 = arith.constant 0 : i32
    %2 = arith.cmpi ne, %1, %c0_i32_0 : i32
    scf.if %2 {
      %cst_9 = arith.constant 0.000000e+00 : f32
      %12 = vector.broadcast %cst_9 : f32 to vector<16x512xf32>
      %c0_10 = arith.constant 0 : index
      %c0_11 = arith.constant 0 : index
      %13 = vector.load %arg6[%c0_10, %c0_11] : memref<16x512xf32, #tpu.memory_space<vmem>>, vector<16x512xf32>
      tpu.vector_store %arg6[%c0_10, %c0_11], %12 {strides = array<i32>} : memref<16x512xf32, #tpu.memory_space<vmem>>, vector<16x512xf32>,
    } else {
    }
    %c0 = arith.constant 0 : index
    %c0_1 = arith.constant 0 : index
    %3 = vector.load %arg6[%c0, %c0_1] : memref<16x512xf32, #tpu.memory_space<vmem>>, vector<16x512xf32>
    %c0_2 = arith.constant 0 : index
    %c0_3 = arith.constant 0 : index
    %4 = vector.load %arg2[%c0_2, %c0_3] : memref<16x768xbf16, #tpu.memory_space<vmem>>, vector<16x768xbf16>
    %c0_4 = arith.constant 0 : index
    %c0_5 = arith.constant 0 : index
    %5 = vector.load %arg3[%c0_4, %c0_5] : memref<768x512xbf16, #tpu.memory_space<vmem>>, vector<768x512xbf16>
    %cst = arith.constant dense<0.000000e+00> : vector<16x512xf32>
    %6 = tpu.matmul %4, %5, %cst {dimension_numbers = #tpu.dot_dimension_numbers<[1], [0], [0], [1], [0, 0, 1, 1], [], []>} : vector<16x768xbf16>, vector<768x512xbf16>, vector<16x512xf32> -> vector<16x512xf32>
    %7 = arith.addf %3, %6 : vector<16x512xf32>
    %c0_6 = arith.constant 0 : index
    %c0_7 = arith.constant 0 : index
    %8 = vector.load %arg6[%c0_6, %c0_7] : memref<16x512xf32, #tpu.memory_space<vmem>>, vector<16x512xf32>
    tpu.vector_store %arg6[%c0_6, %c0_7], %7 {strides = array<i32>} : memref<16x512xf32, #tpu.memory_space<vmem>>, vector<16x512xf32>,
    %c5_i32 = arith.constant 5 : i32
    %9 = arith.cmpi eq, %arg1, %c5_i32 : i32
    %10 = arith.extui %9 : i1 to i32
    %c0_i32_8 = arith.constant 0 : i32
    %11 = arith.cmpi ne, %10, %c0_i32_8 : i32
    scf.if %11 {
      %c0_9 = arith.constant 0 : index
      %c0_10 = arith.constant 0 : index
      %12 = vector.load %arg6[%c0_9, %c0_10] : memref<16x512xf32, #tpu.memory_space<vmem>>, vector<16x512xf32>
      %c0_11 = arith.constant 0 : index
      %c0_12 = arith.constant 0 : index
      %13 = vector.load %arg4[%c0_11, %c0_12] : memref<1x512xf32, #tpu.memory_space<vmem>>, vector<1x512xf32>
      %c0_13 = arith.constant 0 : index
      %c0_14 = arith.constant 0 : index
      %14 = vector.load %arg5[%c0_13, %c0_14] : memref<1x512xf32, #tpu.memory_space<vmem>>, vector<1x512xf32>
      %15 = vector.broadcast %13 : vector<1x512xf32> to vector<16x512xf32>
      %16 = arith.mulf %12, %15 : vector<16x512xf32>
      %17 = vector.broadcast %14 : vector<1x512xf32> to vector<16x512xf32>
      %18 = arith.addf %16, %17 : vector<16x512xf32>
      %cst_15 = arith.constant 0.000000e+00 : f32
      %19 = vector.broadcast %cst_15 : f32 to vector<16x512xf32>
      %20 = arith.maximumf %18, %19 : vector<16x512xf32>
      %c0_16 = arith.constant 0 : index
      %c0_17 = arith.constant 0 : index
      %21 = vector.load %arg6[%c0_16, %c0_17] : memref<16x512xf32, #tpu.memory_space<vmem>>, vector<16x512xf32>
      tpu.vector_store %arg6[%c0_16, %c0_17], %20 {strides = array<i32>} : memref<16x512xf32, #tpu.memory_space<vmem>>, vector<16x512xf32>,
    } else {
    }
    return
  }
  func.func @transform_0(%arg0: i32, %arg1: i32) -> (i32, i32) {
    %c0_i32 = arith.constant 0 : i32
    return %arg0, %arg1 : i32, i32
  }
  func.func @transform_1(%arg0: i32, %arg1: i32) -> (i32, i32) {
    %c0_i32 = arith.constant 0 : i32
    %c0_i32_0 = arith.constant 0 : i32
    return %arg1, %c0_i32 : i32, i32
  }
  func.func @transform_2(%arg0: i32, %arg1: i32) -> (i32, i32) {
    %c0_i32 = arith.constant 0 : i32
    %c0_i32_0 = arith.constant 0 : i32
    %c0_i32_1 = arith.constant 0 : i32
    return %c0_i32, %c0_i32_0 : i32, i32
  }
  func.func @transform_3(%arg0: i32, %arg1: i32) -> (i32, i32) {
    %c0_i32 = arith.constant 0 : i32
    %c0_i32_0 = arith.constant 0 : i32
    %c0_i32_1 = arith.constant 0 : i32
    return %c0_i32, %c0_i32_0 : i32, i32
  }
  func.func @transform_4(%arg0: i32, %arg1: i32) -> (i32, i32) {
    %c0_i32 = arith.constant 0 : i32
    %c0_i32_0 = arith.constant 0 : i32
    return %arg0, %c0_i32 : i32, i32
  }
}

module attributes {stable_mosaic.version = 11 : i64} {
  func.func @_avgpool_kernel(%arg0: memref<2x1x512xf32, #tpu.memory_space<vmem>>, %arg1: memref<2x512xf32, #tpu.memory_space<vmem>>) attributes {dimension_semantics = [], scalar_prefetch = 0 : i64, scratch_operands = 0 : i64, tpu.core_type = #tpu.core_type<tc>} {
    %c0 = arith.constant 0 : index
    %c0_0 = arith.constant 0 : index
    %c0_1 = arith.constant 0 : index
    %0 = vector.load %arg0[%c0, %c0_0, %c0_1] : memref<2x1x512xf32, #tpu.memory_space<vmem>>, vector<2x1x512xf32>
    %cst = arith.constant dense<0.000000e+00> : vector<2x512xf32>
    %1 = vector.multi_reduction <add>, %0, %cst [1] : vector<2x1x512xf32> to vector<2x512xf32>
    %cst_2 = arith.constant 1.000000e+00 : f32
    %2 = vector.broadcast %cst_2 : f32 to vector<2x512xf32>
    %3 = arith.divf %1, %2 : vector<2x512xf32>
    %c0_3 = arith.constant 0 : index
    %c0_4 = arith.constant 0 : index
    %4 = vector.load %arg1[%c0_3, %c0_4] : memref<2x512xf32, #tpu.memory_space<vmem>>, vector<2x512xf32>
    tpu.vector_store %arg1[%c0_3, %c0_4], %3 {strides = array<i32>} : memref<2x512xf32, #tpu.memory_space<vmem>>, vector<2x512xf32>,
    return
  }
}

</mosaic_0001>

<bundles_post_ra>
// kernel: resnet_feature_forward.23
= control target key start
LH: loop header
LB: loop body
LE: loop exit
PB: predicated region body
PF: predicated region fallthrough
CT: control target
= control target key end

     0   :  { %s478_s0 = inlined_call_operand.vmem [shape: f32[9,64,128], index: 0, kind: input, shape index: {}]   ;;  %s479_s1 = inlined_call_operand.vmem [shape: f32[64,128], index: 1, kind: output, shape index: {}]  }
   0x1   :  { %v8_v0 = vld [vmem:[%s478_s0] sm:$0xff]  ;;  %v9_v6 = vld [vmem:[%s478_s0 + $0x8] sm:$0xff]  ;;  %v10_v15 = vld [vmem:[%s478_s0 + $0x10] sm:$0xff] }
   0x2   :  { %v164_v1 = vld [vmem:[%s478_s0 + $0x40] sm:$0xff]  ;;  %v165_v7 = vld [vmem:[%s478_s0 + $0x48] sm:$0xff]  ;;  %v166_v16 = vld [vmem:[%s478_s0 + $0x50] sm:$0xff] }
   0x3   :  { %v172_v2 = vld [vmem:[%s478_s0 + $0x80] sm:$0xff]  ;;  %v25_v3 = vmax.f32 %v8_v0, %v164_v1  ;;  %v173_v8 = vld [vmem:[%s478_s0 + $0x88] sm:$0xff]  ;;  %v26_v10 = vmax.f32 %v9_v6, %v165_v7  ;;  %v174_v17 = vld [vmem:[%s478_s0 + $0x90] sm:$0xff]  ;;  %v27_v20 = vmax.f32 %v10_v15, %v166_v16 }
   0x4   :  { %v180_v4 = vld [vmem:[%s478_s0 + $0xc0] sm:$0xff]  ;;  %v181_v13 = vld [vmem:[%s478_s0 + $0xc8] sm:$0xff]  ;;  %v182_v24 = vld [vmem:[%s478_s0 + $0xd0] sm:$0xff] }
   0x5   :  { %v42_v5 = vmax.f32 %v25_v3, %v172_v2  ;;  %v188_v9 = vld [vmem:[%s478_s0 + $0x100] sm:$0xff]  ;;  %v43_v14 = vmax.f32 %v26_v10, %v173_v8  ;;  %v189_v19 = vld [vmem:[%s478_s0 + $0x108] sm:$0xff]  ;;  %v44_v26 = vmax.f32 %v27_v20, %v174_v17  ;;  %v11_v27 = vld [vmem:[%s478_s0 + $0x18] sm:$0xff] }
   0x6   :  { %v196_v12 = vld [vmem:[%s478_s0 + $0x140] sm:$0xff]  ;;  %v197_v23 = vld [vmem:[%s478_s0 + $0x148] sm:$0xff]  ;;  %v167_v28 = vld [vmem:[%s478_s0 + $0x58] sm:$0xff] }
   0x7   :  { %v59_v11 = vmax.f32 %v42_v5, %v180_v4  ;;  %v204_v21 = vld [vmem:[%s478_s0 + $0x180] sm:$0xff]  ;;  %v60_v22 = vmax.f32 %v43_v14, %v181_v13  ;;  %v175_v29 = vld [vmem:[%s478_s0 + $0x98] sm:$0xff]  ;;  %v190_v33 = vld [vmem:[%s478_s0 + $0x110] sm:$0xff]  ;;  %v28_v34 = vmax.f32 %v11_v27, %v167_v28  ;;  %v61_v37 = vmax.f32 %v44_v26, %v182_v24 }
   0x8   :  { %v212_v30 = vld [vmem:[%s478_s0 + $0x1c0] sm:$0xff]  ;;  %v205_v36 = vld [vmem:[%s478_s0 + $0x188] sm:$0xff]  ;;  %v198_v38 = vld [vmem:[%s478_s0 + $0x150] sm:$0xff] }
   0x9   :  { %v76_v18 = vmax.f32 %v59_v11, %v188_v9  ;;  %v220_v31 = vld [vmem:[%s478_s0 + $0x200] sm:$0xff]  ;;  %v77_v32 = vmax.f32 %v60_v22, %v189_v19  ;;  %v183_v39 = vld [vmem:[%s478_s0 + $0xd8] sm:$0xff]  ;;  %v45_v41 = vmax.f32 %v28_v34, %v175_v29  ;;  %v213_v46 = vld [vmem:[%s478_s0 + $0x1c8] sm:$0xff]  ;;  %v78_v48 = vmax.f32 %v61_v37, %v190_v33 }
   0xa   :  { %v12_v42 = vld [vmem:[%s478_s0 + $0x20] sm:$0xff]  ;;  %v221_v47 = vld [vmem:[%s478_s0 + $0x208] sm:$0xff]  ;;  %v191_v49 = vld [vmem:[%s478_s0 + $0x118] sm:$0xff] }
   0xb   :  { %v93_v25 = vmax.f32 %v76_v18, %v196_v12  ;;  %v94_v40 = vmax.f32 %v77_v32, %v197_v23  ;;  %v168_v43 = vld [vmem:[%s478_s0 + $0x60] sm:$0xff]  ;;  %v206_v52 = vld [vmem:[%s478_s0 + $0x190] sm:$0xff]  ;;  %v62_v53 = vmax.f32 %v45_v41, %v183_v39  ;;  %v199_v54 = vld [vmem:[%s478_s0 + $0x158] sm:$0xff]  ;;  %v95_v57 = vmax.f32 %v78_v48, %v198_v38 }
   0xc   :  { %v176_v44 = vld [vmem:[%s478_s0 + $0xa0] sm:$0xff]  ;;  %v29_v50 = vmax.f32 %v12_v42, %v168_v43  ;;  %v13_v59 = vld [vmem:[%s478_s0 + $0x28] sm:$0xff]  ;;  %v214_v63 = vld [vmem:[%s478_s0 + $0x1d0] sm:$0xff] }
   0xd   :  { %v110_v35 = vmax.f32 %v93_v25, %v204_v21  ;;  %v111_v51 = vmax.f32 %v94_v40, %v205_v36  ;;  %v184_v55 = vld [vmem:[%s478_s0 + $0xe0] sm:$0xff]  ;;  %v169_v60 = vld [vmem:[%s478_s0 + $0x68] sm:$0xff]  ;;  %v222_v0 = vld [vmem:[%s478_s0 + $0x210] sm:$0xff]  ;;  %v79_v1 = vmax.f32 %v62_v53, %v191_v49  ;;  %v112_v4 = vmax.f32 %v95_v57, %v206_v52 }
   0xe   :  { %v46_v58 = vmax.f32 %v29_v50, %v176_v44  ;;  %v177_v61 = vld [vmem:[%s478_s0 + $0xa8] sm:$0xff]  ;;  %v192_v2 = vld [vmem:[%s478_s0 + $0x120] sm:$0xff]  ;;  %v30_v3 = vmax.f32 %v13_v59, %v169_v60  ;;  %v207_v5 = vld [vmem:[%s478_s0 + $0x198] sm:$0xff] }
   0xf   :  { %v127_v45 = vmax.f32 %v110_v35, %v212_v30  ;;  %v128_v62 = vmax.f32 %v111_v51, %v213_v46  ;;  %v200_v7 = vld [vmem:[%s478_s0 + $0x160] sm:$0xff]  ;;  %v185_v8 = vld [vmem:[%s478_s0 + $0xe8] sm:$0xff]  ;;  %v96_v10 = vmax.f32 %v79_v1, %v199_v54  ;;  %v14_v12 = vld [vmem:[%s478_s0 + $0x30] sm:$0xff]  ;;  %v129_v15 = vmax.f32 %v112_v4, %v214_v63 }
  0x10   :  { %v63_v6 = vmax.f32 %v46_v58, %v184_v55  ;;  %v47_v11 = vmax.f32 %v30_v3, %v177_v61  ;;  %v170_v13 = vld [vmem:[%s478_s0 + $0x70] sm:$0xff]  ;;  %v215_v16 = vld [vmem:[%s478_s0 + $0x1d8] sm:$0xff]  ;;  %v193_v19 = vld [vmem:[%s478_s0 + $0x128] sm:$0xff] }
  0x11   :  { %v144_v56 = vmax.f32 %v127_v45, %v220_v31  ;;  %v145_v9 = vmax.f32 %v128_v62, %v221_v47  ;;  %v178_v14 = vld [vmem:[%s478_s0 + $0xb0] sm:$0xff]  ;;  %v223_v17 = vld [vmem:[%s478_s0 + $0x218] sm:$0xff]  ;;  %v31_v20 = vmax.f32 %v14_v12, %v170_v13  ;;  %v113_v21 = vmax.f32 %v96_v10, %v207_v5  ;;  %v208_v22 = vld [vmem:[%s478_s0 + $0x1a0] sm:$0xff] }
  0x12   :  { %v80_v18 = vmax.f32 %v63_v6, %v192_v2  ;;  %v64_v23 = vmax.f32 %v47_v11, %v185_v8  ;;  %v201_v24 = vld [vmem:[%s478_s0 + $0x168] sm:$0xff]  ;;  %v186_v25 = vld [vmem:[%s478_s0 + $0xf0] sm:$0xff]  ;;  %v146_v26 = vmax.f32 %v129_v15, %v222_v0  ;;  %v15_v29 = vld [vmem:[%s478_s0 + $0x38] sm:$0xff] }
  0x13   :  { %152 = vst [vmem:[%s479_s1] sm:$0xff] %v144_v56  ;;  %153 = vst [vmem:[%s479_s1 + $0x8] sm:$0xff] %v145_v9  ;;  %v48_v28 = vmax.f32 %v31_v20, %v178_v14  ;;  %v171_v30 = vld [vmem:[%s478_s0 + $0x78] sm:$0xff]  ;;  %v130_v32 = vmax.f32 %v113_v21, %v215_v16  ;;  %v216_v33 = vld [vmem:[%s478_s0 + $0x1e0] sm:$0xff] }
  0x14   :  { %v97_v27 = vmax.f32 %v80_v18, %v200_v7  ;;  %v179_v31 = vld [vmem:[%s478_s0 + $0xb8] sm:$0xff]  ;;  %v81_v34 = vmax.f32 %v64_v23, %v193_v19  ;;  %v194_v35 = vld [vmem:[%s478_s0 + $0x130] sm:$0xff]  ;;  %v32_v36 = vmax.f32 %v15_v29, %v171_v30  ;;  %154 = vst [vmem:[%s479_s1 + $0x10] sm:$0xff] %v146_v26  ;;  %v209_v38 = vld [vmem:[%s478_s0 + $0x1a8] sm:$0xff] }
  0x15   :  { %v65_v39 = vmax.f32 %v48_v28, %v186_v25  ;;  %v187_v40 = vld [vmem:[%s478_s0 + $0xf8] sm:$0xff]  ;;  %v147_v41 = vmax.f32 %v130_v32, %v223_v17  ;;  %v224_v42 = vld [vmem:[%s478_s0 + $0x220] sm:$0xff]  ;;  %v202_v44 = vld [vmem:[%s478_s0 + $0x170] sm:$0xff] }
  0x16   :  { %v114_v37 = vmax.f32 %v97_v27, %v208_v22  ;;  %v98_v43 = vmax.f32 %v81_v34, %v201_v24  ;;  %v49_v45 = vmax.f32 %v32_v36, %v179_v31  ;;  %v217_v47 = vld [vmem:[%s478_s0 + $0x1e8] sm:$0xff]  ;;  %v195_v49 = vld [vmem:[%s478_s0 + $0x138] sm:$0xff]  ;;  %v210_v51 = vld [vmem:[%s478_s0 + $0x1b0] sm:$0xff] }
  0x17   :  { %v82_v48 = vmax.f32 %v65_v39, %v194_v35  ;;  %155 = vst [vmem:[%s479_s1 + $0x18] sm:$0xff] %v147_v41  ;;  %v225_v54 = vld [vmem:[%s478_s0 + $0x228] sm:$0xff]  ;;  %v203_v56 = vld [vmem:[%s478_s0 + $0x178] sm:$0xff]  ;;  %v218_v58 = vld [vmem:[%s478_s0 + $0x1f0] sm:$0xff] }
  0x18   :  { %v131_v46 = vmax.f32 %v114_v37, %v216_v33  ;;  %v115_v50 = vmax.f32 %v98_v43, %v209_v38  ;;  %v66_v52 = vmax.f32 %v49_v45, %v187_v40  ;;  %v211_v61 = vld [vmem:[%s478_s0 + $0x1b8] sm:$0xff]  ;;  %v226_v63 = vld [vmem:[%s478_s0 + $0x230] sm:$0xff] }
  0x19   :  { %v99_v55 = vmax.f32 %v82_v48, %v202_v44  ;;  %v219_v2 = vld [vmem:[%s478_s0 + $0x1f8] sm:$0xff] }
  0x1a   :  { %v148_v53 = vmax.f32 %v131_v46, %v224_v42  ;;  %v132_v57 = vmax.f32 %v115_v50, %v217_v47  ;;  %v83_v59 = vmax.f32 %v66_v52, %v195_v49  ;;  %v227_v5 = vld [vmem:[%s478_s0 + $0x238] sm:$0xff] }
  0x1b   :  { %v116_v60 = vmax.f32 %v99_v55, %v210_v51 }
  0x1c   :  { %156 = vst [vmem:[%s479_s1 + $0x20] sm:$0xff] %v148_v53  ;;  %v149_v62 = vmax.f32 %v132_v57, %v225_v54  ;;  %v100_v0 = vmax.f32 %v83_v59, %v203_v56 }
  0x1d   :  { %v133_v1 = vmax.f32 %v116_v60, %v218_v58 }
  0x1e   :  { %157 = vst [vmem:[%s479_s1 + $0x28] sm:$0xff] %v149_v62  ;;  %v117_v3 = vmax.f32 %v100_v0, %v211_v61 }
  0x1f   :  { %v150_v4 = vmax.f32 %v133_v1, %v226_v63 }
  0x20   :  { %v134_v6 = vmax.f32 %v117_v3, %v219_v2 }
  0x21   :  { %158 = vst [vmem:[%s479_s1 + $0x30] sm:$0xff] %v150_v4 }
  0x22   :  { %v151_v7 = vmax.f32 %v134_v6, %v227_v5 }
  0x24   :  { %159 = vst [vmem:[%s479_s1 + $0x38] sm:$0xff] %v151_v7 }

// kernel: resnet_feature_forward.22
= control target key start
LH: loop header
LB: loop body
LE: loop exit
PB: predicated region body
PF: predicated region fallthrough
CT: control target
= control target key end

     0   :  { %s1461_s15 = smov 0   ;;  %s1463_s16 = smov 0   ;;  %s1691_s0 = inlined_call_operand.vmem [shape: bf16[512,256], index: 0, kind: input, shape index: {}]   ;;  %s1692_s1 = inlined_call_operand.vmem [shape: bf16[256,128], index: 1, kind: input, shape index: {}]   ;;  %s1693_s2 = inlined_call_operand.vmem [shape: f32[1,128], index: 2, kind: input, shape index: {}]   ;;  %s1694_s3 = inlined_call_operand.vmem [shape: f32[1,128], index: 3, kind: input, shape index: {}]   ;;  %s1695_s4 = inlined_call_operand.vmem [shape: f32[512,128], index: 4, kind: output, shape index: {}]  }
   0x1   :  { %s1465_s17 = smov 0  }
   0x2 LB: > { %s26_s18 = sadd.s32 1, %s1430_s16  ;;  %p1136_p0 = scmp.ge.s32.totalorder %s1434_s17, 1  ;;  %s1434_s17 = sphi %s1465_s17, %s14_s17   ;;  %s1430_s16 = sphi %s1463_s16, %s1697_s16   ;;  %s1426_s15 = sphi %s1461_s15, %s1696_s15  }
   0x3   : > { %p28_p1 = scmp.ge.s32.totalorder %s26_s18, 2  ;;  %p194_p2 = scmp.lt.s32.totalorder %s1434_s17, 3 }
   0x5   : > { %s1699_s18 = smov (%p28_p1, %s26_s18), 0  ;;  %p195_p3 = pnand %p1136_p0, %p194_p2 }
   0x6   : > { %v1348_v0 = vld [vmem:[%s1692_s1 + $0x40] sm:$0xff] (!%p195_p3)   ;;  %s1137_s21 = sshll.u32 (!%p195_p3), %s1426_s15, 5  ;;  %v1350_v2 = vld [vmem:[%s1692_s1 + $0x48] sm:$0xff] (!%p195_p3)   ;;  %v1352_v4 = vld [vmem:[%s1692_s1 + $0x50] sm:$0xff] (!%p195_p3)  }
   0x7   : > { %198 = sbr.rel (%p195_p3) target bundleno = 319 (0x13f), region = 36  ;;  %v1349_v1 = vld [vmem:[%s1692_s1] sm:$0xff] (!%p195_p3)   ;;  %1195 = vmatprep.subr.bf16.mxu0 (!%p195_p3), %v1348_v0  ;;  %1307 = vmatprep.subr.bf16.mxu1 (!%p195_p3), %v1348_v0  ;;  %v1351_v3 = vld [vmem:[%s1692_s1 + $0x8] sm:$0xff] (!%p195_p3)   ;;  %p232_p4 = scmp.lt.s32.totalorder (!%p195_p3), %s1137_s21, 63  ;;  %v1353_v5 = vld [vmem:[%s1692_s1 + $0x10] sm:$0xff] (!%p195_p3)  }
   0x8   : > { %1196 = vmatpush3.bf16.msra.mxu0 (!%p195_p3), %v1349_v1  ;;  %1315 = vmatpush3.bf16.msra.mxu1 (!%p195_p3), %v1349_v1  ;;  %v1354_v6 = vld [vmem:[%s1692_s1 + $0x58] sm:$0xff] (!%p195_p3)   ;;  %v1356_v8 = vld [vmem:[%s1692_s1 + $0x60] sm:$0xff] (!%p195_p3)   ;;  %v1358_v10 = vld [vmem:[%s1692_s1 + $0x68] sm:$0xff] (!%p195_p3)  }
   0x9   : > { %1197 = vmatprep.subr.bf16.mxu0 (!%p195_p3), %v1350_v2  ;;  %1308 = vmatprep.subr.bf16.mxu1 (!%p195_p3), %v1350_v2  ;;  %v1355_v7 = vld [vmem:[%s1692_s1 + $0x18] sm:$0xff] (!%p195_p3)   ;;  %v1357_v9 = vld [vmem:[%s1692_s1 + $0x20] sm:$0xff] (!%p195_p3)   ;;  %v1359_v13 = vld [vmem:[%s1692_s1 + $0x28] sm:$0xff] (!%p195_p3)  }
   0xa   : > { %v1360_v14 = vld [vmem:[%s1692_s1 + $0x70] sm:$0xff] (!%p195_p3)   ;;  %v1362_v16 = vld [vmem:[%s1692_s1 + $0x78] sm:$0xff] (!%p195_p3)   ;;  %v1572_v56 = vld [vmem:[%s1693_s2] ss:$0 sm:$0xff] (!%p195_p3) }
   0xb   : > { %v1361_v15 = vld [vmem:[%s1692_s1 + $0x30] sm:$0xff] (!%p195_p3)   ;;  %v1363_v17 = vld [vmem:[%s1692_s1 + $0x38] sm:$0xff] (!%p195_p3)   ;;  %v1577_v61 = vld [vmem:[%s1694_s3] ss:$0 sm:$0xff] (!%p195_p3) }
   0xc   : > { %1198 = vmatpush3.bf16.msra.mxu0 (!%p195_p3), %v1351_v3  ;;  %1316 = vmatpush3.bf16.msra.mxu1 (!%p195_p3), %v1351_v3 }
   0xd   : > { %1199 = vmatprep.subr.bf16.mxu0 (!%p195_p3), %v1352_v4  ;;  %1309 = vmatprep.subr.bf16.mxu1 (!%p195_p3), %v1352_v4 }
   0xe   : > { %s1701_s21 = smov (!%p232_p4, %s1137_s21), 63 }
   0xf   : > { %s1194_s10 = sshll.u32 %s1701_s21, 3 }
  0x10   : > { %1200 = vmatpush3.bf16.msra.mxu0 %v1353_v5  ;;  %1317 = vmatpush3.bf16.msra.mxu1 %v1353_v5  ;;  %s1514_s15 = scalar_lea.vmem %s1691_s0, %s1194_s10 }
  0x11   : > { %1201 = vmatprep.subr.bf16.mxu0 %v1354_v6  ;;  %1310 = vmatprep.subr.bf16.mxu1 %v1354_v6  ;;  %v1366_v11 = vld [vmem:[%s1514_s15 + $0x4] ss:$8 sps:$4 sm:$0xff]   ;;  %v1364_v18 = vld [vmem:[%s1514_s15] ss:$8 sps:$4 sm:$0xff]   ;;  %v1370_v20 = vld [vmem:[%s1514_s15 + $0x14] ss:$8 sps:$4 sm:$0xff]  }
  0x12   : > { %v1369_v12 = vld [vmem:[%s1514_s15 + $0x84] ss:$8 sps:$4 sm:$0xff]   ;;  %675 = vmatprep.mubr.bf16.mxu0 %v1366_v11  ;;  %v1367_v19 = vld [vmem:[%s1514_s15 + $0x80] ss:$8 sps:$4 sm:$0xff]   ;;  %v1372_v21 = vld [vmem:[%s1514_s15 + $0x94] ss:$8 sps:$4 sm:$0xff]  }
  0x13   : > { %739 = vmatprep.mubr.bf16.mxu1 %v1369_v12  ;;  %v1374_v22 = vld [vmem:[%s1514_s15 + $0x10] ss:$8 sps:$4 sm:$0xff]   ;;  %v1376_v24 = vld [vmem:[%s1514_s15 + $0x24] ss:$8 sps:$4 sm:$0xff]   ;;  %v1380_v26 = vld [vmem:[%s1514_s15 + $0x20] ss:$8 sps:$4 sm:$0xff]  }
  0x14   : > { %1202 = vmatpush3.bf16.msra.mxu0 %v1355_v7  ;;  %1318 = vmatpush3.bf16.msra.mxu1 %v1355_v7  ;;  %v1375_v23 = vld [vmem:[%s1514_s15 + $0x90] ss:$8 sps:$4 sm:$0xff]   ;;  %v1378_v25 = vld [vmem:[%s1514_s15 + $0xa4] ss:$8 sps:$4 sm:$0xff]   ;;  %v1381_v27 = vld [vmem:[%s1514_s15 + $0xa0] ss:$8 sps:$4 sm:$0xff]  }
  0x15   : > { %1203 = vmatprep.subr.bf16.mxu0 %v1356_v8  ;;  %1311 = vmatprep.subr.bf16.mxu1 %v1356_v8  ;;  %v1382_v28 = vld [vmem:[%s1514_s15 + $0x34] ss:$8 sps:$4 sm:$0xff]   ;;  %v1386_v30 = vld [vmem:[%s1514_s15 + $0x30] ss:$8 sps:$4 sm:$0xff]   ;;  %v1388_v32 = vld [vmem:[%s1514_s15 + $0x44] ss:$8 sps:$4 sm:$0xff]  }
  0x16   : > { %v1384_v29 = vld [vmem:[%s1514_s15 + $0xb4] ss:$8 sps:$4 sm:$0xff]   ;;  %v1387_v31 = vld [vmem:[%s1514_s15 + $0xb0] ss:$8 sps:$4 sm:$0xff]   ;;  %v1390_v33 = vld [vmem:[%s1514_s15 + $0xc4] ss:$8 sps:$4 sm:$0xff]  }
  0x17   : > { %v1392_v34 = vld [vmem:[%s1514_s15 + $0x40] ss:$8 sps:$4 sm:$0xff]   ;;  %v1394_v36 = vld [vmem:[%s1514_s15 + $0x54] ss:$8 sps:$4 sm:$0xff]   ;;  %v1398_v38 = vld [vmem:[%s1514_s15 + $0x50] ss:$8 sps:$4 sm:$0xff]  }
  0x18   : > { %1204 = vmatpush3.bf16.msra.mxu0 %v1357_v9  ;;  %1319 = vmatpush3.bf16.msra.mxu1 %v1357_v9  ;;  %v1393_v35 = vld [vmem:[%s1514_s15 + $0xc0] ss:$8 sps:$4 sm:$0xff]   ;;  %v1396_v37 = vld [vmem:[%s1514_s15 + $0xd4] ss:$8 sps:$4 sm:$0xff]   ;;  %v1399_v39 = vld [vmem:[%s1514_s15 + $0xd0] ss:$8 sps:$4 sm:$0xff]  }
  0x19   : > { %1205 = vmatprep.subr.bf16.mxu0 %v1358_v10  ;;  %1312 = vmatprep.subr.bf16.mxu1 %v1358_v10  ;;  %v1400_v40 = vld [vmem:[%s1514_s15 + $0x64] ss:$8 sps:$4 sm:$0xff]   ;;  %v1404_v42 = vld [vmem:[%s1514_s15 + $0x60] ss:$8 sps:$4 sm:$0xff]   ;;  %v1406_v44 = vld [vmem:[%s1514_s15 + $0x74] ss:$8 sps:$4 sm:$0xff]  }
  0x1a   : > { %v1402_v41 = vld [vmem:[%s1514_s15 + $0xe4] ss:$8 sps:$4 sm:$0xff]   ;;  %v1405_v43 = vld [vmem:[%s1514_s15 + $0xe0] ss:$8 sps:$4 sm:$0xff]   ;;  %v1408_v45 = vld [vmem:[%s1514_s15 + $0xf4] ss:$8 sps:$4 sm:$0xff]  }
  0x1b   : > { %v1410_v46 = vld [vmem:[%s1514_s15 + $0x70] ss:$8 sps:$4 sm:$0xff]  }
  0x1c   : > { %1206 = vmatpush3.bf16.msra.mxu0 %v1359_v13  ;;  %1320 = vmatpush3.bf16.msra.mxu1 %v1359_v13  ;;  %v1411_v47 = vld [vmem:[%s1514_s15 + $0xf0] ss:$8 sps:$4 sm:$0xff]   ;;  %s1590_s15 = scalar_lea.vmem %s1695_s4, %s1194_s10 }
  0x1d   : > { %1207 = vmatprep.subr.bf16.mxu0 %v1360_v14  ;;  %1313 = vmatprep.subr.bf16.mxu1 %v1360_v14 }
  0x20   : > { %1208 = vmatpush3.bf16.msra.mxu0 %v1361_v15  ;;  %1321 = vmatpush3.bf16.msra.mxu1 %v1361_v15 }
  0x21   : > { %1209 = vmatprep.subr.bf16.mxu0 %v1362_v16  ;;  %1314 = vmatprep.subr.bf16.mxu1 %v1362_v16 }
  0x24   : > { %1210 = vmatpush3.bf16.msra.mxu0 %v1363_v17  ;;  %1322 = vmatpush3.bf16.msra.mxu1 %v1363_v17 }
  0x27   : > { %676 = vmatmul.mubr.bf16.vlgmr.msra.gmra.mrb[0].mxu0 %v1364_v18  ;;  %740 = vmatmul.mubr.bf16.vlgmr.msra.gmra.mrb[0].mxu1 %v1367_v19 }
  0x28   : > { %683 = vmatprep.mubr.bf16.mxu0 %v1370_v20  ;;  %747 = vmatprep.mubr.bf16.mxu1 %v1372_v21 }
  0x2f   : > { %684 = vmatmul.mubr.bf16.gmra.mrb[4].mxu0 %v1374_v22  ;;  %748 = vmatmul.mubr.bf16.gmra.mrb[4].mxu1 %v1375_v23 }
  0x30   : > { %691 = vmatprep.mubr.bf16.mxu0 %v1376_v24  ;;  %755 = vmatprep.mubr.bf16.mxu1 %v1378_v25 }
  0x37   : > { %692 = vmatmul.mubr.bf16.gmra.mrb[8].mxu0 %v1380_v26  ;;  %756 = vmatmul.mubr.bf16.gmra.mrb[8].mxu1 %v1381_v27 }
  0x38   : > { %699 = vmatprep.mubr.bf16.mxu0 %v1382_v28  ;;  %763 = vmatprep.mubr.bf16.mxu1 %v1384_v29 }
  0x3f   : > { %700 = vmatmul.mubr.bf16.gmra.mrb[12].mxu0 %v1386_v30  ;;  %764 = vmatmul.mubr.bf16.gmra.mrb[12].mxu1 %v1387_v31 }
  0x40   : > { %707 = vmatprep.mubr.bf16.mxu0 %v1388_v32  ;;  %771 = vmatprep.mubr.bf16.mxu1 %v1390_v33 }
  0x47   : > { %708 = vmatmul.mubr.bf16.gmra.mrb[16].mxu0 %v1392_v34  ;;  %772 = vmatmul.mubr.bf16.gmra.mrb[16].mxu1 %v1393_v35 }
  0x48   : > { %715 = vmatprep.mubr.bf16.mxu0 %v1394_v36  ;;  %779 = vmatprep.mubr.bf16.mxu1 %v1396_v37 }
  0x4f   : > { %716 = vmatmul.mubr.bf16.gmra.mrb[20].mxu0 %v1398_v38  ;;  %780 = vmatmul.mubr.bf16.gmra.mrb[20].mxu1 %v1399_v39 }
  0x50   : > { %723 = vmatprep.mubr.bf16.mxu0 %v1400_v40  ;;  %787 = vmatprep.mubr.bf16.mxu1 %v1402_v41 }
  0x57   : > { %724 = vmatmul.mubr.bf16.gmra.mrb[24].mxu0 %v1404_v42  ;;  %788 = vmatmul.mubr.bf16.gmra.mrb[24].mxu1 %v1405_v43 }
  0x58   : > { %731 = vmatprep.mubr.bf16.mxu0 %v1406_v44  ;;  %795 = vmatprep.mubr.bf16.mxu1 %v1408_v45 }
  0x5f   : > { %732 = vmatmul.mubr.bf16.gmra.mrb[28].mxu0 %v1410_v46  ;;  %796 = vmatmul.mubr.bf16.gmra.mrb[28].mxu1 %v1411_v47 }
  0xfa   : > { %v1211_v48 = vpop.f32.mrb[0].mxu0  ;;  %v1259_v49 = vpop.f32.mrb[0].mxu1 }
  0xfb   : > { %v1212_v50 = vpop.f32.mrb[1].mxu0  ;;  %v1260_v51 = vpop.f32.mrb[1].mxu1 }
  0xfc   : > { %v1213_v52 = vadd.f32 %v1212_v50, %v1211_v48  ;;  %v1261_v53 = vadd.f32 %v1260_v51, %v1259_v49  ;;  %v1214_v54 = vpop.f32.mrb[2].mxu0  ;;  %v1262_v55 = vpop.f32.mrb[2].mxu1 }
  0xfd   : > { %v1215_v57 = vpop.f32.mrb[3].mxu0  ;;  %v1263_v58 = vpop.f32.mrb[3].mxu1 }
  0xfe   : > { %v1216_v59 = vadd.f32 %v1215_v57, %v1214_v54  ;;  %v1264_v60 = vadd.f32 %v1263_v58, %v1262_v55  ;;  %v911_v62 = vmul.f32 %v1213_v52, %v1572_v56  ;;  %v927_v63 = vmul.f32 %v1261_v53, %v1572_v56 }
 0x100   : > { %v949_v0 = vadd.f32 %v1577_v61, %v911_v62  ;;  %v965_v1 = vadd.f32 %v1577_v61, %v927_v63  ;;  %v912_v2 = vmul.f32 %v1216_v59, %v1572_v56  ;;  %v928_v3 = vmul.f32 %v1264_v60, %v1572_v56 }
 0x102   : > { %v1217_v4 = vpop.f32.mrb[4].mxu0  ;;  %v1265_v5 = vpop.f32.mrb[4].mxu1  ;;  %v981_v8 = vmax.f32 %v949_v0, 0.0  ;;  %v997_v9 = vmax.f32 %v965_v1, 0.0  ;;  %v950_v10 = vadd.f32 %v1577_v61, %v912_v2  ;;  %v966_v11 = vadd.f32 %v1577_v61, %v928_v3 }
 0x103   : > { %v1218_v6 = vpop.f32.mrb[5].mxu0  ;;  %v1266_v7 = vpop.f32.mrb[5].mxu1 }
 0x104   : > { %v1220_v12 = vpop.f32.mrb[6].mxu0  ;;  %v1268_v13 = vpop.f32.mrb[6].mxu1  ;;  %v1219_v14 = vadd.f32 %v1218_v6, %v1217_v4  ;;  %v1267_v15 = vadd.f32 %v1266_v7, %v1265_v5  ;;  %1013 = vst [vmem:[%s1590_s15] sm:$0xff] %v981_v8  ;;  %1029 = vst [vmem:[%s1590_s15 + $0x80] sm:$0xff] %v997_v9  ;;  %v982_v18 = vmax.f32 %v950_v10, 0.0  ;;  %v998_v19 = vmax.f32 %v966_v11, 0.0 }
 0x105   : > { %v1221_v16 = vpop.f32.mrb[7].mxu0  ;;  %v1269_v17 = vpop.f32.mrb[7].mxu1 }
 0x106   : > { %v1222_v20 = vadd.f32 %v1221_v16, %v1220_v12  ;;  %v1270_v21 = vadd.f32 %v1269_v17, %v1268_v13  ;;  %1014 = vst [vmem:[%s1590_s15 + $0x8] sm:$0xff] %v982_v18  ;;  %1030 = vst [vmem:[%s1590_s15 + $0x88] sm:$0xff] %v998_v19  ;;  %v913_v22 = vmul.f32 %v1219_v14, %v1572_v56 }
 0x107   : > { %v929_v23 = vmul.f32 %v1267_v15, %v1572_v56 }
 0x108   : > { %v914_v24 = vmul.f32 %v1222_v20, %v1572_v56  ;;  %v930_v25 = vmul.f32 %v1270_v21, %v1572_v56  ;;  %v951_v28 = vadd.f32 %v1577_v61, %v913_v22 }
 0x109   : > { %v967_v29 = vadd.f32 %v1577_v61, %v929_v23 }
 0x10a   : > { %v1223_v26 = vpop.f32.mrb[8].mxu0  ;;  %v1271_v27 = vpop.f32.mrb[8].mxu1  ;;  %v952_v32 = vadd.f32 %v1577_v61, %v914_v24  ;;  %v968_v33 = vadd.f32 %v1577_v61, %v930_v25  ;;  %v983_v38 = vmax.f32 %v951_v28, 0.0 }
 0x10b   : > { %v1224_v30 = vpop.f32.mrb[9].mxu0  ;;  %v1272_v31 = vpop.f32.mrb[9].mxu1  ;;  %v999_v39 = vmax.f32 %v967_v29, 0.0 }
 0x10c   : > { %v1225_v34 = vadd.f32 %v1224_v30, %v1223_v26  ;;  %v1273_v35 = vadd.f32 %v1272_v31, %v1271_v27  ;;  %v1226_v36 = vpop.f32.mrb[10].mxu0  ;;  %v1274_v37 = vpop.f32.mrb[10].mxu1  ;;  %v984_v42 = vmax.f32 %v952_v32, 0.0  ;;  %v1000_v43 = vmax.f32 %v968_v33, 0.0  ;;  %1015 = vst [vmem:[%s1590_s15 + $0x10] sm:$0xff] %v983_v38 }
 0x10d   : > { %v1227_v40 = vpop.f32.mrb[11].mxu0  ;;  %v1275_v41 = vpop.f32.mrb[11].mxu1  ;;  %1031 = vst [vmem:[%s1590_s15 + $0x90] sm:$0xff] %v999_v39 }
 0x10e   : > { %v1228_v44 = vadd.f32 %v1227_v40, %v1226_v36  ;;  %v1276_v45 = vadd.f32 %v1275_v41, %v1274_v37  ;;  %1016 = vst [vmem:[%s1590_s15 + $0x18] sm:$0xff] %v984_v42  ;;  %1032 = vst [vmem:[%s1590_s15 + $0x98] sm:$0xff] %v1000_v43  ;;  %v915_v46 = vmul.f32 %v1225_v34, %v1572_v56 }
 0x10f   : > { %v931_v47 = vmul.f32 %v1273_v35, %v1572_v56 }
 0x110   : > { %v953_v48 = vadd.f32 %v1577_v61, %v915_v46  ;;  %v916_v52 = vmul.f32 %v1228_v44, %v1572_v56  ;;  %v932_v53 = vmul.f32 %v1276_v45, %v1572_v56 }
 0x111   : > { %v969_v49 = vadd.f32 %v1577_v61, %v931_v47 }
 0x112   : > { %v1229_v50 = vpop.f32.mrb[12].mxu0  ;;  %v1277_v51 = vpop.f32.mrb[12].mxu1  ;;  %v985_v57 = vmax.f32 %v953_v48, 0.0  ;;  %v954_v0 = vadd.f32 %v1577_v61, %v916_v52  ;;  %v970_v1 = vadd.f32 %v1577_v61, %v932_v53 }
 0x113   : > { %v1230_v54 = vpop.f32.mrb[13].mxu0  ;;  %v1278_v55 = vpop.f32.mrb[13].mxu1  ;;  %v1001_v58 = vmax.f32 %v969_v49, 0.0 }
 0x114   : > { %v1231_v59 = vadd.f32 %v1230_v54, %v1229_v50  ;;  %v1279_v60 = vadd.f32 %v1278_v55, %v1277_v51  ;;  %v1232_v62 = vpop.f32.mrb[14].mxu0  ;;  %v1280_v63 = vpop.f32.mrb[14].mxu1  ;;  %1017 = vst [vmem:[%s1590_s15 + $0x20] sm:$0xff] %v985_v57  ;;  %v986_v6 = vmax.f32 %v954_v0, 0.0  ;;  %v1002_v7 = vmax.f32 %v970_v1, 0.0 }
 0x115   : > { %v1233_v2 = vpop.f32.mrb[15].mxu0  ;;  %v1281_v3 = vpop.f32.mrb[15].mxu1  ;;  %1033 = vst [vmem:[%s1590_s15 + $0xa0] sm:$0xff] %v1001_v58 }
 0x116   : > { %v1234_v4 = vadd.f32 %v1233_v2, %v1232_v62  ;;  %v1282_v5 = vadd.f32 %v1281_v3, %v1280_v63  ;;  %v917_v8 = vmul.f32 %v1231_v59, %v1572_v56  ;;  %v933_v9 = vmul.f32 %v1279_v60, %v1572_v56  ;;  %1018 = vst [vmem:[%s1590_s15 + $0x28] sm:$0xff] %v986_v6 }
 0x117   : > { %1034 = vst [vmem:[%s1590_s15 + $0xa8] sm:$0xff] %v1002_v7 }
 0x118   : > { %v955_v10 = vadd.f32 %v1577_v61, %v917_v8  ;;  %v971_v11 = vadd.f32 %v1577_v61, %v933_v9  ;;  %v918_v12 = vmul.f32 %v1234_v4, %v1572_v56  ;;  %v934_v13 = vmul.f32 %v1282_v5, %v1572_v56 }
 0x11a   : > { %v1235_v14 = vpop.f32.mrb[16].mxu0  ;;  %v1283_v15 = vpop.f32.mrb[16].mxu1  ;;  %v987_v18 = vmax.f32 %v955_v10, 0.0  ;;  %v1003_v19 = vmax.f32 %v971_v11, 0.0  ;;  %v956_v20 = vadd.f32 %v1577_v61, %v918_v12  ;;  %v972_v21 = vadd.f32 %v1577_v61, %v934_v13 }
 0x11b   : > { %v1236_v16 = vpop.f32.mrb[17].mxu0  ;;  %v1284_v17 = vpop.f32.mrb[17].mxu1 }
 0x11c   : > { %v1238_v22 = vpop.f32.mrb[18].mxu0  ;;  %v1286_v23 = vpop.f32.mrb[18].mxu1  ;;  %v1237_v24 = vadd.f32 %v1236_v16, %v1235_v14  ;;  %v1285_v25 = vadd.f32 %v1284_v17, %v1283_v15  ;;  %1019 = vst [vmem:[%s1590_s15 + $0x30] sm:$0xff] %v987_v18  ;;  %1035 = vst [vmem:[%s1590_s15 + $0xb0] sm:$0xff] %v1003_v19  ;;  %v988_v28 = vmax.f32 %v956_v20, 0.0  ;;  %v1004_v29 = vmax.f32 %v972_v21, 0.0 }
 0x11d   : > { %v1239_v26 = vpop.f32.mrb[19].mxu0  ;;  %v1287_v27 = vpop.f32.mrb[19].mxu1 }
 0x11e   : > { %v1240_v30 = vadd.f32 %v1239_v26, %v1238_v22  ;;  %v1288_v31 = vadd.f32 %v1287_v27, %v1286_v23  ;;  %1020 = vst [vmem:[%s1590_s15 + $0x38] sm:$0xff] %v988_v28  ;;  %1036 = vst [vmem:[%s1590_s15 + $0xb8] sm:$0xff] %v1004_v29  ;;  %v919_v32 = vmul.f32 %v1237_v24, %v1572_v56 }
 0x11f   : > { %v935_v33 = vmul.f32 %v1285_v25, %v1572_v56 }
 0x120   : > { %v920_v34 = vmul.f32 %v1240_v30, %v1572_v56  ;;  %v936_v35 = vmul.f32 %v1288_v31, %v1572_v56  ;;  %v957_v38 = vadd.f32 %v1577_v61, %v919_v32 }
 0x121   : > { %v973_v39 = vadd.f32 %v1577_v61, %v935_v33 }
 0x122   : > { %v1241_v36 = vpop.f32.mrb[20].mxu0  ;;  %v1289_v37 = vpop.f32.mrb[20].mxu1  ;;  %v958_v42 = vadd.f32 %v1577_v61, %v920_v34  ;;  %v974_v43 = vadd.f32 %v1577_v61, %v936_v35  ;;  %v989_v48 = vmax.f32 %v957_v38, 0.0 }
 0x123   : > { %v1242_v40 = vpop.f32.mrb[21].mxu0  ;;  %v1290_v41 = vpop.f32.mrb[21].mxu1  ;;  %v1005_v49 = vmax.f32 %v973_v39, 0.0 }
 0x124   : > { %v1243_v44 = vadd.f32 %v1242_v40, %v1241_v36  ;;  %v1291_v45 = vadd.f32 %v1290_v41, %v1289_v37  ;;  %v1244_v46 = vpop.f32.mrb[22].mxu0  ;;  %v1292_v47 = vpop.f32.mrb[22].mxu1  ;;  %v990_v52 = vmax.f32 %v958_v42, 0.0  ;;  %v1006_v53 = vmax.f32 %v974_v43, 0.0  ;;  %1021 = vst [vmem:[%s1590_s15 + $0x40] sm:$0xff] %v989_v48 }
 0x125   : > { %v1245_v50 = vpop.f32.mrb[23].mxu0  ;;  %v1293_v51 = vpop.f32.mrb[23].mxu1  ;;  %1037 = vst [vmem:[%s1590_s15 + $0xc0] sm:$0xff] %v1005_v49 }
 0x126   : > { %v1246_v54 = vadd.f32 %v1245_v50, %v1244_v46  ;;  %v1294_v55 = vadd.f32 %v1293_v51, %v1292_v47  ;;  %1022 = vst [vmem:[%s1590_s15 + $0x48] sm:$0xff] %v990_v52  ;;  %1038 = vst [vmem:[%s1590_s15 + $0xc8] sm:$0xff] %v1006_v53  ;;  %v921_v57 = vmul.f32 %v1243_v44, %v1572_v56 }
 0x127   : > { %v937_v58 = vmul.f32 %v1291_v45, %v1572_v56 }
 0x128   : > { %v959_v59 = vadd.f32 %v1577_v61, %v921_v57  ;;  %v922_v0 = vmul.f32 %v1246_v54, %v1572_v56  ;;  %v938_v1 = vmul.f32 %v1294_v55, %v1572_v56 }
 0x129   : > { %v975_v60 = vadd.f32 %v1577_v61, %v937_v58 }
 0x12a   : > { %v1247_v62 = vpop.f32.mrb[24].mxu0  ;;  %v1295_v63 = vpop.f32.mrb[24].mxu1  ;;  %v991_v4 = vmax.f32 %v959_v59, 0.0  ;;  %v960_v10 = vadd.f32 %v1577_v61, %v922_v0  ;;  %v976_v11 = vadd.f32 %v1577_v61, %v938_v1 }
 0x12b   : > { %v1248_v2 = vpop.f32.mrb[25].mxu0  ;;  %v1296_v3 = vpop.f32.mrb[25].mxu1  ;;  %v1007_v5 = vmax.f32 %v975_v60, 0.0 }
 0x12c   : > { %v1249_v6 = vadd.f32 %v1248_v2, %v1247_v62  ;;  %v1297_v7 = vadd.f32 %v1296_v3, %v1295_v63  ;;  %v1250_v8 = vpop.f32.mrb[26].mxu0  ;;  %v1298_v9 = vpop.f32.mrb[26].mxu1  ;;  %1023 = vst [vmem:[%s1590_s15 + $0x50] sm:$0xff] %v991_v4  ;;  %v992_v16 = vmax.f32 %v960_v10, 0.0  ;;  %v1008_v17 = vmax.f32 %v976_v11, 0.0 }
 0x12d   : > { %v1251_v12 = vpop.f32.mrb[27].mxu0  ;;  %v1299_v13 = vpop.f32.mrb[27].mxu1  ;;  %1039 = vst [vmem:[%s1590_s15 + $0xd0] sm:$0xff] %v1007_v5 }
 0x12e   : > { %v1252_v14 = vadd.f32 %v1251_v12, %v1250_v8  ;;  %v1300_v15 = vadd.f32 %v1299_v13, %v1298_v9  ;;  %v923_v18 = vmul.f32 %v1249_v6, %v1572_v56  ;;  %v939_v19 = vmul.f32 %v1297_v7, %v1572_v56  ;;  %1024 = vst [vmem:[%s1590_s15 + $0x58] sm:$0xff] %v992_v16 }
 0x12f   : > { %1040 = vst [vmem:[%s1590_s15 + $0xd8] sm:$0xff] %v1008_v17 }
 0x130   : > { %v961_v20 = vadd.f32 %v1577_v61, %v923_v18  ;;  %v977_v21 = vadd.f32 %v1577_v61, %v939_v19  ;;  %v924_v22 = vmul.f32 %v1252_v14, %v1572_v56  ;;  %v940_v23 = vmul.f32 %v1300_v15, %v1572_v56 }
 0x132   : > { %v1253_v24 = vpop.f32.mrb[28].mxu0  ;;  %v1301_v25 = vpop.f32.mrb[28].mxu1  ;;  %v993_v28 = vmax.f32 %v961_v20, 0.0  ;;  %v1009_v29 = vmax.f32 %v977_v21, 0.0  ;;  %v962_v30 = vadd.f32 %v1577_v61, %v924_v22  ;;  %v978_v31 = vadd.f32 %v1577_v61, %v940_v23 }
 0x133   : > { %v1254_v26 = vpop.f32.mrb[29].mxu0  ;;  %v1302_v27 = vpop.f32.mrb[29].mxu1 }
 0x134   : > { %v1256_v32 = vpop.f32.mrb[30].mxu0  ;;  %v1304_v33 = vpop.f32.mrb[30].mxu1  ;;  %v1255_v34 = vadd.f32 %v1254_v26, %v1253_v24  ;;  %v1303_v35 = vadd.f32 %v1302_v27, %v1301_v25  ;;  %1025 = vst [vmem:[%s1590_s15 + $0x60] sm:$0xff] %v993_v28  ;;  %1041 = vst [vmem:[%s1590_s15 + $0xe0] sm:$0xff] %v1009_v29  ;;  %v994_v38 = vmax.f32 %v962_v30, 0.0  ;;  %v1010_v39 = vmax.f32 %v978_v31, 0.0 }
 0x135   : > { %v1257_v36 = vpop.f32.mrb[31].mxu0  ;;  %v1305_v37 = vpop.f32.mrb[31].mxu1 }
 0x136   : > { %v1258_v40 = vadd.f32 %v1257_v36, %v1256_v32  ;;  %v1306_v41 = vadd.f32 %v1305_v37, %v1304_v33  ;;  %1026 = vst [vmem:[%s1590_s15 + $0x68] sm:$0xff] %v994_v38  ;;  %1042 = vst [vmem:[%s1590_s15 + $0xe8] sm:$0xff] %v1010_v39  ;;  %v925_v42 = vmul.f32 %v1255_v34, %v1572_v56 }
 0x137   : > { %v941_v43 = vmul.f32 %v1303_v35, %v1572_v56 }
 0x138   : > { %v926_v44 = vmul.f32 %v1258_v40, %v1572_v56  ;;  %v942_v45 = vmul.f32 %v1306_v41, %v1572_v56  ;;  %v963_v46 = vadd.f32 %v1577_v61, %v925_v42 }
 0x139   : > { %v979_v47 = vadd.f32 %v1577_v61, %v941_v43 }
 0x13a   : > { %v964_v48 = vadd.f32 %v1577_v61, %v926_v44  ;;  %v980_v49 = vadd.f32 %v1577_v61, %v942_v45  ;;  %v995_v50 = vmax.f32 %v963_v46, 0.0 }
 0x13b   : > { %v1011_v51 = vmax.f32 %v979_v47, 0.0 }
 0x13c   : > { %v996_v52 = vmax.f32 %v964_v48, 0.0  ;;  %v1012_v53 = vmax.f32 %v980_v49, 0.0  ;;  %1027 = vst [vmem:[%s1590_s15 + $0x70] sm:$0xff] %v995_v50 }
 0x13d   : > { %1043 = vst [vmem:[%s1590_s15 + $0xf0] sm:$0xff] %v1011_v51 }
 0x13e   : > { %1028 = vst [vmem:[%s1590_s15 + $0x78] sm:$0xff] %v996_v52  ;;  %1044 = vst [vmem:[%s1590_s15 + $0xf8] sm:$0xff] %v1012_v53 }
 0x13f PF: > { %s14_s17 = sadd.s32 1, %s1434_s17   ;;  %s1696_s15 = smov %s1430_s16 }
 0x140   : > { %p11_p5 = scmp.ge.s32.totalorder %s14_s17, 4   ;;  %s1697_s16 = smov %s1699_s18 }
 0x142   :  { %13 = sbr.rel (!%p11_p5) target bundleno = 2 (0x2), region = 77 }

// kernel: resnet_feature_forward.24
= control target key start
LH: loop header
LB: loop body
LE: loop exit
PB: predicated region body
PF: predicated region fallthrough
CT: control target
= control target key end

     0   :  { %s1816_s1 = inlined_call_operand.vmem [shape: bf16[640,128], index: 1, kind: input, shape index: {}]   ;;  %s1817_s0 = inlined_call_operand.vmem [shape: bf16[128,640], index: 0, kind: input, shape index: {}]   ;;  %s1818_s2 = inlined_call_operand.vmem [shape: f32[1,128], index: 2, kind: input, shape index: {}]   ;;  %s1819_s3 = inlined_call_operand.vmem [shape: f32[1,128], index: 3, kind: input, shape index: {}]   ;;  %s1820_s4 = inlined_call_operand.vmem [shape: f32[128,128], index: 4, kind: output, shape index: {}]  }
   0x1   :  { %v1329_v0 = vld [vmem:[%s1816_s1 + $0x40] sm:$0xff]   ;;  %v1333_v4 = vld [vmem:[%s1816_s1 + $0x48] sm:$0xff]   ;;  %v1337_v8 = vld [vmem:[%s1816_s1 + $0x50] sm:$0xff]  }
   0x2   :  { %v1330_v1 = vld [vmem:[%s1816_s1 + $0xc0] sm:$0xff]   ;;  %1136 = vmatprep.subr.bf16.mxu0 %v1329_v0  ;;  %v1334_v5 = vld [vmem:[%s1816_s1 + $0xc8] sm:$0xff]   ;;  %v1338_v9 = vld [vmem:[%s1816_s1 + $0xd0] sm:$0xff]  }
   0x3   :  { %v1331_v2 = vld [vmem:[%s1816_s1] sm:$0xff]   ;;  %1200 = vmatprep.subr.bf16.mxu1 %v1330_v1  ;;  %v1335_v6 = vld [vmem:[%s1816_s1 + $0x8] sm:$0xff]   ;;  %v1339_v10 = vld [vmem:[%s1816_s1 + $0x10] sm:$0xff]  }
   0x4   :  { %v1332_v3 = vld [vmem:[%s1816_s1 + $0x80] sm:$0xff]   ;;  %1137 = vmatpush3.bf16.msra.mxu0 %v1331_v2  ;;  %v1336_v7 = vld [vmem:[%s1816_s1 + $0x88] sm:$0xff]   ;;  %v1340_v11 = vld [vmem:[%s1816_s1 + $0x90] sm:$0xff]  }
   0x5   :  { %1201 = vmatpush3.bf16.msra.mxu1 %v1332_v3  ;;  %1138 = vmatprep.subr.bf16.mxu0 %v1333_v4  ;;  %v1341_v12 = vld [vmem:[%s1816_s1 + $0x58] sm:$0xff]   ;;  %v1345_v16 = vld [vmem:[%s1816_s1 + $0x60] sm:$0xff]   ;;  %v1349_v20 = vld [vmem:[%s1816_s1 + $0x68] sm:$0xff]  }
   0x6   :  { %1202 = vmatprep.subr.bf16.mxu1 %v1334_v5  ;;  %v1342_v13 = vld [vmem:[%s1816_s1 + $0xd8] sm:$0xff]   ;;  %v1346_v17 = vld [vmem:[%s1816_s1 + $0xe0] sm:$0xff]   ;;  %v1350_v21 = vld [vmem:[%s1816_s1 + $0xe8] sm:$0xff]  }
   0x7   :  { %v1343_v14 = vld [vmem:[%s1816_s1 + $0x18] sm:$0xff]   ;;  %v1347_v18 = vld [vmem:[%s1816_s1 + $0x20] sm:$0xff]   ;;  %v1351_v22 = vld [vmem:[%s1816_s1 + $0x28] sm:$0xff]  }
   0x8   :  { %1139 = vmatpush3.bf16.msra.mxu0 %v1335_v6  ;;  %v1344_v15 = vld [vmem:[%s1816_s1 + $0x98] sm:$0xff]   ;;  %v1348_v19 = vld [vmem:[%s1816_s1 + $0xa0] sm:$0xff]   ;;  %v1352_v23 = vld [vmem:[%s1816_s1 + $0xa8] sm:$0xff]  }
   0x9   :  { %1203 = vmatpush3.bf16.msra.mxu1 %v1336_v7  ;;  %1140 = vmatprep.subr.bf16.mxu0 %v1337_v8  ;;  %v1353_v24 = vld [vmem:[%s1816_s1 + $0x70] sm:$0xff]   ;;  %v1357_v28 = vld [vmem:[%s1816_s1 + $0x78] sm:$0xff]   ;;  %v1366_v35 = vld [vmem:[%s1817_s0 + $0xc] ss:$20 sps:$4 sm:$0xff]  }
   0xa   :  { %1204 = vmatprep.subr.bf16.mxu1 %v1338_v9  ;;  %v1354_v25 = vld [vmem:[%s1816_s1 + $0xf0] sm:$0xff]   ;;  %v1358_v29 = vld [vmem:[%s1816_s1 + $0xf8] sm:$0xff]   ;;  %v1367_v36 = vld [vmem:[%s1816_s1 + $0x100] sm:$0xff]   ;;  %759 = vmatprep.mubr.bf16.mxu1 %v1366_v35 }
   0xb   :  { %v1355_v26 = vld [vmem:[%s1816_s1 + $0x30] sm:$0xff]   ;;  %v1359_v30 = vld [vmem:[%s1816_s1 + $0x38] sm:$0xff]   ;;  %v1368_v37 = vld [vmem:[%s1817_s0 + $0x2c] ss:$20 sps:$4 sm:$0xff]  }
   0xc   :  { %1141 = vmatpush3.bf16.msra.mxu0 %v1339_v10  ;;  %v1356_v27 = vld [vmem:[%s1816_s1 + $0xb0] sm:$0xff]   ;;  %v1360_v31 = vld [vmem:[%s1816_s1 + $0xb8] sm:$0xff]   ;;  %v1374_v39 = vld [vmem:[%s1816_s1 + $0x108] sm:$0xff]  }
   0xd   :  { %1205 = vmatpush3.bf16.msra.mxu1 %v1340_v11  ;;  %1142 = vmatprep.subr.bf16.mxu0 %v1341_v12  ;;  %v1361_v32 = vld [vmem:[%s1817_s0] ss:$20 sps:$4 sm:$0xff]   ;;  %v1363_v33 = vld [vmem:[%s1817_s0 + $0x4] ss:$20 sps:$4 sm:$0xff]   ;;  %v1364_v34 = vld [vmem:[%s1817_s0 + $0x8] ss:$20 sps:$4 sm:$0xff]  }
   0xe   :  { %1206 = vmatprep.subr.bf16.mxu1 %v1342_v13  ;;  %662 = vmatprep.mubr.bf16.mxu0 %v1363_v33  ;;  %v1370_v38 = vld [vmem:[%s1817_s0 + $0x34] ss:$20 sps:$4 sm:$0xff]   ;;  %v1373_v41 = vld [vmem:[%s1817_s0 + $0x30] ss:$20 sps:$4 sm:$0xff]   ;;  %v1388_v45 = vld [vmem:[%s1816_s1 + $0x118] sm:$0xff]  }
   0xf   :  { %v1372_v40 = vld [vmem:[%s1817_s0 + $0x28] ss:$20 sps:$4 sm:$0xff]   ;;  %v1381_v44 = vld [vmem:[%s1816_s1 + $0x110] sm:$0xff]   ;;  %v1380_v47 = vld [vmem:[%s1817_s0 + $0x58] ss:$20 sps:$4 sm:$0xff]  }
  0x10   :  { %1143 = vmatpush3.bf16.msra.mxu0 %v1343_v14  ;;  %v1375_v42 = vld [vmem:[%s1817_s0 + $0x54] ss:$20 sps:$4 sm:$0xff]   ;;  %v1377_v43 = vld [vmem:[%s1817_s0 + $0x5c] ss:$20 sps:$4 sm:$0xff]   ;;  %v1384_v49 = vld [vmem:[%s1817_s0 + $0x84] ss:$20 sps:$4 sm:$0xff]  }
  0x11   :  { %1207 = vmatpush3.bf16.msra.mxu1 %v1344_v15  ;;  %1144 = vmatprep.subr.bf16.mxu0 %v1345_v16  ;;  %v1379_v46 = vld [vmem:[%s1817_s0 + $0x50] ss:$20 sps:$4 sm:$0xff]   ;;  %v1402_v51 = vld [vmem:[%s1816_s1 + $0x128] sm:$0xff]   ;;  %v1387_v53 = vld [vmem:[%s1817_s0 + $0x80] ss:$20 sps:$4 sm:$0xff]  }
  0x12   :  { %1208 = vmatprep.subr.bf16.mxu1 %v1346_v17  ;;  %v1382_v48 = vld [vmem:[%s1817_s0 + $0x7c] ss:$20 sps:$4 sm:$0xff]   ;;  %v1395_v50 = vld [vmem:[%s1816_s1 + $0x120] sm:$0xff]   ;;  %v1386_v52 = vld [vmem:[%s1817_s0 + $0x78] ss:$20 sps:$4 sm:$0xff]  }
  0x13   :  { %v1389_v54 = vld [vmem:[%s1817_s0 + $0xa4] ss:$20 sps:$4 sm:$0xff]   ;;  %v1409_v55 = vld [vmem:[%s1816_s1 + $0x130] sm:$0xff]   ;;  %v1391_v56 = vld [vmem:[%s1817_s0 + $0xac] ss:$20 sps:$4 sm:$0xff]  }
  0x14   :  { %1145 = vmatpush3.bf16.msra.mxu0 %v1347_v18  ;;  %v1416_v57 = vld [vmem:[%s1816_s1 + $0x138] sm:$0xff]   ;;  %v1393_v58 = vld [vmem:[%s1817_s0 + $0xa0] ss:$20 sps:$4 sm:$0xff]   ;;  %v1401_v63 = vld [vmem:[%s1817_s0 + $0xd0] ss:$20 sps:$4 sm:$0xff]  }
  0x15   :  { %1209 = vmatpush3.bf16.msra.mxu1 %v1348_v19  ;;  %1146 = vmatprep.subr.bf16.mxu0 %v1349_v20  ;;  %v1394_v59 = vld [vmem:[%s1817_s0 + $0xa8] ss:$20 sps:$4 sm:$0xff]   ;;  %v1396_v60 = vld [vmem:[%s1817_s0 + $0xcc] ss:$20 sps:$4 sm:$0xff]   ;;  %v1407_v2 = vld [vmem:[%s1817_s0 + $0xf0] ss:$20 sps:$4 sm:$0xff]  }
  0x16   :  { %1210 = vmatprep.subr.bf16.mxu1 %v1350_v21  ;;  %v1398_v61 = vld [vmem:[%s1817_s0 + $0xd4] ss:$20 sps:$4 sm:$0xff]   ;;  %v1405_v1 = vld [vmem:[%s1817_s0 + $0xfc] ss:$20 sps:$4 sm:$0xff]   ;;  %v1408_v3 = vld [vmem:[%s1817_s0 + $0xf8] ss:$20 sps:$4 sm:$0xff]  }
  0x17   :  { %v1400_v62 = vld [vmem:[%s1817_s0 + $0xc8] ss:$20 sps:$4 sm:$0xff]   ;;  %v1412_v5 = vld [vmem:[%s1817_s0 + $0x124] ss:$20 sps:$4 sm:$0xff]   ;;  %v1415_v7 = vld [vmem:[%s1817_s0 + $0x120] ss:$20 sps:$4 sm:$0xff]  }
  0x18   :  { %1147 = vmatpush3.bf16.msra.mxu0 %v1351_v22  ;;  %v1403_v0 = vld [vmem:[%s1817_s0 + $0xf4] ss:$20 sps:$4 sm:$0xff]   ;;  %v1410_v4 = vld [vmem:[%s1817_s0 + $0x11c] ss:$20 sps:$4 sm:$0xff]   ;;  %v1414_v6 = vld [vmem:[%s1817_s0 + $0x118] ss:$20 sps:$4 sm:$0xff]  }
  0x19   :  { %1211 = vmatpush3.bf16.msra.mxu1 %v1352_v23  ;;  %1148 = vmatprep.subr.bf16.mxu0 %v1353_v24  ;;  %v1417_v8 = vld [vmem:[%s1817_s0 + $0x10] ss:$20 sps:$4 sm:$0xff]   ;;  %v1419_v10 = vld [vmem:[%s1817_s0 + $0x38] ss:$20 sps:$4 sm:$0xff]   ;;  %v1421_v12 = vld [vmem:[%s1817_s0 + $0x60] ss:$20 sps:$4 sm:$0xff]  }
  0x1a   :  { %1212 = vmatprep.subr.bf16.mxu1 %v1354_v25  ;;  %v1418_v9 = vld [vmem:[%s1817_s0 + $0xb0] ss:$20 sps:$4 sm:$0xff]   ;;  %v1420_v11 = vld [vmem:[%s1817_s0 + $0xd8] ss:$20 sps:$4 sm:$0xff]   ;;  %v1422_v13 = vld [vmem:[%s1817_s0 + $0x100] ss:$20 sps:$4 sm:$0xff]  }
  0x1b   :  { %v1423_v14 = vld [vmem:[%s1817_s0 + $0x88] ss:$20 sps:$4 sm:$0xff]  }
  0x1c   :  { %1149 = vmatpush3.bf16.msra.mxu0 %v1355_v26  ;;  %v1424_v15 = vld [vmem:[%s1817_s0 + $0x128] ss:$20 sps:$4 sm:$0xff]  }
  0x1d   :  { %1213 = vmatpush3.bf16.msra.mxu1 %v1356_v27  ;;  %1150 = vmatprep.subr.bf16.mxu0 %v1357_v28 }
  0x1e   :  { %1214 = vmatprep.subr.bf16.mxu1 %v1358_v29 }
  0x20   :  { %1151 = vmatpush3.bf16.msra.mxu0 %v1359_v30 }
  0x21   :  { %1215 = vmatpush3.bf16.msra.mxu1 %v1360_v31  ;;  %1280 = vmatprep.subr.bf16.mxu0 %v1367_v36 }
  0x22   :  { %1312 = vmatprep.subr.bf16.mxu1 %v1367_v36 }
  0x23   :  { %663 = vmatmul.mubr.bf16.vlgmr.msra.gmra.mrb[0].mxu0 %v1361_v32 }
  0x24   :  { %760 = vmatmul.mubr.bf16.vlgmr.msra.gmra.mrb[0].mxu1 %v1364_v34  ;;  %1281 = vmatpush3.bf16.msra.mxu0 %v1367_v36 }
  0x25   :  { %1320 = vmatpush3.bf16.msra.mxu1 %v1367_v36  ;;  %670 = vmatprep.mubr.bf16.mxu0 %v1368_v37 }
  0x26   :  { %767 = vmatprep.mubr.bf16.mxu1 %v1370_v38  ;;  %1282 = vmatprep.subr.bf16.mxu0 %v1374_v39 }
  0x27   :  { %1313 = vmatprep.subr.bf16.mxu1 %v1374_v39 }
  0x28   :  { %1283 = vmatpush3.bf16.msra.mxu0 %v1374_v39 }
  0x29   :  { %1321 = vmatpush3.bf16.msra.mxu1 %v1374_v39  ;;  %1284 = vmatprep.subr.bf16.mxu0 %v1381_v44 }
  0x2a   :  { %1314 = vmatprep.subr.bf16.mxu1 %v1381_v44 }
  0x2b   :  { %671 = vmatmul.mubr.bf16.gmra.mrb[4].mxu0 %v1372_v40 }
  0x2c   :  { %768 = vmatmul.mubr.bf16.gmra.mrb[4].mxu1 %v1373_v41  ;;  %678 = vmatprep.mubr.bf16.mxu0 %v1375_v42 }
  0x2d   :  { %775 = vmatprep.mubr.bf16.mxu1 %v1377_v43  ;;  %1285 = vmatpush3.bf16.msra.mxu0 %v1381_v44 }
  0x2e   :  { %1322 = vmatpush3.bf16.msra.mxu1 %v1381_v44  ;;  %1286 = vmatprep.subr.bf16.mxu0 %v1388_v45 }
  0x2f   :  { %1315 = vmatprep.subr.bf16.mxu1 %v1388_v45 }
  0x31   :  { %1287 = vmatpush3.bf16.msra.mxu0 %v1388_v45 }
  0x32   :  { %1323 = vmatpush3.bf16.msra.mxu1 %v1388_v45  ;;  %1288 = vmatprep.subr.bf16.mxu0 %v1395_v50 }
  0x33   :  { %679 = vmatmul.mubr.bf16.gmra.mrb[8].mxu0 %v1379_v46  ;;  %1316 = vmatprep.subr.bf16.mxu1 %v1395_v50 }
  0x34   :  { %776 = vmatmul.mubr.bf16.gmra.mrb[8].mxu1 %v1380_v47  ;;  %686 = vmatprep.mubr.bf16.mxu0 %v1382_v48 }
  0x35   :  { %783 = vmatprep.mubr.bf16.mxu1 %v1384_v49  ;;  %1289 = vmatpush3.bf16.msra.mxu0 %v1395_v50 }
  0x36   :  { %1324 = vmatpush3.bf16.msra.mxu1 %v1395_v50  ;;  %1290 = vmatprep.subr.bf16.mxu0 %v1402_v51 }
  0x37   :  { %1317 = vmatprep.subr.bf16.mxu1 %v1402_v51 }
  0x39   :  { %1291 = vmatpush3.bf16.msra.mxu0 %v1402_v51 }
  0x3a   :  { %1325 = vmatpush3.bf16.msra.mxu1 %v1402_v51  ;;  %1292 = vmatprep.subr.bf16.mxu0 %v1409_v55 }
  0x3b   :  { %687 = vmatmul.mubr.bf16.gmra.mrb[12].mxu0 %v1386_v52  ;;  %1318 = vmatprep.subr.bf16.mxu1 %v1409_v55 }
  0x3c   :  { %784 = vmatmul.mubr.bf16.gmra.mrb[12].mxu1 %v1387_v53  ;;  %694 = vmatprep.mubr.bf16.mxu0 %v1389_v54 }
  0x3d   :  { %791 = vmatprep.mubr.bf16.mxu1 %v1391_v56  ;;  %1293 = vmatpush3.bf16.msra.mxu0 %v1409_v55 }
  0x3e   :  { %1326 = vmatpush3.bf16.msra.mxu1 %v1409_v55  ;;  %1294 = vmatprep.subr.bf16.mxu0 %v1416_v57 }
  0x3f   :  { %1319 = vmatprep.subr.bf16.mxu1 %v1416_v57 }
  0x41   :  { %1295 = vmatpush3.bf16.msra.mxu0 %v1416_v57 }
  0x42   :  { %1327 = vmatpush3.bf16.msra.mxu1 %v1416_v57 }
  0x43   :  { %695 = vmatmul.mubr.bf16.gmra.mrb[16].mxu0 %v1393_v58 }
  0x44   :  { %792 = vmatmul.mubr.bf16.gmra.mrb[16].mxu1 %v1394_v59  ;;  %702 = vmatprep.mubr.bf16.mxu0 %v1396_v60 }
  0x45   :  { %799 = vmatprep.mubr.bf16.mxu1 %v1398_v61 }
  0x4b   :  { %703 = vmatmul.mubr.bf16.gmra.mrb[20].mxu0 %v1400_v62 }
  0x4c   :  { %800 = vmatmul.mubr.bf16.gmra.mrb[20].mxu1 %v1401_v63  ;;  %710 = vmatprep.mubr.bf16.mxu0 %v1403_v0 }
  0x4d   :  { %807 = vmatprep.mubr.bf16.mxu1 %v1405_v1 }
  0x53   :  { %711 = vmatmul.mubr.bf16.gmra.mrb[24].mxu0 %v1407_v2 }
  0x54   :  { %808 = vmatmul.mubr.bf16.gmra.mrb[24].mxu1 %v1408_v3  ;;  %718 = vmatprep.mubr.bf16.mxu0 %v1410_v4 }
  0x55   :  { %815 = vmatprep.mubr.bf16.mxu1 %v1412_v5 }
  0x5b   :  { %719 = vmatmul.mubr.bf16.gmra.mrb[28].mxu0 %v1414_v6 }
  0x5c   :  { %816 = vmatmul.mubr.bf16.gmra.mrb[28].mxu1 %v1415_v7  ;;  %1296 = vmatprep.mubr.bf16.mxu0 %v1417_v8 }
  0x5d   :  { %1304 = vmatprep.mubr.bf16.mxu1 %v1418_v9 }
  0x63   :  { %1297 = vmatmul.mubr.bf16.vlgmr.msra.gmra.mrb[32].mxu0 %v1419_v10 }
  0x64   :  { %1305 = vmatmul.mubr.bf16.vlgmr.msra.gmra.mrb[32].mxu1 %v1420_v11  ;;  %1300 = vmatprep.mubr.bf16.mxu0 %v1421_v12 }
  0x65   :  { %1308 = vmatprep.mubr.bf16.mxu1 %v1422_v13 }
  0x6b   :  { %1301 = vmatmul.mubr.bf16.gmra.mrb[36].mxu0 %v1423_v14 }
  0x6c   :  { %1309 = vmatmul.mubr.bf16.gmra.mrb[36].mxu1 %v1424_v15 }
  0xf6   :  { %v1152_v16 = vpop.f32.mrb[0].mxu0 }
  0xf7   :  { %v1216_v17 = vpop.f32.mrb[0].mxu1  ;;  %v1153_v18 = vpop.f32.mrb[1].mxu0 }
  0xf8   :  { %v1154_v19 = vadd.f32 %v1153_v18, %v1152_v16  ;;  %v1217_v20 = vpop.f32.mrb[1].mxu1  ;;  %v1155_v21 = vpop.f32.mrb[2].mxu0 }
  0xf9   :  { %v1218_v22 = vadd.f32 %v1217_v20, %v1216_v17  ;;  %v1219_v23 = vpop.f32.mrb[2].mxu1  ;;  %v1156_v24 = vpop.f32.mrb[3].mxu0 }
  0xfa   :  { %v1157_v25 = vadd.f32 %v1156_v24, %v1155_v21  ;;  %v1220_v26 = vpop.f32.mrb[3].mxu1 }
  0xfb   :  { %v1221_v27 = vadd.f32 %v1220_v26, %v1219_v23  ;;  %v1690_v28 = vadd.f32 %v1218_v22, %v1154_v19 }
  0xfd   :  { %v1692_v29 = vadd.f32 %v1221_v27, %v1157_v25 }
  0xfe   :  { %v1158_v30 = vpop.f32.mrb[4].mxu0 }
  0xff   :  { %v1222_v31 = vpop.f32.mrb[4].mxu1  ;;  %v1159_v32 = vpop.f32.mrb[5].mxu0 }
 0x100   :  { %v1160_v33 = vadd.f32 %v1159_v32, %v1158_v30  ;;  %v1223_v34 = vpop.f32.mrb[5].mxu1  ;;  %v1161_v35 = vpop.f32.mrb[6].mxu0 }
 0x101   :  { %v1224_v36 = vadd.f32 %v1223_v34, %v1222_v31  ;;  %v1225_v37 = vpop.f32.mrb[6].mxu1  ;;  %v1162_v38 = vpop.f32.mrb[7].mxu0 }
 0x102   :  { %v1163_v39 = vadd.f32 %v1162_v38, %v1161_v35  ;;  %v1226_v40 = vpop.f32.mrb[7].mxu1 }
 0x103   :  { %v1227_v41 = vadd.f32 %v1226_v40, %v1225_v37  ;;  %v1694_v42 = vadd.f32 %v1224_v36, %v1160_v33 }
 0x105   :  { %v1696_v43 = vadd.f32 %v1227_v41, %v1163_v39 }
 0x106   :  { %v1164_v44 = vpop.f32.mrb[8].mxu0 }
 0x107   :  { %v1228_v45 = vpop.f32.mrb[8].mxu1  ;;  %v1165_v46 = vpop.f32.mrb[9].mxu0 }
 0x108   :  { %v1166_v47 = vadd.f32 %v1165_v46, %v1164_v44  ;;  %v1229_v48 = vpop.f32.mrb[9].mxu1  ;;  %v1167_v49 = vpop.f32.mrb[10].mxu0 }
 0x109   :  { %v1230_v50 = vadd.f32 %v1229_v48, %v1228_v45  ;;  %v1231_v51 = vpop.f32.mrb[10].mxu1  ;;  %v1168_v52 = vpop.f32.mrb[11].mxu0 }
 0x10a   :  { %v1169_v53 = vadd.f32 %v1168_v52, %v1167_v49  ;;  %v1232_v54 = vpop.f32.mrb[11].mxu1 }
 0x10b   :  { %v1233_v55 = vadd.f32 %v1232_v54, %v1231_v51  ;;  %v1698_v56 = vadd.f32 %v1230_v50, %v1166_v47 }
 0x10d   :  { %v1700_v57 = vadd.f32 %v1233_v55, %v1169_v53 }
 0x10e   :  { %v1170_v58 = vpop.f32.mrb[12].mxu0 }
 0x10f   :  { %v1234_v59 = vpop.f32.mrb[12].mxu1  ;;  %v1171_v60 = vpop.f32.mrb[13].mxu0 }
 0x110   :  { %v1172_v61 = vadd.f32 %v1171_v60, %v1170_v58  ;;  %v1235_v62 = vpop.f32.mrb[13].mxu1  ;;  %v1173_v63 = vpop.f32.mrb[14].mxu0 }
 0x111   :  { %v1236_v0 = vadd.f32 %v1235_v62, %v1234_v59  ;;  %v1237_v1 = vpop.f32.mrb[14].mxu1  ;;  %v1174_v2 = vpop.f32.mrb[15].mxu0 }
 0x112   :  { %v1175_v3 = vadd.f32 %v1174_v2, %v1173_v63  ;;  %v1238_v4 = vpop.f32.mrb[15].mxu1 }
 0x113   :  { %v1239_v5 = vadd.f32 %v1238_v4, %v1237_v1  ;;  %v1702_v6 = vadd.f32 %v1236_v0, %v1172_v61 }
 0x115   :  { %v1704_v7 = vadd.f32 %v1239_v5, %v1175_v3 }
 0x116   :  { %v1176_v8 = vpop.f32.mrb[16].mxu0 }
 0x117   :  { %v1240_v9 = vpop.f32.mrb[16].mxu1  ;;  %v1177_v10 = vpop.f32.mrb[17].mxu0 }
 0x118   :  { %v1178_v11 = vadd.f32 %v1177_v10, %v1176_v8  ;;  %v1241_v12 = vpop.f32.mrb[17].mxu1  ;;  %v1179_v13 = vpop.f32.mrb[18].mxu0 }
 0x119   :  { %v1242_v14 = vadd.f32 %v1241_v12, %v1240_v9  ;;  %v1243_v15 = vpop.f32.mrb[18].mxu1  ;;  %v1180_v16 = vpop.f32.mrb[19].mxu0  ;;  %v1718_v12 = vld [vmem:[%s1818_s2] ss:$0 sm:$0xff] }
 0x11a   :  { %v1181_v17 = vadd.f32 %v1180_v16, %v1179_v13  ;;  %v1244_v18 = vpop.f32.mrb[19].mxu1 }
 0x11b   :  { %v1245_v19 = vadd.f32 %v1244_v18, %v1243_v15  ;;  %v794_v20 = vadd.f32 %v1242_v14, %v1178_v11 }
 0x11d   :  { %v1706_v21 = vadd.f32 %v1245_v19, %v1181_v17 }
 0x11e   :  { %v1182_v22 = vpop.f32.mrb[20].mxu0 }
 0x11f   :  { %v1246_v23 = vpop.f32.mrb[20].mxu1  ;;  %v1183_v24 = vpop.f32.mrb[21].mxu0 }
 0x120   :  { %v1184_v25 = vadd.f32 %v1183_v24, %v1182_v22  ;;  %v1247_v26 = vpop.f32.mrb[21].mxu1  ;;  %v1185_v27 = vpop.f32.mrb[22].mxu0 }
 0x121   :  { %v1248_v30 = vadd.f32 %v1247_v26, %v1246_v23  ;;  %v1249_v31 = vpop.f32.mrb[22].mxu1  ;;  %v1186_v32 = vpop.f32.mrb[23].mxu0 }
 0x122   :  { %v1187_v33 = vadd.f32 %v1186_v32, %v1185_v27  ;;  %v1250_v34 = vpop.f32.mrb[23].mxu1 }
 0x123   :  { %v1251_v35 = vadd.f32 %v1250_v34, %v1249_v31  ;;  %v802_v36 = vadd.f32 %v1248_v30, %v1184_v25 }
 0x125   :  { %v805_v37 = vadd.f32 %v1251_v35, %v1187_v33 }
 0x126   :  { %v1188_v38 = vpop.f32.mrb[24].mxu0 }
 0x127   :  { %v1252_v39 = vpop.f32.mrb[24].mxu1  ;;  %v1189_v40 = vpop.f32.mrb[25].mxu0 }
 0x128   :  { %v1190_v41 = vadd.f32 %v1189_v40, %v1188_v38  ;;  %v1253_v44 = vpop.f32.mrb[25].mxu1  ;;  %v1191_v45 = vpop.f32.mrb[26].mxu0 }
 0x129   :  { %v1254_v46 = vadd.f32 %v1253_v44, %v1252_v39  ;;  %v1255_v47 = vpop.f32.mrb[26].mxu1  ;;  %v1192_v48 = vpop.f32.mrb[27].mxu0 }
 0x12a   :  { %v1193_v49 = vadd.f32 %v1192_v48, %v1191_v45  ;;  %v1256_v50 = vpop.f32.mrb[27].mxu1 }
 0x12b   :  { %v1257_v51 = vadd.f32 %v1256_v50, %v1255_v47  ;;  %v1708_v52 = vadd.f32 %v1254_v46, %v1190_v41 }
 0x12d   :  { %v1710_v53 = vadd.f32 %v1257_v51, %v1193_v49 }
 0x12e   :  { %v1194_v54 = vpop.f32.mrb[28].mxu0 }
 0x12f   :  { %v1258_v55 = vpop.f32.mrb[28].mxu1  ;;  %v1195_v58 = vpop.f32.mrb[29].mxu0 }
 0x130   :  { %v1196_v59 = vadd.f32 %v1195_v58, %v1194_v54  ;;  %v1259_v60 = vpop.f32.mrb[29].mxu1  ;;  %v1197_v61 = vpop.f32.mrb[30].mxu0 }
 0x131   :  { %v1260_v62 = vadd.f32 %v1259_v60, %v1258_v55  ;;  %v1261_v63 = vpop.f32.mrb[30].mxu1  ;;  %v1198_v0 = vpop.f32.mrb[31].mxu0 }
 0x132   :  { %v1199_v1 = vadd.f32 %v1198_v0, %v1197_v61  ;;  %v1262_v2 = vpop.f32.mrb[31].mxu1 }
 0x133   :  { %v1263_v3 = vadd.f32 %v1262_v2, %v1261_v63  ;;  %v818_v4 = vadd.f32 %v1260_v62, %v1196_v59 }
 0x135   :  { %v1712_v5 = vadd.f32 %v1263_v3, %v1199_v1 }
 0x136   :  { %v1298_v8 = vpop.f32.mrb[32].mxu0 }
 0x137   :  { %v867_v9 = vadd.f32 %v1298_v8, %v1694_v42  ;;  %v1306_v10 = vpop.f32.mrb[32].mxu1  ;;  %v858_v11 = vpop.f32.mrb[33].mxu0  ;;  %v1725_v42 = vld [vmem:[%s1819_s3] ss:$0 sm:$0xff] }
 0x138   :  { %v899_v13 = vadd.f32 %v1306_v10, %v802_v36  ;;  %v859_v14 = vadd.f32 %v858_v11, %v1690_v28  ;;  %v890_v15 = vpop.f32.mrb[33].mxu1  ;;  %v1299_v16 = vpop.f32.mrb[34].mxu0 }
 0x139   :  { %v891_v17 = vadd.f32 %v890_v15, %v794_v20  ;;  %v870_v18 = vadd.f32 %v1299_v16, %v1696_v43  ;;  %v1307_v19 = vpop.f32.mrb[34].mxu1  ;;  %v861_v22 = vpop.f32.mrb[35].mxu0  ;;  %v982_v26 = vmul.f32 %v1718_v12, %v867_v9 }
 0x13a   :  { %v902_v23 = vadd.f32 %v1307_v19, %v805_v37  ;;  %v862_v24 = vadd.f32 %v861_v22, %v1692_v29  ;;  %v893_v25 = vpop.f32.mrb[35].mxu1  ;;  %v990_v27 = vmul.f32 %v1718_v12, %v899_v13  ;;  %v980_v20 = vmul.f32 %v1718_v12, %v859_v14 }
 0x13b   :  { %v894_v28 = vadd.f32 %v893_v25, %v1706_v21  ;;  %v1004_v43 = vadd.f32 %v1725_v42, %v982_v26  ;;  %v988_v30 = vmul.f32 %v1718_v12, %v891_v17  ;;  %v983_v31 = vmul.f32 %v1718_v12, %v870_v18 }
 0x13c   :  { %v1012_v32 = vadd.f32 %v1725_v42, %v990_v27  ;;  %v1002_v33 = vadd.f32 %v1725_v42, %v980_v20  ;;  %v991_v29 = vmul.f32 %v1718_v12, %v902_v23  ;;  %v981_v34 = vmul.f32 %v1718_v12, %v862_v24 }
 0x13d   :  { %v1020_v21 = vmax.f32 %v1004_v43, 0.0  ;;  %v1010_v36 = vadd.f32 %v1725_v42, %v988_v30  ;;  %v1005_v37 = vadd.f32 %v1725_v42, %v983_v31  ;;  %v989_v38 = vmul.f32 %v1718_v12, %v894_v28 }
 0x13e   :  { %v1302_v35 = vpop.f32.mrb[36].mxu0  ;;  %v1028_v41 = vmax.f32 %v1012_v32, 0.0  ;;  %v1018_v44 = vmax.f32 %v1002_v33, 0.0  ;;  %v1013_v45 = vadd.f32 %v1725_v42, %v991_v29  ;;  %v1003_v46 = vadd.f32 %v1725_v42, %v981_v34 }
 0x13f   :  { %v1310_v39 = vpop.f32.mrb[36].mxu1  ;;  %v874_v40 = vpop.f32.mrb[37].mxu0  ;;  %1036 = vst [vmem:[%s1820_s4 + $0x10] sm:$0xff] %v1020_v21  ;;  %v1026_v49 = vmax.f32 %v1010_v36, 0.0  ;;  %v1021_v50 = vmax.f32 %v1005_v37, 0.0  ;;  %v1011_v51 = vadd.f32 %v1725_v42, %v989_v38  ;;  %v883_v54 = vadd.f32 %v1302_v35, %v1702_v6 }
 0x140   :  { %v906_v47 = vpop.f32.mrb[37].mxu1  ;;  %v1303_v48 = vpop.f32.mrb[38].mxu0  ;;  %1044 = vst [vmem:[%s1820_s4 + $0x50] sm:$0xff] %v1028_v41  ;;  %1034 = vst [vmem:[%s1820_s4] sm:$0xff] %v1018_v44  ;;  %v1029_v59 = vmax.f32 %v1013_v45, 0.0  ;;  %v1019_v60 = vmax.f32 %v1003_v46, 0.0  ;;  %v915_v61 = vadd.f32 %v1310_v39, %v818_v4  ;;  %v875_v62 = vadd.f32 %v874_v40, %v1698_v56 }
 0x141   :  { %v1311_v55 = vpop.f32.mrb[38].mxu1  ;;  %v877_v58 = vpop.f32.mrb[39].mxu0  ;;  %1042 = vst [vmem:[%s1820_s4 + $0x40] sm:$0xff] %v1026_v49  ;;  %1037 = vst [vmem:[%s1820_s4 + $0x18] sm:$0xff] %v1021_v50  ;;  %v1027_v6 = vmax.f32 %v1011_v51, 0.0  ;;  %v907_v0 = vadd.f32 %v906_v47, %v1708_v52  ;;  %v886_v1 = vadd.f32 %v1303_v48, %v1704_v7  ;;  %v986_v52 = vmul.f32 %v1718_v12, %v883_v54 }
 0x142   :  { %v909_v63 = vpop.f32.mrb[39].mxu1  ;;  %1045 = vst [vmem:[%s1820_s4 + $0x58] sm:$0xff] %v1029_v59  ;;  %1035 = vst [vmem:[%s1820_s4 + $0x8] sm:$0xff] %v1019_v60  ;;  %v918_v56 = vadd.f32 %v1311_v55, %v1712_v5  ;;  %v878_v2 = vadd.f32 %v877_v58, %v1700_v57  ;;  %v994_v3 = vmul.f32 %v1718_v12, %v915_v61 }
 0x143   :  { %1043 = vst [vmem:[%s1820_s4 + $0x48] sm:$0xff] %v1027_v6  ;;  %v910_v7 = vadd.f32 %v909_v63, %v1710_v53  ;;  %v984_v4 = vmul.f32 %v1718_v12, %v875_v62  ;;  %v1008_v8 = vadd.f32 %v1725_v42, %v986_v52  ;;  %v992_v9 = vmul.f32 %v1718_v12, %v907_v0 }
 0x144   :  { %v987_v5 = vmul.f32 %v1718_v12, %v886_v1  ;;  %v1016_v57 = vadd.f32 %v1725_v42, %v994_v3  ;;  %v995_v11 = vmul.f32 %v1718_v12, %v918_v56  ;;  %v985_v13 = vmul.f32 %v1718_v12, %v878_v2 }
 0x145   :  { %v1006_v10 = vadd.f32 %v1725_v42, %v984_v4  ;;  %v1024_v14 = vmax.f32 %v1008_v8, 0.0  ;;  %v1014_v53 = vadd.f32 %v1725_v42, %v992_v9  ;;  %v993_v16 = vmul.f32 %v1718_v12, %v910_v7 }
 0x146   :  { %v1009_v15 = vadd.f32 %v1725_v42, %v987_v5  ;;  %v1032_v17 = vmax.f32 %v1016_v57, 0.0  ;;  %v1017_v19 = vadd.f32 %v1725_v42, %v995_v11  ;;  %v1007_v22 = vadd.f32 %v1725_v42, %v985_v13 }
 0x147   :  { %v1022_v18 = vmax.f32 %v1006_v10, 0.0  ;;  %1040 = vst [vmem:[%s1820_s4 + $0x30] sm:$0xff] %v1024_v14  ;;  %v1030_v23 = vmax.f32 %v1014_v53, 0.0  ;;  %v1015_v25 = vadd.f32 %v1725_v42, %v993_v16 }
 0x148   :  { %v1025_v24 = vmax.f32 %v1009_v15, 0.0  ;;  %1048 = vst [vmem:[%s1820_s4 + $0x70] sm:$0xff] %v1032_v17  ;;  %v1033_v12 = vmax.f32 %v1017_v19, 0.0  ;;  %v1023_v26 = vmax.f32 %v1007_v22, 0.0 }
 0x149   :  { %1038 = vst [vmem:[%s1820_s4 + $0x20] sm:$0xff] %v1022_v18  ;;  %1046 = vst [vmem:[%s1820_s4 + $0x60] sm:$0xff] %v1030_v23  ;;  %v1031_v28 = vmax.f32 %v1015_v25, 0.0 }
 0x14a   :  { %1041 = vst [vmem:[%s1820_s4 + $0x38] sm:$0xff] %v1025_v24  ;;  %1049 = vst [vmem:[%s1820_s4 + $0x78] sm:$0xff] %v1033_v12 }
 0x14b   :  { %1039 = vst [vmem:[%s1820_s4 + $0x28] sm:$0xff] %v1023_v26  ;;  %1047 = vst [vmem:[%s1820_s4 + $0x68] sm:$0xff] %v1031_v28 }

// kernel: resnet_feature_forward.25
= control target key start
LH: loop header
LB: loop body
LE: loop exit
PB: predicated region body
PF: predicated region fallthrough
CT: control target
= control target key end

     0   :  { %s1907_s1 = inlined_call_operand.vmem [shape: bf16[640,128], index: 1, kind: input, shape index: {}]   ;;  %s1908_s0 = inlined_call_operand.vmem [shape: bf16[128,640], index: 0, kind: input, shape index: {}]   ;;  %s1909_s2 = inlined_call_operand.vmem [shape: f32[1,128], index: 2, kind: input, shape index: {}]   ;;  %s1910_s3 = inlined_call_operand.vmem [shape: f32[1,128], index: 3, kind: input, shape index: {}]   ;;  %s1911_s4 = inlined_call_operand.vmem [shape: f32[128,128], index: 4, kind: input, shape index: {}]   ;;  %s1912_s5 = inlined_call_operand.vmem [shape: f32[128,128], index: 5, kind: output, shape index: {}]  }
   0x1   :  { %v1364_v0 = vld [vmem:[%s1907_s1 + $0x40] sm:$0xff]   ;;  %v1368_v4 = vld [vmem:[%s1907_s1 + $0x48] sm:$0xff]   ;;  %v1372_v8 = vld [vmem:[%s1907_s1 + $0x50] sm:$0xff]  }
   0x2   :  { %v1365_v1 = vld [vmem:[%s1907_s1 + $0xc0] sm:$0xff]   ;;  %1171 = vmatprep.subr.bf16.mxu0 %v1364_v0  ;;  %v1369_v5 = vld [vmem:[%s1907_s1 + $0xc8] sm:$0xff]   ;;  %v1373_v9 = vld [vmem:[%s1907_s1 + $0xd0] sm:$0xff]  }
   0x3   :  { %v1366_v2 = vld [vmem:[%s1907_s1] sm:$0xff]   ;;  %1235 = vmatprep.subr.bf16.mxu1 %v1365_v1  ;;  %v1370_v6 = vld [vmem:[%s1907_s1 + $0x8] sm:$0xff]   ;;  %v1374_v10 = vld [vmem:[%s1907_s1 + $0x10] sm:$0xff]  }
   0x4   :  { %v1367_v3 = vld [vmem:[%s1907_s1 + $0x80] sm:$0xff]   ;;  %1172 = vmatpush3.bf16.msra.mxu0 %v1366_v2  ;;  %v1371_v7 = vld [vmem:[%s1907_s1 + $0x88] sm:$0xff]   ;;  %v1375_v11 = vld [vmem:[%s1907_s1 + $0x90] sm:$0xff]  }
   0x5   :  { %1236 = vmatpush3.bf16.msra.mxu1 %v1367_v3  ;;  %1173 = vmatprep.subr.bf16.mxu0 %v1368_v4  ;;  %v1376_v12 = vld [vmem:[%s1907_s1 + $0x58] sm:$0xff]   ;;  %v1380_v16 = vld [vmem:[%s1907_s1 + $0x60] sm:$0xff]   ;;  %v1384_v20 = vld [vmem:[%s1907_s1 + $0x68] sm:$0xff]  }
   0x6   :  { %1237 = vmatprep.subr.bf16.mxu1 %v1369_v5  ;;  %v1377_v13 = vld [vmem:[%s1907_s1 + $0xd8] sm:$0xff]   ;;  %v1381_v17 = vld [vmem:[%s1907_s1 + $0xe0] sm:$0xff]   ;;  %v1385_v21 = vld [vmem:[%s1907_s1 + $0xe8] sm:$0xff]  }
   0x7   :  { %v1378_v14 = vld [vmem:[%s1907_s1 + $0x18] sm:$0xff]   ;;  %v1382_v18 = vld [vmem:[%s1907_s1 + $0x20] sm:$0xff]   ;;  %v1386_v22 = vld [vmem:[%s1907_s1 + $0x28] sm:$0xff]  }
   0x8   :  { %1174 = vmatpush3.bf16.msra.mxu0 %v1370_v6  ;;  %v1379_v15 = vld [vmem:[%s1907_s1 + $0x98] sm:$0xff]   ;;  %v1383_v19 = vld [vmem:[%s1907_s1 + $0xa0] sm:$0xff]   ;;  %v1387_v23 = vld [vmem:[%s1907_s1 + $0xa8] sm:$0xff]  }
   0x9   :  { %1238 = vmatpush3.bf16.msra.mxu1 %v1371_v7  ;;  %1175 = vmatprep.subr.bf16.mxu0 %v1372_v8  ;;  %v1388_v24 = vld [vmem:[%s1907_s1 + $0x70] sm:$0xff]   ;;  %v1392_v28 = vld [vmem:[%s1907_s1 + $0x78] sm:$0xff]   ;;  %v1401_v35 = vld [vmem:[%s1908_s0 + $0xc] ss:$20 sps:$4 sm:$0xff]  }
   0xa   :  { %1239 = vmatprep.subr.bf16.mxu1 %v1373_v9  ;;  %v1389_v25 = vld [vmem:[%s1907_s1 + $0xf0] sm:$0xff]   ;;  %v1393_v29 = vld [vmem:[%s1907_s1 + $0xf8] sm:$0xff]   ;;  %v1402_v36 = vld [vmem:[%s1907_s1 + $0x100] sm:$0xff]   ;;  %762 = vmatprep.mubr.bf16.mxu1 %v1401_v35 }
   0xb   :  { %v1390_v26 = vld [vmem:[%s1907_s1 + $0x30] sm:$0xff]   ;;  %v1394_v30 = vld [vmem:[%s1907_s1 + $0x38] sm:$0xff]   ;;  %v1403_v37 = vld [vmem:[%s1908_s0 + $0x2c] ss:$20 sps:$4 sm:$0xff]  }
   0xc   :  { %1176 = vmatpush3.bf16.msra.mxu0 %v1374_v10  ;;  %v1391_v27 = vld [vmem:[%s1907_s1 + $0xb0] sm:$0xff]   ;;  %v1395_v31 = vld [vmem:[%s1907_s1 + $0xb8] sm:$0xff]   ;;  %v1409_v39 = vld [vmem:[%s1907_s1 + $0x108] sm:$0xff]  }
   0xd   :  { %1240 = vmatpush3.bf16.msra.mxu1 %v1375_v11  ;;  %1177 = vmatprep.subr.bf16.mxu0 %v1376_v12  ;;  %v1396_v32 = vld [vmem:[%s1908_s0] ss:$20 sps:$4 sm:$0xff]   ;;  %v1398_v33 = vld [vmem:[%s1908_s0 + $0x4] ss:$20 sps:$4 sm:$0xff]   ;;  %v1399_v34 = vld [vmem:[%s1908_s0 + $0x8] ss:$20 sps:$4 sm:$0xff]  }
   0xe   :  { %1241 = vmatprep.subr.bf16.mxu1 %v1377_v13  ;;  %665 = vmatprep.mubr.bf16.mxu0 %v1398_v33  ;;  %v1405_v38 = vld [vmem:[%s1908_s0 + $0x34] ss:$20 sps:$4 sm:$0xff]   ;;  %v1408_v41 = vld [vmem:[%s1908_s0 + $0x30] ss:$20 sps:$4 sm:$0xff]   ;;  %v1423_v45 = vld [vmem:[%s1907_s1 + $0x118] sm:$0xff]  }
   0xf   :  { %v1407_v40 = vld [vmem:[%s1908_s0 + $0x28] ss:$20 sps:$4 sm:$0xff]   ;;  %v1416_v44 = vld [vmem:[%s1907_s1 + $0x110] sm:$0xff]   ;;  %v1415_v47 = vld [vmem:[%s1908_s0 + $0x58] ss:$20 sps:$4 sm:$0xff]  }
  0x10   :  { %1178 = vmatpush3.bf16.msra.mxu0 %v1378_v14  ;;  %v1410_v42 = vld [vmem:[%s1908_s0 + $0x54] ss:$20 sps:$4 sm:$0xff]   ;;  %v1412_v43 = vld [vmem:[%s1908_s0 + $0x5c] ss:$20 sps:$4 sm:$0xff]   ;;  %v1419_v49 = vld [vmem:[%s1908_s0 + $0x84] ss:$20 sps:$4 sm:$0xff]  }
  0x11   :  { %1242 = vmatpush3.bf16.msra.mxu1 %v1379_v15  ;;  %1179 = vmatprep.subr.bf16.mxu0 %v1380_v16  ;;  %v1414_v46 = vld [vmem:[%s1908_s0 + $0x50] ss:$20 sps:$4 sm:$0xff]   ;;  %v1437_v51 = vld [vmem:[%s1907_s1 + $0x128] sm:$0xff]   ;;  %v1422_v53 = vld [vmem:[%s1908_s0 + $0x80] ss:$20 sps:$4 sm:$0xff]  }
  0x12   :  { %1243 = vmatprep.subr.bf16.mxu1 %v1381_v17  ;;  %v1417_v48 = vld [vmem:[%s1908_s0 + $0x7c] ss:$20 sps:$4 sm:$0xff]   ;;  %v1430_v50 = vld [vmem:[%s1907_s1 + $0x120] sm:$0xff]   ;;  %v1421_v52 = vld [vmem:[%s1908_s0 + $0x78] ss:$20 sps:$4 sm:$0xff]  }
  0x13   :  { %v1424_v54 = vld [vmem:[%s1908_s0 + $0xa4] ss:$20 sps:$4 sm:$0xff]   ;;  %v1444_v55 = vld [vmem:[%s1907_s1 + $0x130] sm:$0xff]   ;;  %v1426_v56 = vld [vmem:[%s1908_s0 + $0xac] ss:$20 sps:$4 sm:$0xff]  }
  0x14   :  { %1180 = vmatpush3.bf16.msra.mxu0 %v1382_v18  ;;  %v1451_v57 = vld [vmem:[%s1907_s1 + $0x138] sm:$0xff]   ;;  %v1428_v58 = vld [vmem:[%s1908_s0 + $0xa0] ss:$20 sps:$4 sm:$0xff]   ;;  %v1436_v63 = vld [vmem:[%s1908_s0 + $0xd0] ss:$20 sps:$4 sm:$0xff]  }
  0x15   :  { %1244 = vmatpush3.bf16.msra.mxu1 %v1383_v19  ;;  %1181 = vmatprep.subr.bf16.mxu0 %v1384_v20  ;;  %v1429_v59 = vld [vmem:[%s1908_s0 + $0xa8] ss:$20 sps:$4 sm:$0xff]   ;;  %v1431_v60 = vld [vmem:[%s1908_s0 + $0xcc] ss:$20 sps:$4 sm:$0xff]   ;;  %v1442_v2 = vld [vmem:[%s1908_s0 + $0xf0] ss:$20 sps:$4 sm:$0xff]  }
  0x16   :  { %1245 = vmatprep.subr.bf16.mxu1 %v1385_v21  ;;  %v1433_v61 = vld [vmem:[%s1908_s0 + $0xd4] ss:$20 sps:$4 sm:$0xff]   ;;  %v1440_v1 = vld [vmem:[%s1908_s0 + $0xfc] ss:$20 sps:$4 sm:$0xff]   ;;  %v1443_v3 = vld [vmem:[%s1908_s0 + $0xf8] ss:$20 sps:$4 sm:$0xff]  }
  0x17   :  { %v1435_v62 = vld [vmem:[%s1908_s0 + $0xc8] ss:$20 sps:$4 sm:$0xff]   ;;  %v1447_v5 = vld [vmem:[%s1908_s0 + $0x124] ss:$20 sps:$4 sm:$0xff]   ;;  %v1450_v7 = vld [vmem:[%s1908_s0 + $0x120] ss:$20 sps:$4 sm:$0xff]  }
  0x18   :  { %1182 = vmatpush3.bf16.msra.mxu0 %v1386_v22  ;;  %v1438_v0 = vld [vmem:[%s1908_s0 + $0xf4] ss:$20 sps:$4 sm:$0xff]   ;;  %v1445_v4 = vld [vmem:[%s1908_s0 + $0x11c] ss:$20 sps:$4 sm:$0xff]   ;;  %v1449_v6 = vld [vmem:[%s1908_s0 + $0x118] ss:$20 sps:$4 sm:$0xff]  }
  0x19   :  { %1246 = vmatpush3.bf16.msra.mxu1 %v1387_v23  ;;  %1183 = vmatprep.subr.bf16.mxu0 %v1388_v24  ;;  %v1452_v8 = vld [vmem:[%s1908_s0 + $0x10] ss:$20 sps:$4 sm:$0xff]   ;;  %v1454_v10 = vld [vmem:[%s1908_s0 + $0x38] ss:$20 sps:$4 sm:$0xff]   ;;  %v1456_v12 = vld [vmem:[%s1908_s0 + $0x60] ss:$20 sps:$4 sm:$0xff]  }
  0x1a   :  { %1247 = vmatprep.subr.bf16.mxu1 %v1389_v25  ;;  %v1453_v9 = vld [vmem:[%s1908_s0 + $0xb0] ss:$20 sps:$4 sm:$0xff]   ;;  %v1455_v11 = vld [vmem:[%s1908_s0 + $0xd8] ss:$20 sps:$4 sm:$0xff]   ;;  %v1457_v13 = vld [vmem:[%s1908_s0 + $0x100] ss:$20 sps:$4 sm:$0xff]  }
  0x1b   :  { %v1458_v14 = vld [vmem:[%s1908_s0 + $0x88] ss:$20 sps:$4 sm:$0xff]  }
  0x1c   :  { %1184 = vmatpush3.bf16.msra.mxu0 %v1390_v26  ;;  %v1459_v15 = vld [vmem:[%s1908_s0 + $0x128] ss:$20 sps:$4 sm:$0xff]  }
  0x1d   :  { %1248 = vmatpush3.bf16.msra.mxu1 %v1391_v27  ;;  %1185 = vmatprep.subr.bf16.mxu0 %v1392_v28 }
  0x1e   :  { %1249 = vmatprep.subr.bf16.mxu1 %v1393_v29 }
  0x20   :  { %1186 = vmatpush3.bf16.msra.mxu0 %v1394_v30 }
  0x21   :  { %1250 = vmatpush3.bf16.msra.mxu1 %v1395_v31  ;;  %1315 = vmatprep.subr.bf16.mxu0 %v1402_v36 }
  0x22   :  { %1347 = vmatprep.subr.bf16.mxu1 %v1402_v36 }
  0x23   :  { %666 = vmatmul.mubr.bf16.vlgmr.msra.gmra.mrb[0].mxu0 %v1396_v32 }
  0x24   :  { %763 = vmatmul.mubr.bf16.vlgmr.msra.gmra.mrb[0].mxu1 %v1399_v34  ;;  %1316 = vmatpush3.bf16.msra.mxu0 %v1402_v36 }
  0x25   :  { %1355 = vmatpush3.bf16.msra.mxu1 %v1402_v36  ;;  %673 = vmatprep.mubr.bf16.mxu0 %v1403_v37 }
  0x26   :  { %770 = vmatprep.mubr.bf16.mxu1 %v1405_v38  ;;  %1317 = vmatprep.subr.bf16.mxu0 %v1409_v39 }
  0x27   :  { %1348 = vmatprep.subr.bf16.mxu1 %v1409_v39 }
  0x28   :  { %1318 = vmatpush3.bf16.msra.mxu0 %v1409_v39 }
  0x29   :  { %1356 = vmatpush3.bf16.msra.mxu1 %v1409_v39  ;;  %1319 = vmatprep.subr.bf16.mxu0 %v1416_v44 }
  0x2a   :  { %1349 = vmatprep.subr.bf16.mxu1 %v1416_v44 }
  0x2b   :  { %674 = vmatmul.mubr.bf16.gmra.mrb[4].mxu0 %v1407_v40 }
  0x2c   :  { %771 = vmatmul.mubr.bf16.gmra.mrb[4].mxu1 %v1408_v41  ;;  %681 = vmatprep.mubr.bf16.mxu0 %v1410_v42 }
  0x2d   :  { %778 = vmatprep.mubr.bf16.mxu1 %v1412_v43  ;;  %1320 = vmatpush3.bf16.msra.mxu0 %v1416_v44 }
  0x2e   :  { %1357 = vmatpush3.bf16.msra.mxu1 %v1416_v44  ;;  %1321 = vmatprep.subr.bf16.mxu0 %v1423_v45 }
  0x2f   :  { %1350 = vmatprep.subr.bf16.mxu1 %v1423_v45 }
  0x31   :  { %1322 = vmatpush3.bf16.msra.mxu0 %v1423_v45 }
  0x32   :  { %1358 = vmatpush3.bf16.msra.mxu1 %v1423_v45  ;;  %1323 = vmatprep.subr.bf16.mxu0 %v1430_v50 }
  0x33   :  { %682 = vmatmul.mubr.bf16.gmra.mrb[8].mxu0 %v1414_v46  ;;  %1351 = vmatprep.subr.bf16.mxu1 %v1430_v50 }
  0x34   :  { %779 = vmatmul.mubr.bf16.gmra.mrb[8].mxu1 %v1415_v47  ;;  %689 = vmatprep.mubr.bf16.mxu0 %v1417_v48 }
  0x35   :  { %786 = vmatprep.mubr.bf16.mxu1 %v1419_v49  ;;  %1324 = vmatpush3.bf16.msra.mxu0 %v1430_v50 }
  0x36   :  { %1359 = vmatpush3.bf16.msra.mxu1 %v1430_v50  ;;  %1325 = vmatprep.subr.bf16.mxu0 %v1437_v51 }
  0x37   :  { %1352 = vmatprep.subr.bf16.mxu1 %v1437_v51 }
  0x39   :  { %1326 = vmatpush3.bf16.msra.mxu0 %v1437_v51 }
  0x3a   :  { %1360 = vmatpush3.bf16.msra.mxu1 %v1437_v51  ;;  %1327 = vmatprep.subr.bf16.mxu0 %v1444_v55 }
  0x3b   :  { %690 = vmatmul.mubr.bf16.gmra.mrb[12].mxu0 %v1421_v52  ;;  %1353 = vmatprep.subr.bf16.mxu1 %v1444_v55 }
  0x3c   :  { %787 = vmatmul.mubr.bf16.gmra.mrb[12].mxu1 %v1422_v53  ;;  %697 = vmatprep.mubr.bf16.mxu0 %v1424_v54 }
  0x3d   :  { %794 = vmatprep.mubr.bf16.mxu1 %v1426_v56  ;;  %1328 = vmatpush3.bf16.msra.mxu0 %v1444_v55 }
  0x3e   :  { %1361 = vmatpush3.bf16.msra.mxu1 %v1444_v55  ;;  %1329 = vmatprep.subr.bf16.mxu0 %v1451_v57 }
  0x3f   :  { %1354 = vmatprep.subr.bf16.mxu1 %v1451_v57 }
  0x41   :  { %1330 = vmatpush3.bf16.msra.mxu0 %v1451_v57 }
  0x42   :  { %1362 = vmatpush3.bf16.msra.mxu1 %v1451_v57 }
  0x43   :  { %698 = vmatmul.mubr.bf16.gmra.mrb[16].mxu0 %v1428_v58 }
  0x44   :  { %795 = vmatmul.mubr.bf16.gmra.mrb[16].mxu1 %v1429_v59  ;;  %705 = vmatprep.mubr.bf16.mxu0 %v1431_v60 }
  0x45   :  { %802 = vmatprep.mubr.bf16.mxu1 %v1433_v61 }
  0x4b   :  { %706 = vmatmul.mubr.bf16.gmra.mrb[20].mxu0 %v1435_v62 }
  0x4c   :  { %803 = vmatmul.mubr.bf16.gmra.mrb[20].mxu1 %v1436_v63  ;;  %713 = vmatprep.mubr.bf16.mxu0 %v1438_v0 }
  0x4d   :  { %810 = vmatprep.mubr.bf16.mxu1 %v1440_v1 }
  0x53   :  { %714 = vmatmul.mubr.bf16.gmra.mrb[24].mxu0 %v1442_v2 }
  0x54   :  { %811 = vmatmul.mubr.bf16.gmra.mrb[24].mxu1 %v1443_v3  ;;  %721 = vmatprep.mubr.bf16.mxu0 %v1445_v4 }
  0x55   :  { %818 = vmatprep.mubr.bf16.mxu1 %v1447_v5 }
  0x5b   :  { %722 = vmatmul.mubr.bf16.gmra.mrb[28].mxu0 %v1449_v6 }
  0x5c   :  { %819 = vmatmul.mubr.bf16.gmra.mrb[28].mxu1 %v1450_v7  ;;  %1331 = vmatprep.mubr.bf16.mxu0 %v1452_v8 }
  0x5d   :  { %1339 = vmatprep.mubr.bf16.mxu1 %v1453_v9 }
  0x63   :  { %1332 = vmatmul.mubr.bf16.vlgmr.msra.gmra.mrb[32].mxu0 %v1454_v10 }
  0x64   :  { %1340 = vmatmul.mubr.bf16.vlgmr.msra.gmra.mrb[32].mxu1 %v1455_v11  ;;  %1335 = vmatprep.mubr.bf16.mxu0 %v1456_v12 }
  0x65   :  { %1343 = vmatprep.mubr.bf16.mxu1 %v1457_v13 }
  0x6b   :  { %1336 = vmatmul.mubr.bf16.gmra.mrb[36].mxu0 %v1458_v14 }
  0x6c   :  { %1344 = vmatmul.mubr.bf16.gmra.mrb[36].mxu1 %v1459_v15 }
  0xf6   :  { %v1187_v16 = vpop.f32.mrb[0].mxu0 }
  0xf7   :  { %v1251_v17 = vpop.f32.mrb[0].mxu1  ;;  %v1188_v18 = vpop.f32.mrb[1].mxu0 }
  0xf8   :  { %v1189_v19 = vadd.f32 %v1188_v18, %v1187_v16  ;;  %v1252_v20 = vpop.f32.mrb[1].mxu1  ;;  %v1190_v21 = vpop.f32.mrb[2].mxu0 }
  0xf9   :  { %v1253_v22 = vadd.f32 %v1252_v20, %v1251_v17  ;;  %v1254_v23 = vpop.f32.mrb[2].mxu1  ;;  %v1191_v24 = vpop.f32.mrb[3].mxu0 }
  0xfa   :  { %v1192_v25 = vadd.f32 %v1191_v24, %v1190_v21  ;;  %v1255_v26 = vpop.f32.mrb[3].mxu1 }
  0xfb   :  { %v1256_v27 = vadd.f32 %v1255_v26, %v1254_v23  ;;  %v1730_v28 = vadd.f32 %v1253_v22, %v1189_v19 }
  0xfd   :  { %v1732_v29 = vadd.f32 %v1256_v27, %v1192_v25 }
  0xfe   :  { %v1193_v30 = vpop.f32.mrb[4].mxu0 }
  0xff   :  { %v1257_v31 = vpop.f32.mrb[4].mxu1  ;;  %v1194_v32 = vpop.f32.mrb[5].mxu0 }
 0x100   :  { %v1195_v33 = vadd.f32 %v1194_v32, %v1193_v30  ;;  %v1258_v34 = vpop.f32.mrb[5].mxu1  ;;  %v1196_v35 = vpop.f32.mrb[6].mxu0 }
 0x101   :  { %v1259_v36 = vadd.f32 %v1258_v34, %v1257_v31  ;;  %v1260_v37 = vpop.f32.mrb[6].mxu1  ;;  %v1197_v38 = vpop.f32.mrb[7].mxu0 }
 0x102   :  { %v1198_v39 = vadd.f32 %v1197_v38, %v1196_v35  ;;  %v1261_v40 = vpop.f32.mrb[7].mxu1 }
 0x103   :  { %v1262_v41 = vadd.f32 %v1261_v40, %v1260_v37  ;;  %v1734_v42 = vadd.f32 %v1259_v36, %v1195_v33 }
 0x105   :  { %v1736_v43 = vadd.f32 %v1262_v41, %v1198_v39 }
 0x106   :  { %v1199_v44 = vpop.f32.mrb[8].mxu0 }
 0x107   :  { %v1263_v45 = vpop.f32.mrb[8].mxu1  ;;  %v1200_v46 = vpop.f32.mrb[9].mxu0 }
 0x108   :  { %v1201_v47 = vadd.f32 %v1200_v46, %v1199_v44  ;;  %v1264_v48 = vpop.f32.mrb[9].mxu1  ;;  %v1202_v49 = vpop.f32.mrb[10].mxu0 }
 0x109   :  { %v1265_v50 = vadd.f32 %v1264_v48, %v1263_v45  ;;  %v1266_v51 = vpop.f32.mrb[10].mxu1  ;;  %v1203_v52 = vpop.f32.mrb[11].mxu0 }
 0x10a   :  { %v1204_v53 = vadd.f32 %v1203_v52, %v1202_v49  ;;  %v1267_v54 = vpop.f32.mrb[11].mxu1 }
 0x10b   :  { %v1268_v55 = vadd.f32 %v1267_v54, %v1266_v51  ;;  %v1738_v56 = vadd.f32 %v1265_v50, %v1201_v47 }
 0x10d   :  { %v1740_v57 = vadd.f32 %v1268_v55, %v1204_v53 }
 0x10e   :  { %v1205_v58 = vpop.f32.mrb[12].mxu0 }
 0x10f   :  { %v1269_v59 = vpop.f32.mrb[12].mxu1  ;;  %v1206_v60 = vpop.f32.mrb[13].mxu0 }
 0x110   :  { %v1207_v61 = vadd.f32 %v1206_v60, %v1205_v58  ;;  %v1270_v62 = vpop.f32.mrb[13].mxu1  ;;  %v1208_v63 = vpop.f32.mrb[14].mxu0 }
 0x111   :  { %v1271_v0 = vadd.f32 %v1270_v62, %v1269_v59  ;;  %v1272_v1 = vpop.f32.mrb[14].mxu1  ;;  %v1209_v2 = vpop.f32.mrb[15].mxu0 }
 0x112   :  { %v1210_v3 = vadd.f32 %v1209_v2, %v1208_v63  ;;  %v1273_v4 = vpop.f32.mrb[15].mxu1 }
 0x113   :  { %v1274_v5 = vadd.f32 %v1273_v4, %v1272_v1  ;;  %v1742_v6 = vadd.f32 %v1271_v0, %v1207_v61 }
 0x115   :  { %v1744_v7 = vadd.f32 %v1274_v5, %v1210_v3 }
 0x116   :  { %v1211_v8 = vpop.f32.mrb[16].mxu0 }
 0x117   :  { %v1275_v9 = vpop.f32.mrb[16].mxu1  ;;  %v1212_v10 = vpop.f32.mrb[17].mxu0 }
 0x118   :  { %v1213_v11 = vadd.f32 %v1212_v10, %v1211_v8  ;;  %v1276_v12 = vpop.f32.mrb[17].mxu1  ;;  %v1214_v13 = vpop.f32.mrb[18].mxu0 }
 0x119   :  { %v1277_v14 = vadd.f32 %v1276_v12, %v1275_v9  ;;  %v1278_v15 = vpop.f32.mrb[18].mxu1  ;;  %v1215_v16 = vpop.f32.mrb[19].mxu0  ;;  %v1760_v12 = vld [vmem:[%s1909_s2] ss:$0 sm:$0xff] }
 0x11a   :  { %v1216_v17 = vadd.f32 %v1215_v16, %v1214_v13  ;;  %v1279_v18 = vpop.f32.mrb[19].mxu1 }
 0x11b   :  { %v1280_v19 = vadd.f32 %v1279_v18, %v1278_v15  ;;  %v797_v20 = vadd.f32 %v1277_v14, %v1213_v11 }
 0x11d   :  { %v1746_v21 = vadd.f32 %v1280_v19, %v1216_v17 }
 0x11e   :  { %v1217_v22 = vpop.f32.mrb[20].mxu0 }
 0x11f   :  { %v1281_v23 = vpop.f32.mrb[20].mxu1  ;;  %v1218_v24 = vpop.f32.mrb[21].mxu0 }
 0x120   :  { %v1219_v25 = vadd.f32 %v1218_v24, %v1217_v22  ;;  %v1282_v26 = vpop.f32.mrb[21].mxu1  ;;  %v1220_v27 = vpop.f32.mrb[22].mxu0 }
 0x121   :  { %v1283_v30 = vadd.f32 %v1282_v26, %v1281_v23  ;;  %v1284_v31 = vpop.f32.mrb[22].mxu1  ;;  %v1221_v32 = vpop.f32.mrb[23].mxu0 }
 0x122   :  { %v1222_v33 = vadd.f32 %v1221_v32, %v1220_v27  ;;  %v1285_v34 = vpop.f32.mrb[23].mxu1 }
 0x123   :  { %v1286_v35 = vadd.f32 %v1285_v34, %v1284_v31  ;;  %v805_v36 = vadd.f32 %v1283_v30, %v1219_v25  ;;  %v987_v31 = vld [vmem:[%s1911_s4 + $0x50] sm:$0xff] }
 0x125   :  { %v808_v37 = vadd.f32 %v1286_v35, %v1222_v33  ;;  %v985_v35 = vld [vmem:[%s1911_s4 + $0x40] sm:$0xff] }
 0x126   :  { %v1223_v38 = vpop.f32.mrb[24].mxu0 }
 0x127   :  { %v1287_v39 = vpop.f32.mrb[24].mxu1  ;;  %v1224_v40 = vpop.f32.mrb[25].mxu0 }
 0x128   :  { %v1225_v41 = vadd.f32 %v1224_v40, %v1223_v38  ;;  %v1288_v44 = vpop.f32.mrb[25].mxu1  ;;  %v1226_v45 = vpop.f32.mrb[26].mxu0 }
 0x129   :  { %v1289_v46 = vadd.f32 %v1288_v44, %v1287_v39  ;;  %v1290_v47 = vpop.f32.mrb[26].mxu1  ;;  %v1227_v48 = vpop.f32.mrb[27].mxu0 }
 0x12a   :  { %v1228_v49 = vadd.f32 %v1227_v48, %v1226_v45  ;;  %v1291_v50 = vpop.f32.mrb[27].mxu1  ;;  %v988_v45 = vld [vmem:[%s1911_s4 + $0x58] sm:$0xff] }
 0x12b   :  { %v1292_v51 = vadd.f32 %v1291_v50, %v1290_v47  ;;  %v1748_v52 = vadd.f32 %v1289_v46, %v1225_v41  ;;  %v978_v46 = vld [vmem:[%s1911_s4 + $0x8] sm:$0xff] }
 0x12d   :  { %v1750_v53 = vadd.f32 %v1292_v51, %v1228_v49 }
 0x12e   :  { %v1229_v54 = vpop.f32.mrb[28].mxu0 }
 0x12f   :  { %v1293_v55 = vpop.f32.mrb[28].mxu1  ;;  %v1230_v58 = vpop.f32.mrb[29].mxu0 }
 0x130   :  { %v1231_v59 = vadd.f32 %v1230_v58, %v1229_v54  ;;  %v1294_v60 = vpop.f32.mrb[29].mxu1  ;;  %v1232_v61 = vpop.f32.mrb[30].mxu0  ;;  %v986_v58 = vld [vmem:[%s1911_s4 + $0x48] sm:$0xff] }
 0x131   :  { %v1295_v62 = vadd.f32 %v1294_v60, %v1293_v55  ;;  %v1296_v63 = vpop.f32.mrb[30].mxu1  ;;  %v1233_v0 = vpop.f32.mrb[31].mxu0 }
 0x132   :  { %v1234_v1 = vadd.f32 %v1233_v0, %v1232_v61  ;;  %v1297_v2 = vpop.f32.mrb[31].mxu1 }
 0x133   :  { %v1298_v3 = vadd.f32 %v1297_v2, %v1296_v63  ;;  %v1752_v4 = vadd.f32 %v1295_v62, %v1231_v59 }
 0x135   :  { %v1754_v5 = vadd.f32 %v1298_v3, %v1234_v1 }
 0x136   :  { %v1333_v8 = vpop.f32.mrb[32].mxu0 }
 0x137   :  { %v870_v9 = vadd.f32 %v1333_v8, %v1734_v42  ;;  %v1341_v10 = vpop.f32.mrb[32].mxu1  ;;  %v861_v11 = vpop.f32.mrb[33].mxu0  ;;  %v1767_v42 = vld [vmem:[%s1910_s3] ss:$0 sm:$0xff] }
 0x138   :  { %v902_v13 = vadd.f32 %v1341_v10, %v805_v36  ;;  %v862_v14 = vadd.f32 %v861_v11, %v1730_v28  ;;  %v893_v15 = vpop.f32.mrb[33].mxu1  ;;  %v1334_v16 = vpop.f32.mrb[34].mxu0  ;;  %v980_v36 = vld [vmem:[%s1911_s4 + $0x18] sm:$0xff] }
 0x139   :  { %v894_v17 = vadd.f32 %v893_v15, %v797_v20  ;;  %v873_v18 = vadd.f32 %v1334_v16, %v1736_v43  ;;  %v1342_v19 = vpop.f32.mrb[34].mxu1  ;;  %v864_v22 = vpop.f32.mrb[35].mxu0  ;;  %v1001_v26 = vmul.f32 %v1760_v12, %v870_v9  ;;  %v979_v20 = vld [vmem:[%s1911_s4 + $0x10] sm:$0xff] }
 0x13a   :  { %v905_v23 = vadd.f32 %v1342_v19, %v808_v37  ;;  %v865_v24 = vadd.f32 %v864_v22, %v1732_v29  ;;  %v896_v25 = vpop.f32.mrb[35].mxu1  ;;  %v1009_v43 = vmul.f32 %v1760_v12, %v902_v13  ;;  %v999_v27 = vmul.f32 %v1760_v12, %v862_v14  ;;  %v977_v29 = vld [vmem:[%s1911_s4] sm:$0xff] }
 0x13b   :  { %v897_v28 = vadd.f32 %v896_v25, %v1746_v21  ;;  %v1023_v30 = vadd.f32 %v1767_v42, %v1001_v26  ;;  %v1007_v21 = vmul.f32 %v1760_v12, %v894_v17  ;;  %v1002_v32 = vmul.f32 %v1760_v12, %v873_v18  ;;  %v983_v25 = vld [vmem:[%s1911_s4 + $0x30] sm:$0xff] }
 0x13c   :  { %v1031_v33 = vadd.f32 %v1767_v42, %v1009_v43  ;;  %v1021_v34 = vadd.f32 %v1767_v42, %v999_v27  ;;  %v1010_v37 = vmul.f32 %v1760_v12, %v905_v23  ;;  %v1000_v38 = vmul.f32 %v1760_v12, %v865_v24 }
 0x13d   :  { %v1039_v40 = vadd.f32 %v1023_v30, %v979_v20  ;;  %v1029_v41 = vadd.f32 %v1767_v42, %v1007_v21  ;;  %v1024_v44 = vadd.f32 %v1767_v42, %v1002_v32  ;;  %v1008_v47 = vmul.f32 %v1760_v12, %v897_v28  ;;  %v981_v20 = vld [vmem:[%s1911_s4 + $0x20] sm:$0xff] }
 0x13e   :  { %v1337_v39 = vpop.f32.mrb[36].mxu0  ;;  %v1047_v50 = vadd.f32 %v1031_v33, %v987_v31  ;;  %v1037_v51 = vadd.f32 %v1021_v34, %v977_v29  ;;  %v1032_v54 = vadd.f32 %v1767_v42, %v1010_v37  ;;  %v1022_v55 = vadd.f32 %v1767_v42, %v1000_v38  ;;  %v989_v31 = vld [vmem:[%s1911_s4 + $0x60] sm:$0xff]  ;;  %v984_v29 = vld [vmem:[%s1911_s4 + $0x38] sm:$0xff]  ;;  %v982_v37 = vld [vmem:[%s1911_s4 + $0x28] sm:$0xff] }
 0x13f   :  { %v1345_v48 = vpop.f32.mrb[36].mxu1  ;;  %v877_v49 = vpop.f32.mrb[37].mxu0  ;;  %v1055_v61 = vmax.f32 %v1039_v40, 0.0  ;;  %v1045_v62 = vadd.f32 %v1029_v41, %v985_v35  ;;  %v1040_v63 = vadd.f32 %v1024_v44, %v980_v36  ;;  %v1030_v0 = vadd.f32 %v1767_v42, %v1008_v47  ;;  %v992_v36 = vld [vmem:[%s1911_s4 + $0x78] sm:$0xff] }
 0x140   :  { %v909_v59 = vpop.f32.mrb[37].mxu1  ;;  %v1338_v60 = vpop.f32.mrb[38].mxu0  ;;  %v1063_v3 = vmax.f32 %v1047_v50, 0.0  ;;  %v1053_v8 = vmax.f32 %v1037_v51, 0.0  ;;  %v1048_v9 = vadd.f32 %v1032_v54, %v988_v45  ;;  %v1038_v10 = vadd.f32 %v1022_v55, %v978_v46  ;;  %v990_v45 = vld [vmem:[%s1911_s4 + $0x68] sm:$0xff] }
 0x141   :  { %v1346_v1 = vpop.f32.mrb[38].mxu1  ;;  %v880_v2 = vpop.f32.mrb[39].mxu0  ;;  %1071 = vst [vmem:[%s1912_s5 + $0x10] sm:$0xff] %v1055_v61  ;;  %v1061_v13 = vmax.f32 %v1045_v62, 0.0  ;;  %v1056_v14 = vmax.f32 %v1040_v63, 0.0  ;;  %v1046_v15 = vadd.f32 %v1030_v0, %v986_v58  ;;  %v886_v16 = vadd.f32 %v1337_v39, %v1742_v6 }
 0x142   :  { %v912_v11 = vpop.f32.mrb[39].mxu1  ;;  %1079 = vst [vmem:[%s1912_s5 + $0x50] sm:$0xff] %v1063_v3  ;;  %1069 = vst [vmem:[%s1912_s5] sm:$0xff] %v1053_v8  ;;  %v1064_v17 = vmax.f32 %v1048_v9, 0.0  ;;  %v1054_v18 = vmax.f32 %v1038_v10, 0.0  ;;  %v918_v19 = vadd.f32 %v1345_v48, %v1752_v4  ;;  %v878_v22 = vadd.f32 %v877_v49, %v1738_v56 }
 0x143   :  { %1077 = vst [vmem:[%s1912_s5 + $0x40] sm:$0xff] %v1061_v13  ;;  %1072 = vst [vmem:[%s1912_s5 + $0x18] sm:$0xff] %v1056_v14  ;;  %v1062_v6 = vmax.f32 %v1046_v15, 0.0  ;;  %v910_v23 = vadd.f32 %v909_v59, %v1748_v52  ;;  %v889_v24 = vadd.f32 %v1338_v60, %v1744_v7  ;;  %v921_v56 = vadd.f32 %v1346_v1, %v1754_v5 }
 0x144   :  { %1080 = vst [vmem:[%s1912_s5 + $0x58] sm:$0xff] %v1064_v17  ;;  %1070 = vst [vmem:[%s1912_s5 + $0x8] sm:$0xff] %v1054_v18  ;;  %v881_v4 = vadd.f32 %v880_v2, %v1740_v57  ;;  %v1005_v52 = vmul.f32 %v1760_v12, %v886_v16  ;;  %v913_v7 = vadd.f32 %v912_v11, %v1750_v53  ;;  %v991_v57 = vld [vmem:[%s1911_s4 + $0x70] sm:$0xff] }
 0x145   :  { %1078 = vst [vmem:[%s1912_s5 + $0x48] sm:$0xff] %v1062_v6  ;;  %v1013_v26 = vmul.f32 %v1760_v12, %v918_v19  ;;  %v1003_v28 = vmul.f32 %v1760_v12, %v878_v22  ;;  %v1011_v53 = vmul.f32 %v1760_v12, %v910_v23  ;;  %v1006_v43 = vmul.f32 %v1760_v12, %v889_v24 }
 0x146   :  { %v1027_v5 = vadd.f32 %v1767_v42, %v1005_v52  ;;  %v1014_v21 = vmul.f32 %v1760_v12, %v921_v56  ;;  %v1004_v32 = vmul.f32 %v1760_v12, %v881_v4  ;;  %v1012_v38 = vmul.f32 %v1760_v12, %v913_v7 }
 0x147   :  { %v1035_v27 = vadd.f32 %v1767_v42, %v1013_v26  ;;  %v1025_v30 = vadd.f32 %v1767_v42, %v1003_v28  ;;  %v1033_v34 = vadd.f32 %v1767_v42, %v1011_v53  ;;  %v1028_v35 = vadd.f32 %v1767_v42, %v1006_v43 }
 0x148   :  { %v1043_v33 = vadd.f32 %v1027_v5, %v983_v25  ;;  %v1036_v41 = vadd.f32 %v1767_v42, %v1014_v21  ;;  %v1026_v44 = vadd.f32 %v1767_v42, %v1004_v32  ;;  %v1034_v49 = vadd.f32 %v1767_v42, %v1012_v38 }
 0x149   :  { %v1051_v39 = vadd.f32 %v1035_v27, %v991_v57  ;;  %v1041_v40 = vadd.f32 %v1025_v30, %v981_v20  ;;  %v1049_v47 = vadd.f32 %v1033_v34, %v989_v31  ;;  %v1044_v48 = vadd.f32 %v1028_v35, %v984_v29 }
 0x14a   :  { %v1059_v46 = vmax.f32 %v1043_v33, 0.0  ;;  %v1052_v54 = vadd.f32 %v1036_v41, %v992_v36  ;;  %v1042_v55 = vadd.f32 %v1026_v44, %v982_v37  ;;  %v1050_v59 = vadd.f32 %v1034_v49, %v990_v45 }
 0x14b   :  { %v1067_v50 = vmax.f32 %v1051_v39, 0.0  ;;  %v1057_v51 = vmax.f32 %v1041_v40, 0.0  ;;  %v1065_v12 = vmax.f32 %v1049_v47, 0.0  ;;  %v1060_v58 = vmax.f32 %v1044_v48, 0.0 }
 0x14c   :  { %1075 = vst [vmem:[%s1912_s5 + $0x30] sm:$0xff] %v1059_v46  ;;  %v1068_v42 = vmax.f32 %v1052_v54, 0.0  ;;  %v1058_v60 = vmax.f32 %v1042_v55, 0.0  ;;  %v1066_v61 = vmax.f32 %v1050_v59, 0.0 }
 0x14d   :  { %1083 = vst [vmem:[%s1912_s5 + $0x70] sm:$0xff] %v1067_v50  ;;  %1073 = vst [vmem:[%s1912_s5 + $0x20] sm:$0xff] %v1057_v51 }
 0x14e   :  { %1081 = vst [vmem:[%s1912_s5 + $0x60] sm:$0xff] %v1065_v12  ;;  %1076 = vst [vmem:[%s1912_s5 + $0x38] sm:$0xff] %v1060_v58 }
 0x14f   :  { %1084 = vst [vmem:[%s1912_s5 + $0x78] sm:$0xff] %v1068_v42  ;;  %1074 = vst [vmem:[%s1912_s5 + $0x28] sm:$0xff] %v1058_v60 }
 0x150   :  { %1082 = vst [vmem:[%s1912_s5 + $0x68] sm:$0xff] %v1066_v61 }

// kernel: resnet_feature_forward.29
= control target key start
LH: loop header
LB: loop body
LE: loop exit
PB: predicated region body
PF: predicated region fallthrough
CT: control target
= control target key end

     0   :  { %s330_s1 = inlined_call_operand.vmem [shape: bf16[128,128], index: 1, kind: input, shape index: {}]   ;;  %s331_s0 = inlined_call_operand.vmem [shape: bf16[32,128], index: 0, kind: input, shape index: {}]   ;;  %s332_s2 = inlined_call_operand.vmem [shape: f32[1,128], index: 2, kind: input, shape index: {}]   ;;  %s333_s3 = inlined_call_operand.vmem [shape: f32[1,128], index: 3, kind: input, shape index: {}]   ;;  %s334_s4 = inlined_call_operand.vmem [shape: f32[32,128], index: 4, kind: output, shape index: {}]  }
   0x1   :  { %v247_v0 = vld [vmem:[%s330_s1] sm:$0xff]   ;;  %v248_v1 = vld [vmem:[%s330_s1 + $0x8] sm:$0xff]   ;;  %v249_v2 = vld [vmem:[%s330_s1 + $0x10] sm:$0xff]  }
   0x2   :  { %226 = vmatprep.subr.bf16.mxu0 %v247_v0  ;;  %v250_v3 = vld [vmem:[%s330_s1 + $0x18] sm:$0xff]   ;;  %v255_v4 = vld [vmem:[%s331_s0] sm:$0xff]   ;;  %v252_v6 = vld [vmem:[%s330_s1 + $0x28] sm:$0xff]  }
   0x3   :  { %227 = vmatpush3.bf16.msra.mxu0 %v247_v0  ;;  %242 = vmatprep.mubr.bf16.mxu0 %v255_v4  ;;  %v251_v5 = vld [vmem:[%s330_s1 + $0x20] sm:$0xff]   ;;  %v253_v7 = vld [vmem:[%s330_s1 + $0x30] sm:$0xff]   ;;  %v254_v8 = vld [vmem:[%s330_s1 + $0x38] sm:$0xff]  }
   0x4   :  { %228 = vmatprep.subr.bf16.mxu0 %v248_v1  ;;  %v256_v9 = vld [vmem:[%s331_s0 + $0x8] sm:$0xff]   ;;  %v214_v11 = vld [vmem:[%s332_s2] ss:$0 sm:$0xff] }
   0x5   :  { %v215_v13 = vld [vmem:[%s333_s3] ss:$0 sm:$0xff] }
   0x7   :  { %229 = vmatpush3.bf16.msra.mxu0 %v248_v1 }
   0x8   :  { %230 = vmatprep.subr.bf16.mxu0 %v249_v2 }
   0xb   :  { %231 = vmatpush3.bf16.msra.mxu0 %v249_v2 }
   0xc   :  { %232 = vmatprep.subr.bf16.mxu0 %v250_v3 }
   0xf   :  { %233 = vmatpush3.bf16.msra.mxu0 %v250_v3 }
  0x10   :  { %234 = vmatprep.subr.bf16.mxu0 %v251_v5 }
  0x13   :  { %235 = vmatpush3.bf16.msra.mxu0 %v251_v5 }
  0x14   :  { %236 = vmatprep.subr.bf16.mxu0 %v252_v6 }
  0x17   :  { %237 = vmatpush3.bf16.msra.mxu0 %v252_v6 }
  0x18   :  { %238 = vmatprep.subr.bf16.mxu0 %v253_v7 }
  0x1b   :  { %239 = vmatpush3.bf16.msra.mxu0 %v253_v7 }
  0x1c   :  { %240 = vmatprep.subr.bf16.mxu0 %v254_v8 }
  0x1f   :  { %241 = vmatpush3.bf16.msra.mxu0 %v254_v8 }
  0x22   :  { %243 = vmatmul.mubr.bf16.vlgmr.msra.gmra.mrb[0].mxu0 %v256_v9 }
  0xf5   :  { %v244_v10 = vpop.f32.mrb[0].mxu0 }
  0xf6   :  { %v144_v12 = vpop.f32.mrb[1].mxu0  ;;  %v184_v15 = vmul.f32 %v244_v10, %v214_v11 }
  0xf7   :  { %v245_v14 = vpop.f32.mrb[2].mxu0  ;;  %v182_v17 = vmul.f32 %v214_v11, %v144_v12 }
  0xf8   :  { %v147_v16 = vpop.f32.mrb[3].mxu0  ;;  %v194_v18 = vadd.f32 %v215_v13, %v184_v15  ;;  %v185_v19 = vmul.f32 %v245_v14, %v214_v11 }
  0xf9   :  { %v192_v20 = vadd.f32 %v215_v13, %v182_v17  ;;  %v183_v21 = vmul.f32 %v214_v11, %v147_v16 }
  0xfa   :  { %198 = vst [vmem:[%s334_s4 + $0x10] sm:$0xff] %v194_v18  ;;  %v195_v22 = vadd.f32 %v215_v13, %v185_v19 }
  0xfb   :  { %196 = vst [vmem:[%s334_s4] sm:$0xff] %v192_v20  ;;  %v193_v23 = vadd.f32 %v215_v13, %v183_v21 }
  0xfc   :  { %199 = vst [vmem:[%s334_s4 + $0x18] sm:$0xff] %v195_v22 }
  0xfd   :  { %197 = vst [vmem:[%s334_s4 + $0x8] sm:$0xff] %v193_v23 }

// kernel: resnet_feature_forward.30
= control target key start
LH: loop header
LB: loop body
LE: loop exit
PB: predicated region body
PF: predicated region fallthrough
CT: control target
= control target key end

     0   :  { %s1089_s18 = smov 0   ;;  %s1091_s19 = smov 0   ;;  %s1268_s0 = inlined_call_operand.vmem [shape: bf16[32,1152], index: 0, kind: input, shape index: {}]   ;;  %s1269_s1 = inlined_call_operand.vmem [shape: bf16[1152,128], index: 1, kind: input, shape index: {}]   ;;  %s1270_s2 = inlined_call_operand.vmem [shape: f32[1,128], index: 2, kind: input, shape index: {}]   ;;  %s1271_s3 = inlined_call_operand.vmem [shape: f32[1,128], index: 3, kind: input, shape index: {}]   ;;  %s1272_s4 = inlined_call_operand.vmem [shape: f32[32,128], index: 4, kind: input, shape index: {}]   ;;  %s1273_s5 = inlined_call_operand.vmem [shape: f32[32,128], index: 5, kind: output, shape index: {}]  }
   0x1   :  { %s1093_s20 = smov 0   ;;  %s1095_s21 = smov 0  }
   0x2   :  { %s1097_s22 = smov 0  }
   0x3 LB: > { %s24_s23 = sadd.s32 1, %s1052_s21  ;;  %p43_p1 = scmp.ne.s32.totalorder %s1044_s19, %s1040_s18  ;;  %s1056_s22 = sphi %s1097_s22, %s15_s22   ;;  %s1052_s21 = sphi %s1095_s21, %s1277_s21   ;;  %s1048_s20 = sphi %s1093_s20, %s1276_s20   ;;  %s1044_s19 = sphi %s1091_s19, %s1275_s19   ;;  %s1040_s18 = sphi %s1089_s18, %s1274_s18  }
   0x4   : > { %p25_p0 = scmp.ge.s32.totalorder %s24_s23, 3  ;;  %p44_p2 = scmp.eq.s32.totalorder %s1056_s22, 0 }
   0x5   : > { %s36_s25 = sadd.s32 1, %s1044_s19  ;;  %p834_p5 = scmp.ge.s32.totalorder %s1056_s22, 3 }
   0x6   : > { %s1279_s23 = smov (%p25_p0, %s24_s23), 0  ;;  %p45_p3 = por %p44_p2, %p43_p1 }
   0x7   : > { %s32_s24 = ssub.s32 %s1052_s21, %s1279_s23  ;;  %204 = sbr.rel (%p834_p5) target bundleno = 23 (0x17), region = 28 }
   0x8   : > { %p34_p4 = scmp.eq.s32.totalorder %s32_s24, 0 }
   0xa   : > { %s1124_s26 = scalar_select %p34_p4, %s1044_s19, %s36_s25  }
   0xe   : > { %207 = sbr.rel (!%p45_p3) target bundleno = 23 (0x17), region = 32  ;;  %s209_s27 = sand.u32 (%p45_p3), 1, %s1044_s19  }
   0xf   : > { %s884_s28 = smul.u32 (%p45_p3), 12, %s1052_s21 }
  0x10   : > { %s943_s29 = smul.u32 (%p45_p3), 48, %s209_s27 }
  0x11   : > { %s217_s7 = scalar_lea.vmem (%p45_p3), %s1268_s0, %s884_s28 }
  0x12   : > { %v232_v0 = vld [vmem:[%s217_s7] sm:$0xff] (%p45_p3)  ;;  %v236_v2 = vld [vmem:[%s217_s7 + $0x48] sm:$0xff] (%p45_p3)  ;;  %s211_s8 = scalar_lea.vmem (%p45_p3), [#allocation2], %s943_s29  ;;  %v840_v6 = vld [vmem:[%s217_s7 + $0x50] sm:$0xf] (%p45_p3) }
  0x13   : > { %v234_v1 = vld [vmem:[%s217_s7 + $0x24] sm:$0xff] (%p45_p3)  ;;  %233 = vst [vmem:[%s211_s8] sm:$0xff] (%p45_p3), %v232_v0  ;;  %237 = vst [vmem:[%s211_s8 + $0x18] sm:$0xff] (%p45_p3), %v236_v2  ;;  %v238_v3 = vld [vmem:[%s217_s7 + $0x6c] sm:$0xff] (%p45_p3) }
  0x14   : > { %235 = vst [vmem:[%s211_s8 + $0xc] sm:$0xff] (%p45_p3), %v234_v1  ;;  %v836_v4 = vld [vmem:[%s217_s7 + $0x8] sm:$0xf] (%p45_p3)  ;;  %v838_v5 = vld [vmem:[%s217_s7 + $0x2c] sm:$0xf] (%p45_p3)  ;;  %239 = vst [vmem:[%s211_s8 + $0x24] sm:$0xff] (%p45_p3), %v238_v3 }
  0x15   : > { %837 = vst [vmem:[%s211_s8 + $0x8] sm:$0xf] %v836_v4  ;;  %839 = vst [vmem:[%s211_s8 + $0x14] sm:$0xf] %v838_v5  ;;  %v842_v7 = vld [vmem:[%s217_s7 + $0x74] sm:$0xf] }
  0x16   : > { %841 = vst [vmem:[%s211_s8 + $0x20] sm:$0xf] %v840_v6  ;;  %843 = vst [vmem:[%s211_s8 + $0x2c] sm:$0xf] %v842_v7 }
  0x17 PF: > { %p844_p6 = scmp.ge.s32.totalorder %s1056_s22, 1  ;;  %p268_p7 = scmp.lt.s32.totalorder %s1056_s22, 4 }
  0x19   : > { %p269_p8 = pnand %p844_p6, %p268_p7 }
  0x1a   : > { %s275_s9 = sand.u32 (!%p269_p8), 1, %s1040_s18   ;;  %s314_s10 = smul.u32 (!%p269_p8), 48, %s1048_s20 }
  0x1b   : > { %272 = sbr.rel (%p269_p8) target bundleno = 320 (0x140), region = 62  ;;  %p846_p10 = scmp.ne.s32.totalorder (!%p269_p8), %s1048_s20, 0 }
  0x1c   : > { %s944_s11 = smul.u32 (!%p269_p8), 48, %s275_s9  ;;  %p315_p9 = scmp.lt.s32.totalorder (!%p269_p8), %s314_s10, 143 }
  0x1e   : > { %s1141_s16 = scalar_lea.vmem (!%p269_p8), [#allocation2], %s944_s11 }
  0x22   : > { %s1281_s10 = smov (!%p315_p9, %s314_s10), 143  ;;  %336 = sbr.rel (%p846_p10) target bundleno = 41 (0x29), region = 70 }
  0x23   : > { %s845_s12 = sshll.u32 %s1281_s10, 2  ;;  %v1058_v8 = vmov (!%p846_p10), 0.0  }
  0x24   : > { %s1139_s15 = scalar_lea.vmem %s1269_s1, %s845_s12  ;;  %337 = vst [vmem:[%s1273_s5] sm:$0xff] (!%p846_p10), %v1058_v8  ;;  %338 = vst [vmem:[%s1273_s5 + $0x8] sm:$0xff] (!%p846_p10), %v1058_v8 }
  0x25   : > { %339 = vst [vmem:[%s1273_s5 + $0x10] sm:$0xff] (!%p846_p10), %v1058_v8  ;;  %340 = vst [vmem:[%s1273_s5 + $0x18] sm:$0xff] (!%p846_p10), %v1058_v8 }
  0x29 PF: > { %v986_v9 = vld [vmem:[%s1139_s15 + $0x40] sm:$0xff]   ;;  %v989_v12 = vld [vmem:[%s1139_s15 + $0x48] sm:$0xff]   ;;  %v992_v15 = vld [vmem:[%s1139_s15 + $0x50] sm:$0xff]   ;;  %p877_p11 = scmp.ne.s32.totalorder %s1048_s20, 2 }
  0x2a   : > { %v987_v10 = vld [vmem:[%s1139_s15] sm:$0xff]   ;;  %885 = vmatprep.subr.bf16.mxu0 %v986_v9  ;;  %v990_v13 = vld [vmem:[%s1139_s15 + $0x8] sm:$0xff]   ;;  %v993_v16 = vld [vmem:[%s1139_s15 + $0x10] sm:$0xff]  }
  0x2b   : > { %v988_v11 = vld [vmem:[%s1139_s15 + $0x80] sm:$0xff]   ;;  %886 = vmatpush3.bf16.msra.mxu0 %v987_v10  ;;  %v991_v14 = vld [vmem:[%s1139_s15 + $0x88] sm:$0xff]   ;;  %v994_v17 = vld [vmem:[%s1139_s15 + $0x90] sm:$0xff]  }
  0x2c   : > { %923 = vmatprep.subr.bf16.mxu1 %v988_v11  ;;  %887 = vmatprep.subr.bf16.mxu0 %v989_v12  ;;  %v995_v18 = vld [vmem:[%s1139_s15 + $0x58] sm:$0xff]   ;;  %v998_v21 = vld [vmem:[%s1139_s15 + $0x60] sm:$0xff]   ;;  %v1001_v24 = vld [vmem:[%s1139_s15 + $0x68] sm:$0xff]  }
  0x2d   : > { %924 = vmatpush3.bf16.msra.mxu1 %v988_v11  ;;  %v996_v19 = vld [vmem:[%s1139_s15 + $0x18] sm:$0xff]   ;;  %v1000_v22 = vld [vmem:[%s1139_s15 + $0xa0] sm:$0xff]   ;;  %v1003_v25 = vld [vmem:[%s1139_s15 + $0xa8] sm:$0xff]  }
  0x2e   : > { %925 = vmatprep.subr.bf16.mxu1 %v991_v14  ;;  %v997_v20 = vld [vmem:[%s1139_s15 + $0x98] sm:$0xff]   ;;  %v999_v23 = vld [vmem:[%s1139_s15 + $0x20] sm:$0xff]   ;;  %v1002_v26 = vld [vmem:[%s1139_s15 + $0x28] sm:$0xff]  }
  0x2f   : > { %888 = vmatpush3.bf16.msra.mxu0 %v990_v13  ;;  %v1004_v27 = vld [vmem:[%s1139_s15 + $0x70] sm:$0xff]   ;;  %v1007_v30 = vld [vmem:[%s1139_s15 + $0x78] sm:$0xff]   ;;  %v341_v45 = vld [vmem:[%s1273_s5] sm:$0xff] }
  0x30   : > { %889 = vmatprep.subr.bf16.mxu0 %v992_v15  ;;  %v1005_v28 = vld [vmem:[%s1139_s15 + $0x30] sm:$0xff]   ;;  %v1009_v31 = vld [vmem:[%s1139_s15 + $0xb8] sm:$0xff]   ;;  %v342_v50 = vld [vmem:[%s1273_s5 + $0x8] sm:$0xff] }
  0x31   : > { %926 = vmatpush3.bf16.msra.mxu1 %v991_v14  ;;  %v1006_v29 = vld [vmem:[%s1139_s15 + $0xb0] sm:$0xff]   ;;  %v1008_v34 = vld [vmem:[%s1139_s15 + $0x38] sm:$0xff]   ;;  %v878_v4 = vld [vmem:[%s1270_s2] ss:$0 sm:$0xff] (!%p877_p11) }
  0x32   : > { %927 = vmatprep.subr.bf16.mxu1 %v994_v17  ;;  %v1012_v32 = vld [vmem:[%s1141_s16 + $0x4] ss:$12 sps:$4 sm:$0xff]   ;;  %v1013_v33 = vld [vmem:[%s1141_s16 + $0x8] ss:$12 sps:$4 sm:$0xff]   ;;  %v1010_v35 = vld [vmem:[%s1141_s16] ss:$12 sps:$4 sm:$0xff]  }
  0x33   : > { %890 = vmatpush3.bf16.msra.mxu0 %v993_v16  ;;  %609 = vmatprep.mubr.bf16.mxu0 %v1012_v32  ;;  %v1015_v36 = vld [vmem:[%s1141_s16 + $0x1c] ss:$12 sps:$4 sm:$0xff]   ;;  %v1014_v37 = vld [vmem:[%s1141_s16 + $0x20] ss:$12 sps:$4 sm:$0xff]   ;;  %v1017_v38 = vld [vmem:[%s1141_s16 + $0x18] ss:$12 sps:$4 sm:$0xff]  }
  0x34   : > { %891 = vmatprep.subr.bf16.mxu0 %v995_v18  ;;  %939 = vmatprep.mubr.bf16.mxu1 %v1013_v33  ;;  %v343_v59 = vld [vmem:[%s1273_s5 + $0x10] sm:$0xff]  ;;  %v344_v63 = vld [vmem:[%s1273_s5 + $0x18] sm:$0xff]  ;;  %v879_v5 = vld [vmem:[%s1271_s3] ss:$0 sm:$0xff] (!%p877_p11) }
  0x35   : > { %928 = vmatpush3.bf16.msra.mxu1 %v994_v17  ;;  %v693_v8 = vld [vmem:[%s1272_s4] sm:$0xff] (!%p877_p11)  ;;  %v694_v13 = vld [vmem:[%s1272_s4 + $0x8] sm:$0xff] (!%p877_p11)  ;;  %v695_v17 = vld [vmem:[%s1272_s4 + $0x10] sm:$0xff] (!%p877_p11) }
  0x36   : > { %929 = vmatprep.subr.bf16.mxu1 %v997_v20  ;;  %v696_v18 = vld [vmem:[%s1272_s4 + $0x18] sm:$0xff] (!%p877_p11) }
  0x37   : > { %892 = vmatpush3.bf16.msra.mxu0 %v996_v19 }
  0x38   : > { %893 = vmatprep.subr.bf16.mxu0 %v998_v21 }
  0x39   : > { %930 = vmatpush3.bf16.msra.mxu1 %v997_v20 }
  0x3a   : > { %931 = vmatprep.subr.bf16.mxu1 %v1000_v22 }
  0x3b   : > { %894 = vmatpush3.bf16.msra.mxu0 %v999_v23 }
  0x3c   : > { %895 = vmatprep.subr.bf16.mxu0 %v1001_v24 }
  0x3d   : > { %932 = vmatpush3.bf16.msra.mxu1 %v1000_v22 }
  0x3e   : > { %933 = vmatprep.subr.bf16.mxu1 %v1003_v25 }
  0x3f   : > { %896 = vmatpush3.bf16.msra.mxu0 %v1002_v26 }
  0x40   : > { %897 = vmatprep.subr.bf16.mxu0 %v1004_v27 }
  0x41   : > { %934 = vmatpush3.bf16.msra.mxu1 %v1003_v25 }
  0x42   : > { %935 = vmatprep.subr.bf16.mxu1 %v1006_v29 }
  0x43   : > { %898 = vmatpush3.bf16.msra.mxu0 %v1005_v28 }
  0x44   : > { %899 = vmatprep.subr.bf16.mxu0 %v1007_v30 }
  0x45   : > { %936 = vmatpush3.bf16.msra.mxu1 %v1006_v29 }
  0x46   : > { %937 = vmatprep.subr.bf16.mxu1 %v1009_v31 }
  0x47   : > { %900 = vmatpush3.bf16.msra.mxu0 %v1008_v34 }
  0x49   : > { %938 = vmatpush3.bf16.msra.mxu1 %v1009_v31 }
  0x4a   : > { %610 = vmatmul.mubr.bf16.vlgmr.msra.gmra.mrb[0].mxu0 %v1010_v35 }
  0x4b   : > { %617 = vmatprep.mubr.bf16.mxu0 %v1015_v36 }
  0x4c   : > { %940 = vmatmul.mubr.bf16.vlgmr.msra.gmra.mrb[0].mxu1 %v1014_v37 }
  0x52   : > { %618 = vmatmul.mubr.bf16.gmra.mrb[4].mxu0 %v1017_v38 }
 0x11d   : > { %v901_v39 = vpop.f32.mrb[0].mxu0 }
 0x11e   : > { %v902_v40 = vpop.f32.mrb[1].mxu0 }
 0x11f   : > { %v903_v41 = vadd.f32 %v902_v40, %v901_v39  ;;  %v904_v42 = vpop.f32.mrb[2].mxu0  ;;  %v941_v43 = vpop.f32.mrb[0].mxu1 }
 0x120   : > { %v905_v44 = vpop.f32.mrb[3].mxu0  ;;  %v660_v46 = vpop.f32.mrb[1].mxu1 }
 0x121   : > { %v906_v47 = vadd.f32 %v905_v44, %v904_v42  ;;  %v661_v48 = vadd.f32 %v903_v41, %v660_v46  ;;  %v942_v49 = vpop.f32.mrb[2].mxu1 }
 0x122   : > { %v663_v51 = vpop.f32.mrb[3].mxu1 }
 0x123   : > { %v675_v52 = vadd.f32 %v661_v48, %v341_v45  ;;  %v664_v53 = vadd.f32 %v906_v47, %v663_v51 }
 0x125   : > { %679 = vst [vmem:[%s1273_s5] sm:$0xff] %v675_v52  ;;  %v676_v54 = vadd.f32 %v664_v53, %v342_v50  ;;  %v907_v55 = vpop.f32.mrb[4].mxu0 }
 0x126   : > { %v908_v56 = vpop.f32.mrb[5].mxu0 }
 0x127   : > { %680 = vst [vmem:[%s1273_s5 + $0x8] sm:$0xff] %v676_v54  ;;  %v909_v57 = vadd.f32 %v908_v56, %v907_v55  ;;  %v910_v58 = vpop.f32.mrb[6].mxu0 }
 0x128   : > { %v911_v60 = vpop.f32.mrb[7].mxu0 }
 0x129   : > { %v669_v61 = vadd.f32 %v941_v43, %v909_v57  ;;  %v912_v62 = vadd.f32 %v911_v60, %v910_v58  ;;  %686 = sbr.rel (%p877_p11) target bundleno = 320 (0x140), region = 74 }
 0x12b   : > { %v677_v0 = vadd.f32 %v669_v61, %v343_v59  ;;  %v672_v1 = vadd.f32 %v942_v49, %v912_v62 }
 0x12c   : > { %v687_v3 = vld [vmem:[%s1273_s5] sm:$0xff] (!%p877_p11) }
 0x12d   : > { %681 = vst [vmem:[%s1273_s5 + $0x10] sm:$0xff] %v677_v0  ;;  %v678_v2 = vadd.f32 %v672_v1, %v344_v63  ;;  %v703_v6 = vmul.f32 (!%p877_p11), %v878_v4, %v687_v3 }
 0x12e   : > { %v688_v7 = vld [vmem:[%s1273_s5 + $0x8] sm:$0xff] (!%p877_p11) }
 0x12f   : > { %682 = vst [vmem:[%s1273_s5 + $0x18] sm:$0xff] %v678_v2  ;;  %v704_v9 = vmul.f32 (!%p877_p11), %v878_v4, %v688_v7  ;;  %v713_v12 = vadd.f32 (!%p877_p11), %v879_v5, %v703_v6 }
 0x131   : > { %v714_v16 = vadd.f32 %v879_v5, %v704_v9  ;;  %v717_v19 = vadd.f32 %v713_v12, %v693_v8 }
 0x133   : > { %v718_v22 = vadd.f32 %v714_v16, %v694_v13  ;;  %v721_v23 = vmax.f32 %v717_v19, 0.0 }
 0x134   : > { %v689_v10 = vld [vmem:[%s1273_s5 + $0x10] sm:$0xff] }
 0x135   : > { %v705_v14 = vmul.f32 %v878_v4, %v689_v10  ;;  %v722_v26 = vmax.f32 %v718_v22, 0.0  ;;  %725 = vst [vmem:[%s1273_s5] sm:$0xff] %v721_v23 }
 0x136   : > { %v690_v11 = vld [vmem:[%s1273_s5 + $0x18] sm:$0xff] }
 0x137   : > { %v706_v15 = vmul.f32 %v878_v4, %v690_v11  ;;  %v715_v20 = vadd.f32 %v879_v5, %v705_v14  ;;  %726 = vst [vmem:[%s1273_s5 + $0x8] sm:$0xff] %v722_v26 }
 0x139   : > { %v716_v21 = vadd.f32 %v879_v5, %v706_v15  ;;  %v719_v24 = vadd.f32 %v715_v20, %v695_v17 }
 0x13b   : > { %v720_v25 = vadd.f32 %v716_v21, %v696_v18  ;;  %v723_v27 = vmax.f32 %v719_v24, 0.0 }
 0x13d   : > { %v724_v28 = vmax.f32 %v720_v25, 0.0  ;;  %727 = vst [vmem:[%s1273_s5 + $0x10] sm:$0xff] %v723_v27 }
 0x13f   : > { %728 = vst [vmem:[%s1273_s5 + $0x18] sm:$0xff] %v724_v28 }
 0x140 PF: > { %s15_s22 = sadd.s32 1, %s1056_s22   ;;  %s1274_s18 = smov %s1044_s19 }
 0x141   : > { %p12_p12 = scmp.ge.s32.totalorder %s15_s22, 5   ;;  %s1275_s19 = smov %s1124_s26 }
 0x142   : > { %s1276_s20 = smov %s1052_s21  ;;  %s1277_s21 = smov %s1279_s23 }
 0x143   :  { %14 = sbr.rel (!%p12_p12) target bundleno = 3 (0x3), region = 121 }

// kernel: resnet_feature_forward.28
= control target key start
LH: loop header
LB: loop body
LE: loop exit
PB: predicated region body
PF: predicated region fallthrough
CT: control target
= control target key end

     0   :  { %s996_s1 = inlined_call_operand.vmem [shape: bf16[640,128], index: 1, kind: input, shape index: {}]   ;;  %s997_s0 = inlined_call_operand.vmem [shape: bf16[32,640], index: 0, kind: input, shape index: {}]   ;;  %s998_s2 = inlined_call_operand.vmem [shape: f32[1,128], index: 2, kind: input, shape index: {}]   ;;  %s999_s3 = inlined_call_operand.vmem [shape: f32[1,128], index: 3, kind: input, shape index: {}]   ;;  %s1000_s4 = inlined_call_operand.vmem [shape: f32[32,128], index: 4, kind: output, shape index: {}]  }
   0x1   :  { %v749_v0 = vld [vmem:[%s996_s1 + $0x40] sm:$0xff]   ;;  %v753_v4 = vld [vmem:[%s996_s1 + $0x48] sm:$0xff]   ;;  %v757_v8 = vld [vmem:[%s996_s1 + $0x50] sm:$0xff]  }
   0x2   :  { %v750_v1 = vld [vmem:[%s996_s1 + $0xc0] sm:$0xff]   ;;  %662 = vmatprep.subr.bf16.mxu0 %v749_v0  ;;  %v754_v5 = vld [vmem:[%s996_s1 + $0xc8] sm:$0xff]   ;;  %v758_v9 = vld [vmem:[%s996_s1 + $0xd0] sm:$0xff]  }
   0x3   :  { %v751_v2 = vld [vmem:[%s996_s1] sm:$0xff]   ;;  %690 = vmatprep.subr.bf16.mxu1 %v750_v1  ;;  %v755_v6 = vld [vmem:[%s996_s1 + $0x8] sm:$0xff]   ;;  %v759_v10 = vld [vmem:[%s996_s1 + $0x10] sm:$0xff]  }
   0x4   :  { %v752_v3 = vld [vmem:[%s996_s1 + $0x80] sm:$0xff]   ;;  %663 = vmatpush3.bf16.msra.mxu0 %v751_v2  ;;  %v756_v7 = vld [vmem:[%s996_s1 + $0x88] sm:$0xff]   ;;  %v760_v11 = vld [vmem:[%s996_s1 + $0x90] sm:$0xff]  }
   0x5   :  { %691 = vmatpush3.bf16.msra.mxu1 %v752_v3  ;;  %664 = vmatprep.subr.bf16.mxu0 %v753_v4  ;;  %v761_v12 = vld [vmem:[%s996_s1 + $0x58] sm:$0xff]   ;;  %v765_v16 = vld [vmem:[%s996_s1 + $0x60] sm:$0xff]   ;;  %v769_v20 = vld [vmem:[%s996_s1 + $0x68] sm:$0xff]  }
   0x6   :  { %692 = vmatprep.subr.bf16.mxu1 %v754_v5  ;;  %v762_v13 = vld [vmem:[%s996_s1 + $0xd8] sm:$0xff]   ;;  %v766_v17 = vld [vmem:[%s996_s1 + $0xe0] sm:$0xff]   ;;  %v770_v21 = vld [vmem:[%s996_s1 + $0xe8] sm:$0xff]  }
   0x7   :  { %v763_v14 = vld [vmem:[%s996_s1 + $0x18] sm:$0xff]   ;;  %v767_v18 = vld [vmem:[%s996_s1 + $0x20] sm:$0xff]   ;;  %v771_v22 = vld [vmem:[%s996_s1 + $0x28] sm:$0xff]  }
   0x8   :  { %665 = vmatpush3.bf16.msra.mxu0 %v755_v6  ;;  %v764_v15 = vld [vmem:[%s996_s1 + $0x98] sm:$0xff]   ;;  %v768_v19 = vld [vmem:[%s996_s1 + $0xa0] sm:$0xff]   ;;  %v772_v23 = vld [vmem:[%s996_s1 + $0xa8] sm:$0xff]  }
   0x9   :  { %693 = vmatpush3.bf16.msra.mxu1 %v756_v7  ;;  %666 = vmatprep.subr.bf16.mxu0 %v757_v8  ;;  %v773_v24 = vld [vmem:[%s996_s1 + $0x70] sm:$0xff]   ;;  %v777_v28 = vld [vmem:[%s996_s1 + $0x78] sm:$0xff]   ;;  %v786_v35 = vld [vmem:[%s997_s0 + $0xc] ss:$20 sps:$4 sm:$0xff]  }
   0xa   :  { %694 = vmatprep.subr.bf16.mxu1 %v758_v9  ;;  %v774_v25 = vld [vmem:[%s996_s1 + $0xf0] sm:$0xff]   ;;  %v778_v29 = vld [vmem:[%s996_s1 + $0xf8] sm:$0xff]   ;;  %v787_v36 = vld [vmem:[%s996_s1 + $0x100] sm:$0xff]   ;;  %495 = vmatprep.mubr.bf16.mxu1 %v786_v35 }
   0xb   :  { %v775_v26 = vld [vmem:[%s996_s1 + $0x30] sm:$0xff]   ;;  %v779_v30 = vld [vmem:[%s996_s1 + $0x38] sm:$0xff]   ;;  %v788_v37 = vld [vmem:[%s996_s1 + $0x108] sm:$0xff]  }
   0xc   :  { %667 = vmatpush3.bf16.msra.mxu0 %v759_v10  ;;  %v776_v27 = vld [vmem:[%s996_s1 + $0xb0] sm:$0xff]   ;;  %v780_v31 = vld [vmem:[%s996_s1 + $0xb8] sm:$0xff]   ;;  %v792_v39 = vld [vmem:[%s997_s0 + $0x2c] ss:$20 sps:$4 sm:$0xff]  }
   0xd   :  { %695 = vmatpush3.bf16.msra.mxu1 %v760_v11  ;;  %668 = vmatprep.subr.bf16.mxu0 %v761_v12  ;;  %v781_v32 = vld [vmem:[%s997_s0] ss:$20 sps:$4 sm:$0xff]   ;;  %v783_v33 = vld [vmem:[%s997_s0 + $0x4] ss:$20 sps:$4 sm:$0xff]   ;;  %v784_v34 = vld [vmem:[%s997_s0 + $0x8] ss:$20 sps:$4 sm:$0xff]  }
   0xe   :  { %696 = vmatprep.subr.bf16.mxu1 %v762_v13  ;;  %446 = vmatprep.mubr.bf16.mxu0 %v783_v33  ;;  %v789_v38 = vld [vmem:[%s996_s1 + $0x110] sm:$0xff]   ;;  %v790_v41 = vld [vmem:[%s996_s1 + $0x118] sm:$0xff]   ;;  %v791_v45 = vld [vmem:[%s996_s1 + $0x120] sm:$0xff]  }
   0xf   :  { %v794_v40 = vld [vmem:[%s997_s0 + $0x34] ss:$20 sps:$4 sm:$0xff]   ;;  %v798_v43 = vld [vmem:[%s997_s0 + $0x30] ss:$20 sps:$4 sm:$0xff]   ;;  %v800_v48 = vld [vmem:[%s996_s1 + $0x138] sm:$0xff]  }
  0x10   :  { %669 = vmatpush3.bf16.msra.mxu0 %v763_v14  ;;  %v797_v42 = vld [vmem:[%s997_s0 + $0x28] ss:$20 sps:$4 sm:$0xff]   ;;  %v801_v44 = vld [vmem:[%s997_s0 + $0x10] ss:$20 sps:$4 sm:$0xff]   ;;  %v802_v49 = vld [vmem:[%s997_s0 + $0x38] ss:$20 sps:$4 sm:$0xff]  }
  0x11   :  { %697 = vmatpush3.bf16.msra.mxu1 %v764_v15  ;;  %670 = vmatprep.subr.bf16.mxu0 %v765_v16  ;;  %v796_v46 = vld [vmem:[%s996_s1 + $0x128] sm:$0xff]   ;;  %v799_v47 = vld [vmem:[%s996_s1 + $0x130] sm:$0xff]  }
  0x12   :  { %698 = vmatprep.subr.bf16.mxu1 %v766_v17  ;;  %v660_v17 = vld [vmem:[%s998_s2] ss:$0 sm:$0xff] }
  0x14   :  { %671 = vmatpush3.bf16.msra.mxu0 %v767_v18 }
  0x15   :  { %699 = vmatpush3.bf16.msra.mxu1 %v768_v19  ;;  %672 = vmatprep.subr.bf16.mxu0 %v769_v20 }
  0x16   :  { %700 = vmatprep.subr.bf16.mxu1 %v770_v21 }
  0x18   :  { %673 = vmatpush3.bf16.msra.mxu0 %v771_v22  ;;  %v661_v22 = vld [vmem:[%s999_s3] ss:$0 sm:$0xff] }
  0x19   :  { %701 = vmatpush3.bf16.msra.mxu1 %v772_v23  ;;  %674 = vmatprep.subr.bf16.mxu0 %v773_v24 }
  0x1a   :  { %702 = vmatprep.subr.bf16.mxu1 %v774_v25 }
  0x1c   :  { %675 = vmatpush3.bf16.msra.mxu0 %v775_v26 }
  0x1d   :  { %703 = vmatpush3.bf16.msra.mxu1 %v776_v27  ;;  %676 = vmatprep.subr.bf16.mxu0 %v777_v28 }
  0x1e   :  { %704 = vmatprep.subr.bf16.mxu1 %v778_v29 }
  0x20   :  { %677 = vmatpush3.bf16.msra.mxu0 %v779_v30 }
  0x21   :  { %705 = vmatpush3.bf16.msra.mxu1 %v780_v31  ;;  %728 = vmatprep.subr.bf16.mxu0 %v787_v36 }
  0x23   :  { %447 = vmatmul.mubr.bf16.vlgmr.msra.gmra.mrb[0].mxu0 %v781_v32 }
  0x24   :  { %496 = vmatmul.mubr.bf16.vlgmr.msra.gmra.mrb[0].mxu1 %v784_v34  ;;  %729 = vmatpush3.bf16.msra.mxu0 %v787_v36 }
  0x25   :  { %730 = vmatprep.subr.bf16.mxu0 %v788_v37  ;;  %454 = vmatprep.mubr.bf16.mxu0 %v792_v39 }
  0x26   :  { %503 = vmatprep.mubr.bf16.mxu1 %v794_v40 }
  0x28   :  { %731 = vmatpush3.bf16.msra.mxu0 %v788_v37 }
  0x29   :  { %732 = vmatprep.subr.bf16.mxu0 %v789_v38 }
  0x2b   :  { %455 = vmatmul.mubr.bf16.gmra.mrb[4].mxu0 %v797_v42 }
  0x2c   :  { %504 = vmatmul.mubr.bf16.gmra.mrb[4].mxu1 %v798_v43  ;;  %733 = vmatpush3.bf16.msra.mxu0 %v789_v38 }
  0x2d   :  { %734 = vmatprep.subr.bf16.mxu0 %v790_v41  ;;  %744 = vmatprep.mubr.bf16.mxu0 %v801_v44 }
  0x30   :  { %735 = vmatpush3.bf16.msra.mxu0 %v790_v41 }
  0x31   :  { %736 = vmatprep.subr.bf16.mxu0 %v791_v45 }
  0x34   :  { %737 = vmatpush3.bf16.msra.mxu0 %v791_v45 }
  0x35   :  { %738 = vmatprep.subr.bf16.mxu0 %v796_v46 }
  0x38   :  { %739 = vmatpush3.bf16.msra.mxu0 %v796_v46 }
  0x39   :  { %740 = vmatprep.subr.bf16.mxu0 %v799_v47 }
  0x3c   :  { %741 = vmatpush3.bf16.msra.mxu0 %v799_v47 }
  0x3d   :  { %742 = vmatprep.subr.bf16.mxu0 %v800_v48 }
  0x40   :  { %743 = vmatpush3.bf16.msra.mxu0 %v800_v48 }
  0x43   :  { %745 = vmatmul.mubr.bf16.vlgmr.msra.gmra.mrb[8].mxu0 %v802_v49 }
  0xf6   :  { %v678_v50 = vpop.f32.mrb[0].mxu0 }
  0xf7   :  { %v706_v51 = vpop.f32.mrb[0].mxu1  ;;  %v679_v52 = vpop.f32.mrb[1].mxu0 }
  0xf8   :  { %v680_v53 = vadd.f32 %v679_v52, %v678_v50  ;;  %v707_v54 = vpop.f32.mrb[1].mxu1  ;;  %v681_v55 = vpop.f32.mrb[2].mxu0 }
  0xf9   :  { %v708_v56 = vadd.f32 %v707_v54, %v706_v51  ;;  %v709_v57 = vpop.f32.mrb[2].mxu1  ;;  %v682_v58 = vpop.f32.mrb[3].mxu0 }
  0xfa   :  { %v683_v59 = vadd.f32 %v682_v58, %v681_v55  ;;  %v710_v60 = vpop.f32.mrb[3].mxu1 }
  0xfb   :  { %v711_v61 = vadd.f32 %v710_v60, %v709_v57  ;;  %v498_v62 = vadd.f32 %v708_v56, %v680_v53 }
  0xfd   :  { %v501_v63 = vadd.f32 %v711_v61, %v683_v59 }
  0xfe   :  { %v684_v0 = vpop.f32.mrb[4].mxu0 }
  0xff   :  { %v712_v1 = vpop.f32.mrb[4].mxu1  ;;  %v685_v2 = vpop.f32.mrb[5].mxu0 }
 0x100   :  { %v686_v3 = vadd.f32 %v685_v2, %v684_v0  ;;  %v713_v4 = vpop.f32.mrb[5].mxu1  ;;  %v687_v5 = vpop.f32.mrb[6].mxu0 }
 0x101   :  { %v714_v6 = vadd.f32 %v713_v4, %v712_v1  ;;  %v715_v7 = vpop.f32.mrb[6].mxu1  ;;  %v688_v8 = vpop.f32.mrb[7].mxu0 }
 0x102   :  { %v689_v9 = vadd.f32 %v688_v8, %v687_v5  ;;  %v716_v10 = vpop.f32.mrb[7].mxu1 }
 0x103   :  { %v717_v11 = vadd.f32 %v716_v10, %v715_v7  ;;  %v506_v12 = vadd.f32 %v714_v6, %v686_v3 }
 0x105   :  { %v509_v13 = vadd.f32 %v717_v11, %v689_v9 }
 0x116   :  { %v746_v14 = vpop.f32.mrb[8].mxu0 }
 0x117   :  { %v555_v15 = vadd.f32 %v746_v14, %v506_v12  ;;  %v546_v16 = vpop.f32.mrb[9].mxu0 }
 0x118   :  { %v547_v18 = vadd.f32 %v546_v16, %v498_v62  ;;  %v747_v19 = vpop.f32.mrb[10].mxu0 }
 0x119   :  { %v558_v20 = vadd.f32 %v747_v19, %v509_v13  ;;  %v549_v21 = vpop.f32.mrb[11].mxu0  ;;  %v586_v24 = vmul.f32 %v660_v17, %v555_v15 }
 0x11a   :  { %v550_v23 = vadd.f32 %v549_v21, %v501_v63  ;;  %v584_v25 = vmul.f32 %v660_v17, %v547_v18 }
 0x11b   :  { %v596_v26 = vadd.f32 %v661_v22, %v586_v24  ;;  %v587_v27 = vmul.f32 %v660_v17, %v558_v20 }
 0x11c   :  { %v594_v28 = vadd.f32 %v661_v22, %v584_v25  ;;  %v585_v29 = vmul.f32 %v660_v17, %v550_v23 }
 0x11d   :  { %v600_v30 = vmax.f32 %v596_v26, 0.0  ;;  %v597_v31 = vadd.f32 %v661_v22, %v587_v27 }
 0x11e   :  { %v598_v32 = vmax.f32 %v594_v28, 0.0  ;;  %v595_v33 = vadd.f32 %v661_v22, %v585_v29 }
 0x11f   :  { %604 = vst [vmem:[%s1000_s4 + $0x10] sm:$0xff] %v600_v30  ;;  %v601_v34 = vmax.f32 %v597_v31, 0.0 }
 0x120   :  { %602 = vst [vmem:[%s1000_s4] sm:$0xff] %v598_v32  ;;  %v599_v35 = vmax.f32 %v595_v33, 0.0 }
 0x121   :  { %605 = vst [vmem:[%s1000_s4 + $0x18] sm:$0xff] %v601_v34 }
 0x122   :  { %603 = vst [vmem:[%s1000_s4 + $0x8] sm:$0xff] %v599_v35 }

// kernel: resnet_feature_forward.31
= control target key start
LH: loop header
LB: loop body
LE: loop exit
PB: predicated region body
PF: predicated region fallthrough
CT: control target
= control target key end

     0   :  { %s1011_s15 = smov 0   ;;  %s1013_s16 = smov 0   ;;  %s1178_s0 = inlined_call_operand.vmem [shape: bf16[32,1152], index: 0, kind: input, shape index: {}]   ;;  %s1179_s1 = inlined_call_operand.vmem [shape: bf16[1152,128], index: 1, kind: input, shape index: {}]   ;;  %s1180_s2 = inlined_call_operand.vmem [shape: f32[1,128], index: 2, kind: input, shape index: {}]   ;;  %s1181_s3 = inlined_call_operand.vmem [shape: f32[1,128], index: 3, kind: input, shape index: {}]   ;;  %s1182_s4 = inlined_call_operand.vmem [shape: f32[32,128], index: 4, kind: output, shape index: {}]  }
   0x1   :  { %s1015_s17 = smov 0   ;;  %s1017_s18 = smov 0  }
   0x2   :  { %s1019_s19 = smov 0  }
   0x3 LB: > { %s23_s20 = sadd.s32 1, %s979_s18  ;;  %p42_p1 = scmp.ne.s32.totalorder %s971_s16, %s967_s15  ;;  %s983_s19 = sphi %s1019_s19, %s14_s19   ;;  %s979_s18 = sphi %s1017_s18, %s1186_s18   ;;  %s975_s17 = sphi %s1015_s17, %s1185_s17   ;;  %s971_s16 = sphi %s1013_s16, %s1184_s16   ;;  %s967_s15 = sphi %s1011_s15, %s1183_s15  }
   0x4   : > { %p24_p0 = scmp.ge.s32.totalorder %s23_s20, 3  ;;  %p43_p2 = scmp.eq.s32.totalorder %s983_s19, 0 }
   0x5   : > { %s35_s22 = sadd.s32 1, %s971_s16  ;;  %p761_p5 = scmp.ge.s32.totalorder %s983_s19, 3 }
   0x6   : > { %s1188_s20 = smov (%p24_p0, %s23_s20), 0  ;;  %p44_p3 = por %p43_p2, %p42_p1 }
   0x7   : > { %s31_s21 = ssub.s32 %s979_s18, %s1188_s20  ;;  %168 = sbr.rel (%p761_p5) target bundleno = 23 (0x17), region = 24 }
   0x8   : > { %p33_p4 = scmp.eq.s32.totalorder %s31_s21, 0 }
   0xa   : > { %s1046_s23 = scalar_select %p33_p4, %s971_s16, %s35_s22  }
   0xe   : > { %171 = sbr.rel (!%p44_p3) target bundleno = 23 (0x17), region = 28  ;;  %s173_s24 = sand.u32 (%p44_p3), 1, %s971_s16  }
   0xf   : > { %s811_s25 = smul.u32 (%p44_p3), 12, %s979_s18 }
  0x10   : > { %s870_s26 = smul.u32 (%p44_p3), 48, %s173_s24 }
  0x11   : > { %s181_s29 = scalar_lea.vmem (%p44_p3), %s1178_s0, %s811_s25 }
  0x12   : > { %v196_v0 = vld [vmem:[%s181_s29] sm:$0xff] (%p44_p3)  ;;  %v200_v2 = vld [vmem:[%s181_s29 + $0x48] sm:$0xff] (%p44_p3)  ;;  %s175_s30 = scalar_lea.vmem (%p44_p3), [#allocation2], %s870_s26  ;;  %v767_v6 = vld [vmem:[%s181_s29 + $0x50] sm:$0xf] (%p44_p3) }
  0x13   : > { %v198_v1 = vld [vmem:[%s181_s29 + $0x24] sm:$0xff] (%p44_p3)  ;;  %197 = vst [vmem:[%s175_s30] sm:$0xff] (%p44_p3), %v196_v0  ;;  %201 = vst [vmem:[%s175_s30 + $0x18] sm:$0xff] (%p44_p3), %v200_v2  ;;  %v202_v3 = vld [vmem:[%s181_s29 + $0x6c] sm:$0xff] (%p44_p3) }
  0x14   : > { %199 = vst [vmem:[%s175_s30 + $0xc] sm:$0xff] (%p44_p3), %v198_v1  ;;  %v763_v4 = vld [vmem:[%s181_s29 + $0x8] sm:$0xf] (%p44_p3)  ;;  %v765_v5 = vld [vmem:[%s181_s29 + $0x2c] sm:$0xf] (%p44_p3)  ;;  %203 = vst [vmem:[%s175_s30 + $0x24] sm:$0xff] (%p44_p3), %v202_v3 }
  0x15   : > { %764 = vst [vmem:[%s175_s30 + $0x8] sm:$0xf] %v763_v4  ;;  %766 = vst [vmem:[%s175_s30 + $0x14] sm:$0xf] %v765_v5  ;;  %v769_v7 = vld [vmem:[%s181_s29 + $0x74] sm:$0xf] }
  0x16   : > { %768 = vst [vmem:[%s175_s30 + $0x20] sm:$0xf] %v767_v6  ;;  %770 = vst [vmem:[%s175_s30 + $0x2c] sm:$0xf] %v769_v7 }
  0x17 PF: > { %p771_p6 = scmp.ge.s32.totalorder %s983_s19, 1  ;;  %p232_p7 = scmp.lt.s32.totalorder %s983_s19, 4 }
  0x19   : > { %p233_p8 = pnand %p771_p6, %p232_p7 }
  0x1a   : > { %s239_s5 = sand.u32 (!%p233_p8), 1, %s967_s15   ;;  %s271_s6 = smul.u32 (!%p233_p8), 48, %s975_s17 }
  0x1b   : > { %236 = sbr.rel (%p233_p8) target bundleno = 318 (0x13e), region = 58  ;;  %p773_p10 = scmp.ne.s32.totalorder (!%p233_p8), %s975_s17, 0 }
  0x1c   : > { %s871_s7 = smul.u32 (!%p233_p8), 48, %s239_s5  ;;  %p272_p9 = scmp.lt.s32.totalorder (!%p233_p8), %s271_s6, 143 }
  0x1e   : > { %s1063_s12 = scalar_lea.vmem (!%p233_p8), [#allocation2], %s871_s7 }
  0x22   : > { %s1190_s6 = smov (!%p272_p9, %s271_s6), 143  ;;  %287 = sbr.rel (%p773_p10) target bundleno = 41 (0x29), region = 66 }
  0x23   : > { %s772_s8 = sshll.u32 %s1190_s6, 2  ;;  %v985_v8 = vmov (!%p773_p10), 0.0  }
  0x24   : > { %s1061_s11 = scalar_lea.vmem %s1179_s1, %s772_s8  ;;  %288 = vst [vmem:[%s1182_s4] sm:$0xff] (!%p773_p10), %v985_v8  ;;  %289 = vst [vmem:[%s1182_s4 + $0x8] sm:$0xff] (!%p773_p10), %v985_v8 }
  0x25   : > { %290 = vst [vmem:[%s1182_s4 + $0x10] sm:$0xff] (!%p773_p10), %v985_v8  ;;  %291 = vst [vmem:[%s1182_s4 + $0x18] sm:$0xff] (!%p773_p10), %v985_v8 }
  0x29 PF: > { %v913_v9 = vld [vmem:[%s1061_s11 + $0x40] sm:$0xff]   ;;  %v916_v12 = vld [vmem:[%s1061_s11 + $0x48] sm:$0xff]   ;;  %v919_v15 = vld [vmem:[%s1061_s11 + $0x50] sm:$0xff]   ;;  %p804_p11 = scmp.ne.s32.totalorder %s975_s17, 2 }
  0x2a   : > { %v914_v10 = vld [vmem:[%s1061_s11] sm:$0xff]   ;;  %812 = vmatprep.subr.bf16.mxu0 %v913_v9  ;;  %v917_v13 = vld [vmem:[%s1061_s11 + $0x8] sm:$0xff]   ;;  %v920_v16 = vld [vmem:[%s1061_s11 + $0x10] sm:$0xff]  }
  0x2b   : > { %v915_v11 = vld [vmem:[%s1061_s11 + $0x80] sm:$0xff]   ;;  %813 = vmatpush3.bf16.msra.mxu0 %v914_v10  ;;  %v918_v14 = vld [vmem:[%s1061_s11 + $0x88] sm:$0xff]   ;;  %v921_v17 = vld [vmem:[%s1061_s11 + $0x90] sm:$0xff]  }
  0x2c   : > { %850 = vmatprep.subr.bf16.mxu1 %v915_v11  ;;  %814 = vmatprep.subr.bf16.mxu0 %v916_v12  ;;  %v922_v18 = vld [vmem:[%s1061_s11 + $0x58] sm:$0xff]   ;;  %v925_v21 = vld [vmem:[%s1061_s11 + $0x60] sm:$0xff]   ;;  %v928_v24 = vld [vmem:[%s1061_s11 + $0x68] sm:$0xff]  }
  0x2d   : > { %851 = vmatpush3.bf16.msra.mxu1 %v915_v11  ;;  %v923_v19 = vld [vmem:[%s1061_s11 + $0x18] sm:$0xff]   ;;  %v927_v22 = vld [vmem:[%s1061_s11 + $0xa0] sm:$0xff]   ;;  %v930_v25 = vld [vmem:[%s1061_s11 + $0xa8] sm:$0xff]  }
  0x2e   : > { %852 = vmatprep.subr.bf16.mxu1 %v918_v14  ;;  %v924_v20 = vld [vmem:[%s1061_s11 + $0x98] sm:$0xff]   ;;  %v926_v23 = vld [vmem:[%s1061_s11 + $0x20] sm:$0xff]   ;;  %v929_v26 = vld [vmem:[%s1061_s11 + $0x28] sm:$0xff]  }
  0x2f   : > { %815 = vmatpush3.bf16.msra.mxu0 %v917_v13  ;;  %v931_v27 = vld [vmem:[%s1061_s11 + $0x70] sm:$0xff]   ;;  %v934_v30 = vld [vmem:[%s1061_s11 + $0x78] sm:$0xff]   ;;  %v292_v45 = vld [vmem:[%s1182_s4] sm:$0xff] }
  0x30   : > { %816 = vmatprep.subr.bf16.mxu0 %v919_v15  ;;  %v932_v28 = vld [vmem:[%s1061_s11 + $0x30] sm:$0xff]   ;;  %v936_v31 = vld [vmem:[%s1061_s11 + $0xb8] sm:$0xff]   ;;  %v293_v50 = vld [vmem:[%s1182_s4 + $0x8] sm:$0xff] }
  0x31   : > { %853 = vmatpush3.bf16.msra.mxu1 %v918_v14  ;;  %v933_v29 = vld [vmem:[%s1061_s11 + $0xb0] sm:$0xff]   ;;  %v935_v34 = vld [vmem:[%s1061_s11 + $0x38] sm:$0xff]   ;;  %v805_v4 = vld [vmem:[%s1180_s2] ss:$0 sm:$0xff] (!%p804_p11) }
  0x32   : > { %854 = vmatprep.subr.bf16.mxu1 %v921_v17  ;;  %v939_v32 = vld [vmem:[%s1063_s12 + $0x4] ss:$12 sps:$4 sm:$0xff]   ;;  %v940_v33 = vld [vmem:[%s1063_s12 + $0x8] ss:$12 sps:$4 sm:$0xff]   ;;  %v937_v35 = vld [vmem:[%s1063_s12] ss:$12 sps:$4 sm:$0xff]  }
  0x33   : > { %817 = vmatpush3.bf16.msra.mxu0 %v920_v16  ;;  %560 = vmatprep.mubr.bf16.mxu0 %v939_v32  ;;  %v942_v36 = vld [vmem:[%s1063_s12 + $0x1c] ss:$12 sps:$4 sm:$0xff]   ;;  %v941_v37 = vld [vmem:[%s1063_s12 + $0x20] ss:$12 sps:$4 sm:$0xff]   ;;  %v944_v38 = vld [vmem:[%s1063_s12 + $0x18] ss:$12 sps:$4 sm:$0xff]  }
  0x34   : > { %818 = vmatprep.subr.bf16.mxu0 %v922_v18  ;;  %866 = vmatprep.mubr.bf16.mxu1 %v940_v33  ;;  %v294_v59 = vld [vmem:[%s1182_s4 + $0x10] sm:$0xff]  ;;  %v295_v63 = vld [vmem:[%s1182_s4 + $0x18] sm:$0xff]  ;;  %v806_v5 = vld [vmem:[%s1181_s3] ss:$0 sm:$0xff] (!%p804_p11) }
  0x35   : > { %855 = vmatpush3.bf16.msra.mxu1 %v921_v17 }
  0x36   : > { %856 = vmatprep.subr.bf16.mxu1 %v924_v20 }
  0x37   : > { %819 = vmatpush3.bf16.msra.mxu0 %v923_v19 }
  0x38   : > { %820 = vmatprep.subr.bf16.mxu0 %v925_v21 }
  0x39   : > { %857 = vmatpush3.bf16.msra.mxu1 %v924_v20 }
  0x3a   : > { %858 = vmatprep.subr.bf16.mxu1 %v927_v22 }
  0x3b   : > { %821 = vmatpush3.bf16.msra.mxu0 %v926_v23 }
  0x3c   : > { %822 = vmatprep.subr.bf16.mxu0 %v928_v24 }
  0x3d   : > { %859 = vmatpush3.bf16.msra.mxu1 %v927_v22 }
  0x3e   : > { %860 = vmatprep.subr.bf16.mxu1 %v930_v25 }
  0x3f   : > { %823 = vmatpush3.bf16.msra.mxu0 %v929_v26 }
  0x40   : > { %824 = vmatprep.subr.bf16.mxu0 %v931_v27 }
  0x41   : > { %861 = vmatpush3.bf16.msra.mxu1 %v930_v25 }
  0x42   : > { %862 = vmatprep.subr.bf16.mxu1 %v933_v29 }
  0x43   : > { %825 = vmatpush3.bf16.msra.mxu0 %v932_v28 }
  0x44   : > { %826 = vmatprep.subr.bf16.mxu0 %v934_v30 }
  0x45   : > { %863 = vmatpush3.bf16.msra.mxu1 %v933_v29 }
  0x46   : > { %864 = vmatprep.subr.bf16.mxu1 %v936_v31 }
  0x47   : > { %827 = vmatpush3.bf16.msra.mxu0 %v935_v34 }
  0x49   : > { %865 = vmatpush3.bf16.msra.mxu1 %v936_v31 }
  0x4a   : > { %561 = vmatmul.mubr.bf16.vlgmr.msra.gmra.mrb[0].mxu0 %v937_v35 }
  0x4b   : > { %568 = vmatprep.mubr.bf16.mxu0 %v942_v36 }
  0x4c   : > { %867 = vmatmul.mubr.bf16.vlgmr.msra.gmra.mrb[0].mxu1 %v941_v37 }
  0x52   : > { %569 = vmatmul.mubr.bf16.gmra.mrb[4].mxu0 %v944_v38 }
 0x11d   : > { %v828_v39 = vpop.f32.mrb[0].mxu0 }
 0x11e   : > { %v829_v40 = vpop.f32.mrb[1].mxu0 }
 0x11f   : > { %v830_v41 = vadd.f32 %v829_v40, %v828_v39  ;;  %v831_v42 = vpop.f32.mrb[2].mxu0  ;;  %v868_v43 = vpop.f32.mrb[0].mxu1 }
 0x120   : > { %v832_v44 = vpop.f32.mrb[3].mxu0  ;;  %v611_v46 = vpop.f32.mrb[1].mxu1 }
 0x121   : > { %v833_v47 = vadd.f32 %v832_v44, %v831_v42  ;;  %v612_v48 = vadd.f32 %v830_v41, %v611_v46  ;;  %v869_v49 = vpop.f32.mrb[2].mxu1 }
 0x122   : > { %v614_v51 = vpop.f32.mrb[3].mxu1 }
 0x123   : > { %v626_v52 = vadd.f32 %v612_v48, %v292_v45  ;;  %v615_v53 = vadd.f32 %v833_v47, %v614_v51 }
 0x125   : > { %630 = vst [vmem:[%s1182_s4] sm:$0xff] %v626_v52  ;;  %v627_v54 = vadd.f32 %v615_v53, %v293_v50  ;;  %v834_v55 = vpop.f32.mrb[4].mxu0 }
 0x126   : > { %v835_v56 = vpop.f32.mrb[5].mxu0 }
 0x127   : > { %631 = vst [vmem:[%s1182_s4 + $0x8] sm:$0xff] %v627_v54  ;;  %v836_v57 = vadd.f32 %v835_v56, %v834_v55  ;;  %v837_v58 = vpop.f32.mrb[6].mxu0 }
 0x128   : > { %v838_v60 = vpop.f32.mrb[7].mxu0 }
 0x129   : > { %v620_v61 = vadd.f32 %v868_v43, %v836_v57  ;;  %v839_v62 = vadd.f32 %v838_v60, %v837_v58  ;;  %637 = sbr.rel (%p804_p11) target bundleno = 318 (0x13e), region = 70 }
 0x12b   : > { %v628_v0 = vadd.f32 %v620_v61, %v294_v59  ;;  %v623_v1 = vadd.f32 %v869_v49, %v839_v62 }
 0x12c   : > { %v638_v3 = vld [vmem:[%s1182_s4] sm:$0xff] (!%p804_p11) }
 0x12d   : > { %632 = vst [vmem:[%s1182_s4 + $0x10] sm:$0xff] %v628_v0  ;;  %v629_v2 = vadd.f32 %v623_v1, %v295_v63  ;;  %v650_v6 = vmul.f32 (!%p804_p11), %v805_v4, %v638_v3 }
 0x12e   : > { %v639_v7 = vld [vmem:[%s1182_s4 + $0x8] sm:$0xff] (!%p804_p11) }
 0x12f   : > { %633 = vst [vmem:[%s1182_s4 + $0x18] sm:$0xff] %v629_v2  ;;  %v651_v10 = vmul.f32 (!%p804_p11), %v805_v4, %v639_v7  ;;  %v660_v13 = vadd.f32 (!%p804_p11), %v806_v5, %v650_v6 }
 0x131   : > { %v661_v14 = vadd.f32 %v806_v5, %v651_v10  ;;  %v664_v17 = vmax.f32 %v660_v13, 0.0 }
 0x133   : > { %v665_v18 = vmax.f32 %v661_v14, 0.0  ;;  %668 = vst [vmem:[%s1182_s4] sm:$0xff] %v664_v17 }
 0x134   : > { %v640_v8 = vld [vmem:[%s1182_s4 + $0x10] sm:$0xff] }
 0x135   : > { %v652_v11 = vmul.f32 %v805_v4, %v640_v8  ;;  %669 = vst [vmem:[%s1182_s4 + $0x8] sm:$0xff] %v665_v18 }
 0x136   : > { %v641_v9 = vld [vmem:[%s1182_s4 + $0x18] sm:$0xff] }
 0x137   : > { %v653_v12 = vmul.f32 %v805_v4, %v641_v9  ;;  %v662_v15 = vadd.f32 %v806_v5, %v652_v11 }
 0x139   : > { %v663_v16 = vadd.f32 %v806_v5, %v653_v12  ;;  %v666_v19 = vmax.f32 %v662_v15, 0.0 }
 0x13b   : > { %v667_v20 = vmax.f32 %v663_v16, 0.0  ;;  %670 = vst [vmem:[%s1182_s4 + $0x10] sm:$0xff] %v666_v19 }
 0x13d   : > { %671 = vst [vmem:[%s1182_s4 + $0x18] sm:$0xff] %v667_v20 }
 0x13e PF: > { %s14_s19 = sadd.s32 1, %s983_s19   ;;  %s1183_s15 = smov %s971_s16 }
 0x13f   : > { %p11_p12 = scmp.ge.s32.totalorder %s14_s19, 5   ;;  %s1184_s16 = smov %s1046_s23 }
 0x140   : > { %s1185_s17 = smov %s979_s18  ;;  %s1186_s18 = smov %s1188_s20 }
 0x141   :  { %13 = sbr.rel (!%p11_p12) target bundleno = 3 (0x3), region = 114 }

// kernel: resnet_feature_forward.33
= control target key start
LH: loop header
LB: loop body
LE: loop exit
PB: predicated region body
PF: predicated region fallthrough
CT: control target
= control target key end

     0   :  { %s1093_s15 = smov 0   ;;  %s1095_s16 = smov 0   ;;  %s1281_s0 = inlined_call_operand.vmem [shape: bf16[16,1152], index: 0, kind: input, shape index: {}]   ;;  %s1282_s1 = inlined_call_operand.vmem [shape: bf16[1152,256], index: 1, kind: input, shape index: {}]   ;;  %s1283_s2 = inlined_call_operand.vmem [shape: f32[1,256], index: 2, kind: input, shape index: {}]   ;;  %s1284_s3 = inlined_call_operand.vmem [shape: f32[1,256], index: 3, kind: input, shape index: {}]   ;;  %s1285_s4 = inlined_call_operand.vmem [shape: f32[16,256], index: 4, kind: output, shape index: {}]  }
   0x1   :  { %s1097_s17 = smov 0   ;;  %s1099_s18 = smov 0  }
   0x2   :  { %s1101_s19 = smov 0  }
   0x3 LB: > { %s23_s20 = sadd.s32 1, %s1060_s18  ;;  %p42_p1 = scmp.ne.s32.totalorder %s1052_s16, %s1048_s15  ;;  %s1064_s19 = sphi %s1101_s19, %s14_s19   ;;  %s1060_s18 = sphi %s1099_s18, %s1289_s18   ;;  %s1056_s17 = sphi %s1097_s17, %s1288_s17   ;;  %s1052_s16 = sphi %s1095_s16, %s1287_s16   ;;  %s1048_s15 = sphi %s1093_s15, %s1286_s15  }
   0x4   : > { %p24_p0 = scmp.ge.s32.totalorder %s23_s20, 3  ;;  %p43_p2 = scmp.eq.s32.totalorder %s1064_s19, 0 }
   0x5   : > { %s35_s22 = sadd.s32 1, %s1052_s16  ;;  %p834_p5 = scmp.ge.s32.totalorder %s1064_s19, 3 }
   0x6   : > { %s1291_s20 = smov (%p24_p0, %s23_s20), 0  ;;  %p44_p3 = por %p43_p2, %p42_p1 }
   0x7   : > { %s31_s21 = ssub.s32 %s1060_s18, %s1291_s20  ;;  %168 = sbr.rel (%p834_p5) target bundleno = 21 (0x15), region = 24 }
   0x8   : > { %p33_p4 = scmp.eq.s32.totalorder %s31_s21, 0 }
   0xa   : > { %s1128_s23 = scalar_select %p33_p4, %s1052_s16, %s35_s22  }
   0xe   : > { %171 = sbr.rel (!%p44_p3) target bundleno = 21 (0x15), region = 28  ;;  %s173_s24 = sand.u32 (%p44_p3), 1, %s1052_s16  }
   0xf   : > { %s900_s25 = smul.u32 (%p44_p3), 12, %s1060_s18 }
  0x10   : > { %s906_s26 = smul.u32 (%p44_p3), 24, %s173_s24 }
  0x11   : > { %s181_s29 = scalar_lea.vmem (%p44_p3), %s1281_s0, %s900_s25 }
  0x12   : > { %v196_v0 = vld [vmem:[%s181_s29] sm:$0xff] (%p44_p3)  ;;  %v836_v2 = vld [vmem:[%s181_s29 + $0x8] sm:$0xf] (%p44_p3)  ;;  %s175_s30 = scalar_lea.vmem (%p44_p3), [#allocation2], %s906_s26  ;;  %v838_v3 = vld [vmem:[%s181_s29 + $0x2c] sm:$0xf] (%p44_p3) }
  0x13   : > { %v198_v1 = vld [vmem:[%s181_s29 + $0x24] sm:$0xff] (%p44_p3)  ;;  %197 = vst [vmem:[%s175_s30] sm:$0xff] (%p44_p3), %v196_v0  ;;  %837 = vst [vmem:[%s175_s30 + $0x8] sm:$0xf] (%p44_p3), %v836_v2 }
  0x14   : > { %199 = vst [vmem:[%s175_s30 + $0xc] sm:$0xff] (%p44_p3), %v198_v1  ;;  %839 = vst [vmem:[%s175_s30 + $0x14] sm:$0xf] (%p44_p3), %v838_v3 }
  0x15 PF: > { %p840_p6 = scmp.ge.s32.totalorder %s1064_s19, 1  ;;  %p225_p7 = scmp.lt.s32.totalorder %s1064_s19, 4 }
  0x17   : > { %p226_p8 = pnand %p840_p6, %p225_p7 }
  0x18   : > { %s232_s5 = sand.u32 (!%p226_p8), 1, %s1048_s15   ;;  %s266_s6 = smul.u32 (!%p226_p8), 48, %s1056_s17 }
  0x19   : > { %229 = sbr.rel (%p226_p8) target bundleno = 338 (0x152), region = 58  ;;  %p843_p10 = scmp.ne.s32.totalorder (!%p226_p8), %s1056_s17, 0 }
  0x1a   : > { %s907_s7 = smul.u32 (!%p226_p8), 24, %s232_s5  ;;  %p267_p9 = scmp.lt.s32.totalorder (!%p226_p8), %s266_s6, 143 }
  0x1c   : > { %s1145_s12 = scalar_lea.vmem (!%p226_p8), [#allocation2], %s907_s7 }
  0x20   : > { %s1293_s6 = smov (!%p267_p9, %s266_s6), 143  ;;  %284 = sbr.rel (%p843_p10) target bundleno = 39 (0x27), region = 66 }
  0x21   : > { %s901_s8 = sshll.u32 %s1293_s6, 3  ;;  %v1066_v4 = vmov (!%p843_p10), 0.0  }
  0x22   : > { %s1143_s11 = scalar_lea.vmem %s1282_s1, %s901_s8  ;;  %285 = vst [vmem:[%s1285_s4] sm:$0xff] (!%p843_p10), %v1066_v4  ;;  %286 = vst [vmem:[%s1285_s4 + $0x8] sm:$0xff] (!%p843_p10), %v1066_v4 }
  0x23   : > { %287 = vst [vmem:[%s1285_s4 + $0x10] sm:$0xff] (!%p843_p10), %v1066_v4  ;;  %288 = vst [vmem:[%s1285_s4 + $0x18] sm:$0xff] (!%p843_p10), %v1066_v4 }
  0x27 PF: > { %v950_v5 = vld [vmem:[%s1143_s11 + $0x4] ss:$8 sps:$4 sm:$0xff]   ;;  %v952_v6 = vld [vmem:[%s1143_s11] ss:$8 sps:$4 sm:$0xff]   ;;  %v1067_v7 = vmov 0   ;;  %p895_p11 = scmp.ne.s32.totalorder %s1056_s17, 2 }
  0x28   : > { %676 = vmatprep.mubr.bf16.mxu0 %v1067_v7  ;;  %601 = vmatprep.subr.bf16.mxu1 %v950_v5  ;;  %v953_v8 = vld [vmem:[%s1143_s11 + $0x14] ss:$8 sps:$4 sm:$0xff]   ;;  %v955_v9 = vld [vmem:[%s1143_s11 + $0x10] ss:$8 sps:$4 sm:$0xff]   ;;  %v956_v10 = vld [vmem:[%s1143_s11 + $0x24] ss:$8 sps:$4 sm:$0xff]  }
  0x29   : > { %602 = vmatpush1.bf16.msra.mxu1 %v952_v6  ;;  %v958_v11 = vld [vmem:[%s1143_s11 + $0x20] ss:$8 sps:$4 sm:$0xff]   ;;  %v959_v12 = vld [vmem:[%s1143_s11 + $0x34] ss:$8 sps:$4 sm:$0xff]   ;;  %v961_v13 = vld [vmem:[%s1143_s11 + $0x30] ss:$8 sps:$4 sm:$0xff]  }
  0x2a   : > { %603 = vmatprep.subr.bf16.mxu1 %v953_v8  ;;  %v974_v14 = vld [vmem:[%s1143_s11 + $0x104] ss:$8 sps:$4 sm:$0xff]   ;;  %v976_v15 = vld [vmem:[%s1143_s11 + $0x100] ss:$8 sps:$4 sm:$0xff]   ;;  %v980_v17 = vld [vmem:[%s1143_s11 + $0x114] ss:$8 sps:$4 sm:$0xff]  }
  0x2b   : > { %v962_v16 = vld [vmem:[%s1143_s11 + $0x44] ss:$8 sps:$4 sm:$0xff]   ;;  %644 = vmatprep.subr.bf16.mxu0 %v974_v14  ;;  %v982_v18 = vld [vmem:[%s1143_s11 + $0x110] ss:$8 sps:$4 sm:$0xff]   ;;  %v964_v19 = vld [vmem:[%s1143_s11 + $0x40] ss:$8 sps:$4 sm:$0xff]  }
  0x2c   : > { %645 = vmatpush1.bf16.msra.mxu0 %v976_v15  ;;  %v965_v20 = vld [vmem:[%s1143_s11 + $0x54] ss:$8 sps:$4 sm:$0xff]   ;;  %v986_v21 = vld [vmem:[%s1143_s11 + $0x124] ss:$8 sps:$4 sm:$0xff]   ;;  %v988_v22 = vld [vmem:[%s1143_s11 + $0x120] ss:$8 sps:$4 sm:$0xff]  }
  0x2d   : > { %604 = vmatpush1.bf16.msra.mxu1 %v955_v9  ;;  %646 = vmatprep.subr.bf16.mxu0 %v980_v17  ;;  %v967_v23 = vld [vmem:[%s1143_s11 + $0x50] ss:$8 sps:$4 sm:$0xff]   ;;  %v992_v24 = vld [vmem:[%s1143_s11 + $0x134] ss:$8 sps:$4 sm:$0xff]   ;;  %v968_v25 = vld [vmem:[%s1143_s11 + $0x64] ss:$8 sps:$4 sm:$0xff]  }
  0x2e   : > { %605 = vmatprep.subr.bf16.mxu1 %v956_v10  ;;  %v994_v26 = vld [vmem:[%s1143_s11 + $0x130] ss:$8 sps:$4 sm:$0xff]   ;;  %v970_v27 = vld [vmem:[%s1143_s11 + $0x60] ss:$8 sps:$4 sm:$0xff]   ;;  %v998_v28 = vld [vmem:[%s1143_s11 + $0x144] ss:$8 sps:$4 sm:$0xff]  }
  0x2f   : > { %v971_v29 = vld [vmem:[%s1143_s11 + $0x74] ss:$8 sps:$4 sm:$0xff]   ;;  %v1000_v30 = vld [vmem:[%s1143_s11 + $0x140] ss:$8 sps:$4 sm:$0xff]   ;;  %v973_v31 = vld [vmem:[%s1143_s11 + $0x70] ss:$8 sps:$4 sm:$0xff]  }
  0x30   : > { %647 = vmatpush1.bf16.msra.mxu0 %v982_v18  ;;  %v1004_v32 = vld [vmem:[%s1143_s11 + $0x154] ss:$8 sps:$4 sm:$0xff]   ;;  %v977_v33 = vld [vmem:[%s1143_s11 + $0x84] ss:$8 sps:$4 sm:$0xff]   ;;  %v1006_v34 = vld [vmem:[%s1143_s11 + $0x150] ss:$8 sps:$4 sm:$0xff]  }
  0x31   : > { %606 = vmatpush1.bf16.msra.mxu1 %v958_v11  ;;  %648 = vmatprep.subr.bf16.mxu0 %v986_v21  ;;  %v979_v35 = vld [vmem:[%s1143_s11 + $0x80] ss:$8 sps:$4 sm:$0xff]   ;;  %v1010_v36 = vld [vmem:[%s1143_s11 + $0x164] ss:$8 sps:$4 sm:$0xff]   ;;  %v983_v37 = vld [vmem:[%s1143_s11 + $0x94] ss:$8 sps:$4 sm:$0xff]  }
  0x32   : > { %607 = vmatprep.subr.bf16.mxu1 %v959_v12  ;;  %v1012_v38 = vld [vmem:[%s1143_s11 + $0x160] ss:$8 sps:$4 sm:$0xff]   ;;  %v985_v40 = vld [vmem:[%s1143_s11 + $0x90] ss:$8 sps:$4 sm:$0xff]   ;;  %v1016_v41 = vld [vmem:[%s1143_s11 + $0x174] ss:$8 sps:$4 sm:$0xff]  }
  0x33   : > { %v1025_v39 = vld [vmem:[%s1145_s12 + $0x4] ss:$12 sps:$4 sm:$0xff]   ;;  %v1022_v46 = vld [vmem:[%s1145_s12 + $0x8] ss:$12 sps:$4 sm:$0xff]   ;;  %v1023_v56 = vld [vmem:[%s1145_s12] ss:$12 sps:$4 sm:$0xff]  }
  0x34   : > { %649 = vmatpush1.bf16.msra.mxu0 %v988_v22  ;;  %v989_v42 = vld [vmem:[%s1143_s11 + $0xa4] ss:$8 sps:$4 sm:$0xff]   ;;  %633 = vmatprep.mubr.bf16.mxu1 %v1025_v39  ;;  %v1018_v43 = vld [vmem:[%s1143_s11 + $0x170] ss:$8 sps:$4 sm:$0xff]   ;;  %v991_v44 = vld [vmem:[%s1143_s11 + $0xa0] ss:$8 sps:$4 sm:$0xff]  }
  0x35   : > { %608 = vmatpush1.bf16.msra.mxu1 %v961_v13  ;;  %650 = vmatprep.subr.bf16.mxu0 %v992_v24  ;;  %v995_v45 = vld [vmem:[%s1143_s11 + $0xb4] ss:$8 sps:$4 sm:$0xff]   ;;  %v997_v47 = vld [vmem:[%s1143_s11 + $0xb0] ss:$8 sps:$4 sm:$0xff]   ;;  %v1001_v48 = vld [vmem:[%s1143_s11 + $0xc4] ss:$8 sps:$4 sm:$0xff]   ;;  %v706_v13 = vlaneseq (!%p895_p11) }
  0x36   : > { %609 = vmatprep.subr.bf16.mxu1 %v962_v16  ;;  %v1003_v49 = vld [vmem:[%s1143_s11 + $0xc0] ss:$8 sps:$4 sm:$0xff]   ;;  %v1007_v50 = vld [vmem:[%s1143_s11 + $0xd4] ss:$8 sps:$4 sm:$0xff]   ;;  %v1009_v51 = vld [vmem:[%s1143_s11 + $0xd0] ss:$8 sps:$4 sm:$0xff]  }
  0x37   : > { %v1013_v52 = vld [vmem:[%s1143_s11 + $0xe4] ss:$8 sps:$4 sm:$0xff]   ;;  %v1015_v53 = vld [vmem:[%s1143_s11 + $0xe0] ss:$8 sps:$4 sm:$0xff]   ;;  %v1019_v54 = vld [vmem:[%s1143_s11 + $0xf4] ss:$8 sps:$4 sm:$0xff]  }
  0x38   : > { %651 = vmatpush1.bf16.msra.mxu0 %v994_v26  ;;  %v1021_v55 = vld [vmem:[%s1143_s11 + $0xf0] ss:$8 sps:$4 sm:$0xff]   ;;  %v289_v61 = vld [vmem:[%s1285_s4] sm:$0xff]  ;;  %v290_v0 = vld [vmem:[%s1285_s4 + $0x8] sm:$0xff]  ;;  %v707_v14 = vshrl.u32 (!%p895_p11), %v706_v13, 7 }
  0x39   : > { %610 = vmatpush1.bf16.msra.mxu1 %v964_v19  ;;  %652 = vmatprep.subr.bf16.mxu0 %v998_v28  ;;  %v291_v3 = vld [vmem:[%s1285_s4 + $0x10] sm:$0xff]  ;;  %v292_v7 = vld [vmem:[%s1285_s4 + $0x18] sm:$0xff]  ;;  %v703_v15 = vld [vmem:[%s1283_s2] sm:$0x3] (!%p895_p11) }
  0x3a   : > { %611 = vmatprep.subr.bf16.mxu1 %v965_v20  ;;  %v704_v16 = vld [vmem:[%s1284_s3] sm:$0x3] (!%p895_p11)  ;;  %v708_v18 = vsub.s32 (!%p895_p11), 0, %v707_v14  ;;  %v712_v19 = vsub.s32 (!%p895_p11), 1, %v707_v14 }
  0x3c   : > { %653 = vmatpush1.bf16.msra.mxu0 %v1000_v30  ;;  %v724_v24 = vrot.slane (!%p895_p11), %v704_v16, %v708_v18  ;;  %v728_v26 = vrot.slane (!%p895_p11), %v704_v16, %v712_v19 }
  0x3d   : > { %612 = vmatpush1.bf16.msra.mxu1 %v967_v23  ;;  %654 = vmatprep.subr.bf16.mxu0 %v1004_v32  ;;  %v709_v23 = vrot.slane (!%p895_p11), %v703_v15, %v708_v18 }
  0x3e   : > { %613 = vmatprep.subr.bf16.mxu1 %v968_v25  ;;  %v713_v25 = vrot.slane (!%p895_p11), %v703_v15, %v712_v19 }
  0x40   : > { %655 = vmatpush1.bf16.msra.mxu0 %v1006_v34 }
  0x41   : > { %614 = vmatpush1.bf16.msra.mxu1 %v970_v27  ;;  %656 = vmatprep.subr.bf16.mxu0 %v1010_v36 }
  0x42   : > { %615 = vmatprep.subr.bf16.mxu1 %v971_v29 }
  0x44   : > { %657 = vmatpush1.bf16.msra.mxu0 %v1012_v38 }
  0x45   : > { %616 = vmatpush1.bf16.msra.mxu1 %v973_v31  ;;  %658 = vmatprep.subr.bf16.mxu0 %v1016_v41 }
  0x46   : > { %617 = vmatprep.subr.bf16.mxu1 %v977_v33 }
  0x48   : > { %659 = vmatpush1.bf16.msra.mxu0 %v1018_v43 }
  0x49   : > { %618 = vmatpush1.bf16.msra.mxu1 %v979_v35 }
  0x4a   : > { %619 = vmatprep.subr.bf16.mxu1 %v983_v37 }
  0x4b   : > { %677 = vmatmul.mubr.bf16.vlgmr.msra.gmra.mrb[0].mxu0 %v1022_v46 }
  0x4d   : > { %620 = vmatpush1.bf16.msra.mxu1 %v985_v40 }
  0x4e   : > { %621 = vmatprep.subr.bf16.mxu1 %v989_v42 }
  0x51   : > { %622 = vmatpush1.bf16.msra.mxu1 %v991_v44 }
  0x52   : > { %623 = vmatprep.subr.bf16.mxu1 %v995_v45 }
  0x55   : > { %624 = vmatpush1.bf16.msra.mxu1 %v997_v47 }
  0x56   : > { %625 = vmatprep.subr.bf16.mxu1 %v1001_v48 }
  0x59   : > { %626 = vmatpush1.bf16.msra.mxu1 %v1003_v49 }
  0x5a   : > { %627 = vmatprep.subr.bf16.mxu1 %v1007_v50 }
  0x5d   : > { %628 = vmatpush1.bf16.msra.mxu1 %v1009_v51 }
  0x5e   : > { %629 = vmatprep.subr.bf16.mxu1 %v1013_v52 }
  0x61   : > { %630 = vmatpush1.bf16.msra.mxu1 %v1015_v53 }
  0x62   : > { %631 = vmatprep.subr.bf16.mxu1 %v1019_v54 }
  0x65   : > { %632 = vmatpush1.bf16.msra.mxu1 %v1021_v55 }
  0x68   : > { %634 = vmatmul.mubr.bf16.vlgmr.msra.gmra.mrb[0].mxu1 %v1023_v56 }
 0x11e   : > { %v678_v57 = vpop.f32.mrb[0].mxu0 }
 0x11f   : > { %v680_v58 = vpop.f32.mrb[1].mxu0 }
 0x120   : > { %v682_v59 = vpop.f32.mrb[2].mxu0 }
 0x121   : > { %v684_v60 = vpop.f32.mrb[3].mxu0 }
 0x13b   : > { %v635_v62 = vpop.f32.mrb[0].mxu1 }
 0x13c   : > { %v679_v63 = vadd.f32 %v678_v57, %v635_v62  ;;  %v637_v1 = vpop.f32.mrb[1].mxu1 }
 0x13d   : > { %v681_v2 = vadd.f32 %v680_v58, %v637_v1  ;;  %v639_v4 = vpop.f32.mrb[2].mxu1  ;;  %698 = sbr.rel (%p895_p11) target bundleno = 338 (0x152), region = 70 }
 0x13e   : > { %v687_v5 = vadd.f32 %v679_v63, %v289_v61  ;;  %v683_v6 = vadd.f32 %v682_v59, %v639_v4  ;;  %v641_v8 = vpop.f32.mrb[3].mxu1 }
 0x13f   : > { %v688_v9 = vadd.f32 %v681_v2, %v290_v0  ;;  %v685_v10 = vadd.f32 %v684_v60, %v641_v8 }
 0x140   : > { %691 = vst [vmem:[%s1285_s4] sm:$0xff] %v687_v5  ;;  %v689_v11 = vadd.f32 %v683_v6, %v291_v3 }
 0x141   : > { %692 = vst [vmem:[%s1285_s4 + $0x8] sm:$0xff] %v688_v9  ;;  %v690_v12 = vadd.f32 %v685_v10, %v292_v7 }
 0x142   : > { %693 = vst [vmem:[%s1285_s4 + $0x10] sm:$0xff] %v689_v11 }
 0x143   : > { %694 = vst [vmem:[%s1285_s4 + $0x18] sm:$0xff] %v690_v12 }
 0x147   : > { %v699_v17 = vld [vmem:[%s1285_s4] sm:$0xff] }
 0x148   : > { %v700_v20 = vld [vmem:[%s1285_s4 + $0x8] sm:$0xff]  ;;  %v716_v27 = vmul.f32 %v709_v23, %v699_v17 }
 0x149   : > { %v701_v21 = vld [vmem:[%s1285_s4 + $0x10] sm:$0xff]  ;;  %v717_v28 = vmul.f32 %v713_v25, %v700_v20 }
 0x14a   : > { %v702_v22 = vld [vmem:[%s1285_s4 + $0x18] sm:$0xff]  ;;  %v718_v29 = vmul.f32 %v709_v23, %v701_v21  ;;  %v731_v31 = vadd.f32 %v724_v24, %v716_v27 }
 0x14b   : > { %v719_v30 = vmul.f32 %v713_v25, %v702_v22  ;;  %v732_v32 = vadd.f32 %v728_v26, %v717_v28 }
 0x14c   : > { %v733_v33 = vadd.f32 %v724_v24, %v718_v29  ;;  %v735_v35 = vmax.f32 %v731_v31, 0.0 }
 0x14d   : > { %v734_v34 = vadd.f32 %v728_v26, %v719_v30  ;;  %v736_v36 = vmax.f32 %v732_v32, 0.0 }
 0x14e   : > { %v737_v37 = vmax.f32 %v733_v33, 0.0  ;;  %739 = vst [vmem:[%s1285_s4] sm:$0xff] %v735_v35 }
 0x14f   : > { %v738_v38 = vmax.f32 %v734_v34, 0.0  ;;  %740 = vst [vmem:[%s1285_s4 + $0x8] sm:$0xff] %v736_v36 }
 0x150   : > { %741 = vst [vmem:[%s1285_s4 + $0x10] sm:$0xff] %v737_v37 }
 0x151   : > { %742 = vst [vmem:[%s1285_s4 + $0x18] sm:$0xff] %v738_v38 }
 0x152 PF: > { %s14_s19 = sadd.s32 1, %s1064_s19   ;;  %s1286_s15 = smov %s1052_s16 }
 0x153   : > { %p11_p12 = scmp.ge.s32.totalorder %s14_s19, 5   ;;  %s1287_s16 = smov %s1128_s23 }
 0x154   : > { %s1288_s17 = smov %s1060_s18  ;;  %s1289_s18 = smov %s1291_s20 }
 0x155   :  { %13 = sbr.rel (!%p11_p12) target bundleno = 3 (0x3), region = 114 }

// kernel: resnet_feature_forward.34
= control target key start
LH: loop header
LB: loop body
LE: loop exit
PB: predicated region body
PF: predicated region fallthrough
CT: control target
= control target key end

     0   :  { %v276_v1 = vmov 0   ;;  %v195_v18 = vlaneseq  ;;  %s371_s1 = inlined_call_operand.vmem [shape: bf16[128,256], index: 1, kind: input, shape index: {}]   ;;  %s372_s0 = inlined_call_operand.vmem [shape: bf16[16,128], index: 0, kind: input, shape index: {}]   ;;  %s373_s2 = inlined_call_operand.vmem [shape: f32[1,256], index: 2, kind: input, shape index: {}]   ;;  %s374_s3 = inlined_call_operand.vmem [shape: f32[1,256], index: 3, kind: input, shape index: {}]   ;;  %s375_s4 = inlined_call_operand.vmem [shape: f32[16,256], index: 4, kind: output, shape index: {}]  }
   0x1   :  { %v251_v0 = vld [vmem:[%s371_s1 + $0x4] ss:$8 sps:$4 sm:$0xff]   ;;  %166 = vmatprep.mubr.bf16.mxu0 %v276_v1  ;;  %v253_v2 = vld [vmem:[%s371_s1] ss:$8 sps:$4 sm:$0xff]   ;;  %v254_v3 = vld [vmem:[%s371_s1 + $0x14] ss:$8 sps:$4 sm:$0xff]  }
   0x2   :  { %134 = vmatprep.subr.bf16.mxu0 %v251_v0  ;;  %v256_v4 = vld [vmem:[%s371_s1 + $0x10] ss:$8 sps:$4 sm:$0xff]   ;;  %v257_v5 = vld [vmem:[%s371_s1 + $0x24] ss:$8 sps:$4 sm:$0xff]   ;;  %v259_v6 = vld [vmem:[%s371_s1 + $0x20] ss:$8 sps:$4 sm:$0xff]  }
   0x3   :  { %135 = vmatpush1.bf16.msra.mxu0 %v253_v2  ;;  %v260_v7 = vld [vmem:[%s371_s1 + $0x34] ss:$8 sps:$4 sm:$0xff]   ;;  %v262_v8 = vld [vmem:[%s371_s1 + $0x30] ss:$8 sps:$4 sm:$0xff]   ;;  %v263_v9 = vld [vmem:[%s371_s1 + $0x44] ss:$8 sps:$4 sm:$0xff]  }
   0x4   :  { %136 = vmatprep.subr.bf16.mxu0 %v254_v3  ;;  %v265_v10 = vld [vmem:[%s371_s1 + $0x40] ss:$8 sps:$4 sm:$0xff]   ;;  %v266_v11 = vld [vmem:[%s371_s1 + $0x54] ss:$8 sps:$4 sm:$0xff]   ;;  %v268_v12 = vld [vmem:[%s371_s1 + $0x50] ss:$8 sps:$4 sm:$0xff]  }
   0x5   :  { %v269_v13 = vld [vmem:[%s371_s1 + $0x64] ss:$8 sps:$4 sm:$0xff]   ;;  %v271_v14 = vld [vmem:[%s371_s1 + $0x60] ss:$8 sps:$4 sm:$0xff]   ;;  %v272_v15 = vld [vmem:[%s371_s1 + $0x74] ss:$8 sps:$4 sm:$0xff]  }
   0x6   :  { %v274_v16 = vld [vmem:[%s371_s1 + $0x70] ss:$8 sps:$4 sm:$0xff]   ;;  %v275_v17 = vld [vmem:[%s372_s0] sm:$0xff]   ;;  %v196_v19 = vshrl.u32 %v195_v18, 7 }
   0x7   :  { %137 = vmatpush1.bf16.msra.mxu0 %v256_v4  ;;  %v192_v21 = vld [vmem:[%s373_s2] sm:$0x3] }
   0x8   :  { %138 = vmatprep.subr.bf16.mxu0 %v257_v5  ;;  %v197_v20 = vsub.s32 0, %v196_v19  ;;  %v201_v22 = vsub.s32 1, %v196_v19  ;;  %v193_v23 = vld [vmem:[%s374_s3] sm:$0x3] }
   0xa   :  { %v198_v24 = vrot.slane %v192_v21, %v197_v20  ;;  %v202_v26 = vrot.slane %v192_v21, %v201_v22  ;;  %v213_v27 = vrot.slane %v193_v23, %v197_v20  ;;  %v217_v29 = vrot.slane %v193_v23, %v201_v22 }
   0xb   :  { %139 = vmatpush1.bf16.msra.mxu0 %v259_v6 }
   0xc   :  { %140 = vmatprep.subr.bf16.mxu0 %v260_v7 }
   0xf   :  { %141 = vmatpush1.bf16.msra.mxu0 %v262_v8 }
  0x10   :  { %142 = vmatprep.subr.bf16.mxu0 %v263_v9 }
  0x13   :  { %143 = vmatpush1.bf16.msra.mxu0 %v265_v10 }
  0x14   :  { %144 = vmatprep.subr.bf16.mxu0 %v266_v11 }
  0x17   :  { %145 = vmatpush1.bf16.msra.mxu0 %v268_v12 }
  0x18   :  { %146 = vmatprep.subr.bf16.mxu0 %v269_v13 }
  0x1b   :  { %147 = vmatpush1.bf16.msra.mxu0 %v271_v14 }
  0x1c   :  { %148 = vmatprep.subr.bf16.mxu0 %v272_v15 }
  0x1f   :  { %149 = vmatpush1.bf16.msra.mxu0 %v274_v16 }
  0x22   :  { %167 = vmatmul.mubr.bf16.vlgmr.msra.gmra.mrb[0].mxu0 %v275_v17 }
  0xf5   :  { %v168_v25 = vpop.f32.mrb[0].mxu0 }
  0xf6   :  { %v170_v28 = vpop.f32.mrb[1].mxu0  ;;  %v205_v31 = vmul.f32 %v198_v24, %v168_v25 }
  0xf7   :  { %v172_v30 = vpop.f32.mrb[2].mxu0  ;;  %v206_v33 = vmul.f32 %v202_v26, %v170_v28 }
  0xf8   :  { %v174_v32 = vpop.f32.mrb[3].mxu0  ;;  %v220_v34 = vadd.f32 %v213_v27, %v205_v31  ;;  %v207_v35 = vmul.f32 %v198_v24, %v172_v30 }
  0xf9   :  { %v221_v36 = vadd.f32 %v217_v29, %v206_v33  ;;  %v208_v37 = vmul.f32 %v202_v26, %v174_v32 }
  0xfa   :  { %224 = vst [vmem:[%s375_s4] sm:$0xff] %v220_v34  ;;  %v222_v38 = vadd.f32 %v213_v27, %v207_v35 }
  0xfb   :  { %225 = vst [vmem:[%s375_s4 + $0x8] sm:$0xff] %v221_v36  ;;  %v223_v39 = vadd.f32 %v217_v29, %v208_v37 }
  0xfc   :  { %226 = vst [vmem:[%s375_s4 + $0x10] sm:$0xff] %v222_v38 }
  0xfd   :  { %227 = vst [vmem:[%s375_s4 + $0x18] sm:$0xff] %v223_v39 }

// kernel: resnet_feature_forward.35
= control target key start
LH: loop header
LB: loop body
LE: loop exit
PB: predicated region body
PF: predicated region fallthrough
CT: control target
= control target key end

     0   :  { %s1637_s18 = smov 0   ;;  %s1639_s19 = smov 0   ;;  %s1888_s0 = inlined_call_operand.vmem [shape: bf16[16,2304], index: 0, kind: input, shape index: {}]   ;;  %s1889_s1 = inlined_call_operand.vmem [shape: bf16[2304,256], index: 1, kind: input, shape index: {}]   ;;  %s1890_s2 = inlined_call_operand.vmem [shape: f32[1,256], index: 2, kind: input, shape index: {}]   ;;  %s1891_s3 = inlined_call_operand.vmem [shape: f32[1,256], index: 3, kind: input, shape index: {}]   ;;  %s1892_s4 = inlined_call_operand.vmem [shape: f32[16,256], index: 4, kind: input, shape index: {}]   ;;  %s1893_s5 = inlined_call_operand.vmem [shape: f32[16,256], index: 5, kind: output, shape index: {}]  }
   0x1   :  { %s1641_s20 = smov 0   ;;  %s1643_s21 = smov 0  }
   0x2   :  { %s1645_s22 = smov 0  }
   0x3 LB: > { %s24_s23 = sadd.s32 1, %s1600_s21  ;;  %p43_p1 = scmp.ne.s32.totalorder %s1592_s19, %s1588_s18  ;;  %s1604_s22 = sphi %s1645_s22, %s15_s22   ;;  %s1600_s21 = sphi %s1643_s21, %s1897_s21   ;;  %s1596_s20 = sphi %s1641_s20, %s1896_s20   ;;  %s1592_s19 = sphi %s1639_s19, %s1895_s19   ;;  %s1588_s18 = sphi %s1637_s18, %s1894_s18  }
   0x4   : > { %p25_p0 = scmp.ge.s32.totalorder %s24_s23, 3  ;;  %p44_p2 = scmp.eq.s32.totalorder %s1604_s22, 0 }
   0x5   : > { %s36_s25 = sadd.s32 1, %s1592_s19  ;;  %p1247_p5 = scmp.ge.s32.totalorder %s1604_s22, 3 }
   0x6   : > { %s1899_s23 = smov (%p25_p0, %s24_s23), 0  ;;  %p45_p3 = por %p44_p2, %p43_p1 }
   0x7   : > { %s32_s24 = ssub.s32 %s1600_s21, %s1899_s23  ;;  %205 = sbr.rel (%p1247_p5) target bundleno = 22 (0x16), region = 28 }
   0x8   : > { %p34_p4 = scmp.eq.s32.totalorder %s32_s24, 0 }
   0xa   : > { %s1672_s26 = scalar_select %p34_p4, %s1592_s19, %s36_s25  }
   0xe   : > { %208 = sbr.rel (!%p45_p3) target bundleno = 22 (0x16), region = 32  ;;  %s210_s27 = sand.u32 (%p45_p3), 1, %s1592_s19  }
   0xf   : > { %s1360_s28 = smul.u32 (%p45_p3), 24, %s1600_s21 }
  0x10   : > { %s1370_s29 = smul.u32 (%p45_p3), 48, %s210_s27 }
  0x11   : > { %s218_s7 = scalar_lea.vmem (%p45_p3), %s1888_s0, %s1360_s28 }
  0x12   : > { %v231_v0 = vld [vmem:[%s218_s7] sm:$0xff] (%p45_p3)  ;;  %v233_v1 = vld [vmem:[%s218_s7 + $0x8] sm:$0xff] (%p45_p3)  ;;  %v235_v2 = vld [vmem:[%s218_s7 + $0x10] sm:$0xff] (%p45_p3)  ;;  %s212_s8 = scalar_lea.vmem (%p45_p3), [#allocation2], %s1370_s29 }
  0x13   : > { %232 = vst [vmem:[%s212_s8] sm:$0xff] (%p45_p3), %v231_v0  ;;  %234 = vst [vmem:[%s212_s8 + $0x8] sm:$0xff] (%p45_p3), %v233_v1  ;;  %v237_v3 = vld [vmem:[%s218_s7 + $0x48] sm:$0xff] (%p45_p3)  ;;  %v239_v4 = vld [vmem:[%s218_s7 + $0x50] sm:$0xff] (%p45_p3) }
  0x14   : > { %236 = vst [vmem:[%s212_s8 + $0x10] sm:$0xff] (%p45_p3), %v235_v2  ;;  %v241_v5 = vld [vmem:[%s218_s7 + $0x58] sm:$0xff] (%p45_p3)  ;;  %238 = vst [vmem:[%s212_s8 + $0x18] sm:$0xff] (%p45_p3), %v237_v3 }
  0x15   : > { %240 = vst [vmem:[%s212_s8 + $0x20] sm:$0xff] %v239_v4  ;;  %242 = vst [vmem:[%s212_s8 + $0x28] sm:$0xff] %v241_v5 }
  0x16 PF: > { %p1249_p6 = scmp.ge.s32.totalorder %s1604_s22, 1  ;;  %p257_p7 = scmp.lt.s32.totalorder %s1604_s22, 4 }
  0x18   : > { %p258_p8 = pnand %p1249_p6, %p257_p7 }
  0x19   : > { %s264_s9 = sand.u32 (!%p258_p8), 1, %s1588_s18   ;;  %s306_s10 = smul.u32 (!%p258_p8), 96, %s1596_s20 }
  0x1a   : > { %261 = sbr.rel (%p258_p8) target bundleno = 405 (0x195), region = 59  ;;  %p1252_p10 = scmp.ne.s32.totalorder (!%p258_p8), %s1596_s20, 0 }
  0x1b   : > { %s1371_s11 = smul.u32 (!%p258_p8), 48, %s264_s9  ;;  %p307_p9 = scmp.lt.s32.totalorder (!%p258_p8), %s306_s10, 287 }
  0x1d   : > { %s1689_s16 = scalar_lea.vmem (!%p258_p8), [#allocation2], %s1371_s11 }
  0x21   : > { %s1901_s10 = smov (!%p307_p9, %s306_s10), 287  ;;  %330 = sbr.rel (%p1252_p10) target bundleno = 40 (0x28), region = 67 }
  0x22   : > { %s1361_s12 = sshll.u32 %s1901_s10, 3  ;;  %v1606_v6 = vmov (!%p1252_p10), 0.0  }
  0x23   : > { %s1687_s15 = scalar_lea.vmem %s1889_s1, %s1361_s12  ;;  %331 = vst [vmem:[%s1893_s5] sm:$0xff] (!%p1252_p10), %v1606_v6  ;;  %332 = vst [vmem:[%s1893_s5 + $0x8] sm:$0xff] (!%p1252_p10), %v1606_v6 }
  0x24   : > { %333 = vst [vmem:[%s1893_s5 + $0x10] sm:$0xff] (!%p1252_p10), %v1606_v6  ;;  %334 = vst [vmem:[%s1893_s5 + $0x18] sm:$0xff] (!%p1252_p10), %v1606_v6 }
  0x28 PF: > { %v1413_v7 = vld [vmem:[%s1687_s15 + $0x104] ss:$8 sps:$4 sm:$0xff]   ;;  %v1415_v8 = vld [vmem:[%s1687_s15 + $0x100] ss:$8 sps:$4 sm:$0xff]   ;;  %v1416_v9 = vld [vmem:[%s1687_s15 + $0x114] ss:$8 sps:$4 sm:$0xff]  }
  0x29   : > { %994 = vmatprep.subr.bf16.mxu0 %v1413_v7  ;;  %v1418_v10 = vld [vmem:[%s1687_s15 + $0x110] ss:$8 sps:$4 sm:$0xff]   ;;  %v1419_v11 = vld [vmem:[%s1687_s15 + $0x124] ss:$8 sps:$4 sm:$0xff]   ;;  %v1421_v12 = vld [vmem:[%s1687_s15 + $0x120] ss:$8 sps:$4 sm:$0xff]  }
  0x2a   : > { %995 = vmatpush1.bf16.msra.mxu0 %v1415_v8  ;;  %v1422_v13 = vld [vmem:[%s1687_s15 + $0x134] ss:$8 sps:$4 sm:$0xff]   ;;  %v1424_v14 = vld [vmem:[%s1687_s15 + $0x130] ss:$8 sps:$4 sm:$0xff]   ;;  %v1425_v15 = vld [vmem:[%s1687_s15 + $0x144] ss:$8 sps:$4 sm:$0xff]  }
  0x2b   : > { %996 = vmatprep.subr.bf16.mxu0 %v1416_v9  ;;  %v1427_v16 = vld [vmem:[%s1687_s15 + $0x140] ss:$8 sps:$4 sm:$0xff]   ;;  %v1428_v17 = vld [vmem:[%s1687_s15 + $0x154] ss:$8 sps:$4 sm:$0xff]   ;;  %v1430_v18 = vld [vmem:[%s1687_s15 + $0x150] ss:$8 sps:$4 sm:$0xff]  }
  0x2c   : > { %v1431_v19 = vld [vmem:[%s1687_s15 + $0x164] ss:$8 sps:$4 sm:$0xff]   ;;  %v1463_v21 = vld [vmem:[%s1687_s15] ss:$8 sps:$4 sm:$0xff]   ;;  %v1434_v24 = vld [vmem:[%s1687_s15 + $0x174] ss:$8 sps:$4 sm:$0xff]  }
  0x2d   : > { %v1460_v20 = vld [vmem:[%s1687_s15 + $0x4] ss:$8 sps:$4 sm:$0xff]   ;;  %v1433_v22 = vld [vmem:[%s1687_s15 + $0x160] ss:$8 sps:$4 sm:$0xff]   ;;  %v1470_v25 = vld [vmem:[%s1687_s15 + $0x14] ss:$8 sps:$4 sm:$0xff]  }
  0x2e   : > { %997 = vmatpush1.bf16.msra.mxu0 %v1418_v10  ;;  %951 = vmatprep.subr.bf16.mxu1 %v1460_v20  ;;  %v1466_v23 = vld [vmem:[%s1689_s16 + $0xc] ss:$24 sps:$4 sm:$0xff]   ;;  %v1472_v26 = vld [vmem:[%s1687_s15 + $0x10] ss:$8 sps:$4 sm:$0xff]   ;;  %v1478_v30 = vld [vmem:[%s1687_s15 + $0x20] ss:$8 sps:$4 sm:$0xff]  }
  0x2f   : > { %998 = vmatprep.subr.bf16.mxu0 %v1419_v11  ;;  %952 = vmatpush1.bf16.msra.mxu1 %v1463_v21  ;;  %v1436_v27 = vld [vmem:[%s1687_s15 + $0x170] ss:$8 sps:$4 sm:$0xff]   ;;  %v1437_v28 = vld [vmem:[%s1687_s15 + $0x184] ss:$8 sps:$4 sm:$0xff]   ;;  %v1439_v31 = vld [vmem:[%s1687_s15 + $0x180] ss:$8 sps:$4 sm:$0xff]  }
  0x30   : > { %1026 = vmatprep.mubr.bf16.mxu0 %v1466_v23  ;;  %953 = vmatprep.subr.bf16.mxu1 %v1470_v25  ;;  %v1476_v29 = vld [vmem:[%s1687_s15 + $0x24] ss:$8 sps:$4 sm:$0xff]   ;;  %v1482_v32 = vld [vmem:[%s1687_s15 + $0x34] ss:$8 sps:$4 sm:$0xff]   ;;  %v1484_v34 = vld [vmem:[%s1687_s15 + $0x30] ss:$8 sps:$4 sm:$0xff]  }
  0x31   : > { %v1440_v33 = vld [vmem:[%s1687_s15 + $0x194] ss:$8 sps:$4 sm:$0xff]   ;;  %v1488_v35 = vld [vmem:[%s1687_s15 + $0x44] ss:$8 sps:$4 sm:$0xff]   ;;  %v1442_v36 = vld [vmem:[%s1687_s15 + $0x190] ss:$8 sps:$4 sm:$0xff]  }
  0x32   : > { %999 = vmatpush1.bf16.msra.mxu0 %v1421_v12  ;;  %v1443_v37 = vld [vmem:[%s1687_s15 + $0x1a4] ss:$8 sps:$4 sm:$0xff]   ;;  %v1490_v38 = vld [vmem:[%s1687_s15 + $0x40] ss:$8 sps:$4 sm:$0xff]   ;;  %v1494_v39 = vld [vmem:[%s1687_s15 + $0x54] ss:$8 sps:$4 sm:$0xff]  }
  0x33   : > { %1000 = vmatprep.subr.bf16.mxu0 %v1422_v13  ;;  %954 = vmatpush1.bf16.msra.mxu1 %v1472_v26  ;;  %v1445_v40 = vld [vmem:[%s1687_s15 + $0x1a0] ss:$8 sps:$4 sm:$0xff]   ;;  %v1446_v41 = vld [vmem:[%s1687_s15 + $0x1b4] ss:$8 sps:$4 sm:$0xff]   ;;  %v1496_v42 = vld [vmem:[%s1687_s15 + $0x50] ss:$8 sps:$4 sm:$0xff]  }
  0x34   : > { %955 = vmatprep.subr.bf16.mxu1 %v1476_v29  ;;  %v1500_v43 = vld [vmem:[%s1687_s15 + $0x64] ss:$8 sps:$4 sm:$0xff]   ;;  %v1448_v44 = vld [vmem:[%s1687_s15 + $0x1b0] ss:$8 sps:$4 sm:$0xff]   ;;  %v1502_v46 = vld [vmem:[%s1687_s15 + $0x60] ss:$8 sps:$4 sm:$0xff]  }
  0x35   : > { %v1449_v45 = vld [vmem:[%s1687_s15 + $0x1c4] ss:$8 sps:$4 sm:$0xff]   ;;  %v1506_v47 = vld [vmem:[%s1687_s15 + $0x74] ss:$8 sps:$4 sm:$0xff]   ;;  %v1451_v48 = vld [vmem:[%s1687_s15 + $0x1c0] ss:$8 sps:$4 sm:$0xff]  }
  0x36   : > { %1001 = vmatpush1.bf16.msra.mxu0 %v1424_v14  ;;  %v1452_v49 = vld [vmem:[%s1687_s15 + $0x1d4] ss:$8 sps:$4 sm:$0xff]   ;;  %v1508_v50 = vld [vmem:[%s1687_s15 + $0x70] ss:$8 sps:$4 sm:$0xff]   ;;  %v1512_v51 = vld [vmem:[%s1687_s15 + $0x84] ss:$8 sps:$4 sm:$0xff]  }
  0x37   : > { %1002 = vmatprep.subr.bf16.mxu0 %v1425_v15  ;;  %956 = vmatpush1.bf16.msra.mxu1 %v1478_v30  ;;  %v1454_v52 = vld [vmem:[%s1687_s15 + $0x1d0] ss:$8 sps:$4 sm:$0xff]   ;;  %v1455_v53 = vld [vmem:[%s1687_s15 + $0x1e4] ss:$8 sps:$4 sm:$0xff]   ;;  %v1514_v54 = vld [vmem:[%s1687_s15 + $0x80] ss:$8 sps:$4 sm:$0xff]  }
  0x38   : > { %957 = vmatprep.subr.bf16.mxu1 %v1482_v32  ;;  %v1518_v55 = vld [vmem:[%s1687_s15 + $0x94] ss:$8 sps:$4 sm:$0xff]   ;;  %v1457_v56 = vld [vmem:[%s1687_s15 + $0x1e0] ss:$8 sps:$4 sm:$0xff]   ;;  %v1520_v58 = vld [vmem:[%s1687_s15 + $0x90] ss:$8 sps:$4 sm:$0xff]  }
  0x39   : > { %v1458_v57 = vld [vmem:[%s1687_s15 + $0x1f4] ss:$8 sps:$4 sm:$0xff]   ;;  %v1524_v59 = vld [vmem:[%s1687_s15 + $0xa4] ss:$8 sps:$4 sm:$0xff]   ;;  %v1462_v60 = vld [vmem:[%s1687_s15 + $0x1f0] ss:$8 sps:$4 sm:$0xff]  }
  0x3a   : > { %1003 = vmatpush1.bf16.msra.mxu0 %v1427_v16  ;;  %v1469_v61 = vld [vmem:[%s1687_s15 + $0x204] ss:$8 sps:$4 sm:$0xff]   ;;  %v1526_v62 = vld [vmem:[%s1687_s15 + $0xa0] ss:$8 sps:$4 sm:$0xff]   ;;  %v1530_v0 = vld [vmem:[%s1687_s15 + $0xb4] ss:$8 sps:$4 sm:$0xff]  }
  0x3b   : > { %1004 = vmatprep.subr.bf16.mxu0 %v1428_v17  ;;  %958 = vmatpush1.bf16.msra.mxu1 %v1484_v34  ;;  %v1464_v63 = vld [vmem:[%s1689_s16 + $0x8] ss:$24 sps:$4 sm:$0xff]   ;;  %v1475_v2 = vld [vmem:[%s1687_s15 + $0x214] ss:$8 sps:$4 sm:$0xff]   ;;  %v1536_v5 = vld [vmem:[%s1687_s15 + $0xc4] ss:$8 sps:$4 sm:$0xff]  }
  0x3c   : > { %959 = vmatprep.subr.bf16.mxu1 %v1488_v35  ;;  %v1467_v1 = vld [vmem:[%s1687_s15 + $0x200] ss:$8 sps:$4 sm:$0xff]   ;;  %v1532_v3 = vld [vmem:[%s1687_s15 + $0xb0] ss:$8 sps:$4 sm:$0xff]   ;;  %v1559_v4 = vld [vmem:[%s1689_s16 + $0x4] ss:$24 sps:$4 sm:$0xff]  }
  0x3d   : > { %v1473_v6 = vld [vmem:[%s1687_s15 + $0x210] ss:$8 sps:$4 sm:$0xff]   ;;  %983 = vmatprep.mubr.bf16.mxu1 %v1559_v4  ;;  %v1565_v7 = vld [vmem:[%s1689_s16 + $0x14] ss:$24 sps:$4 sm:$0xff]   ;;  %v1538_v9 = vld [vmem:[%s1687_s15 + $0xc0] ss:$8 sps:$4 sm:$0xff]  }
  0x3e   : > { %1005 = vmatpush1.bf16.msra.mxu0 %v1430_v18  ;;  %v1481_v8 = vld [vmem:[%s1687_s15 + $0x224] ss:$8 sps:$4 sm:$0xff]   ;;  %v1542_v10 = vld [vmem:[%s1687_s15 + $0xd4] ss:$8 sps:$4 sm:$0xff]   ;;  %v1479_v11 = vld [vmem:[%s1687_s15 + $0x220] ss:$8 sps:$4 sm:$0xff]  }
  0x3f   : > { %1006 = vmatprep.subr.bf16.mxu0 %v1431_v19  ;;  %960 = vmatpush1.bf16.msra.mxu1 %v1490_v38  ;;  %v1487_v12 = vld [vmem:[%s1687_s15 + $0x234] ss:$8 sps:$4 sm:$0xff]   ;;  %v1544_v13 = vld [vmem:[%s1687_s15 + $0xd0] ss:$8 sps:$4 sm:$0xff]   ;;  %v1548_v14 = vld [vmem:[%s1687_s15 + $0xe4] ss:$8 sps:$4 sm:$0xff]  }
  0x40   : > { %961 = vmatprep.subr.bf16.mxu1 %v1494_v39  ;;  %v1485_v15 = vld [vmem:[%s1687_s15 + $0x230] ss:$8 sps:$4 sm:$0xff]   ;;  %v1493_v16 = vld [vmem:[%s1687_s15 + $0x244] ss:$8 sps:$4 sm:$0xff]   ;;  %v1550_v17 = vld [vmem:[%s1687_s15 + $0xe0] ss:$8 sps:$4 sm:$0xff]  }
  0x41   : > { %v1554_v18 = vld [vmem:[%s1687_s15 + $0xf4] ss:$8 sps:$4 sm:$0xff]   ;;  %v1491_v19 = vld [vmem:[%s1687_s15 + $0x240] ss:$8 sps:$4 sm:$0xff]   ;;  %v1556_v21 = vld [vmem:[%s1687_s15 + $0xf0] ss:$8 sps:$4 sm:$0xff]  }
  0x42   : > { %1007 = vmatpush1.bf16.msra.mxu0 %v1433_v22  ;;  %v1499_v20 = vld [vmem:[%s1687_s15 + $0x254] ss:$8 sps:$4 sm:$0xff]   ;;  %v1497_v22 = vld [vmem:[%s1687_s15 + $0x250] ss:$8 sps:$4 sm:$0xff]   ;;  %v1505_v23 = vld [vmem:[%s1687_s15 + $0x264] ss:$8 sps:$4 sm:$0xff]  }
  0x43   : > { %1008 = vmatprep.subr.bf16.mxu0 %v1434_v24  ;;  %962 = vmatpush1.bf16.msra.mxu1 %v1496_v42  ;;  %v1557_v24 = vld [vmem:[%s1689_s16] ss:$24 sps:$4 sm:$0xff]   ;;  %v1511_v26 = vld [vmem:[%s1687_s15 + $0x274] ss:$8 sps:$4 sm:$0xff]   ;;  %v1529_v32 = vld [vmem:[%s1687_s15 + $0x2a4] ss:$8 sps:$4 sm:$0xff]  }
  0x44   : > { %963 = vmatprep.subr.bf16.mxu1 %v1500_v43  ;;  %v1503_v25 = vld [vmem:[%s1687_s15 + $0x260] ss:$8 sps:$4 sm:$0xff]   ;;  %v1523_v30 = vld [vmem:[%s1687_s15 + $0x294] ss:$8 sps:$4 sm:$0xff]   ;;  %v1533_v35 = vld [vmem:[%s1687_s15 + $0x2b0] ss:$8 sps:$4 sm:$0xff]  }
  0x45   : > { %v1515_v29 = vld [vmem:[%s1687_s15 + $0x280] ss:$8 sps:$4 sm:$0xff]   ;;  %v1535_v34 = vld [vmem:[%s1687_s15 + $0x2b4] ss:$8 sps:$4 sm:$0xff]   ;;  %v1545_v39 = vld [vmem:[%s1687_s15 + $0x2d0] ss:$8 sps:$4 sm:$0xff]  }
  0x46   : > { %1009 = vmatpush1.bf16.msra.mxu0 %v1436_v27  ;;  %v1509_v27 = vld [vmem:[%s1687_s15 + $0x270] ss:$8 sps:$4 sm:$0xff]   ;;  %v1547_v38 = vld [vmem:[%s1687_s15 + $0x2d4] ss:$8 sps:$4 sm:$0xff]   ;;  %p1355_p11 = scmp.ne.s32.totalorder %s1596_s20, 2 }
  0x47   : > { %1010 = vmatprep.subr.bf16.mxu0 %v1437_v28  ;;  %964 = vmatpush1.bf16.msra.mxu1 %v1502_v46  ;;  %v1517_v28 = vld [vmem:[%s1687_s15 + $0x284] ss:$8 sps:$4 sm:$0xff]   ;;  %v1562_v42 = vld [vmem:[%s1687_s15 + $0x2f4] ss:$8 sps:$4 sm:$0xff]   ;;  %v1560_v43 = vld [vmem:[%s1687_s15 + $0x2f0] ss:$8 sps:$4 sm:$0xff]  }
  0x48   : > { %965 = vmatprep.subr.bf16.mxu1 %v1506_v47  ;;  %v1097_v4 = vld [vmem:[%s1891_s3] sm:$0x3] (!%p1355_p11) }
  0x4a   : > { %1011 = vmatpush1.bf16.msra.mxu0 %v1439_v31  ;;  %v1521_v31 = vld [vmem:[%s1687_s15 + $0x290] ss:$8 sps:$4 sm:$0xff]  }
  0x4b   : > { %1012 = vmatprep.subr.bf16.mxu0 %v1440_v33  ;;  %966 = vmatpush1.bf16.msra.mxu1 %v1508_v50  ;;  %v1527_v33 = vld [vmem:[%s1687_s15 + $0x2a0] ss:$8 sps:$4 sm:$0xff]  }
  0x4c   : > { %967 = vmatprep.subr.bf16.mxu1 %v1512_v51 }
  0x4e   : > { %1013 = vmatpush1.bf16.msra.mxu0 %v1442_v36  ;;  %v1541_v36 = vld [vmem:[%s1687_s15 + $0x2c4] ss:$8 sps:$4 sm:$0xff]  }
  0x4f   : > { %1014 = vmatprep.subr.bf16.mxu0 %v1443_v37  ;;  %968 = vmatpush1.bf16.msra.mxu1 %v1514_v54  ;;  %v1539_v37 = vld [vmem:[%s1687_s15 + $0x2c0] ss:$8 sps:$4 sm:$0xff]  }
  0x50   : > { %969 = vmatprep.subr.bf16.mxu1 %v1518_v55  ;;  %v337_v55 = vld [vmem:[%s1893_s5 + $0x10] sm:$0xff] }
  0x52   : > { %1015 = vmatpush1.bf16.msra.mxu0 %v1445_v40  ;;  %v1553_v40 = vld [vmem:[%s1687_s15 + $0x2e4] ss:$8 sps:$4 sm:$0xff]  }
  0x53   : > { %1016 = vmatprep.subr.bf16.mxu0 %v1446_v41  ;;  %970 = vmatpush1.bf16.msra.mxu1 %v1520_v58  ;;  %v1551_v41 = vld [vmem:[%s1687_s15 + $0x2e0] ss:$8 sps:$4 sm:$0xff]  }
  0x54   : > { %971 = vmatprep.subr.bf16.mxu1 %v1524_v59  ;;  %v338_v59 = vld [vmem:[%s1893_s5 + $0x18] sm:$0xff] }
  0x56   : > { %1017 = vmatpush1.bf16.msra.mxu0 %v1448_v44  ;;  %v1563_v44 = vld [vmem:[%s1689_s16 + $0x10] ss:$24 sps:$4 sm:$0xff]  }
  0x57   : > { %1018 = vmatprep.subr.bf16.mxu0 %v1449_v45  ;;  %972 = vmatpush1.bf16.msra.mxu1 %v1526_v62 }
  0x58   : > { %973 = vmatprep.subr.bf16.mxu1 %v1530_v0 }
  0x5a   : > { %1019 = vmatpush1.bf16.msra.mxu0 %v1451_v48 }
  0x5b   : > { %1020 = vmatprep.subr.bf16.mxu0 %v1452_v49  ;;  %974 = vmatpush1.bf16.msra.mxu1 %v1532_v3  ;;  %v335_v49 = vld [vmem:[%s1893_s5] sm:$0xff] }
  0x5c   : > { %975 = vmatprep.subr.bf16.mxu1 %v1536_v5  ;;  %v1096_v3 = vld [vmem:[%s1890_s2] sm:$0x3] (!%p1355_p11) }
  0x5e   : > { %1021 = vmatpush1.bf16.msra.mxu0 %v1454_v52  ;;  %v336_v52 = vld [vmem:[%s1893_s5 + $0x8] sm:$0xff] }
  0x5f   : > { %1022 = vmatprep.subr.bf16.mxu0 %v1455_v53  ;;  %976 = vmatpush1.bf16.msra.mxu1 %v1538_v9 }
  0x60   : > { %977 = vmatprep.subr.bf16.mxu1 %v1542_v10 }
  0x62   : > { %1023 = vmatpush1.bf16.msra.mxu0 %v1457_v56 }
  0x63   : > { %1024 = vmatprep.subr.bf16.mxu0 %v1458_v57  ;;  %978 = vmatpush1.bf16.msra.mxu1 %v1544_v13 }
  0x64   : > { %979 = vmatprep.subr.bf16.mxu1 %v1548_v14 }
  0x66   : > { %1025 = vmatpush1.bf16.msra.mxu0 %v1462_v60 }
  0x67   : > { %1037 = vmatprep.subr.bf16.mxu0 %v1469_v61  ;;  %980 = vmatpush1.bf16.msra.mxu1 %v1550_v17 }
  0x68   : > { %981 = vmatprep.subr.bf16.mxu1 %v1554_v18 }
  0x69   : > { %1027 = vmatmul.mubr.bf16.vlgmr.msra.gmra.mrb[0].mxu0 %v1464_v63 }
  0x6a   : > { %1038 = vmatpush1.bf16.msra.mxu0 %v1467_v1  ;;  %1069 = vmatprep.mubr.bf16.mxu0 %v1565_v7  ;;  %v1103_v1 = vlaneseq (!%p1355_p11) }
  0x6b   : > { %1039 = vmatprep.subr.bf16.mxu0 %v1475_v2  ;;  %982 = vmatpush1.bf16.msra.mxu1 %v1556_v21  ;;  %v1100_v21 = vld [vmem:[%s1892_s4 + $0x10] sm:$0xff] (!%p1355_p11) }
  0x6c   : > { %v1104_v2 = vshrl.u32 (!%p1355_p11), %v1103_v1, 7 }
  0x6e   : > { %1040 = vmatpush1.bf16.msra.mxu0 %v1473_v6  ;;  %984 = vmatmul.mubr.bf16.vlgmr.msra.gmra.mrb[0].mxu1 %v1557_v24  ;;  %v1105_v6 = vsub.s32 (!%p1355_p11), 0, %v1104_v2  ;;  %v1109_v7 = vsub.s32 (!%p1355_p11), 1, %v1104_v2 }
  0x6f   : > { %1041 = vmatprep.subr.bf16.mxu0 %v1481_v8 }
  0x70   : > { %v1110_v13 = vrot.slane (!%p1355_p11), %v1096_v3, %v1109_v7  ;;  %v1125_v14 = vrot.slane (!%p1355_p11), %v1097_v4, %v1109_v7 }
  0x72   : > { %1042 = vmatpush1.bf16.msra.mxu0 %v1479_v11  ;;  %v1106_v11 = vrot.slane (!%p1355_p11), %v1096_v3, %v1105_v6 }
  0x73   : > { %1043 = vmatprep.subr.bf16.mxu0 %v1487_v12  ;;  %v1121_v12 = vrot.slane (!%p1355_p11), %v1097_v4, %v1105_v6 }
  0x76   : > { %1044 = vmatpush1.bf16.msra.mxu0 %v1485_v15  ;;  %v1098_v15 = vld [vmem:[%s1892_s4] sm:$0xff] (!%p1355_p11) }
  0x77   : > { %1045 = vmatprep.subr.bf16.mxu0 %v1493_v16 }
  0x7a   : > { %1046 = vmatpush1.bf16.msra.mxu0 %v1491_v19 }
  0x7b   : > { %1047 = vmatprep.subr.bf16.mxu0 %v1499_v20  ;;  %v1099_v20 = vld [vmem:[%s1892_s4 + $0x8] sm:$0xff] (!%p1355_p11) }
  0x7e   : > { %1048 = vmatpush1.bf16.msra.mxu0 %v1497_v22  ;;  %v1101_v22 = vld [vmem:[%s1892_s4 + $0x18] sm:$0xff] (!%p1355_p11) }
  0x7f   : > { %1049 = vmatprep.subr.bf16.mxu0 %v1505_v23 }
  0x82   : > { %1050 = vmatpush1.bf16.msra.mxu0 %v1503_v25 }
  0x83   : > { %1051 = vmatprep.subr.bf16.mxu0 %v1511_v26 }
  0x86   : > { %1052 = vmatpush1.bf16.msra.mxu0 %v1509_v27 }
  0x87   : > { %1053 = vmatprep.subr.bf16.mxu0 %v1517_v28 }
  0x8a   : > { %1054 = vmatpush1.bf16.msra.mxu0 %v1515_v29 }
  0x8b   : > { %1055 = vmatprep.subr.bf16.mxu0 %v1523_v30 }
  0x8e   : > { %1056 = vmatpush1.bf16.msra.mxu0 %v1521_v31 }
  0x8f   : > { %1057 = vmatprep.subr.bf16.mxu0 %v1529_v32 }
  0x92   : > { %1058 = vmatpush1.bf16.msra.mxu0 %v1527_v33 }
  0x93   : > { %1059 = vmatprep.subr.bf16.mxu0 %v1535_v34 }
  0x96   : > { %1060 = vmatpush1.bf16.msra.mxu0 %v1533_v35 }
  0x97   : > { %1061 = vmatprep.subr.bf16.mxu0 %v1541_v36 }
  0x9a   : > { %1062 = vmatpush1.bf16.msra.mxu0 %v1539_v37 }
  0x9b   : > { %1063 = vmatprep.subr.bf16.mxu0 %v1547_v38 }
  0x9e   : > { %1064 = vmatpush1.bf16.msra.mxu0 %v1545_v39 }
  0x9f   : > { %1065 = vmatprep.subr.bf16.mxu0 %v1553_v40 }
  0xa2   : > { %1066 = vmatpush1.bf16.msra.mxu0 %v1551_v41 }
  0xa3   : > { %1067 = vmatprep.subr.bf16.mxu0 %v1562_v42 }
  0xa6   : > { %1068 = vmatpush1.bf16.msra.mxu0 %v1560_v43 }
  0xa9   : > { %1070 = vmatmul.mubr.bf16.vlgmr.msra.gmra.mrb[0].mxu0 %v1563_v44 }
 0x141   : > { %v985_v45 = vpop.f32.mrb[0].mxu1 }
 0x142   : > { %v987_v46 = vpop.f32.mrb[1].mxu1 }
 0x143   : > { %v989_v47 = vpop.f32.mrb[2].mxu1 }
 0x144   : > { %v991_v48 = vpop.f32.mrb[3].mxu1 }
 0x17c   : > { %v1071_v50 = vpop.f32.mrb[0].mxu0 }
 0x17d   : > { %v1362_v51 = vadd.f32 %v1071_v50, %v985_v45  ;;  %v1073_v53 = vpop.f32.mrb[1].mxu0 }
 0x17e   : > { %v1363_v54 = vadd.f32 %v1073_v53, %v987_v46  ;;  %v1075_v56 = vpop.f32.mrb[2].mxu0  ;;  %1091 = sbr.rel (%p1355_p11) target bundleno = 405 (0x195), region = 71 }
 0x17f   : > { %v1080_v57 = vadd.f32 %v1362_v51, %v335_v49  ;;  %v1364_v58 = vadd.f32 %v1075_v56, %v989_v47  ;;  %v1077_v60 = vpop.f32.mrb[3].mxu0 }
 0x180   : > { %v1081_v61 = vadd.f32 %v1363_v54, %v336_v52  ;;  %v1365_v62 = vadd.f32 %v1077_v60, %v991_v48 }
 0x181   : > { %1084 = vst [vmem:[%s1893_s5] sm:$0xff] %v1080_v57  ;;  %v1082_v63 = vadd.f32 %v1364_v58, %v337_v55 }
 0x182   : > { %1085 = vst [vmem:[%s1893_s5 + $0x8] sm:$0xff] %v1081_v61  ;;  %v1083_v0 = vadd.f32 %v1365_v62, %v338_v59 }
 0x183   : > { %1086 = vst [vmem:[%s1893_s5 + $0x10] sm:$0xff] %v1082_v63 }
 0x184   : > { %1087 = vst [vmem:[%s1893_s5 + $0x18] sm:$0xff] %v1083_v0 }
 0x188   : > { %v1092_v5 = vld [vmem:[%s1893_s5] sm:$0xff] }
 0x189   : > { %v1093_v8 = vld [vmem:[%s1893_s5 + $0x8] sm:$0xff]  ;;  %v1113_v16 = vmul.f32 %v1106_v11, %v1092_v5 }
 0x18a   : > { %v1094_v9 = vld [vmem:[%s1893_s5 + $0x10] sm:$0xff]  ;;  %v1114_v17 = vmul.f32 %v1110_v13, %v1093_v8 }
 0x18b   : > { %v1095_v10 = vld [vmem:[%s1893_s5 + $0x18] sm:$0xff]  ;;  %v1115_v18 = vmul.f32 %v1106_v11, %v1094_v9  ;;  %v1128_v23 = vadd.f32 %v1121_v12, %v1113_v16 }
 0x18c   : > { %v1116_v19 = vmul.f32 %v1110_v13, %v1095_v10  ;;  %v1129_v24 = vadd.f32 %v1125_v14, %v1114_v17 }
 0x18d   : > { %v1130_v25 = vadd.f32 %v1121_v12, %v1115_v18  ;;  %v1132_v27 = vadd.f32 %v1128_v23, %v1098_v15 }
 0x18e   : > { %v1131_v26 = vadd.f32 %v1125_v14, %v1116_v19  ;;  %v1133_v28 = vadd.f32 %v1129_v24, %v1099_v20 }
 0x18f   : > { %v1134_v29 = vadd.f32 %v1130_v25, %v1100_v21  ;;  %v1136_v31 = vmax.f32 %v1132_v27, 0.0 }
 0x190   : > { %v1135_v30 = vadd.f32 %v1131_v26, %v1101_v22  ;;  %v1137_v32 = vmax.f32 %v1133_v28, 0.0 }
 0x191   : > { %v1138_v33 = vmax.f32 %v1134_v29, 0.0  ;;  %1140 = vst [vmem:[%s1893_s5] sm:$0xff] %v1136_v31 }
 0x192   : > { %v1139_v34 = vmax.f32 %v1135_v30, 0.0  ;;  %1141 = vst [vmem:[%s1893_s5 + $0x8] sm:$0xff] %v1137_v32 }
 0x193   : > { %1142 = vst [vmem:[%s1893_s5 + $0x10] sm:$0xff] %v1138_v33 }
 0x194   : > { %1143 = vst [vmem:[%s1893_s5 + $0x18] sm:$0xff] %v1139_v34 }
 0x195 PF: > { %s15_s22 = sadd.s32 1, %s1604_s22   ;;  %s1894_s18 = smov %s1592_s19 }
 0x196   : > { %p12_p12 = scmp.ge.s32.totalorder %s15_s22, 5   ;;  %s1895_s19 = smov %s1672_s26 }
 0x197   : > { %s1896_s20 = smov %s1600_s21  ;;  %s1897_s21 = smov %s1899_s23 }
 0x198   :  { %14 = sbr.rel (!%p12_p12) target bundleno = 3 (0x3), region = 112 }

// kernel: resnet_feature_forward.36
= control target key start
LH: loop header
LB: loop body
LE: loop exit
PB: predicated region body
PF: predicated region fallthrough
CT: control target
= control target key end

     0   :  { %s1556_s15 = smov 0   ;;  %s1558_s16 = smov 0   ;;  %s1795_s0 = inlined_call_operand.vmem [shape: bf16[16,2304], index: 0, kind: input, shape index: {}]   ;;  %s1796_s1 = inlined_call_operand.vmem [shape: bf16[2304,256], index: 1, kind: input, shape index: {}]   ;;  %s1797_s2 = inlined_call_operand.vmem [shape: f32[1,256], index: 2, kind: input, shape index: {}]   ;;  %s1798_s3 = inlined_call_operand.vmem [shape: f32[1,256], index: 3, kind: input, shape index: {}]   ;;  %s1799_s4 = inlined_call_operand.vmem [shape: f32[16,256], index: 4, kind: output, shape index: {}]  }
   0x1   :  { %s1560_s17 = smov 0   ;;  %s1562_s18 = smov 0  }
   0x2   :  { %s1564_s19 = smov 0  }
   0x3 LB: > { %s23_s20 = sadd.s32 1, %s1524_s18  ;;  %p42_p1 = scmp.ne.s32.totalorder %s1516_s16, %s1512_s15  ;;  %s1528_s19 = sphi %s1564_s19, %s14_s19   ;;  %s1524_s18 = sphi %s1562_s18, %s1803_s18   ;;  %s1520_s17 = sphi %s1560_s17, %s1802_s17   ;;  %s1516_s16 = sphi %s1558_s16, %s1801_s16   ;;  %s1512_s15 = sphi %s1556_s15, %s1800_s15  }
   0x4   : > { %p24_p0 = scmp.ge.s32.totalorder %s23_s20, 3  ;;  %p43_p2 = scmp.eq.s32.totalorder %s1528_s19, 0 }
   0x5   : > { %s35_s22 = sadd.s32 1, %s1516_s16  ;;  %p1171_p5 = scmp.ge.s32.totalorder %s1528_s19, 3 }
   0x6   : > { %s1805_s20 = smov (%p24_p0, %s23_s20), 0  ;;  %p44_p3 = por %p43_p2, %p42_p1 }
   0x7   : > { %s31_s21 = ssub.s32 %s1524_s18, %s1805_s20  ;;  %168 = sbr.rel (%p1171_p5) target bundleno = 22 (0x16), region = 24 }
   0x8   : > { %p33_p4 = scmp.eq.s32.totalorder %s31_s21, 0 }
   0xa   : > { %s1591_s23 = scalar_select %p33_p4, %s1516_s16, %s35_s22  }
   0xe   : > { %171 = sbr.rel (!%p44_p3) target bundleno = 22 (0x16), region = 28  ;;  %s173_s24 = sand.u32 (%p44_p3), 1, %s1516_s16  }
   0xf   : > { %s1284_s25 = smul.u32 (%p44_p3), 24, %s1524_s18 }
  0x10   : > { %s1294_s26 = smul.u32 (%p44_p3), 48, %s173_s24 }
  0x11   : > { %s181_s29 = scalar_lea.vmem (%p44_p3), %s1795_s0, %s1284_s25 }
  0x12   : > { %v194_v0 = vld [vmem:[%s181_s29] sm:$0xff] (%p44_p3)  ;;  %v196_v1 = vld [vmem:[%s181_s29 + $0x8] sm:$0xff] (%p44_p3)  ;;  %v198_v2 = vld [vmem:[%s181_s29 + $0x10] sm:$0xff] (%p44_p3)  ;;  %s175_s30 = scalar_lea.vmem (%p44_p3), [#allocation2], %s1294_s26 }
  0x13   : > { %195 = vst [vmem:[%s175_s30] sm:$0xff] (%p44_p3), %v194_v0  ;;  %197 = vst [vmem:[%s175_s30 + $0x8] sm:$0xff] (%p44_p3), %v196_v1  ;;  %v200_v3 = vld [vmem:[%s181_s29 + $0x48] sm:$0xff] (%p44_p3)  ;;  %v202_v4 = vld [vmem:[%s181_s29 + $0x50] sm:$0xff] (%p44_p3) }
  0x14   : > { %199 = vst [vmem:[%s175_s30 + $0x10] sm:$0xff] (%p44_p3), %v198_v2  ;;  %v204_v5 = vld [vmem:[%s181_s29 + $0x58] sm:$0xff] (%p44_p3)  ;;  %201 = vst [vmem:[%s175_s30 + $0x18] sm:$0xff] (%p44_p3), %v200_v3 }
  0x15   : > { %203 = vst [vmem:[%s175_s30 + $0x20] sm:$0xff] %v202_v4  ;;  %205 = vst [vmem:[%s175_s30 + $0x28] sm:$0xff] %v204_v5 }
  0x16 PF: > { %p1173_p6 = scmp.ge.s32.totalorder %s1528_s19, 1  ;;  %p220_p7 = scmp.lt.s32.totalorder %s1528_s19, 4 }
  0x18   : > { %p221_p8 = pnand %p1173_p6, %p220_p7 }
  0x19   : > { %s227_s5 = sand.u32 (!%p221_p8), 1, %s1512_s15   ;;  %s261_s6 = smul.u32 (!%p221_p8), 96, %s1520_s17 }
  0x1a   : > { %224 = sbr.rel (%p221_p8) target bundleno = 403 (0x193), region = 55  ;;  %p1176_p10 = scmp.ne.s32.totalorder (!%p221_p8), %s1520_s17, 0 }
  0x1b   : > { %s1295_s7 = smul.u32 (!%p221_p8), 48, %s227_s5  ;;  %p262_p9 = scmp.lt.s32.totalorder (!%p221_p8), %s261_s6, 287 }
  0x1d   : > { %s1608_s12 = scalar_lea.vmem (!%p221_p8), [#allocation2], %s1295_s7 }
  0x21   : > { %s1807_s6 = smov (!%p262_p9, %s261_s6), 287  ;;  %278 = sbr.rel (%p1176_p10) target bundleno = 40 (0x28), region = 63 }
  0x22   : > { %s1285_s8 = sshll.u32 %s1807_s6, 3  ;;  %v1530_v6 = vmov (!%p1176_p10), 0.0  }
  0x23   : > { %s1606_s11 = scalar_lea.vmem %s1796_s1, %s1285_s8  ;;  %279 = vst [vmem:[%s1799_s4] sm:$0xff] (!%p1176_p10), %v1530_v6  ;;  %280 = vst [vmem:[%s1799_s4 + $0x8] sm:$0xff] (!%p1176_p10), %v1530_v6 }
  0x24   : > { %281 = vst [vmem:[%s1799_s4 + $0x10] sm:$0xff] (!%p1176_p10), %v1530_v6  ;;  %282 = vst [vmem:[%s1799_s4 + $0x18] sm:$0xff] (!%p1176_p10), %v1530_v6 }
  0x28 PF: > { %v1337_v7 = vld [vmem:[%s1606_s11 + $0x104] ss:$8 sps:$4 sm:$0xff]   ;;  %v1339_v8 = vld [vmem:[%s1606_s11 + $0x100] ss:$8 sps:$4 sm:$0xff]   ;;  %v1340_v9 = vld [vmem:[%s1606_s11 + $0x114] ss:$8 sps:$4 sm:$0xff]  }
  0x29   : > { %942 = vmatprep.subr.bf16.mxu0 %v1337_v7  ;;  %v1342_v10 = vld [vmem:[%s1606_s11 + $0x110] ss:$8 sps:$4 sm:$0xff]   ;;  %v1343_v11 = vld [vmem:[%s1606_s11 + $0x124] ss:$8 sps:$4 sm:$0xff]   ;;  %v1345_v12 = vld [vmem:[%s1606_s11 + $0x120] ss:$8 sps:$4 sm:$0xff]  }
  0x2a   : > { %943 = vmatpush1.bf16.msra.mxu0 %v1339_v8  ;;  %v1346_v13 = vld [vmem:[%s1606_s11 + $0x134] ss:$8 sps:$4 sm:$0xff]   ;;  %v1348_v14 = vld [vmem:[%s1606_s11 + $0x130] ss:$8 sps:$4 sm:$0xff]   ;;  %v1349_v15 = vld [vmem:[%s1606_s11 + $0x144] ss:$8 sps:$4 sm:$0xff]  }
  0x2b   : > { %944 = vmatprep.subr.bf16.mxu0 %v1340_v9  ;;  %v1351_v16 = vld [vmem:[%s1606_s11 + $0x140] ss:$8 sps:$4 sm:$0xff]   ;;  %v1352_v17 = vld [vmem:[%s1606_s11 + $0x154] ss:$8 sps:$4 sm:$0xff]   ;;  %v1354_v18 = vld [vmem:[%s1606_s11 + $0x150] ss:$8 sps:$4 sm:$0xff]  }
  0x2c   : > { %v1355_v19 = vld [vmem:[%s1606_s11 + $0x164] ss:$8 sps:$4 sm:$0xff]   ;;  %v1387_v21 = vld [vmem:[%s1606_s11] ss:$8 sps:$4 sm:$0xff]   ;;  %v1358_v24 = vld [vmem:[%s1606_s11 + $0x174] ss:$8 sps:$4 sm:$0xff]  }
  0x2d   : > { %v1384_v20 = vld [vmem:[%s1606_s11 + $0x4] ss:$8 sps:$4 sm:$0xff]   ;;  %v1357_v22 = vld [vmem:[%s1606_s11 + $0x160] ss:$8 sps:$4 sm:$0xff]   ;;  %v1394_v25 = vld [vmem:[%s1606_s11 + $0x14] ss:$8 sps:$4 sm:$0xff]  }
  0x2e   : > { %945 = vmatpush1.bf16.msra.mxu0 %v1342_v10  ;;  %899 = vmatprep.subr.bf16.mxu1 %v1384_v20  ;;  %v1390_v23 = vld [vmem:[%s1608_s12 + $0xc] ss:$24 sps:$4 sm:$0xff]   ;;  %v1396_v26 = vld [vmem:[%s1606_s11 + $0x10] ss:$8 sps:$4 sm:$0xff]   ;;  %v1402_v30 = vld [vmem:[%s1606_s11 + $0x20] ss:$8 sps:$4 sm:$0xff]  }
  0x2f   : > { %946 = vmatprep.subr.bf16.mxu0 %v1343_v11  ;;  %900 = vmatpush1.bf16.msra.mxu1 %v1387_v21  ;;  %v1360_v27 = vld [vmem:[%s1606_s11 + $0x170] ss:$8 sps:$4 sm:$0xff]   ;;  %v1361_v28 = vld [vmem:[%s1606_s11 + $0x184] ss:$8 sps:$4 sm:$0xff]   ;;  %v1363_v31 = vld [vmem:[%s1606_s11 + $0x180] ss:$8 sps:$4 sm:$0xff]  }
  0x30   : > { %974 = vmatprep.mubr.bf16.mxu0 %v1390_v23  ;;  %901 = vmatprep.subr.bf16.mxu1 %v1394_v25  ;;  %v1400_v29 = vld [vmem:[%s1606_s11 + $0x24] ss:$8 sps:$4 sm:$0xff]   ;;  %v1406_v32 = vld [vmem:[%s1606_s11 + $0x34] ss:$8 sps:$4 sm:$0xff]   ;;  %v1408_v34 = vld [vmem:[%s1606_s11 + $0x30] ss:$8 sps:$4 sm:$0xff]  }
  0x31   : > { %v1364_v33 = vld [vmem:[%s1606_s11 + $0x194] ss:$8 sps:$4 sm:$0xff]   ;;  %v1412_v35 = vld [vmem:[%s1606_s11 + $0x44] ss:$8 sps:$4 sm:$0xff]   ;;  %v1366_v36 = vld [vmem:[%s1606_s11 + $0x190] ss:$8 sps:$4 sm:$0xff]  }
  0x32   : > { %947 = vmatpush1.bf16.msra.mxu0 %v1345_v12  ;;  %v1367_v37 = vld [vmem:[%s1606_s11 + $0x1a4] ss:$8 sps:$4 sm:$0xff]   ;;  %v1414_v38 = vld [vmem:[%s1606_s11 + $0x40] ss:$8 sps:$4 sm:$0xff]   ;;  %v1418_v39 = vld [vmem:[%s1606_s11 + $0x54] ss:$8 sps:$4 sm:$0xff]  }
  0x33   : > { %948 = vmatprep.subr.bf16.mxu0 %v1346_v13  ;;  %902 = vmatpush1.bf16.msra.mxu1 %v1396_v26  ;;  %v1369_v40 = vld [vmem:[%s1606_s11 + $0x1a0] ss:$8 sps:$4 sm:$0xff]   ;;  %v1370_v41 = vld [vmem:[%s1606_s11 + $0x1b4] ss:$8 sps:$4 sm:$0xff]   ;;  %v1420_v42 = vld [vmem:[%s1606_s11 + $0x50] ss:$8 sps:$4 sm:$0xff]  }
  0x34   : > { %903 = vmatprep.subr.bf16.mxu1 %v1400_v29  ;;  %v1424_v43 = vld [vmem:[%s1606_s11 + $0x64] ss:$8 sps:$4 sm:$0xff]   ;;  %v1372_v44 = vld [vmem:[%s1606_s11 + $0x1b0] ss:$8 sps:$4 sm:$0xff]   ;;  %v1426_v46 = vld [vmem:[%s1606_s11 + $0x60] ss:$8 sps:$4 sm:$0xff]  }
  0x35   : > { %v1373_v45 = vld [vmem:[%s1606_s11 + $0x1c4] ss:$8 sps:$4 sm:$0xff]   ;;  %v1430_v47 = vld [vmem:[%s1606_s11 + $0x74] ss:$8 sps:$4 sm:$0xff]   ;;  %v1375_v48 = vld [vmem:[%s1606_s11 + $0x1c0] ss:$8 sps:$4 sm:$0xff]  }
  0x36   : > { %949 = vmatpush1.bf16.msra.mxu0 %v1348_v14  ;;  %v1376_v49 = vld [vmem:[%s1606_s11 + $0x1d4] ss:$8 sps:$4 sm:$0xff]   ;;  %v1432_v50 = vld [vmem:[%s1606_s11 + $0x70] ss:$8 sps:$4 sm:$0xff]   ;;  %v1436_v51 = vld [vmem:[%s1606_s11 + $0x84] ss:$8 sps:$4 sm:$0xff]  }
  0x37   : > { %950 = vmatprep.subr.bf16.mxu0 %v1349_v15  ;;  %904 = vmatpush1.bf16.msra.mxu1 %v1402_v30  ;;  %v1378_v52 = vld [vmem:[%s1606_s11 + $0x1d0] ss:$8 sps:$4 sm:$0xff]   ;;  %v1379_v53 = vld [vmem:[%s1606_s11 + $0x1e4] ss:$8 sps:$4 sm:$0xff]   ;;  %v1438_v54 = vld [vmem:[%s1606_s11 + $0x80] ss:$8 sps:$4 sm:$0xff]  }
  0x38   : > { %905 = vmatprep.subr.bf16.mxu1 %v1406_v32  ;;  %v1442_v55 = vld [vmem:[%s1606_s11 + $0x94] ss:$8 sps:$4 sm:$0xff]   ;;  %v1381_v56 = vld [vmem:[%s1606_s11 + $0x1e0] ss:$8 sps:$4 sm:$0xff]   ;;  %v1444_v58 = vld [vmem:[%s1606_s11 + $0x90] ss:$8 sps:$4 sm:$0xff]  }
  0x39   : > { %v1382_v57 = vld [vmem:[%s1606_s11 + $0x1f4] ss:$8 sps:$4 sm:$0xff]   ;;  %v1448_v59 = vld [vmem:[%s1606_s11 + $0xa4] ss:$8 sps:$4 sm:$0xff]   ;;  %v1386_v60 = vld [vmem:[%s1606_s11 + $0x1f0] ss:$8 sps:$4 sm:$0xff]  }
  0x3a   : > { %951 = vmatpush1.bf16.msra.mxu0 %v1351_v16  ;;  %v1393_v61 = vld [vmem:[%s1606_s11 + $0x204] ss:$8 sps:$4 sm:$0xff]   ;;  %v1450_v62 = vld [vmem:[%s1606_s11 + $0xa0] ss:$8 sps:$4 sm:$0xff]   ;;  %v1454_v0 = vld [vmem:[%s1606_s11 + $0xb4] ss:$8 sps:$4 sm:$0xff]  }
  0x3b   : > { %952 = vmatprep.subr.bf16.mxu0 %v1352_v17  ;;  %906 = vmatpush1.bf16.msra.mxu1 %v1408_v34  ;;  %v1388_v63 = vld [vmem:[%s1608_s12 + $0x8] ss:$24 sps:$4 sm:$0xff]   ;;  %v1399_v2 = vld [vmem:[%s1606_s11 + $0x214] ss:$8 sps:$4 sm:$0xff]   ;;  %v1460_v5 = vld [vmem:[%s1606_s11 + $0xc4] ss:$8 sps:$4 sm:$0xff]  }
  0x3c   : > { %907 = vmatprep.subr.bf16.mxu1 %v1412_v35  ;;  %v1391_v1 = vld [vmem:[%s1606_s11 + $0x200] ss:$8 sps:$4 sm:$0xff]   ;;  %v1456_v3 = vld [vmem:[%s1606_s11 + $0xb0] ss:$8 sps:$4 sm:$0xff]   ;;  %v1483_v4 = vld [vmem:[%s1608_s12 + $0x4] ss:$24 sps:$4 sm:$0xff]  }
  0x3d   : > { %v1397_v6 = vld [vmem:[%s1606_s11 + $0x210] ss:$8 sps:$4 sm:$0xff]   ;;  %931 = vmatprep.mubr.bf16.mxu1 %v1483_v4  ;;  %v1489_v7 = vld [vmem:[%s1608_s12 + $0x14] ss:$24 sps:$4 sm:$0xff]   ;;  %v1462_v9 = vld [vmem:[%s1606_s11 + $0xc0] ss:$8 sps:$4 sm:$0xff]  }
  0x3e   : > { %953 = vmatpush1.bf16.msra.mxu0 %v1354_v18  ;;  %v1405_v8 = vld [vmem:[%s1606_s11 + $0x224] ss:$8 sps:$4 sm:$0xff]   ;;  %v1466_v10 = vld [vmem:[%s1606_s11 + $0xd4] ss:$8 sps:$4 sm:$0xff]   ;;  %v1403_v11 = vld [vmem:[%s1606_s11 + $0x220] ss:$8 sps:$4 sm:$0xff]  }
  0x3f   : > { %954 = vmatprep.subr.bf16.mxu0 %v1355_v19  ;;  %908 = vmatpush1.bf16.msra.mxu1 %v1414_v38  ;;  %v1411_v12 = vld [vmem:[%s1606_s11 + $0x234] ss:$8 sps:$4 sm:$0xff]   ;;  %v1468_v13 = vld [vmem:[%s1606_s11 + $0xd0] ss:$8 sps:$4 sm:$0xff]   ;;  %v1472_v14 = vld [vmem:[%s1606_s11 + $0xe4] ss:$8 sps:$4 sm:$0xff]  }
  0x40   : > { %909 = vmatprep.subr.bf16.mxu1 %v1418_v39  ;;  %v1409_v15 = vld [vmem:[%s1606_s11 + $0x230] ss:$8 sps:$4 sm:$0xff]   ;;  %v1417_v16 = vld [vmem:[%s1606_s11 + $0x244] ss:$8 sps:$4 sm:$0xff]   ;;  %v1474_v17 = vld [vmem:[%s1606_s11 + $0xe0] ss:$8 sps:$4 sm:$0xff]  }
  0x41   : > { %v1478_v18 = vld [vmem:[%s1606_s11 + $0xf4] ss:$8 sps:$4 sm:$0xff]   ;;  %v1415_v19 = vld [vmem:[%s1606_s11 + $0x240] ss:$8 sps:$4 sm:$0xff]   ;;  %v1480_v21 = vld [vmem:[%s1606_s11 + $0xf0] ss:$8 sps:$4 sm:$0xff]  }
  0x42   : > { %955 = vmatpush1.bf16.msra.mxu0 %v1357_v22  ;;  %v1423_v20 = vld [vmem:[%s1606_s11 + $0x254] ss:$8 sps:$4 sm:$0xff]   ;;  %v1421_v22 = vld [vmem:[%s1606_s11 + $0x250] ss:$8 sps:$4 sm:$0xff]   ;;  %v1429_v23 = vld [vmem:[%s1606_s11 + $0x264] ss:$8 sps:$4 sm:$0xff]  }
  0x43   : > { %956 = vmatprep.subr.bf16.mxu0 %v1358_v24  ;;  %910 = vmatpush1.bf16.msra.mxu1 %v1420_v42  ;;  %v1481_v24 = vld [vmem:[%s1608_s12] ss:$24 sps:$4 sm:$0xff]   ;;  %v1435_v26 = vld [vmem:[%s1606_s11 + $0x274] ss:$8 sps:$4 sm:$0xff]   ;;  %v1453_v32 = vld [vmem:[%s1606_s11 + $0x2a4] ss:$8 sps:$4 sm:$0xff]  }
  0x44   : > { %911 = vmatprep.subr.bf16.mxu1 %v1424_v43  ;;  %v1427_v25 = vld [vmem:[%s1606_s11 + $0x260] ss:$8 sps:$4 sm:$0xff]   ;;  %v1447_v30 = vld [vmem:[%s1606_s11 + $0x294] ss:$8 sps:$4 sm:$0xff]   ;;  %v1457_v35 = vld [vmem:[%s1606_s11 + $0x2b0] ss:$8 sps:$4 sm:$0xff]  }
  0x45   : > { %v1439_v29 = vld [vmem:[%s1606_s11 + $0x280] ss:$8 sps:$4 sm:$0xff]   ;;  %v1459_v34 = vld [vmem:[%s1606_s11 + $0x2b4] ss:$8 sps:$4 sm:$0xff]   ;;  %v1469_v39 = vld [vmem:[%s1606_s11 + $0x2d0] ss:$8 sps:$4 sm:$0xff]  }
  0x46   : > { %957 = vmatpush1.bf16.msra.mxu0 %v1360_v27  ;;  %v1433_v27 = vld [vmem:[%s1606_s11 + $0x270] ss:$8 sps:$4 sm:$0xff]   ;;  %v1471_v38 = vld [vmem:[%s1606_s11 + $0x2d4] ss:$8 sps:$4 sm:$0xff]   ;;  %p1279_p11 = scmp.ne.s32.totalorder %s1520_s17, 2 }
  0x47   : > { %958 = vmatprep.subr.bf16.mxu0 %v1361_v28  ;;  %912 = vmatpush1.bf16.msra.mxu1 %v1426_v46  ;;  %v1441_v28 = vld [vmem:[%s1606_s11 + $0x284] ss:$8 sps:$4 sm:$0xff]   ;;  %v1486_v42 = vld [vmem:[%s1606_s11 + $0x2f4] ss:$8 sps:$4 sm:$0xff]   ;;  %v1484_v43 = vld [vmem:[%s1606_s11 + $0x2f0] ss:$8 sps:$4 sm:$0xff]  }
  0x48   : > { %913 = vmatprep.subr.bf16.mxu1 %v1430_v47  ;;  %v1045_v4 = vld [vmem:[%s1798_s3] sm:$0x3] (!%p1279_p11) }
  0x4a   : > { %959 = vmatpush1.bf16.msra.mxu0 %v1363_v31  ;;  %v1445_v31 = vld [vmem:[%s1606_s11 + $0x290] ss:$8 sps:$4 sm:$0xff]  }
  0x4b   : > { %960 = vmatprep.subr.bf16.mxu0 %v1364_v33  ;;  %914 = vmatpush1.bf16.msra.mxu1 %v1432_v50  ;;  %v1451_v33 = vld [vmem:[%s1606_s11 + $0x2a0] ss:$8 sps:$4 sm:$0xff]  }
  0x4c   : > { %915 = vmatprep.subr.bf16.mxu1 %v1436_v51 }
  0x4e   : > { %961 = vmatpush1.bf16.msra.mxu0 %v1366_v36  ;;  %v1465_v36 = vld [vmem:[%s1606_s11 + $0x2c4] ss:$8 sps:$4 sm:$0xff]  }
  0x4f   : > { %962 = vmatprep.subr.bf16.mxu0 %v1367_v37  ;;  %916 = vmatpush1.bf16.msra.mxu1 %v1438_v54  ;;  %v1463_v37 = vld [vmem:[%s1606_s11 + $0x2c0] ss:$8 sps:$4 sm:$0xff]  }
  0x50   : > { %917 = vmatprep.subr.bf16.mxu1 %v1442_v55  ;;  %v285_v55 = vld [vmem:[%s1799_s4 + $0x10] sm:$0xff] }
  0x52   : > { %963 = vmatpush1.bf16.msra.mxu0 %v1369_v40  ;;  %v1477_v40 = vld [vmem:[%s1606_s11 + $0x2e4] ss:$8 sps:$4 sm:$0xff]  }
  0x53   : > { %964 = vmatprep.subr.bf16.mxu0 %v1370_v41  ;;  %918 = vmatpush1.bf16.msra.mxu1 %v1444_v58  ;;  %v1475_v41 = vld [vmem:[%s1606_s11 + $0x2e0] ss:$8 sps:$4 sm:$0xff]  }
  0x54   : > { %919 = vmatprep.subr.bf16.mxu1 %v1448_v59  ;;  %v286_v59 = vld [vmem:[%s1799_s4 + $0x18] sm:$0xff] }
  0x56   : > { %965 = vmatpush1.bf16.msra.mxu0 %v1372_v44  ;;  %v1487_v44 = vld [vmem:[%s1608_s12 + $0x10] ss:$24 sps:$4 sm:$0xff]  }
  0x57   : > { %966 = vmatprep.subr.bf16.mxu0 %v1373_v45  ;;  %920 = vmatpush1.bf16.msra.mxu1 %v1450_v62 }
  0x58   : > { %921 = vmatprep.subr.bf16.mxu1 %v1454_v0 }
  0x5a   : > { %967 = vmatpush1.bf16.msra.mxu0 %v1375_v48 }
  0x5b   : > { %968 = vmatprep.subr.bf16.mxu0 %v1376_v49  ;;  %922 = vmatpush1.bf16.msra.mxu1 %v1456_v3  ;;  %v283_v49 = vld [vmem:[%s1799_s4] sm:$0xff] }
  0x5c   : > { %923 = vmatprep.subr.bf16.mxu1 %v1460_v5  ;;  %v1044_v3 = vld [vmem:[%s1797_s2] sm:$0x3] (!%p1279_p11) }
  0x5e   : > { %969 = vmatpush1.bf16.msra.mxu0 %v1378_v52  ;;  %v284_v52 = vld [vmem:[%s1799_s4 + $0x8] sm:$0xff] }
  0x5f   : > { %970 = vmatprep.subr.bf16.mxu0 %v1379_v53  ;;  %924 = vmatpush1.bf16.msra.mxu1 %v1462_v9 }
  0x60   : > { %925 = vmatprep.subr.bf16.mxu1 %v1466_v10 }
  0x62   : > { %971 = vmatpush1.bf16.msra.mxu0 %v1381_v56 }
  0x63   : > { %972 = vmatprep.subr.bf16.mxu0 %v1382_v57  ;;  %926 = vmatpush1.bf16.msra.mxu1 %v1468_v13 }
  0x64   : > { %927 = vmatprep.subr.bf16.mxu1 %v1472_v14 }
  0x66   : > { %973 = vmatpush1.bf16.msra.mxu0 %v1386_v60 }
  0x67   : > { %985 = vmatprep.subr.bf16.mxu0 %v1393_v61  ;;  %928 = vmatpush1.bf16.msra.mxu1 %v1474_v17 }
  0x68   : > { %929 = vmatprep.subr.bf16.mxu1 %v1478_v18 }
  0x69   : > { %975 = vmatmul.mubr.bf16.vlgmr.msra.gmra.mrb[0].mxu0 %v1388_v63 }
  0x6a   : > { %986 = vmatpush1.bf16.msra.mxu0 %v1391_v1  ;;  %1017 = vmatprep.mubr.bf16.mxu0 %v1489_v7  ;;  %v1047_v1 = vlaneseq (!%p1279_p11) }
  0x6b   : > { %987 = vmatprep.subr.bf16.mxu0 %v1399_v2  ;;  %930 = vmatpush1.bf16.msra.mxu1 %v1480_v21 }
  0x6c   : > { %v1048_v2 = vshrl.u32 (!%p1279_p11), %v1047_v1, 7 }
  0x6e   : > { %988 = vmatpush1.bf16.msra.mxu0 %v1397_v6  ;;  %932 = vmatmul.mubr.bf16.vlgmr.msra.gmra.mrb[0].mxu1 %v1481_v24  ;;  %v1049_v6 = vsub.s32 (!%p1279_p11), 0, %v1048_v2  ;;  %v1053_v7 = vsub.s32 (!%p1279_p11), 1, %v1048_v2 }
  0x6f   : > { %989 = vmatprep.subr.bf16.mxu0 %v1405_v8 }
  0x70   : > { %v1054_v13 = vrot.slane (!%p1279_p11), %v1044_v3, %v1053_v7  ;;  %v1069_v14 = vrot.slane (!%p1279_p11), %v1045_v4, %v1053_v7 }
  0x72   : > { %990 = vmatpush1.bf16.msra.mxu0 %v1403_v11  ;;  %v1050_v11 = vrot.slane (!%p1279_p11), %v1044_v3, %v1049_v6 }
  0x73   : > { %991 = vmatprep.subr.bf16.mxu0 %v1411_v12  ;;  %v1065_v12 = vrot.slane (!%p1279_p11), %v1045_v4, %v1049_v6 }
  0x76   : > { %992 = vmatpush1.bf16.msra.mxu0 %v1409_v15 }
  0x77   : > { %993 = vmatprep.subr.bf16.mxu0 %v1417_v16 }
  0x7a   : > { %994 = vmatpush1.bf16.msra.mxu0 %v1415_v19 }
  0x7b   : > { %995 = vmatprep.subr.bf16.mxu0 %v1423_v20 }
  0x7e   : > { %996 = vmatpush1.bf16.msra.mxu0 %v1421_v22 }
  0x7f   : > { %997 = vmatprep.subr.bf16.mxu0 %v1429_v23 }
  0x82   : > { %998 = vmatpush1.bf16.msra.mxu0 %v1427_v25 }
  0x83   : > { %999 = vmatprep.subr.bf16.mxu0 %v1435_v26 }
  0x86   : > { %1000 = vmatpush1.bf16.msra.mxu0 %v1433_v27 }
  0x87   : > { %1001 = vmatprep.subr.bf16.mxu0 %v1441_v28 }
  0x8a   : > { %1002 = vmatpush1.bf16.msra.mxu0 %v1439_v29 }
  0x8b   : > { %1003 = vmatprep.subr.bf16.mxu0 %v1447_v30 }
  0x8e   : > { %1004 = vmatpush1.bf16.msra.mxu0 %v1445_v31 }
  0x8f   : > { %1005 = vmatprep.subr.bf16.mxu0 %v1453_v32 }
  0x92   : > { %1006 = vmatpush1.bf16.msra.mxu0 %v1451_v33 }
  0x93   : > { %1007 = vmatprep.subr.bf16.mxu0 %v1459_v34 }
  0x96   : > { %1008 = vmatpush1.bf16.msra.mxu0 %v1457_v35 }
  0x97   : > { %1009 = vmatprep.subr.bf16.mxu0 %v1465_v36 }
  0x9a   : > { %1010 = vmatpush1.bf16.msra.mxu0 %v1463_v37 }
  0x9b   : > { %1011 = vmatprep.subr.bf16.mxu0 %v1471_v38 }
  0x9e   : > { %1012 = vmatpush1.bf16.msra.mxu0 %v1469_v39 }
  0x9f   : > { %1013 = vmatprep.subr.bf16.mxu0 %v1477_v40 }
  0xa2   : > { %1014 = vmatpush1.bf16.msra.mxu0 %v1475_v41 }
  0xa3   : > { %1015 = vmatprep.subr.bf16.mxu0 %v1486_v42 }
  0xa6   : > { %1016 = vmatpush1.bf16.msra.mxu0 %v1484_v43 }
  0xa9   : > { %1018 = vmatmul.mubr.bf16.vlgmr.msra.gmra.mrb[0].mxu0 %v1487_v44 }
 0x141   : > { %v933_v45 = vpop.f32.mrb[0].mxu1 }
 0x142   : > { %v935_v46 = vpop.f32.mrb[1].mxu1 }
 0x143   : > { %v937_v47 = vpop.f32.mrb[2].mxu1 }
 0x144   : > { %v939_v48 = vpop.f32.mrb[3].mxu1 }
 0x17c   : > { %v1019_v50 = vpop.f32.mrb[0].mxu0 }
 0x17d   : > { %v1286_v51 = vadd.f32 %v1019_v50, %v933_v45  ;;  %v1021_v53 = vpop.f32.mrb[1].mxu0 }
 0x17e   : > { %v1287_v54 = vadd.f32 %v1021_v53, %v935_v46  ;;  %v1023_v56 = vpop.f32.mrb[2].mxu0  ;;  %1039 = sbr.rel (%p1279_p11) target bundleno = 403 (0x193), region = 67 }
 0x17f   : > { %v1028_v57 = vadd.f32 %v1286_v51, %v283_v49  ;;  %v1288_v58 = vadd.f32 %v1023_v56, %v937_v47  ;;  %v1025_v60 = vpop.f32.mrb[3].mxu0 }
 0x180   : > { %v1029_v61 = vadd.f32 %v1287_v54, %v284_v52  ;;  %v1289_v62 = vadd.f32 %v1025_v60, %v939_v48 }
 0x181   : > { %1032 = vst [vmem:[%s1799_s4] sm:$0xff] %v1028_v57  ;;  %v1030_v63 = vadd.f32 %v1288_v58, %v285_v55 }
 0x182   : > { %1033 = vst [vmem:[%s1799_s4 + $0x8] sm:$0xff] %v1029_v61  ;;  %v1031_v0 = vadd.f32 %v1289_v62, %v286_v59 }
 0x183   : > { %1034 = vst [vmem:[%s1799_s4 + $0x10] sm:$0xff] %v1030_v63 }
 0x184   : > { %1035 = vst [vmem:[%s1799_s4 + $0x18] sm:$0xff] %v1031_v0 }
 0x188   : > { %v1040_v5 = vld [vmem:[%s1799_s4] sm:$0xff] }
 0x189   : > { %v1041_v8 = vld [vmem:[%s1799_s4 + $0x8] sm:$0xff]  ;;  %v1057_v15 = vmul.f32 %v1050_v11, %v1040_v5 }
 0x18a   : > { %v1042_v9 = vld [vmem:[%s1799_s4 + $0x10] sm:$0xff]  ;;  %v1058_v16 = vmul.f32 %v1054_v13, %v1041_v8 }
 0x18b   : > { %v1043_v10 = vld [vmem:[%s1799_s4 + $0x18] sm:$0xff]  ;;  %v1059_v17 = vmul.f32 %v1050_v11, %v1042_v9  ;;  %v1072_v19 = vadd.f32 %v1065_v12, %v1057_v15 }
 0x18c   : > { %v1060_v18 = vmul.f32 %v1054_v13, %v1043_v10  ;;  %v1073_v20 = vadd.f32 %v1069_v14, %v1058_v16 }
 0x18d   : > { %v1074_v21 = vadd.f32 %v1065_v12, %v1059_v17  ;;  %v1076_v23 = vmax.f32 %v1072_v19, 0.0 }
 0x18e   : > { %v1075_v22 = vadd.f32 %v1069_v14, %v1060_v18  ;;  %v1077_v24 = vmax.f32 %v1073_v20, 0.0 }
 0x18f   : > { %v1078_v25 = vmax.f32 %v1074_v21, 0.0  ;;  %1080 = vst [vmem:[%s1799_s4] sm:$0xff] %v1076_v23 }
 0x190   : > { %v1079_v26 = vmax.f32 %v1075_v22, 0.0  ;;  %1081 = vst [vmem:[%s1799_s4 + $0x8] sm:$0xff] %v1077_v24 }
 0x191   : > { %1082 = vst [vmem:[%s1799_s4 + $0x10] sm:$0xff] %v1078_v25 }
 0x192   : > { %1083 = vst [vmem:[%s1799_s4 + $0x18] sm:$0xff] %v1079_v26 }
 0x193 PF: > { %s14_s19 = sadd.s32 1, %s1528_s19   ;;  %s1800_s15 = smov %s1516_s16 }
 0x194   : > { %p11_p12 = scmp.ge.s32.totalorder %s14_s19, 5   ;;  %s1801_s16 = smov %s1591_s23 }
 0x195   : > { %s1802_s17 = smov %s1524_s18  ;;  %s1803_s18 = smov %s1805_s20 }
 0x196   :  { %13 = sbr.rel (!%p11_p12) target bundleno = 3 (0x3), region = 105 }

// kernel: resnet_feature_forward.38
= control target key start
LH: loop header
LB: loop body
LE: loop exit
PB: predicated region body
PF: predicated region fallthrough
CT: control target
= control target key end

     0   :  { %s2565_s15 = smov 0   ;;  %s2567_s16 = smov 0   ;;  %s2960_s0 = inlined_call_operand.vmem [shape: bf16[16,2304], index: 0, kind: input, shape index: {}]   ;;  %s2961_s1 = inlined_call_operand.vmem [shape: bf16[2304,512], index: 1, kind: input, shape index: {}]   ;;  %s2962_s2 = inlined_call_operand.vmem [shape: f32[1,512], index: 2, kind: input, shape index: {}]   ;;  %s2963_s3 = inlined_call_operand.vmem [shape: f32[1,512], index: 3, kind: input, shape index: {}]   ;;  %s2964_s4 = inlined_call_operand.vmem [shape: f32[16,512], index: 4, kind: output, shape index: {}]  }
   0x1   :  { %s2569_s17 = smov 0   ;;  %s2571_s18 = smov 0  }
   0x2   :  { %s2573_s19 = smov 0  }
   0x3 LB: > { %s23_s20 = sadd.s32 1, %s2533_s18  ;;  %p42_p1 = scmp.ne.s32.totalorder %s2525_s16, %s2521_s15  ;;  %s2537_s19 = sphi %s2573_s19, %s14_s19   ;;  %s2533_s18 = sphi %s2571_s18, %s2968_s18   ;;  %s2529_s17 = sphi %s2569_s17, %s2967_s17   ;;  %s2525_s16 = sphi %s2567_s16, %s2966_s16   ;;  %s2521_s15 = sphi %s2565_s15, %s2965_s15  }
   0x4   : > { %p24_p0 = scmp.ge.s32.totalorder %s23_s20, 3  ;;  %p43_p2 = scmp.eq.s32.totalorder %s2537_s19, 0 }
   0x5   : > { %s35_s22 = sadd.s32 1, %s2525_s16  ;;  %p1932_p5 = scmp.ge.s32.totalorder %s2537_s19, 3 }
   0x6   : > { %s2970_s20 = smov (%p24_p0, %s23_s20), 0  ;;  %p44_p3 = por %p43_p2, %p42_p1 }
   0x7   : > { %s31_s21 = ssub.s32 %s2533_s18, %s2970_s20  ;;  %168 = sbr.rel (%p1932_p5) target bundleno = 22 (0x16), region = 24 }
   0x8   : > { %p33_p4 = scmp.eq.s32.totalorder %s31_s21, 0 }
   0xa   : > { %s2600_s23 = scalar_select %p33_p4, %s2525_s16, %s35_s22  }
   0xe   : > { %171 = sbr.rel (!%p44_p3) target bundleno = 22 (0x16), region = 28  ;;  %s173_s24 = sand.u32 (%p44_p3), 1, %s2525_s16  }
   0xf   : > { %s2141_s25 = smul.u32 (%p44_p3), 24, %s2533_s18 }
  0x10   : > { %s2159_s26 = smul.u32 (%p44_p3), 48, %s173_s24 }
  0x11   : > { %s181_s29 = scalar_lea.vmem (%p44_p3), %s2960_s0, %s2141_s25 }
  0x12   : > { %v194_v0 = vld [vmem:[%s181_s29] sm:$0xff] (%p44_p3)  ;;  %v196_v1 = vld [vmem:[%s181_s29 + $0x8] sm:$0xff] (%p44_p3)  ;;  %v198_v2 = vld [vmem:[%s181_s29 + $0x10] sm:$0xff] (%p44_p3)  ;;  %s175_s30 = scalar_lea.vmem (%p44_p3), [#allocation2], %s2159_s26 }
  0x13   : > { %195 = vst [vmem:[%s175_s30] sm:$0xff] (%p44_p3), %v194_v0  ;;  %197 = vst [vmem:[%s175_s30 + $0x8] sm:$0xff] (%p44_p3), %v196_v1  ;;  %v200_v3 = vld [vmem:[%s181_s29 + $0x48] sm:$0xff] (%p44_p3)  ;;  %v202_v4 = vld [vmem:[%s181_s29 + $0x50] sm:$0xff] (%p44_p3) }
  0x14   : > { %199 = vst [vmem:[%s175_s30 + $0x10] sm:$0xff] (%p44_p3), %v198_v2  ;;  %v204_v5 = vld [vmem:[%s181_s29 + $0x58] sm:$0xff] (%p44_p3)  ;;  %201 = vst [vmem:[%s175_s30 + $0x18] sm:$0xff] (%p44_p3), %v200_v3 }
  0x15   : > { %203 = vst [vmem:[%s175_s30 + $0x20] sm:$0xff] %v202_v4  ;;  %205 = vst [vmem:[%s175_s30 + $0x28] sm:$0xff] %v204_v5 }
  0x16 PF: > { %p1934_p6 = scmp.ge.s32.totalorder %s2537_s19, 1  ;;  %p220_p7 = scmp.lt.s32.totalorder %s2537_s19, 4 }
  0x18   : > { %p221_p8 = pnand %p1934_p6, %p220_p7 }
  0x19   : > { %s227_s5 = sand.u32 (!%p221_p8), 1, %s2521_s15   ;;  %s261_s6 = smul.u32 (!%p221_p8), 96, %s2529_s17 }
  0x1a   : > { %224 = sbr.rel (%p221_p8) target bundleno = 465 (0x1d1), region = 55  ;;  %p1937_p10 = scmp.ne.s32.totalorder (!%p221_p8), %s2529_s17, 0 }
  0x1b   : > { %s2160_s7 = smul.u32 (!%p221_p8), 48, %s227_s5  ;;  %p262_p9 = scmp.lt.s32.totalorder (!%p221_p8), %s261_s6, 287 }
  0x1d   : > { %s2617_s12 = scalar_lea.vmem (!%p221_p8), [#allocation2], %s2160_s7 }
  0x21   : > { %s2972_s6 = smov (!%p262_p9, %s261_s6), 287  ;;  %278 = sbr.rel (%p1937_p10) target bundleno = 40 (0x28), region = 63 }
  0x22   : > { %s2142_s8 = sshll.u32 %s2972_s6, 4  ;;  %v2539_v6 = vmov (!%p1937_p10), 0.0  }
  0x23   : > { %s2615_s11 = scalar_lea.vmem %s2961_s1, %s2142_s8  ;;  %279 = vst [vmem:[%s2964_s4] sm:$0xff] (!%p1937_p10), %v2539_v6  ;;  %280 = vst [vmem:[%s2964_s4 + $0x8] sm:$0xff] (!%p1937_p10), %v2539_v6 }
  0x24   : > { %281 = vst [vmem:[%s2964_s4 + $0x10] sm:$0xff] (!%p1937_p10), %v2539_v6  ;;  %282 = vst [vmem:[%s2964_s4 + $0x18] sm:$0xff] (!%p1937_p10), %v2539_v6 }
  0x25   : > { %283 = vst [vmem:[%s2964_s4 + $0x20] sm:$0xff] (!%p1937_p10), %v2539_v6  ;;  %284 = vst [vmem:[%s2964_s4 + $0x28] sm:$0xff] (!%p1937_p10), %v2539_v6 }
  0x26   : > { %285 = vst [vmem:[%s2964_s4 + $0x30] sm:$0xff] (!%p1937_p10), %v2539_v6  ;;  %286 = vst [vmem:[%s2964_s4 + $0x38] sm:$0xff] (!%p1937_p10), %v2539_v6 }
  0x28 PF: > { %v2202_v7 = vld [vmem:[%s2615_s11 + $0x4] ss:$16 sps:$4 sm:$0xff]   ;;  %v2204_v8 = vld [vmem:[%s2615_s11 + $0xc] ss:$16 sps:$4 sm:$0xff]   ;;  %v2206_v9 = vld [vmem:[%s2615_s11] ss:$16 sps:$4 sm:$0xff]  }
  0x29   : > { %1483 = vmatprep.subr.bf16.mxu0 %v2202_v7  ;;  %v2207_v10 = vld [vmem:[%s2615_s11 + $0x8] ss:$16 sps:$4 sm:$0xff]   ;;  %1612 = vmatprep.subr.bf16.mxu1 %v2204_v8  ;;  %v2208_v11 = vld [vmem:[%s2615_s11 + $0x24] ss:$16 sps:$4 sm:$0xff]   ;;  %v2210_v12 = vld [vmem:[%s2615_s11 + $0x2c] ss:$16 sps:$4 sm:$0xff]  }
  0x2a   : > { %1484 = vmatpush1.bf16.msra.mxu0 %v2206_v9  ;;  %1613 = vmatpush1.bf16.msra.mxu1 %v2207_v10  ;;  %v2212_v13 = vld [vmem:[%s2615_s11 + $0x20] ss:$16 sps:$4 sm:$0xff]   ;;  %v2213_v14 = vld [vmem:[%s2615_s11 + $0x28] ss:$16 sps:$4 sm:$0xff]   ;;  %v2214_v15 = vld [vmem:[%s2615_s11 + $0x44] ss:$16 sps:$4 sm:$0xff]  }
  0x2b   : > { %1485 = vmatprep.subr.bf16.mxu0 %v2208_v11  ;;  %1614 = vmatprep.subr.bf16.mxu1 %v2210_v12  ;;  %v2216_v16 = vld [vmem:[%s2615_s11 + $0x4c] ss:$16 sps:$4 sm:$0xff]   ;;  %v2218_v17 = vld [vmem:[%s2615_s11 + $0x40] ss:$16 sps:$4 sm:$0xff]   ;;  %v2219_v18 = vld [vmem:[%s2615_s11 + $0x48] ss:$16 sps:$4 sm:$0xff]  }
  0x2c   : > { %v2220_v19 = vld [vmem:[%s2615_s11 + $0x64] ss:$16 sps:$4 sm:$0xff]   ;;  %v2222_v20 = vld [vmem:[%s2615_s11 + $0x6c] ss:$16 sps:$4 sm:$0xff]   ;;  %v2224_v21 = vld [vmem:[%s2615_s11 + $0x60] ss:$16 sps:$4 sm:$0xff]  }
  0x2d   : > { %v2225_v22 = vld [vmem:[%s2615_s11 + $0x68] ss:$16 sps:$4 sm:$0xff]   ;;  %v2226_v23 = vld [vmem:[%s2615_s11 + $0x84] ss:$16 sps:$4 sm:$0xff]   ;;  %v2228_v24 = vld [vmem:[%s2615_s11 + $0x8c] ss:$16 sps:$4 sm:$0xff]  }
  0x2e   : > { %1486 = vmatpush1.bf16.msra.mxu0 %v2212_v13  ;;  %1615 = vmatpush1.bf16.msra.mxu1 %v2213_v14  ;;  %v2230_v25 = vld [vmem:[%s2615_s11 + $0x80] ss:$16 sps:$4 sm:$0xff]   ;;  %v2231_v26 = vld [vmem:[%s2615_s11 + $0x88] ss:$16 sps:$4 sm:$0xff]   ;;  %v2232_v27 = vld [vmem:[%s2615_s11 + $0xa4] ss:$16 sps:$4 sm:$0xff]  }
  0x2f   : > { %1487 = vmatprep.subr.bf16.mxu0 %v2214_v15  ;;  %1616 = vmatprep.subr.bf16.mxu1 %v2216_v16  ;;  %v2234_v28 = vld [vmem:[%s2615_s11 + $0xac] ss:$16 sps:$4 sm:$0xff]   ;;  %v2236_v29 = vld [vmem:[%s2615_s11 + $0xa0] ss:$16 sps:$4 sm:$0xff]   ;;  %v2237_v30 = vld [vmem:[%s2615_s11 + $0xa8] ss:$16 sps:$4 sm:$0xff]  }
  0x30   : > { %v2238_v31 = vld [vmem:[%s2615_s11 + $0xc4] ss:$16 sps:$4 sm:$0xff]   ;;  %v2240_v32 = vld [vmem:[%s2615_s11 + $0xcc] ss:$16 sps:$4 sm:$0xff]   ;;  %v2242_v33 = vld [vmem:[%s2615_s11 + $0xc0] ss:$16 sps:$4 sm:$0xff]  }
  0x31   : > { %v2243_v34 = vld [vmem:[%s2615_s11 + $0xc8] ss:$16 sps:$4 sm:$0xff]   ;;  %v2244_v35 = vld [vmem:[%s2615_s11 + $0xe4] ss:$16 sps:$4 sm:$0xff]   ;;  %v2246_v36 = vld [vmem:[%s2615_s11 + $0xec] ss:$16 sps:$4 sm:$0xff]  }
  0x32   : > { %1488 = vmatpush1.bf16.msra.mxu0 %v2218_v17  ;;  %1617 = vmatpush1.bf16.msra.mxu1 %v2219_v18  ;;  %v2248_v37 = vld [vmem:[%s2615_s11 + $0xe0] ss:$16 sps:$4 sm:$0xff]   ;;  %v2249_v38 = vld [vmem:[%s2615_s11 + $0xe8] ss:$16 sps:$4 sm:$0xff]   ;;  %v2250_v39 = vld [vmem:[%s2615_s11 + $0x104] ss:$16 sps:$4 sm:$0xff]  }
  0x33   : > { %1489 = vmatprep.subr.bf16.mxu0 %v2220_v19  ;;  %1618 = vmatprep.subr.bf16.mxu1 %v2222_v20  ;;  %v2252_v40 = vld [vmem:[%s2615_s11 + $0x10c] ss:$16 sps:$4 sm:$0xff]   ;;  %v2254_v41 = vld [vmem:[%s2615_s11 + $0x100] ss:$16 sps:$4 sm:$0xff]   ;;  %v2255_v42 = vld [vmem:[%s2615_s11 + $0x108] ss:$16 sps:$4 sm:$0xff]  }
  0x34   : > { %v2256_v43 = vld [vmem:[%s2615_s11 + $0x124] ss:$16 sps:$4 sm:$0xff]   ;;  %v2258_v44 = vld [vmem:[%s2615_s11 + $0x12c] ss:$16 sps:$4 sm:$0xff]   ;;  %v2260_v45 = vld [vmem:[%s2615_s11 + $0x120] ss:$16 sps:$4 sm:$0xff]  }
  0x35   : > { %v2261_v46 = vld [vmem:[%s2615_s11 + $0x128] ss:$16 sps:$4 sm:$0xff]   ;;  %v2262_v47 = vld [vmem:[%s2615_s11 + $0x144] ss:$16 sps:$4 sm:$0xff]   ;;  %v2264_v48 = vld [vmem:[%s2615_s11 + $0x14c] ss:$16 sps:$4 sm:$0xff]  }
  0x36   : > { %1490 = vmatpush1.bf16.msra.mxu0 %v2224_v21  ;;  %1619 = vmatpush1.bf16.msra.mxu1 %v2225_v22  ;;  %v2266_v49 = vld [vmem:[%s2615_s11 + $0x140] ss:$16 sps:$4 sm:$0xff]   ;;  %v2267_v50 = vld [vmem:[%s2615_s11 + $0x148] ss:$16 sps:$4 sm:$0xff]   ;;  %v2268_v51 = vld [vmem:[%s2615_s11 + $0x164] ss:$16 sps:$4 sm:$0xff]  }
  0x37   : > { %1491 = vmatprep.subr.bf16.mxu0 %v2226_v23  ;;  %1620 = vmatprep.subr.bf16.mxu1 %v2228_v24  ;;  %v2270_v52 = vld [vmem:[%s2615_s11 + $0x16c] ss:$16 sps:$4 sm:$0xff]   ;;  %v2272_v53 = vld [vmem:[%s2615_s11 + $0x160] ss:$16 sps:$4 sm:$0xff]   ;;  %v2273_v54 = vld [vmem:[%s2615_s11 + $0x168] ss:$16 sps:$4 sm:$0xff]  }
  0x38   : > { %v2300_v55 = vld [vmem:[%s2617_s12 + $0x4] ss:$24 sps:$4 sm:$0xff]   ;;  %v2278_v58 = vld [vmem:[%s2615_s11 + $0x180] ss:$16 sps:$4 sm:$0xff]   ;;  %v2279_v59 = vld [vmem:[%s2615_s11 + $0x188] ss:$16 sps:$4 sm:$0xff]  }
  0x39   : > { %v2274_v56 = vld [vmem:[%s2615_s11 + $0x184] ss:$16 sps:$4 sm:$0xff]   ;;  %v2276_v57 = vld [vmem:[%s2615_s11 + $0x18c] ss:$16 sps:$4 sm:$0xff]   ;;  %1515 = vmatprep.mubr.bf16.mxu0 %v2300_v55  ;;  %1644 = vmatprep.mubr.bf16.mxu1 %v2300_v55  ;;  %v2284_v62 = vld [vmem:[%s2615_s11 + $0x1a0] ss:$16 sps:$4 sm:$0xff]  }
  0x3a   : > { %1492 = vmatpush1.bf16.msra.mxu0 %v2230_v25  ;;  %1621 = vmatpush1.bf16.msra.mxu1 %v2231_v26  ;;  %v2280_v60 = vld [vmem:[%s2615_s11 + $0x1a4] ss:$16 sps:$4 sm:$0xff]   ;;  %v2282_v61 = vld [vmem:[%s2615_s11 + $0x1ac] ss:$16 sps:$4 sm:$0xff]   ;;  %v2285_v63 = vld [vmem:[%s2615_s11 + $0x1a8] ss:$16 sps:$4 sm:$0xff]  }
  0x3b   : > { %1493 = vmatprep.subr.bf16.mxu0 %v2232_v27  ;;  %1622 = vmatprep.subr.bf16.mxu1 %v2234_v28  ;;  %v2286_v0 = vld [vmem:[%s2615_s11 + $0x1c4] ss:$16 sps:$4 sm:$0xff]   ;;  %v2288_v1 = vld [vmem:[%s2615_s11 + $0x1cc] ss:$16 sps:$4 sm:$0xff]   ;;  %v2290_v2 = vld [vmem:[%s2615_s11 + $0x1c0] ss:$16 sps:$4 sm:$0xff]  }
  0x3c   : > { %v2291_v3 = vld [vmem:[%s2615_s11 + $0x1c8] ss:$16 sps:$4 sm:$0xff]   ;;  %v2292_v4 = vld [vmem:[%s2615_s11 + $0x1e4] ss:$16 sps:$4 sm:$0xff]   ;;  %v2294_v5 = vld [vmem:[%s2615_s11 + $0x1ec] ss:$16 sps:$4 sm:$0xff]  }
  0x3d   : > { %v2296_v6 = vld [vmem:[%s2615_s11 + $0x1e0] ss:$16 sps:$4 sm:$0xff]   ;;  %v2297_v7 = vld [vmem:[%s2615_s11 + $0x1e8] ss:$16 sps:$4 sm:$0xff]   ;;  %v2303_v8 = vld [vmem:[%s2615_s11 + $0x204] ss:$16 sps:$4 sm:$0xff]  }
  0x3e   : > { %1494 = vmatpush1.bf16.msra.mxu0 %v2236_v29  ;;  %1623 = vmatpush1.bf16.msra.mxu1 %v2237_v30  ;;  %v2306_v9 = vld [vmem:[%s2615_s11 + $0x20c] ss:$16 sps:$4 sm:$0xff]   ;;  %v2298_v10 = vld [vmem:[%s2617_s12] ss:$24 sps:$4 sm:$0xff]   ;;  %v2309_v13 = vld [vmem:[%s2615_s11 + $0x224] ss:$16 sps:$4 sm:$0xff]  }
  0x3f   : > { %1495 = vmatprep.subr.bf16.mxu0 %v2238_v31  ;;  %1624 = vmatprep.subr.bf16.mxu1 %v2240_v32  ;;  %v2301_v11 = vld [vmem:[%s2615_s11 + $0x200] ss:$16 sps:$4 sm:$0xff]   ;;  %v2304_v12 = vld [vmem:[%s2615_s11 + $0x208] ss:$16 sps:$4 sm:$0xff]   ;;  %v2312_v14 = vld [vmem:[%s2615_s11 + $0x22c] ss:$16 sps:$4 sm:$0xff]  }
  0x40   : > { %v2307_v15 = vld [vmem:[%s2615_s11 + $0x220] ss:$16 sps:$4 sm:$0xff]   ;;  %v2310_v16 = vld [vmem:[%s2615_s11 + $0x228] ss:$16 sps:$4 sm:$0xff]   ;;  %v2315_v17 = vld [vmem:[%s2615_s11 + $0x244] ss:$16 sps:$4 sm:$0xff]  }
  0x41   : > { %v2318_v18 = vld [vmem:[%s2615_s11 + $0x24c] ss:$16 sps:$4 sm:$0xff]   ;;  %v2313_v19 = vld [vmem:[%s2615_s11 + $0x240] ss:$16 sps:$4 sm:$0xff]   ;;  %v2316_v20 = vld [vmem:[%s2615_s11 + $0x248] ss:$16 sps:$4 sm:$0xff]  }
  0x42   : > { %1496 = vmatpush1.bf16.msra.mxu0 %v2242_v33  ;;  %1625 = vmatpush1.bf16.msra.mxu1 %v2243_v34  ;;  %v2321_v21 = vld [vmem:[%s2615_s11 + $0x264] ss:$16 sps:$4 sm:$0xff]   ;;  %v2324_v22 = vld [vmem:[%s2615_s11 + $0x26c] ss:$16 sps:$4 sm:$0xff]   ;;  %v2319_v23 = vld [vmem:[%s2615_s11 + $0x260] ss:$16 sps:$4 sm:$0xff]  }
  0x43   : > { %1497 = vmatprep.subr.bf16.mxu0 %v2244_v35  ;;  %1626 = vmatprep.subr.bf16.mxu1 %v2246_v36  ;;  %v2322_v24 = vld [vmem:[%s2615_s11 + $0x268] ss:$16 sps:$4 sm:$0xff]   ;;  %v2327_v25 = vld [vmem:[%s2615_s11 + $0x284] ss:$16 sps:$4 sm:$0xff]   ;;  %v2330_v26 = vld [vmem:[%s2615_s11 + $0x28c] ss:$16 sps:$4 sm:$0xff]  }
  0x44   : > { %v2325_v27 = vld [vmem:[%s2615_s11 + $0x280] ss:$16 sps:$4 sm:$0xff]   ;;  %v2328_v28 = vld [vmem:[%s2615_s11 + $0x288] ss:$16 sps:$4 sm:$0xff]   ;;  %v2333_v29 = vld [vmem:[%s2615_s11 + $0x2a4] ss:$16 sps:$4 sm:$0xff]  }
  0x45   : > { %v2336_v30 = vld [vmem:[%s2615_s11 + $0x2ac] ss:$16 sps:$4 sm:$0xff]   ;;  %v2331_v31 = vld [vmem:[%s2615_s11 + $0x2a0] ss:$16 sps:$4 sm:$0xff]   ;;  %v2334_v32 = vld [vmem:[%s2615_s11 + $0x2a8] ss:$16 sps:$4 sm:$0xff]  }
  0x46   : > { %1498 = vmatpush1.bf16.msra.mxu0 %v2248_v37  ;;  %1627 = vmatpush1.bf16.msra.mxu1 %v2249_v38  ;;  %v2339_v33 = vld [vmem:[%s2615_s11 + $0x2c4] ss:$16 sps:$4 sm:$0xff]   ;;  %v2342_v34 = vld [vmem:[%s2615_s11 + $0x2cc] ss:$16 sps:$4 sm:$0xff]   ;;  %v2337_v35 = vld [vmem:[%s2615_s11 + $0x2c0] ss:$16 sps:$4 sm:$0xff]  }
  0x47   : > { %1499 = vmatprep.subr.bf16.mxu0 %v2250_v39  ;;  %1628 = vmatprep.subr.bf16.mxu1 %v2252_v40  ;;  %v2340_v36 = vld [vmem:[%s2615_s11 + $0x2c8] ss:$16 sps:$4 sm:$0xff]   ;;  %v2399_v37 = vld [vmem:[%s2617_s12 + $0xc] ss:$24 sps:$4 sm:$0xff]   ;;  %v2343_v40 = vld [vmem:[%s2615_s11 + $0x2e0] ss:$16 sps:$4 sm:$0xff]  }
  0x48   : > { %v2345_v38 = vld [vmem:[%s2615_s11 + $0x2e4] ss:$16 sps:$4 sm:$0xff]   ;;  %v2348_v39 = vld [vmem:[%s2615_s11 + $0x2ec] ss:$16 sps:$4 sm:$0xff]   ;;  %p2136_p11 = scmp.ne.s32.totalorder %s2529_s17, 2 }
  0x49   : > { %v2372_v55 = vld [vmem:[%s2615_s11 + $0x36c] ss:$16 sps:$4 sm:$0xff]  }
  0x4a   : > { %1500 = vmatpush1.bf16.msra.mxu0 %v2254_v41  ;;  %1629 = vmatpush1.bf16.msra.mxu1 %v2255_v42  ;;  %v2346_v41 = vld [vmem:[%s2615_s11 + $0x2e8] ss:$16 sps:$4 sm:$0xff]   ;;  %v2351_v42 = vld [vmem:[%s2615_s11 + $0x304] ss:$16 sps:$4 sm:$0xff]  }
  0x4b   : > { %1501 = vmatprep.subr.bf16.mxu0 %v2256_v43  ;;  %1630 = vmatprep.subr.bf16.mxu1 %v2258_v44  ;;  %v2354_v43 = vld [vmem:[%s2615_s11 + $0x30c] ss:$16 sps:$4 sm:$0xff]   ;;  %v2349_v44 = vld [vmem:[%s2615_s11 + $0x300] ss:$16 sps:$4 sm:$0xff]  }
  0x4e   : > { %1502 = vmatpush1.bf16.msra.mxu0 %v2260_v45  ;;  %1631 = vmatpush1.bf16.msra.mxu1 %v2261_v46  ;;  %v2352_v45 = vld [vmem:[%s2615_s11 + $0x308] ss:$16 sps:$4 sm:$0xff]   ;;  %v2357_v46 = vld [vmem:[%s2615_s11 + $0x324] ss:$16 sps:$4 sm:$0xff]  }
  0x4f   : > { %1503 = vmatprep.subr.bf16.mxu0 %v2262_v47  ;;  %1632 = vmatprep.subr.bf16.mxu1 %v2264_v48  ;;  %v2360_v47 = vld [vmem:[%s2615_s11 + $0x32c] ss:$16 sps:$4 sm:$0xff]   ;;  %v2355_v48 = vld [vmem:[%s2615_s11 + $0x320] ss:$16 sps:$4 sm:$0xff]  }
  0x52   : > { %1504 = vmatpush1.bf16.msra.mxu0 %v2266_v49  ;;  %1633 = vmatpush1.bf16.msra.mxu1 %v2267_v50  ;;  %v2358_v49 = vld [vmem:[%s2615_s11 + $0x328] ss:$16 sps:$4 sm:$0xff]   ;;  %v2363_v50 = vld [vmem:[%s2615_s11 + $0x344] ss:$16 sps:$4 sm:$0xff]  }
  0x53   : > { %1505 = vmatprep.subr.bf16.mxu0 %v2268_v51  ;;  %1634 = vmatprep.subr.bf16.mxu1 %v2270_v52  ;;  %v2366_v51 = vld [vmem:[%s2615_s11 + $0x34c] ss:$16 sps:$4 sm:$0xff]   ;;  %v2361_v52 = vld [vmem:[%s2615_s11 + $0x340] ss:$16 sps:$4 sm:$0xff]  }
  0x56   : > { %1506 = vmatpush1.bf16.msra.mxu0 %v2272_v53  ;;  %1635 = vmatpush1.bf16.msra.mxu1 %v2273_v54  ;;  %v2364_v53 = vld [vmem:[%s2615_s11 + $0x348] ss:$16 sps:$4 sm:$0xff]   ;;  %v2369_v54 = vld [vmem:[%s2615_s11 + $0x364] ss:$16 sps:$4 sm:$0xff]  }
  0x57   : > { %1507 = vmatprep.subr.bf16.mxu0 %v2274_v56  ;;  %1636 = vmatprep.subr.bf16.mxu1 %v2276_v57  ;;  %v2367_v56 = vld [vmem:[%s2615_s11 + $0x360] ss:$16 sps:$4 sm:$0xff]   ;;  %v2370_v57 = vld [vmem:[%s2615_s11 + $0x368] ss:$16 sps:$4 sm:$0xff]  }
  0x5a   : > { %1508 = vmatpush1.bf16.msra.mxu0 %v2278_v58  ;;  %1637 = vmatpush1.bf16.msra.mxu1 %v2279_v59  ;;  %v2375_v58 = vld [vmem:[%s2615_s11 + $0x384] ss:$16 sps:$4 sm:$0xff]   ;;  %v2378_v59 = vld [vmem:[%s2615_s11 + $0x38c] ss:$16 sps:$4 sm:$0xff]  }
  0x5b   : > { %1509 = vmatprep.subr.bf16.mxu0 %v2280_v60  ;;  %1638 = vmatprep.subr.bf16.mxu1 %v2282_v61  ;;  %v2373_v60 = vld [vmem:[%s2615_s11 + $0x380] ss:$16 sps:$4 sm:$0xff]   ;;  %v2376_v61 = vld [vmem:[%s2615_s11 + $0x388] ss:$16 sps:$4 sm:$0xff]  }
  0x5e   : > { %1510 = vmatpush1.bf16.msra.mxu0 %v2284_v62  ;;  %1639 = vmatpush1.bf16.msra.mxu1 %v2285_v63  ;;  %v2381_v62 = vld [vmem:[%s2615_s11 + $0x3a4] ss:$16 sps:$4 sm:$0xff]   ;;  %v2384_v63 = vld [vmem:[%s2615_s11 + $0x3ac] ss:$16 sps:$4 sm:$0xff]  }
  0x5f   : > { %1511 = vmatprep.subr.bf16.mxu0 %v2286_v0  ;;  %1640 = vmatprep.subr.bf16.mxu1 %v2288_v1  ;;  %v2379_v0 = vld [vmem:[%s2615_s11 + $0x3a0] ss:$16 sps:$4 sm:$0xff]   ;;  %v2382_v1 = vld [vmem:[%s2615_s11 + $0x3a8] ss:$16 sps:$4 sm:$0xff]  }
  0x62   : > { %1512 = vmatpush1.bf16.msra.mxu0 %v2290_v2  ;;  %1641 = vmatpush1.bf16.msra.mxu1 %v2291_v3  ;;  %v2387_v2 = vld [vmem:[%s2615_s11 + $0x3c4] ss:$16 sps:$4 sm:$0xff]   ;;  %v2390_v3 = vld [vmem:[%s2615_s11 + $0x3cc] ss:$16 sps:$4 sm:$0xff]  }
  0x63   : > { %1513 = vmatprep.subr.bf16.mxu0 %v2292_v4  ;;  %1642 = vmatprep.subr.bf16.mxu1 %v2294_v5  ;;  %v2385_v4 = vld [vmem:[%s2615_s11 + $0x3c0] ss:$16 sps:$4 sm:$0xff]   ;;  %v2388_v5 = vld [vmem:[%s2615_s11 + $0x3c8] ss:$16 sps:$4 sm:$0xff]  }
  0x66   : > { %1514 = vmatpush1.bf16.msra.mxu0 %v2296_v6  ;;  %1643 = vmatpush1.bf16.msra.mxu1 %v2297_v7  ;;  %v2393_v6 = vld [vmem:[%s2615_s11 + $0x3e4] ss:$16 sps:$4 sm:$0xff]   ;;  %v2396_v7 = vld [vmem:[%s2615_s11 + $0x3ec] ss:$16 sps:$4 sm:$0xff]  }
  0x67   : > { %1526 = vmatprep.subr.bf16.mxu0 %v2303_v8  ;;  %1655 = vmatprep.subr.bf16.mxu1 %v2306_v9  ;;  %v2391_v8 = vld [vmem:[%s2615_s11 + $0x3e0] ss:$16 sps:$4 sm:$0xff]   ;;  %v2394_v9 = vld [vmem:[%s2615_s11 + $0x3e8] ss:$16 sps:$4 sm:$0xff]  }
  0x69   : > { %1516 = vmatmul.mubr.bf16.vlgmr.msra.gmra.mrb[0].mxu0 %v2298_v10  ;;  %1645 = vmatmul.mubr.bf16.vlgmr.msra.gmra.mrb[0].mxu1 %v2298_v10  ;;  %v2402_v10 = vld [vmem:[%s2615_s11 + $0x404] ss:$16 sps:$4 sm:$0xff]  }
  0x6a   : > { %1527 = vmatpush1.bf16.msra.mxu0 %v2301_v11  ;;  %1656 = vmatpush1.bf16.msra.mxu1 %v2304_v12  ;;  %v2405_v11 = vld [vmem:[%s2615_s11 + $0x40c] ss:$16 sps:$4 sm:$0xff]   ;;  %v2397_v12 = vld [vmem:[%s2617_s12 + $0x8] ss:$24 sps:$4 sm:$0xff]  }
  0x6b   : > { %1528 = vmatprep.subr.bf16.mxu0 %v2309_v13  ;;  %1657 = vmatprep.subr.bf16.mxu1 %v2312_v14  ;;  %v2400_v13 = vld [vmem:[%s2615_s11 + $0x400] ss:$16 sps:$4 sm:$0xff]   ;;  %v2403_v14 = vld [vmem:[%s2615_s11 + $0x408] ss:$16 sps:$4 sm:$0xff]  }
  0x6c   : > { %1558 = vmatprep.mubr.bf16.mxu0 %v2399_v37  ;;  %1687 = vmatprep.mubr.bf16.mxu1 %v2399_v37  ;;  %v2441_v37 = vld [vmem:[%s2615_s11 + $0x4cc] ss:$16 sps:$4 sm:$0xff]  }
  0x6e   : > { %1529 = vmatpush1.bf16.msra.mxu0 %v2307_v15  ;;  %1658 = vmatpush1.bf16.msra.mxu1 %v2310_v16  ;;  %v2408_v15 = vld [vmem:[%s2615_s11 + $0x424] ss:$16 sps:$4 sm:$0xff]   ;;  %v2411_v16 = vld [vmem:[%s2615_s11 + $0x42c] ss:$16 sps:$4 sm:$0xff]  }
  0x6f   : > { %1530 = vmatprep.subr.bf16.mxu0 %v2315_v17  ;;  %1659 = vmatprep.subr.bf16.mxu1 %v2318_v18  ;;  %v2498_v17 = vld [vmem:[%s2617_s12 + $0x14] ss:$24 sps:$4 sm:$0xff]   ;;  %v2406_v18 = vld [vmem:[%s2615_s11 + $0x420] ss:$16 sps:$4 sm:$0xff]  }
  0x72   : > { %1531 = vmatpush1.bf16.msra.mxu0 %v2313_v19  ;;  %1660 = vmatpush1.bf16.msra.mxu1 %v2316_v20  ;;  %v2409_v19 = vld [vmem:[%s2615_s11 + $0x428] ss:$16 sps:$4 sm:$0xff]   ;;  %v2414_v20 = vld [vmem:[%s2615_s11 + $0x444] ss:$16 sps:$4 sm:$0xff]  }
  0x73   : > { %1532 = vmatprep.subr.bf16.mxu0 %v2321_v21  ;;  %1661 = vmatprep.subr.bf16.mxu1 %v2324_v22  ;;  %v2417_v21 = vld [vmem:[%s2615_s11 + $0x44c] ss:$16 sps:$4 sm:$0xff]   ;;  %v2412_v22 = vld [vmem:[%s2615_s11 + $0x440] ss:$16 sps:$4 sm:$0xff]  }
  0x76   : > { %1533 = vmatpush1.bf16.msra.mxu0 %v2319_v23  ;;  %1662 = vmatpush1.bf16.msra.mxu1 %v2322_v24  ;;  %v2415_v23 = vld [vmem:[%s2615_s11 + $0x448] ss:$16 sps:$4 sm:$0xff]   ;;  %v2420_v24 = vld [vmem:[%s2615_s11 + $0x464] ss:$16 sps:$4 sm:$0xff]  }
  0x77   : > { %1534 = vmatprep.subr.bf16.mxu0 %v2327_v25  ;;  %1663 = vmatprep.subr.bf16.mxu1 %v2330_v26  ;;  %v2423_v25 = vld [vmem:[%s2615_s11 + $0x46c] ss:$16 sps:$4 sm:$0xff]   ;;  %v2418_v26 = vld [vmem:[%s2615_s11 + $0x460] ss:$16 sps:$4 sm:$0xff]  }
  0x7a   : > { %1535 = vmatpush1.bf16.msra.mxu0 %v2325_v27  ;;  %1664 = vmatpush1.bf16.msra.mxu1 %v2328_v28  ;;  %v2421_v27 = vld [vmem:[%s2615_s11 + $0x468] ss:$16 sps:$4 sm:$0xff]   ;;  %v2426_v28 = vld [vmem:[%s2615_s11 + $0x484] ss:$16 sps:$4 sm:$0xff]  }
  0x7b   : > { %1536 = vmatprep.subr.bf16.mxu0 %v2333_v29  ;;  %1665 = vmatprep.subr.bf16.mxu1 %v2336_v30  ;;  %v2429_v29 = vld [vmem:[%s2615_s11 + $0x48c] ss:$16 sps:$4 sm:$0xff]   ;;  %v2424_v30 = vld [vmem:[%s2615_s11 + $0x480] ss:$16 sps:$4 sm:$0xff]  }
  0x7e   : > { %1537 = vmatpush1.bf16.msra.mxu0 %v2331_v31  ;;  %1666 = vmatpush1.bf16.msra.mxu1 %v2334_v32  ;;  %v2427_v31 = vld [vmem:[%s2615_s11 + $0x488] ss:$16 sps:$4 sm:$0xff]   ;;  %v2432_v32 = vld [vmem:[%s2615_s11 + $0x4a4] ss:$16 sps:$4 sm:$0xff]  }
  0x7f   : > { %1538 = vmatprep.subr.bf16.mxu0 %v2339_v33  ;;  %1667 = vmatprep.subr.bf16.mxu1 %v2342_v34  ;;  %v2435_v33 = vld [vmem:[%s2615_s11 + $0x4ac] ss:$16 sps:$4 sm:$0xff]   ;;  %v2430_v34 = vld [vmem:[%s2615_s11 + $0x4a0] ss:$16 sps:$4 sm:$0xff]  }
  0x82   : > { %1539 = vmatpush1.bf16.msra.mxu0 %v2337_v35  ;;  %1668 = vmatpush1.bf16.msra.mxu1 %v2340_v36  ;;  %v2433_v35 = vld [vmem:[%s2615_s11 + $0x4a8] ss:$16 sps:$4 sm:$0xff]   ;;  %v2438_v36 = vld [vmem:[%s2615_s11 + $0x4c4] ss:$16 sps:$4 sm:$0xff]  }
  0x83   : > { %1540 = vmatprep.subr.bf16.mxu0 %v2345_v38  ;;  %1669 = vmatprep.subr.bf16.mxu1 %v2348_v39  ;;  %v2436_v38 = vld [vmem:[%s2615_s11 + $0x4c0] ss:$16 sps:$4 sm:$0xff]   ;;  %v2439_v39 = vld [vmem:[%s2615_s11 + $0x4c8] ss:$16 sps:$4 sm:$0xff]  }
  0x86   : > { %1541 = vmatpush1.bf16.msra.mxu0 %v2343_v40  ;;  %1670 = vmatpush1.bf16.msra.mxu1 %v2346_v41  ;;  %v2444_v40 = vld [vmem:[%s2615_s11 + $0x4e4] ss:$16 sps:$4 sm:$0xff]   ;;  %v2447_v41 = vld [vmem:[%s2615_s11 + $0x4ec] ss:$16 sps:$4 sm:$0xff]  }
  0x87   : > { %1542 = vmatprep.subr.bf16.mxu0 %v2351_v42  ;;  %1671 = vmatprep.subr.bf16.mxu1 %v2354_v43  ;;  %v2442_v42 = vld [vmem:[%s2615_s11 + $0x4e0] ss:$16 sps:$4 sm:$0xff]   ;;  %v2445_v43 = vld [vmem:[%s2615_s11 + $0x4e8] ss:$16 sps:$4 sm:$0xff]  }
  0x8a   : > { %1543 = vmatpush1.bf16.msra.mxu0 %v2349_v44  ;;  %1672 = vmatpush1.bf16.msra.mxu1 %v2352_v45  ;;  %v2450_v44 = vld [vmem:[%s2615_s11 + $0x504] ss:$16 sps:$4 sm:$0xff]   ;;  %v2453_v45 = vld [vmem:[%s2615_s11 + $0x50c] ss:$16 sps:$4 sm:$0xff]  }
  0x8b   : > { %1544 = vmatprep.subr.bf16.mxu0 %v2357_v46  ;;  %1673 = vmatprep.subr.bf16.mxu1 %v2360_v47  ;;  %v2448_v46 = vld [vmem:[%s2615_s11 + $0x500] ss:$16 sps:$4 sm:$0xff]   ;;  %v2451_v47 = vld [vmem:[%s2615_s11 + $0x508] ss:$16 sps:$4 sm:$0xff]  }
  0x8e   : > { %1545 = vmatpush1.bf16.msra.mxu0 %v2355_v48  ;;  %1674 = vmatpush1.bf16.msra.mxu1 %v2358_v49  ;;  %v2456_v48 = vld [vmem:[%s2615_s11 + $0x524] ss:$16 sps:$4 sm:$0xff]   ;;  %v2459_v49 = vld [vmem:[%s2615_s11 + $0x52c] ss:$16 sps:$4 sm:$0xff]  }
  0x8f   : > { %1546 = vmatprep.subr.bf16.mxu0 %v2363_v50  ;;  %1675 = vmatprep.subr.bf16.mxu1 %v2366_v51  ;;  %v2454_v50 = vld [vmem:[%s2615_s11 + $0x520] ss:$16 sps:$4 sm:$0xff]   ;;  %v2457_v51 = vld [vmem:[%s2615_s11 + $0x528] ss:$16 sps:$4 sm:$0xff]  }
  0x92   : > { %1547 = vmatpush1.bf16.msra.mxu0 %v2361_v52  ;;  %1676 = vmatpush1.bf16.msra.mxu1 %v2364_v53  ;;  %v2462_v52 = vld [vmem:[%s2615_s11 + $0x544] ss:$16 sps:$4 sm:$0xff]   ;;  %v2465_v53 = vld [vmem:[%s2615_s11 + $0x54c] ss:$16 sps:$4 sm:$0xff]  }
  0x93   : > { %1548 = vmatprep.subr.bf16.mxu0 %v2369_v54  ;;  %1677 = vmatprep.subr.bf16.mxu1 %v2372_v55  ;;  %v2460_v54 = vld [vmem:[%s2615_s11 + $0x540] ss:$16 sps:$4 sm:$0xff]   ;;  %v2463_v55 = vld [vmem:[%s2615_s11 + $0x548] ss:$16 sps:$4 sm:$0xff]  }
  0x96   : > { %1549 = vmatpush1.bf16.msra.mxu0 %v2367_v56  ;;  %1678 = vmatpush1.bf16.msra.mxu1 %v2370_v57  ;;  %v2468_v56 = vld [vmem:[%s2615_s11 + $0x564] ss:$16 sps:$4 sm:$0xff]   ;;  %v2471_v57 = vld [vmem:[%s2615_s11 + $0x56c] ss:$16 sps:$4 sm:$0xff]  }
  0x97   : > { %1550 = vmatprep.subr.bf16.mxu0 %v2375_v58  ;;  %1679 = vmatprep.subr.bf16.mxu1 %v2378_v59  ;;  %v2466_v58 = vld [vmem:[%s2615_s11 + $0x560] ss:$16 sps:$4 sm:$0xff]   ;;  %v2469_v59 = vld [vmem:[%s2615_s11 + $0x568] ss:$16 sps:$4 sm:$0xff]  }
  0x9a   : > { %1551 = vmatpush1.bf16.msra.mxu0 %v2373_v60  ;;  %1680 = vmatpush1.bf16.msra.mxu1 %v2376_v61  ;;  %v2474_v60 = vld [vmem:[%s2615_s11 + $0x584] ss:$16 sps:$4 sm:$0xff]   ;;  %v2477_v61 = vld [vmem:[%s2615_s11 + $0x58c] ss:$16 sps:$4 sm:$0xff]  }
  0x9b   : > { %1552 = vmatprep.subr.bf16.mxu0 %v2381_v62  ;;  %1681 = vmatprep.subr.bf16.mxu1 %v2384_v63  ;;  %v2472_v62 = vld [vmem:[%s2615_s11 + $0x580] ss:$16 sps:$4 sm:$0xff]   ;;  %v2475_v63 = vld [vmem:[%s2615_s11 + $0x588] ss:$16 sps:$4 sm:$0xff]  }
  0x9e   : > { %1553 = vmatpush1.bf16.msra.mxu0 %v2379_v0  ;;  %1682 = vmatpush1.bf16.msra.mxu1 %v2382_v1  ;;  %v2480_v0 = vld [vmem:[%s2615_s11 + $0x5a4] ss:$16 sps:$4 sm:$0xff]   ;;  %v2483_v1 = vld [vmem:[%s2615_s11 + $0x5ac] ss:$16 sps:$4 sm:$0xff]  }
  0x9f   : > { %1554 = vmatprep.subr.bf16.mxu0 %v2387_v2  ;;  %1683 = vmatprep.subr.bf16.mxu1 %v2390_v3  ;;  %v2478_v2 = vld [vmem:[%s2615_s11 + $0x5a0] ss:$16 sps:$4 sm:$0xff]   ;;  %v2481_v3 = vld [vmem:[%s2615_s11 + $0x5a8] ss:$16 sps:$4 sm:$0xff]  }
  0xa2   : > { %1555 = vmatpush1.bf16.msra.mxu0 %v2385_v4  ;;  %1684 = vmatpush1.bf16.msra.mxu1 %v2388_v5  ;;  %v2486_v4 = vld [vmem:[%s2615_s11 + $0x5c4] ss:$16 sps:$4 sm:$0xff]   ;;  %v2489_v5 = vld [vmem:[%s2615_s11 + $0x5cc] ss:$16 sps:$4 sm:$0xff]  }
  0xa3   : > { %1556 = vmatprep.subr.bf16.mxu0 %v2393_v6  ;;  %1685 = vmatprep.subr.bf16.mxu1 %v2396_v7  ;;  %v2484_v6 = vld [vmem:[%s2615_s11 + $0x5c0] ss:$16 sps:$4 sm:$0xff]   ;;  %v2487_v7 = vld [vmem:[%s2615_s11 + $0x5c8] ss:$16 sps:$4 sm:$0xff]  }
  0xa6   : > { %1557 = vmatpush1.bf16.msra.mxu0 %v2391_v8  ;;  %1686 = vmatpush1.bf16.msra.mxu1 %v2394_v9  ;;  %v2492_v8 = vld [vmem:[%s2615_s11 + $0x5e4] ss:$16 sps:$4 sm:$0xff]   ;;  %v2495_v9 = vld [vmem:[%s2615_s11 + $0x5ec] ss:$16 sps:$4 sm:$0xff]  }
  0xa7   : > { %1569 = vmatprep.subr.bf16.mxu0 %v2402_v10  ;;  %1698 = vmatprep.subr.bf16.mxu1 %v2405_v11  ;;  %v2490_v10 = vld [vmem:[%s2615_s11 + $0x5e0] ss:$16 sps:$4 sm:$0xff]   ;;  %v2493_v11 = vld [vmem:[%s2615_s11 + $0x5e8] ss:$16 sps:$4 sm:$0xff]  }
  0xa9   : > { %1559 = vmatmul.mubr.bf16.vlgmr.msra.gmra.mrb[0].mxu0 %v2397_v12  ;;  %1688 = vmatmul.mubr.bf16.vlgmr.msra.gmra.mrb[0].mxu1 %v2397_v12  ;;  %v2496_v12 = vld [vmem:[%s2617_s12 + $0x10] ss:$24 sps:$4 sm:$0xff]  }
  0xaa   : > { %1570 = vmatpush1.bf16.msra.mxu0 %v2400_v13  ;;  %1699 = vmatpush1.bf16.msra.mxu1 %v2403_v14  ;;  %v287_v13 = vld [vmem:[%s2964_s4] sm:$0xff]  ;;  %v289_v14 = vld [vmem:[%s2964_s4 + $0x10] sm:$0xff] }
  0xab   : > { %1571 = vmatprep.subr.bf16.mxu0 %v2408_v15  ;;  %1700 = vmatprep.subr.bf16.mxu1 %v2411_v16  ;;  %v288_v15 = vld [vmem:[%s2964_s4 + $0x8] sm:$0xff]  ;;  %v290_v16 = vld [vmem:[%s2964_s4 + $0x18] sm:$0xff] }
  0xac   : > { %1601 = vmatprep.mubr.bf16.mxu0 %v2498_v17  ;;  %1730 = vmatprep.mubr.bf16.mxu1 %v2498_v17 }
  0xae   : > { %1572 = vmatpush1.bf16.msra.mxu0 %v2406_v18  ;;  %1701 = vmatpush1.bf16.msra.mxu1 %v2409_v19  ;;  %v291_v19 = vld [vmem:[%s2964_s4 + $0x20] sm:$0xff] }
  0xaf   : > { %1573 = vmatprep.subr.bf16.mxu0 %v2414_v20  ;;  %1702 = vmatprep.subr.bf16.mxu1 %v2417_v21  ;;  %v293_v20 = vld [vmem:[%s2964_s4 + $0x30] sm:$0xff] }
  0xb2   : > { %1574 = vmatpush1.bf16.msra.mxu0 %v2412_v22  ;;  %1703 = vmatpush1.bf16.msra.mxu1 %v2415_v23 }
  0xb3   : > { %1575 = vmatprep.subr.bf16.mxu0 %v2420_v24  ;;  %1704 = vmatprep.subr.bf16.mxu1 %v2423_v25  ;;  %v292_v25 = vld [vmem:[%s2964_s4 + $0x28] sm:$0xff] }
  0xb6   : > { %1576 = vmatpush1.bf16.msra.mxu0 %v2418_v26  ;;  %1705 = vmatpush1.bf16.msra.mxu1 %v2421_v27  ;;  %v294_v26 = vld [vmem:[%s2964_s4 + $0x38] sm:$0xff] }
  0xb7   : > { %1577 = vmatprep.subr.bf16.mxu0 %v2426_v28  ;;  %1706 = vmatprep.subr.bf16.mxu1 %v2429_v29 }
  0xba   : > { %1578 = vmatpush1.bf16.msra.mxu0 %v2424_v30  ;;  %1707 = vmatpush1.bf16.msra.mxu1 %v2427_v31 }
  0xbb   : > { %1579 = vmatprep.subr.bf16.mxu0 %v2432_v32  ;;  %1708 = vmatprep.subr.bf16.mxu1 %v2435_v33 }
  0xbe   : > { %1580 = vmatpush1.bf16.msra.mxu0 %v2430_v34  ;;  %1709 = vmatpush1.bf16.msra.mxu1 %v2433_v35 }
  0xbf   : > { %1581 = vmatprep.subr.bf16.mxu0 %v2438_v36  ;;  %1710 = vmatprep.subr.bf16.mxu1 %v2441_v37  ;;  %v1772_v37 = vlaneseq (!%p2136_p11) }
  0xc2   : > { %1582 = vmatpush1.bf16.msra.mxu0 %v2436_v38  ;;  %1711 = vmatpush1.bf16.msra.mxu1 %v2439_v39  ;;  %v1773_v38 = vshrl.u32 (!%p2136_p11), %v1772_v37, 7  ;;  %v1769_v39 = vld [vmem:[%s2962_s2] sm:$0xf] (!%p2136_p11) }
  0xc3   : > { %1583 = vmatprep.subr.bf16.mxu0 %v2444_v40  ;;  %1712 = vmatprep.subr.bf16.mxu1 %v2447_v41  ;;  %v1770_v40 = vld [vmem:[%s2963_s3] sm:$0xf] (!%p2136_p11) }
  0xc6   : > { %1584 = vmatpush1.bf16.msra.mxu0 %v2442_v42  ;;  %1713 = vmatpush1.bf16.msra.mxu1 %v2445_v43  ;;  %v1774_v42 = vsub.s32 (!%p2136_p11), 0, %v1773_v38 }
  0xc7   : > { %1585 = vmatprep.subr.bf16.mxu0 %v2450_v44  ;;  %1714 = vmatprep.subr.bf16.mxu1 %v2453_v45  ;;  %v1778_v44 = vsub.s32 (!%p2136_p11), 1, %v1773_v38  ;;  %v1782_v45 = vsub.s32 (!%p2136_p11), 2, %v1773_v38 }
  0xca   : > { %1586 = vmatpush1.bf16.msra.mxu0 %v2448_v46  ;;  %1715 = vmatpush1.bf16.msra.mxu1 %v2451_v47  ;;  %v1786_v46 = vsub.s32 (!%p2136_p11), 3, %v1773_v38 }
  0xcb   : > { %1587 = vmatprep.subr.bf16.mxu0 %v2456_v48  ;;  %1716 = vmatprep.subr.bf16.mxu1 %v2459_v49 }
  0xce   : > { %1588 = vmatpush1.bf16.msra.mxu0 %v2454_v50  ;;  %1717 = vmatpush1.bf16.msra.mxu1 %v2457_v51  ;;  %v1775_v50 = vrot.slane (!%p2136_p11), %v1769_v39, %v1774_v42  ;;  %v1804_v51 = vrot.slane (!%p2136_p11), %v1770_v40, %v1774_v42 }
  0xcf   : > { %1589 = vmatprep.subr.bf16.mxu0 %v2462_v52  ;;  %1718 = vmatprep.subr.bf16.mxu1 %v2465_v53  ;;  %v1779_v52 = vrot.slane (!%p2136_p11), %v1769_v39, %v1778_v44  ;;  %v1808_v53 = vrot.slane (!%p2136_p11), %v1770_v40, %v1778_v44 }
  0xd2   : > { %1590 = vmatpush1.bf16.msra.mxu0 %v2460_v54  ;;  %1719 = vmatpush1.bf16.msra.mxu1 %v2463_v55 }
  0xd3   : > { %1591 = vmatprep.subr.bf16.mxu0 %v2468_v56  ;;  %1720 = vmatprep.subr.bf16.mxu1 %v2471_v57  ;;  %v1783_v57 = vrot.slane (!%p2136_p11), %v1769_v39, %v1782_v45 }
  0xd6   : > { %1592 = vmatpush1.bf16.msra.mxu0 %v2466_v58  ;;  %1721 = vmatpush1.bf16.msra.mxu1 %v2469_v59  ;;  %v1812_v58 = vrot.slane (!%p2136_p11), %v1770_v40, %v1782_v45  ;;  %v1787_v59 = vrot.slane (!%p2136_p11), %v1769_v39, %v1786_v46 }
  0xd7   : > { %1593 = vmatprep.subr.bf16.mxu0 %v2474_v60  ;;  %1722 = vmatprep.subr.bf16.mxu1 %v2477_v61  ;;  %v1816_v60 = vrot.slane (!%p2136_p11), %v1770_v40, %v1786_v46 }
  0xda   : > { %1594 = vmatpush1.bf16.msra.mxu0 %v2472_v62  ;;  %1723 = vmatpush1.bf16.msra.mxu1 %v2475_v63 }
  0xdb   : > { %1595 = vmatprep.subr.bf16.mxu0 %v2480_v0  ;;  %1724 = vmatprep.subr.bf16.mxu1 %v2483_v1 }
  0xde   : > { %1596 = vmatpush1.bf16.msra.mxu0 %v2478_v2  ;;  %1725 = vmatpush1.bf16.msra.mxu1 %v2481_v3 }
  0xdf   : > { %1597 = vmatprep.subr.bf16.mxu0 %v2486_v4  ;;  %1726 = vmatprep.subr.bf16.mxu1 %v2489_v5 }
  0xe2   : > { %1598 = vmatpush1.bf16.msra.mxu0 %v2484_v6  ;;  %1727 = vmatpush1.bf16.msra.mxu1 %v2487_v7 }
  0xe3   : > { %1599 = vmatprep.subr.bf16.mxu0 %v2492_v8  ;;  %1728 = vmatprep.subr.bf16.mxu1 %v2495_v9 }
  0xe6   : > { %1600 = vmatpush1.bf16.msra.mxu0 %v2490_v10  ;;  %1729 = vmatpush1.bf16.msra.mxu1 %v2493_v11 }
  0xe9   : > { %1602 = vmatmul.mubr.bf16.vlgmr.msra.gmra.mrb[0].mxu0 %v2496_v12  ;;  %1731 = vmatmul.mubr.bf16.vlgmr.msra.gmra.mrb[0].mxu1 %v2496_v12 }
 0x1bc   : > { %v1603_v17 = vpop.f32.mrb[0].mxu0  ;;  %v1732_v18 = vpop.f32.mrb[0].mxu1  ;;  %1760 = sbr.rel (%p2136_p11) target bundleno = 465 (0x1d1), region = 67 }
 0x1bd   : > { %v1741_v21 = vadd.f32 %v1603_v17, %v287_v13  ;;  %v1743_v22 = vadd.f32 %v1732_v18, %v289_v14  ;;  %v1605_v23 = vpop.f32.mrb[1].mxu0  ;;  %v1734_v24 = vpop.f32.mrb[1].mxu1 }
 0x1be   : > { %v1742_v27 = vadd.f32 %v1605_v23, %v288_v15  ;;  %v1744_v28 = vadd.f32 %v1734_v24, %v290_v16  ;;  %v1607_v29 = vpop.f32.mrb[2].mxu0  ;;  %v1736_v30 = vpop.f32.mrb[2].mxu1 }
 0x1bf   : > { %1749 = vst [vmem:[%s2964_s4] sm:$0xff] %v1741_v21  ;;  %1751 = vst [vmem:[%s2964_s4 + $0x10] sm:$0xff] %v1743_v22  ;;  %v1745_v31 = vadd.f32 %v1607_v29, %v291_v19  ;;  %v1747_v32 = vadd.f32 %v1736_v30, %v293_v20  ;;  %v1609_v33 = vpop.f32.mrb[3].mxu0  ;;  %v1738_v34 = vpop.f32.mrb[3].mxu1 }
 0x1c0   : > { %1750 = vst [vmem:[%s2964_s4 + $0x8] sm:$0xff] %v1742_v27  ;;  %1752 = vst [vmem:[%s2964_s4 + $0x18] sm:$0xff] %v1744_v28  ;;  %v1746_v35 = vadd.f32 %v1609_v33, %v292_v25  ;;  %v1748_v36 = vadd.f32 %v1738_v34, %v294_v26 }
 0x1c1   : > { %1753 = vst [vmem:[%s2964_s4 + $0x20] sm:$0xff] %v1745_v31  ;;  %1755 = vst [vmem:[%s2964_s4 + $0x30] sm:$0xff] %v1747_v32 }
 0x1c2   : > { %1754 = vst [vmem:[%s2964_s4 + $0x28] sm:$0xff] %v1746_v35  ;;  %1756 = vst [vmem:[%s2964_s4 + $0x38] sm:$0xff] %v1748_v36 }
 0x1c6   : > { %v1761_v41 = vld [vmem:[%s2964_s4] sm:$0xff]  ;;  %v1763_v47 = vld [vmem:[%s2964_s4 + $0x10] sm:$0xff] }
 0x1c7   : > { %v1762_v43 = vld [vmem:[%s2964_s4 + $0x8] sm:$0xff]  ;;  %v1764_v54 = vld [vmem:[%s2964_s4 + $0x18] sm:$0xff]  ;;  %v1792_v61 = vmul.f32 %v1775_v50, %v1761_v41  ;;  %v1794_v1 = vmul.f32 %v1783_v57, %v1763_v47 }
 0x1c8   : > { %v1765_v48 = vld [vmem:[%s2964_s4 + $0x20] sm:$0xff]  ;;  %v1767_v55 = vld [vmem:[%s2964_s4 + $0x30] sm:$0xff]  ;;  %v1793_v62 = vmul.f32 %v1779_v52, %v1762_v43  ;;  %v1795_v2 = vmul.f32 %v1787_v59, %v1764_v54 }
 0x1c9   : > { %v1766_v49 = vld [vmem:[%s2964_s4 + $0x28] sm:$0xff]  ;;  %v1768_v56 = vld [vmem:[%s2964_s4 + $0x38] sm:$0xff]  ;;  %v1796_v63 = vmul.f32 %v1775_v50, %v1765_v48  ;;  %v1798_v3 = vmul.f32 %v1783_v57, %v1767_v55  ;;  %v1821_v5 = vadd.f32 %v1804_v51, %v1792_v61  ;;  %v1823_v9 = vadd.f32 %v1812_v58, %v1794_v1 }
 0x1ca   : > { %v1797_v0 = vmul.f32 %v1779_v52, %v1766_v49  ;;  %v1799_v4 = vmul.f32 %v1787_v59, %v1768_v56  ;;  %v1822_v6 = vadd.f32 %v1808_v53, %v1793_v62  ;;  %v1824_v10 = vadd.f32 %v1816_v60, %v1795_v2 }
 0x1cb   : > { %v1825_v7 = vadd.f32 %v1804_v51, %v1796_v63  ;;  %v1827_v11 = vadd.f32 %v1812_v58, %v1798_v3  ;;  %v1829_v13 = vmax.f32 %v1821_v5, 0.0  ;;  %v1831_v17 = vmax.f32 %v1823_v9, 0.0 }
 0x1cc   : > { %v1826_v8 = vadd.f32 %v1808_v53, %v1797_v0  ;;  %v1828_v12 = vadd.f32 %v1816_v60, %v1799_v4  ;;  %v1830_v14 = vmax.f32 %v1822_v6, 0.0  ;;  %v1832_v18 = vmax.f32 %v1824_v10, 0.0 }
 0x1cd   : > { %v1833_v15 = vmax.f32 %v1825_v7, 0.0  ;;  %v1835_v19 = vmax.f32 %v1827_v11, 0.0  ;;  %1837 = vst [vmem:[%s2964_s4] sm:$0xff] %v1829_v13  ;;  %1839 = vst [vmem:[%s2964_s4 + $0x10] sm:$0xff] %v1831_v17 }
 0x1ce   : > { %v1834_v16 = vmax.f32 %v1826_v8, 0.0  ;;  %v1836_v20 = vmax.f32 %v1828_v12, 0.0  ;;  %1838 = vst [vmem:[%s2964_s4 + $0x8] sm:$0xff] %v1830_v14  ;;  %1840 = vst [vmem:[%s2964_s4 + $0x18] sm:$0xff] %v1832_v18 }
 0x1cf   : > { %1841 = vst [vmem:[%s2964_s4 + $0x20] sm:$0xff] %v1833_v15  ;;  %1843 = vst [vmem:[%s2964_s4 + $0x30] sm:$0xff] %v1835_v19 }
 0x1d0   : > { %1842 = vst [vmem:[%s2964_s4 + $0x28] sm:$0xff] %v1834_v16  ;;  %1844 = vst [vmem:[%s2964_s4 + $0x38] sm:$0xff] %v1836_v20 }
 0x1d1 PF: > { %s14_s19 = sadd.s32 1, %s2537_s19   ;;  %s2965_s15 = smov %s2525_s16 }
 0x1d2   : > { %p11_p12 = scmp.ge.s32.totalorder %s14_s19, 5   ;;  %s2966_s16 = smov %s2600_s23 }
 0x1d3   : > { %s2967_s17 = smov %s2533_s18  ;;  %s2968_s18 = smov %s2970_s20 }
 0x1d4   :  { %13 = sbr.rel (!%p11_p12) target bundleno = 3 (0x3), region = 105 }

// kernel: resnet_feature_forward.39
= control target key start
LH: loop header
LB: loop body
LE: loop exit
PB: predicated region body
PF: predicated region fallthrough
CT: control target
= control target key end

     0   :  { %s1037_s1 = inlined_call_operand.vmem [shape: bf16[256,512], index: 1, kind: input, shape index: {}]   ;;  %s1038_s0 = inlined_call_operand.vmem [shape: bf16[16,256], index: 0, kind: input, shape index: {}]   ;;  %s1039_s2 = inlined_call_operand.vmem [shape: f32[1,512], index: 2, kind: input, shape index: {}]   ;;  %s1040_s3 = inlined_call_operand.vmem [shape: f32[1,512], index: 3, kind: input, shape index: {}]   ;;  %s1041_s4 = inlined_call_operand.vmem [shape: f32[16,512], index: 4, kind: output, shape index: {}]  }
   0x1   :  { %v685_v0 = vld [vmem:[%s1037_s1 + $0x4] ss:$16 sps:$4 sm:$0xff]   ;;  %v687_v1 = vld [vmem:[%s1037_s1 + $0xc] ss:$16 sps:$4 sm:$0xff]   ;;  %v689_v2 = vld [vmem:[%s1037_s1] ss:$16 sps:$4 sm:$0xff]  }
   0x2   :  { %433 = vmatprep.subr.bf16.mxu0 %v685_v0  ;;  %v690_v3 = vld [vmem:[%s1037_s1 + $0x8] ss:$16 sps:$4 sm:$0xff]   ;;  %476 = vmatprep.subr.bf16.mxu1 %v687_v1  ;;  %v691_v4 = vld [vmem:[%s1037_s1 + $0x24] ss:$16 sps:$4 sm:$0xff]   ;;  %v693_v5 = vld [vmem:[%s1037_s1 + $0x2c] ss:$16 sps:$4 sm:$0xff]  }
   0x3   :  { %434 = vmatpush1.bf16.msra.mxu0 %v689_v2  ;;  %477 = vmatpush1.bf16.msra.mxu1 %v690_v3  ;;  %v695_v6 = vld [vmem:[%s1037_s1 + $0x20] ss:$16 sps:$4 sm:$0xff]   ;;  %v696_v7 = vld [vmem:[%s1037_s1 + $0x28] ss:$16 sps:$4 sm:$0xff]   ;;  %v697_v8 = vld [vmem:[%s1037_s1 + $0x44] ss:$16 sps:$4 sm:$0xff]   ;;  %v549_v2 = vlaneseq }
   0x4   :  { %435 = vmatprep.subr.bf16.mxu0 %v691_v4  ;;  %478 = vmatprep.subr.bf16.mxu1 %v693_v5  ;;  %v699_v9 = vld [vmem:[%s1037_s1 + $0x4c] ss:$16 sps:$4 sm:$0xff]   ;;  %v701_v10 = vld [vmem:[%s1037_s1 + $0x40] ss:$16 sps:$4 sm:$0xff]   ;;  %v702_v11 = vld [vmem:[%s1037_s1 + $0x48] ss:$16 sps:$4 sm:$0xff]  }
   0x5   :  { %v703_v12 = vld [vmem:[%s1037_s1 + $0x64] ss:$16 sps:$4 sm:$0xff]   ;;  %v705_v13 = vld [vmem:[%s1037_s1 + $0x6c] ss:$16 sps:$4 sm:$0xff]   ;;  %v707_v14 = vld [vmem:[%s1037_s1 + $0x60] ss:$16 sps:$4 sm:$0xff]  }
   0x6   :  { %v708_v15 = vld [vmem:[%s1037_s1 + $0x68] ss:$16 sps:$4 sm:$0xff]   ;;  %v709_v16 = vld [vmem:[%s1037_s1 + $0x84] ss:$16 sps:$4 sm:$0xff]   ;;  %v711_v17 = vld [vmem:[%s1037_s1 + $0x8c] ss:$16 sps:$4 sm:$0xff]  }
   0x7   :  { %436 = vmatpush1.bf16.msra.mxu0 %v695_v6  ;;  %479 = vmatpush1.bf16.msra.mxu1 %v696_v7  ;;  %v713_v18 = vld [vmem:[%s1037_s1 + $0x80] ss:$16 sps:$4 sm:$0xff]   ;;  %v714_v19 = vld [vmem:[%s1037_s1 + $0x88] ss:$16 sps:$4 sm:$0xff]   ;;  %v715_v20 = vld [vmem:[%s1037_s1 + $0xa4] ss:$16 sps:$4 sm:$0xff]  }
   0x8   :  { %437 = vmatprep.subr.bf16.mxu0 %v697_v8  ;;  %480 = vmatprep.subr.bf16.mxu1 %v699_v9  ;;  %v717_v21 = vld [vmem:[%s1037_s1 + $0xac] ss:$16 sps:$4 sm:$0xff]   ;;  %v719_v22 = vld [vmem:[%s1037_s1 + $0xa0] ss:$16 sps:$4 sm:$0xff]   ;;  %v720_v23 = vld [vmem:[%s1037_s1 + $0xa8] ss:$16 sps:$4 sm:$0xff]  }
   0x9   :  { %v721_v24 = vld [vmem:[%s1037_s1 + $0xc4] ss:$16 sps:$4 sm:$0xff]   ;;  %v723_v25 = vld [vmem:[%s1037_s1 + $0xcc] ss:$16 sps:$4 sm:$0xff]   ;;  %v725_v26 = vld [vmem:[%s1037_s1 + $0xc0] ss:$16 sps:$4 sm:$0xff]  }
   0xa   :  { %v726_v27 = vld [vmem:[%s1037_s1 + $0xc8] ss:$16 sps:$4 sm:$0xff]   ;;  %v727_v28 = vld [vmem:[%s1037_s1 + $0xe4] ss:$16 sps:$4 sm:$0xff]   ;;  %v729_v29 = vld [vmem:[%s1037_s1 + $0xec] ss:$16 sps:$4 sm:$0xff]  }
   0xb   :  { %438 = vmatpush1.bf16.msra.mxu0 %v701_v10  ;;  %481 = vmatpush1.bf16.msra.mxu1 %v702_v11  ;;  %v731_v30 = vld [vmem:[%s1037_s1 + $0xe0] ss:$16 sps:$4 sm:$0xff]   ;;  %v732_v31 = vld [vmem:[%s1037_s1 + $0xe8] ss:$16 sps:$4 sm:$0xff]   ;;  %v733_v32 = vld [vmem:[%s1037_s1 + $0x104] ss:$16 sps:$4 sm:$0xff]  }
   0xc   :  { %439 = vmatprep.subr.bf16.mxu0 %v703_v12  ;;  %482 = vmatprep.subr.bf16.mxu1 %v705_v13  ;;  %v735_v33 = vld [vmem:[%s1037_s1 + $0x10c] ss:$16 sps:$4 sm:$0xff]   ;;  %v737_v34 = vld [vmem:[%s1037_s1 + $0x100] ss:$16 sps:$4 sm:$0xff]   ;;  %v738_v35 = vld [vmem:[%s1037_s1 + $0x108] ss:$16 sps:$4 sm:$0xff]  }
   0xd   :  { %v739_v36 = vld [vmem:[%s1037_s1 + $0x124] ss:$16 sps:$4 sm:$0xff]   ;;  %v741_v37 = vld [vmem:[%s1037_s1 + $0x12c] ss:$16 sps:$4 sm:$0xff]   ;;  %v743_v38 = vld [vmem:[%s1037_s1 + $0x120] ss:$16 sps:$4 sm:$0xff]  }
   0xe   :  { %v744_v39 = vld [vmem:[%s1037_s1 + $0x128] ss:$16 sps:$4 sm:$0xff]   ;;  %v745_v40 = vld [vmem:[%s1037_s1 + $0x144] ss:$16 sps:$4 sm:$0xff]   ;;  %v747_v41 = vld [vmem:[%s1037_s1 + $0x14c] ss:$16 sps:$4 sm:$0xff]  }
   0xf   :  { %440 = vmatpush1.bf16.msra.mxu0 %v707_v14  ;;  %483 = vmatpush1.bf16.msra.mxu1 %v708_v15  ;;  %v749_v42 = vld [vmem:[%s1037_s1 + $0x140] ss:$16 sps:$4 sm:$0xff]   ;;  %v750_v43 = vld [vmem:[%s1037_s1 + $0x148] ss:$16 sps:$4 sm:$0xff]   ;;  %v751_v44 = vld [vmem:[%s1037_s1 + $0x164] ss:$16 sps:$4 sm:$0xff]  }
  0x10   :  { %441 = vmatprep.subr.bf16.mxu0 %v709_v16  ;;  %484 = vmatprep.subr.bf16.mxu1 %v711_v17  ;;  %v753_v45 = vld [vmem:[%s1037_s1 + $0x16c] ss:$16 sps:$4 sm:$0xff]   ;;  %v755_v47 = vld [vmem:[%s1037_s1 + $0x160] ss:$16 sps:$4 sm:$0xff]   ;;  %v756_v48 = vld [vmem:[%s1037_s1 + $0x168] ss:$16 sps:$4 sm:$0xff]  }
  0x11   :  { %v783_v46 = vld [vmem:[%s1038_s0 + $0x4] ss:$8 sps:$4 sm:$0xff]   ;;  %v761_v51 = vld [vmem:[%s1037_s1 + $0x180] ss:$16 sps:$4 sm:$0xff]   ;;  %v762_v52 = vld [vmem:[%s1037_s1 + $0x188] ss:$16 sps:$4 sm:$0xff]  }
  0x12   :  { %v757_v49 = vld [vmem:[%s1037_s1 + $0x184] ss:$16 sps:$4 sm:$0xff]   ;;  %v759_v50 = vld [vmem:[%s1037_s1 + $0x18c] ss:$16 sps:$4 sm:$0xff]   ;;  %465 = vmatprep.mubr.bf16.mxu0 %v783_v46  ;;  %508 = vmatprep.mubr.bf16.mxu1 %v783_v46  ;;  %v767_v55 = vld [vmem:[%s1037_s1 + $0x1a0] ss:$16 sps:$4 sm:$0xff]  }
  0x13   :  { %442 = vmatpush1.bf16.msra.mxu0 %v713_v18  ;;  %485 = vmatpush1.bf16.msra.mxu1 %v714_v19  ;;  %v763_v53 = vld [vmem:[%s1037_s1 + $0x1a4] ss:$16 sps:$4 sm:$0xff]   ;;  %v765_v54 = vld [vmem:[%s1037_s1 + $0x1ac] ss:$16 sps:$4 sm:$0xff]   ;;  %v768_v56 = vld [vmem:[%s1037_s1 + $0x1a8] ss:$16 sps:$4 sm:$0xff]  }
  0x14   :  { %443 = vmatprep.subr.bf16.mxu0 %v715_v20  ;;  %486 = vmatprep.subr.bf16.mxu1 %v717_v21  ;;  %v769_v57 = vld [vmem:[%s1037_s1 + $0x1c4] ss:$16 sps:$4 sm:$0xff]   ;;  %v771_v58 = vld [vmem:[%s1037_s1 + $0x1cc] ss:$16 sps:$4 sm:$0xff]   ;;  %v773_v59 = vld [vmem:[%s1037_s1 + $0x1c0] ss:$16 sps:$4 sm:$0xff]  }
  0x15   :  { %v774_v60 = vld [vmem:[%s1037_s1 + $0x1c8] ss:$16 sps:$4 sm:$0xff]   ;;  %v775_v61 = vld [vmem:[%s1037_s1 + $0x1e4] ss:$16 sps:$4 sm:$0xff]   ;;  %v777_v62 = vld [vmem:[%s1037_s1 + $0x1ec] ss:$16 sps:$4 sm:$0xff]  }
  0x16   :  { %v779_v63 = vld [vmem:[%s1037_s1 + $0x1e0] ss:$16 sps:$4 sm:$0xff]   ;;  %v780_v0 = vld [vmem:[%s1037_s1 + $0x1e8] ss:$16 sps:$4 sm:$0xff]   ;;  %v550_v3 = vshrl.u32 %v549_v2, 7 }
  0x17   :  { %444 = vmatpush1.bf16.msra.mxu0 %v719_v22  ;;  %487 = vmatpush1.bf16.msra.mxu1 %v720_v23  ;;  %v781_v1 = vld [vmem:[%s1038_s0] ss:$8 sps:$4 sm:$0xff]  }
  0x18   :  { %445 = vmatprep.subr.bf16.mxu0 %v721_v24  ;;  %488 = vmatprep.subr.bf16.mxu1 %v723_v25  ;;  %v551_v4 = vsub.s32 0, %v550_v3  ;;  %v559_v5 = vsub.s32 2, %v550_v3  ;;  %v546_v6 = vld [vmem:[%s1039_s2] sm:$0xf]  ;;  %v555_v7 = vsub.s32 1, %v550_v3  ;;  %v563_v8 = vsub.s32 3, %v550_v3 }
  0x19   :  { %v547_v9 = vld [vmem:[%s1040_s3] sm:$0xf] }
  0x1a   :  { %v552_v10 = vrot.slane %v546_v6, %v551_v4  ;;  %v560_v11 = vrot.slane %v546_v6, %v559_v5  ;;  %v556_v14 = vrot.slane %v546_v6, %v555_v7  ;;  %v564_v15 = vrot.slane %v546_v6, %v563_v8 }
  0x1b   :  { %446 = vmatpush1.bf16.msra.mxu0 %v725_v26  ;;  %489 = vmatpush1.bf16.msra.mxu1 %v726_v27  ;;  %v581_v16 = vrot.slane %v547_v9, %v551_v4  ;;  %v589_v17 = vrot.slane %v547_v9, %v559_v5  ;;  %v585_v20 = vrot.slane %v547_v9, %v555_v7 }
  0x1c   :  { %447 = vmatprep.subr.bf16.mxu0 %v727_v28  ;;  %490 = vmatprep.subr.bf16.mxu1 %v729_v29  ;;  %v593_v21 = vrot.slane %v547_v9, %v563_v8 }
  0x1f   :  { %448 = vmatpush1.bf16.msra.mxu0 %v731_v30  ;;  %491 = vmatpush1.bf16.msra.mxu1 %v732_v31 }
  0x20   :  { %449 = vmatprep.subr.bf16.mxu0 %v733_v32  ;;  %492 = vmatprep.subr.bf16.mxu1 %v735_v33 }
  0x23   :  { %450 = vmatpush1.bf16.msra.mxu0 %v737_v34  ;;  %493 = vmatpush1.bf16.msra.mxu1 %v738_v35 }
  0x24   :  { %451 = vmatprep.subr.bf16.mxu0 %v739_v36  ;;  %494 = vmatprep.subr.bf16.mxu1 %v741_v37 }
  0x27   :  { %452 = vmatpush1.bf16.msra.mxu0 %v743_v38  ;;  %495 = vmatpush1.bf16.msra.mxu1 %v744_v39 }
  0x28   :  { %453 = vmatprep.subr.bf16.mxu0 %v745_v40  ;;  %496 = vmatprep.subr.bf16.mxu1 %v747_v41 }
  0x2b   :  { %454 = vmatpush1.bf16.msra.mxu0 %v749_v42  ;;  %497 = vmatpush1.bf16.msra.mxu1 %v750_v43 }
  0x2c   :  { %455 = vmatprep.subr.bf16.mxu0 %v751_v44  ;;  %498 = vmatprep.subr.bf16.mxu1 %v753_v45 }
  0x2f   :  { %456 = vmatpush1.bf16.msra.mxu0 %v755_v47  ;;  %499 = vmatpush1.bf16.msra.mxu1 %v756_v48 }
  0x30   :  { %457 = vmatprep.subr.bf16.mxu0 %v757_v49  ;;  %500 = vmatprep.subr.bf16.mxu1 %v759_v50 }
  0x33   :  { %458 = vmatpush1.bf16.msra.mxu0 %v761_v51  ;;  %501 = vmatpush1.bf16.msra.mxu1 %v762_v52 }
  0x34   :  { %459 = vmatprep.subr.bf16.mxu0 %v763_v53  ;;  %502 = vmatprep.subr.bf16.mxu1 %v765_v54 }
  0x37   :  { %460 = vmatpush1.bf16.msra.mxu0 %v767_v55  ;;  %503 = vmatpush1.bf16.msra.mxu1 %v768_v56 }
  0x38   :  { %461 = vmatprep.subr.bf16.mxu0 %v769_v57  ;;  %504 = vmatprep.subr.bf16.mxu1 %v771_v58 }
  0x3b   :  { %462 = vmatpush1.bf16.msra.mxu0 %v773_v59  ;;  %505 = vmatpush1.bf16.msra.mxu1 %v774_v60 }
  0x3c   :  { %463 = vmatprep.subr.bf16.mxu0 %v775_v61  ;;  %506 = vmatprep.subr.bf16.mxu1 %v777_v62 }
  0x3f   :  { %464 = vmatpush1.bf16.msra.mxu0 %v779_v63  ;;  %507 = vmatpush1.bf16.msra.mxu1 %v780_v0 }
  0x42   :  { %466 = vmatmul.mubr.bf16.vlgmr.msra.gmra.mrb[0].mxu0 %v781_v1  ;;  %509 = vmatmul.mubr.bf16.vlgmr.msra.gmra.mrb[0].mxu1 %v781_v1 }
 0x115   :  { %v467_v12 = vpop.f32.mrb[0].mxu0  ;;  %v510_v13 = vpop.f32.mrb[0].mxu1 }
 0x116   :  { %v469_v18 = vpop.f32.mrb[1].mxu0  ;;  %v512_v19 = vpop.f32.mrb[1].mxu1  ;;  %v569_v24 = vmul.f32 %v552_v10, %v467_v12  ;;  %v571_v25 = vmul.f32 %v560_v11, %v510_v13 }
 0x117   :  { %v471_v22 = vpop.f32.mrb[2].mxu0  ;;  %v514_v23 = vpop.f32.mrb[2].mxu1  ;;  %v570_v28 = vmul.f32 %v556_v14, %v469_v18  ;;  %v572_v29 = vmul.f32 %v564_v15, %v512_v19 }
 0x118   :  { %v473_v26 = vpop.f32.mrb[3].mxu0  ;;  %v516_v27 = vpop.f32.mrb[3].mxu1  ;;  %v598_v30 = vadd.f32 %v581_v16, %v569_v24  ;;  %v600_v31 = vadd.f32 %v589_v17, %v571_v25  ;;  %v573_v32 = vmul.f32 %v552_v10, %v471_v22  ;;  %v575_v33 = vmul.f32 %v560_v11, %v514_v23 }
 0x119   :  { %v599_v34 = vadd.f32 %v585_v20, %v570_v28  ;;  %v601_v35 = vadd.f32 %v593_v21, %v572_v29  ;;  %v574_v36 = vmul.f32 %v556_v14, %v473_v26  ;;  %v576_v37 = vmul.f32 %v564_v15, %v516_v27 }
 0x11a   :  { %606 = vst [vmem:[%s1041_s4] sm:$0xff] %v598_v30  ;;  %608 = vst [vmem:[%s1041_s4 + $0x10] sm:$0xff] %v600_v31  ;;  %v602_v38 = vadd.f32 %v581_v16, %v573_v32  ;;  %v604_v39 = vadd.f32 %v589_v17, %v575_v33 }
 0x11b   :  { %607 = vst [vmem:[%s1041_s4 + $0x8] sm:$0xff] %v599_v34  ;;  %609 = vst [vmem:[%s1041_s4 + $0x18] sm:$0xff] %v601_v35  ;;  %v603_v40 = vadd.f32 %v585_v20, %v574_v36  ;;  %v605_v41 = vadd.f32 %v593_v21, %v576_v37 }
 0x11c   :  { %610 = vst [vmem:[%s1041_s4 + $0x20] sm:$0xff] %v602_v38  ;;  %612 = vst [vmem:[%s1041_s4 + $0x30] sm:$0xff] %v604_v39 }
 0x11d   :  { %611 = vst [vmem:[%s1041_s4 + $0x28] sm:$0xff] %v603_v40  ;;  %613 = vst [vmem:[%s1041_s4 + $0x38] sm:$0xff] %v605_v41 }

// kernel: resnet_feature_forward.41
= control target key start
LH: loop header
LB: loop body
LE: loop exit
PB: predicated region body
PF: predicated region fallthrough
CT: control target
= control target key end

     0   :  { %s2565_s15 = smov 0   ;;  %s2567_s16 = smov 0   ;;  %s2960_s0 = inlined_call_operand.vmem [shape: bf16[16,4608], index: 0, kind: input, shape index: {}]   ;;  %s2961_s1 = inlined_call_operand.vmem [shape: bf16[4608,512], index: 1, kind: input, shape index: {}]   ;;  %s2962_s2 = inlined_call_operand.vmem [shape: f32[1,512], index: 2, kind: input, shape index: {}]   ;;  %s2963_s3 = inlined_call_operand.vmem [shape: f32[1,512], index: 3, kind: input, shape index: {}]   ;;  %s2964_s4 = inlined_call_operand.vmem [shape: f32[16,512], index: 4, kind: output, shape index: {}]  }
   0x1   :  { %s2569_s17 = smov 0   ;;  %s2571_s18 = smov 0  }
   0x2   :  { %s2573_s19 = smov 0  }
   0x3 LB: > { %s23_s20 = sadd.s32 1, %s2533_s18  ;;  %p42_p1 = scmp.ne.s32.totalorder %s2525_s16, %s2521_s15  ;;  %s2537_s19 = sphi %s2573_s19, %s14_s19   ;;  %s2533_s18 = sphi %s2571_s18, %s2968_s18   ;;  %s2529_s17 = sphi %s2569_s17, %s2967_s17   ;;  %s2525_s16 = sphi %s2567_s16, %s2966_s16   ;;  %s2521_s15 = sphi %s2565_s15, %s2965_s15  }
   0x4   : > { %p24_p0 = scmp.ge.s32.totalorder %s23_s20, 6  ;;  %p43_p2 = scmp.eq.s32.totalorder %s2537_s19, 0 }
   0x5   : > { %s35_s22 = sadd.s32 1, %s2525_s16  ;;  %p1932_p5 = scmp.ge.s32.totalorder %s2537_s19, 6 }
   0x6   : > { %s2970_s20 = smov (%p24_p0, %s23_s20), 0  ;;  %p44_p3 = por %p43_p2, %p42_p1 }
   0x7   : > { %s31_s21 = ssub.s32 %s2533_s18, %s2970_s20  ;;  %168 = sbr.rel (%p1932_p5) target bundleno = 22 (0x16), region = 24 }
   0x8   : > { %p33_p4 = scmp.eq.s32.totalorder %s31_s21, 0 }
   0xa   : > { %s2600_s23 = scalar_select %p33_p4, %s2525_s16, %s35_s22  }
   0xe   : > { %171 = sbr.rel (!%p44_p3) target bundleno = 22 (0x16), region = 28  ;;  %s173_s24 = sand.u32 (%p44_p3), 1, %s2525_s16  }
   0xf   : > { %s2141_s25 = smul.u32 (%p44_p3), 24, %s2533_s18 }
  0x10   : > { %s2159_s26 = smul.u32 (%p44_p3), 48, %s173_s24 }
  0x11   : > { %s181_s29 = scalar_lea.vmem (%p44_p3), %s2960_s0, %s2141_s25 }
  0x12   : > { %v194_v0 = vld [vmem:[%s181_s29] sm:$0xff] (%p44_p3)  ;;  %v196_v1 = vld [vmem:[%s181_s29 + $0x8] sm:$0xff] (%p44_p3)  ;;  %v198_v2 = vld [vmem:[%s181_s29 + $0x10] sm:$0xff] (%p44_p3)  ;;  %s175_s30 = scalar_lea.vmem (%p44_p3), [#allocation2], %s2159_s26 }
  0x13   : > { %195 = vst [vmem:[%s175_s30] sm:$0xff] (%p44_p3), %v194_v0  ;;  %197 = vst [vmem:[%s175_s30 + $0x8] sm:$0xff] (%p44_p3), %v196_v1  ;;  %v200_v3 = vld [vmem:[%s181_s29 + $0x90] sm:$0xff] (%p44_p3)  ;;  %v202_v4 = vld [vmem:[%s181_s29 + $0x98] sm:$0xff] (%p44_p3) }
  0x14   : > { %199 = vst [vmem:[%s175_s30 + $0x10] sm:$0xff] (%p44_p3), %v198_v2  ;;  %v204_v5 = vld [vmem:[%s181_s29 + $0xa0] sm:$0xff] (%p44_p3)  ;;  %201 = vst [vmem:[%s175_s30 + $0x18] sm:$0xff] (%p44_p3), %v200_v3 }
  0x15   : > { %203 = vst [vmem:[%s175_s30 + $0x20] sm:$0xff] %v202_v4  ;;  %205 = vst [vmem:[%s175_s30 + $0x28] sm:$0xff] %v204_v5 }
  0x16 PF: > { %p1934_p6 = scmp.ge.s32.totalorder %s2537_s19, 1  ;;  %p220_p7 = scmp.lt.s32.totalorder %s2537_s19, 7 }
  0x18   : > { %p221_p8 = pnand %p1934_p6, %p220_p7 }
  0x19   : > { %s227_s5 = sand.u32 (!%p221_p8), 1, %s2521_s15   ;;  %s261_s6 = smul.u32 (!%p221_p8), 96, %s2529_s17 }
  0x1a   : > { %224 = sbr.rel (%p221_p8) target bundleno = 465 (0x1d1), region = 55  ;;  %p1937_p10 = scmp.ne.s32.totalorder (!%p221_p8), %s2529_s17, 0 }
  0x1b   : > { %s2160_s7 = smul.u32 (!%p221_p8), 48, %s227_s5  ;;  %p262_p9 = scmp.lt.s32.totalorder (!%p221_p8), %s261_s6, 575 }
  0x1d   : > { %s2617_s12 = scalar_lea.vmem (!%p221_p8), [#allocation2], %s2160_s7 }
  0x21   : > { %s2972_s6 = smov (!%p262_p9, %s261_s6), 575  ;;  %278 = sbr.rel (%p1937_p10) target bundleno = 40 (0x28), region = 63 }
  0x22   : > { %s2142_s8 = sshll.u32 %s2972_s6, 4  ;;  %v2539_v6 = vmov (!%p1937_p10), 0.0  }
  0x23   : > { %s2615_s11 = scalar_lea.vmem %s2961_s1, %s2142_s8  ;;  %279 = vst [vmem:[%s2964_s4] sm:$0xff] (!%p1937_p10), %v2539_v6  ;;  %280 = vst [vmem:[%s2964_s4 + $0x8] sm:$0xff] (!%p1937_p10), %v2539_v6 }
  0x24   : > { %281 = vst [vmem:[%s2964_s4 + $0x10] sm:$0xff] (!%p1937_p10), %v2539_v6  ;;  %282 = vst [vmem:[%s2964_s4 + $0x18] sm:$0xff] (!%p1937_p10), %v2539_v6 }
  0x25   : > { %283 = vst [vmem:[%s2964_s4 + $0x20] sm:$0xff] (!%p1937_p10), %v2539_v6  ;;  %284 = vst [vmem:[%s2964_s4 + $0x28] sm:$0xff] (!%p1937_p10), %v2539_v6 }
  0x26   : > { %285 = vst [vmem:[%s2964_s4 + $0x30] sm:$0xff] (!%p1937_p10), %v2539_v6  ;;  %286 = vst [vmem:[%s2964_s4 + $0x38] sm:$0xff] (!%p1937_p10), %v2539_v6 }
  0x28 PF: > { %v2202_v7 = vld [vmem:[%s2615_s11 + $0x4] ss:$16 sps:$4 sm:$0xff]   ;;  %v2204_v8 = vld [vmem:[%s2615_s11 + $0xc] ss:$16 sps:$4 sm:$0xff]   ;;  %v2206_v9 = vld [vmem:[%s2615_s11] ss:$16 sps:$4 sm:$0xff]  }
  0x29   : > { %1483 = vmatprep.subr.bf16.mxu0 %v2202_v7  ;;  %v2207_v10 = vld [vmem:[%s2615_s11 + $0x8] ss:$16 sps:$4 sm:$0xff]   ;;  %1612 = vmatprep.subr.bf16.mxu1 %v2204_v8  ;;  %v2208_v11 = vld [vmem:[%s2615_s11 + $0x24] ss:$16 sps:$4 sm:$0xff]   ;;  %v2210_v12 = vld [vmem:[%s2615_s11 + $0x2c] ss:$16 sps:$4 sm:$0xff]  }
  0x2a   : > { %1484 = vmatpush1.bf16.msra.mxu0 %v2206_v9  ;;  %1613 = vmatpush1.bf16.msra.mxu1 %v2207_v10  ;;  %v2212_v13 = vld [vmem:[%s2615_s11 + $0x20] ss:$16 sps:$4 sm:$0xff]   ;;  %v2213_v14 = vld [vmem:[%s2615_s11 + $0x28] ss:$16 sps:$4 sm:$0xff]   ;;  %v2214_v15 = vld [vmem:[%s2615_s11 + $0x44] ss:$16 sps:$4 sm:$0xff]  }
  0x2b   : > { %1485 = vmatprep.subr.bf16.mxu0 %v2208_v11  ;;  %1614 = vmatprep.subr.bf16.mxu1 %v2210_v12  ;;  %v2216_v16 = vld [vmem:[%s2615_s11 + $0x4c] ss:$16 sps:$4 sm:$0xff]   ;;  %v2218_v17 = vld [vmem:[%s2615_s11 + $0x40] ss:$16 sps:$4 sm:$0xff]   ;;  %v2219_v18 = vld [vmem:[%s2615_s11 + $0x48] ss:$16 sps:$4 sm:$0xff]  }
  0x2c   : > { %v2220_v19 = vld [vmem:[%s2615_s11 + $0x64] ss:$16 sps:$4 sm:$0xff]   ;;  %v2222_v20 = vld [vmem:[%s2615_s11 + $0x6c] ss:$16 sps:$4 sm:$0xff]   ;;  %v2224_v21 = vld [vmem:[%s2615_s11 + $0x60] ss:$16 sps:$4 sm:$0xff]  }
  0x2d   : > { %v2225_v22 = vld [vmem:[%s2615_s11 + $0x68] ss:$16 sps:$4 sm:$0xff]   ;;  %v2226_v23 = vld [vmem:[%s2615_s11 + $0x84] ss:$16 sps:$4 sm:$0xff]   ;;  %v2228_v24 = vld [vmem:[%s2615_s11 + $0x8c] ss:$16 sps:$4 sm:$0xff]  }
  0x2e   : > { %1486 = vmatpush1.bf16.msra.mxu0 %v2212_v13  ;;  %1615 = vmatpush1.bf16.msra.mxu1 %v2213_v14  ;;  %v2230_v25 = vld [vmem:[%s2615_s11 + $0x80] ss:$16 sps:$4 sm:$0xff]   ;;  %v2231_v26 = vld [vmem:[%s2615_s11 + $0x88] ss:$16 sps:$4 sm:$0xff]   ;;  %v2232_v27 = vld [vmem:[%s2615_s11 + $0xa4] ss:$16 sps:$4 sm:$0xff]  }
  0x2f   : > { %1487 = vmatprep.subr.bf16.mxu0 %v2214_v15  ;;  %1616 = vmatprep.subr.bf16.mxu1 %v2216_v16  ;;  %v2234_v28 = vld [vmem:[%s2615_s11 + $0xac] ss:$16 sps:$4 sm:$0xff]   ;;  %v2236_v29 = vld [vmem:[%s2615_s11 + $0xa0] ss:$16 sps:$4 sm:$0xff]   ;;  %v2237_v30 = vld [vmem:[%s2615_s11 + $0xa8] ss:$16 sps:$4 sm:$0xff]  }
  0x30   : > { %v2238_v31 = vld [vmem:[%s2615_s11 + $0xc4] ss:$16 sps:$4 sm:$0xff]   ;;  %v2240_v32 = vld [vmem:[%s2615_s11 + $0xcc] ss:$16 sps:$4 sm:$0xff]   ;;  %v2242_v33 = vld [vmem:[%s2615_s11 + $0xc0] ss:$16 sps:$4 sm:$0xff]  }
  0x31   : > { %v2243_v34 = vld [vmem:[%s2615_s11 + $0xc8] ss:$16 sps:$4 sm:$0xff]   ;;  %v2244_v35 = vld [vmem:[%s2615_s11 + $0xe4] ss:$16 sps:$4 sm:$0xff]   ;;  %v2246_v36 = vld [vmem:[%s2615_s11 + $0xec] ss:$16 sps:$4 sm:$0xff]  }
  0x32   : > { %1488 = vmatpush1.bf16.msra.mxu0 %v2218_v17  ;;  %1617 = vmatpush1.bf16.msra.mxu1 %v2219_v18  ;;  %v2248_v37 = vld [vmem:[%s2615_s11 + $0xe0] ss:$16 sps:$4 sm:$0xff]   ;;  %v2249_v38 = vld [vmem:[%s2615_s11 + $0xe8] ss:$16 sps:$4 sm:$0xff]   ;;  %v2250_v39 = vld [vmem:[%s2615_s11 + $0x104] ss:$16 sps:$4 sm:$0xff]  }
  0x33   : > { %1489 = vmatprep.subr.bf16.mxu0 %v2220_v19  ;;  %1618 = vmatprep.subr.bf16.mxu1 %v2222_v20  ;;  %v2252_v40 = vld [vmem:[%s2615_s11 + $0x10c] ss:$16 sps:$4 sm:$0xff]   ;;  %v2254_v41 = vld [vmem:[%s2615_s11 + $0x100] ss:$16 sps:$4 sm:$0xff]   ;;  %v2255_v42 = vld [vmem:[%s2615_s11 + $0x108] ss:$16 sps:$4 sm:$0xff]  }
  0x34   : > { %v2256_v43 = vld [vmem:[%s2615_s11 + $0x124] ss:$16 sps:$4 sm:$0xff]   ;;  %v2258_v44 = vld [vmem:[%s2615_s11 + $0x12c] ss:$16 sps:$4 sm:$0xff]   ;;  %v2260_v45 = vld [vmem:[%s2615_s11 + $0x120] ss:$16 sps:$4 sm:$0xff]  }
  0x35   : > { %v2261_v46 = vld [vmem:[%s2615_s11 + $0x128] ss:$16 sps:$4 sm:$0xff]   ;;  %v2262_v47 = vld [vmem:[%s2615_s11 + $0x144] ss:$16 sps:$4 sm:$0xff]   ;;  %v2264_v48 = vld [vmem:[%s2615_s11 + $0x14c] ss:$16 sps:$4 sm:$0xff]  }
  0x36   : > { %1490 = vmatpush1.bf16.msra.mxu0 %v2224_v21  ;;  %1619 = vmatpush1.bf16.msra.mxu1 %v2225_v22  ;;  %v2266_v49 = vld [vmem:[%s2615_s11 + $0x140] ss:$16 sps:$4 sm:$0xff]   ;;  %v2267_v50 = vld [vmem:[%s2615_s11 + $0x148] ss:$16 sps:$4 sm:$0xff]   ;;  %v2268_v51 = vld [vmem:[%s2615_s11 + $0x164] ss:$16 sps:$4 sm:$0xff]  }
  0x37   : > { %1491 = vmatprep.subr.bf16.mxu0 %v2226_v23  ;;  %1620 = vmatprep.subr.bf16.mxu1 %v2228_v24  ;;  %v2270_v52 = vld [vmem:[%s2615_s11 + $0x16c] ss:$16 sps:$4 sm:$0xff]   ;;  %v2272_v53 = vld [vmem:[%s2615_s11 + $0x160] ss:$16 sps:$4 sm:$0xff]   ;;  %v2273_v54 = vld [vmem:[%s2615_s11 + $0x168] ss:$16 sps:$4 sm:$0xff]  }
  0x38   : > { %v2300_v55 = vld [vmem:[%s2617_s12 + $0x4] ss:$24 sps:$4 sm:$0xff]   ;;  %v2278_v58 = vld [vmem:[%s2615_s11 + $0x180] ss:$16 sps:$4 sm:$0xff]   ;;  %v2279_v59 = vld [vmem:[%s2615_s11 + $0x188] ss:$16 sps:$4 sm:$0xff]  }
  0x39   : > { %v2274_v56 = vld [vmem:[%s2615_s11 + $0x184] ss:$16 sps:$4 sm:$0xff]   ;;  %v2276_v57 = vld [vmem:[%s2615_s11 + $0x18c] ss:$16 sps:$4 sm:$0xff]   ;;  %1515 = vmatprep.mubr.bf16.mxu0 %v2300_v55  ;;  %1644 = vmatprep.mubr.bf16.mxu1 %v2300_v55  ;;  %v2284_v62 = vld [vmem:[%s2615_s11 + $0x1a0] ss:$16 sps:$4 sm:$0xff]  }
  0x3a   : > { %1492 = vmatpush1.bf16.msra.mxu0 %v2230_v25  ;;  %1621 = vmatpush1.bf16.msra.mxu1 %v2231_v26  ;;  %v2280_v60 = vld [vmem:[%s2615_s11 + $0x1a4] ss:$16 sps:$4 sm:$0xff]   ;;  %v2282_v61 = vld [vmem:[%s2615_s11 + $0x1ac] ss:$16 sps:$4 sm:$0xff]   ;;  %v2285_v63 = vld [vmem:[%s2615_s11 + $0x1a8] ss:$16 sps:$4 sm:$0xff]  }
  0x3b   : > { %1493 = vmatprep.subr.bf16.mxu0 %v2232_v27  ;;  %1622 = vmatprep.subr.bf16.mxu1 %v2234_v28  ;;  %v2286_v0 = vld [vmem:[%s2615_s11 + $0x1c4] ss:$16 sps:$4 sm:$0xff]   ;;  %v2288_v1 = vld [vmem:[%s2615_s11 + $0x1cc] ss:$16 sps:$4 sm:$0xff]   ;;  %v2290_v2 = vld [vmem:[%s2615_s11 + $0x1c0] ss:$16 sps:$4 sm:$0xff]  }
  0x3c   : > { %v2291_v3 = vld [vmem:[%s2615_s11 + $0x1c8] ss:$16 sps:$4 sm:$0xff]   ;;  %v2292_v4 = vld [vmem:[%s2615_s11 + $0x1e4] ss:$16 sps:$4 sm:$0xff]   ;;  %v2294_v5 = vld [vmem:[%s2615_s11 + $0x1ec] ss:$16 sps:$4 sm:$0xff]  }
  0x3d   : > { %v2296_v6 = vld [vmem:[%s2615_s11 + $0x1e0] ss:$16 sps:$4 sm:$0xff]   ;;  %v2297_v7 = vld [vmem:[%s2615_s11 + $0x1e8] ss:$16 sps:$4 sm:$0xff]   ;;  %v2303_v8 = vld [vmem:[%s2615_s11 + $0x204] ss:$16 sps:$4 sm:$0xff]  }
  0x3e   : > { %1494 = vmatpush1.bf16.msra.mxu0 %v2236_v29  ;;  %1623 = vmatpush1.bf16.msra.mxu1 %v2237_v30  ;;  %v2306_v9 = vld [vmem:[%s2615_s11 + $0x20c] ss:$16 sps:$4 sm:$0xff]   ;;  %v2298_v10 = vld [vmem:[%s2617_s12] ss:$24 sps:$4 sm:$0xff]   ;;  %v2309_v13 = vld [vmem:[%s2615_s11 + $0x224] ss:$16 sps:$4 sm:$0xff]  }
  0x3f   : > { %1495 = vmatprep.subr.bf16.mxu0 %v2238_v31  ;;  %1624 = vmatprep.subr.bf16.mxu1 %v2240_v32  ;;  %v2301_v11 = vld [vmem:[%s2615_s11 + $0x200] ss:$16 sps:$4 sm:$0xff]   ;;  %v2304_v12 = vld [vmem:[%s2615_s11 + $0x208] ss:$16 sps:$4 sm:$0xff]   ;;  %v2312_v14 = vld [vmem:[%s2615_s11 + $0x22c] ss:$16 sps:$4 sm:$0xff]  }
  0x40   : > { %v2307_v15 = vld [vmem:[%s2615_s11 + $0x220] ss:$16 sps:$4 sm:$0xff]   ;;  %v2310_v16 = vld [vmem:[%s2615_s11 + $0x228] ss:$16 sps:$4 sm:$0xff]   ;;  %v2315_v17 = vld [vmem:[%s2615_s11 + $0x244] ss:$16 sps:$4 sm:$0xff]  }
  0x41   : > { %v2318_v18 = vld [vmem:[%s2615_s11 + $0x24c] ss:$16 sps:$4 sm:$0xff]   ;;  %v2313_v19 = vld [vmem:[%s2615_s11 + $0x240] ss:$16 sps:$4 sm:$0xff]   ;;  %v2316_v20 = vld [vmem:[%s2615_s11 + $0x248] ss:$16 sps:$4 sm:$0xff]  }
  0x42   : > { %1496 = vmatpush1.bf16.msra.mxu0 %v2242_v33  ;;  %1625 = vmatpush1.bf16.msra.mxu1 %v2243_v34  ;;  %v2321_v21 = vld [vmem:[%s2615_s11 + $0x264] ss:$16 sps:$4 sm:$0xff]   ;;  %v2324_v22 = vld [vmem:[%s2615_s11 + $0x26c] ss:$16 sps:$4 sm:$0xff]   ;;  %v2319_v23 = vld [vmem:[%s2615_s11 + $0x260] ss:$16 sps:$4 sm:$0xff]  }
  0x43   : > { %1497 = vmatprep.subr.bf16.mxu0 %v2244_v35  ;;  %1626 = vmatprep.subr.bf16.mxu1 %v2246_v36  ;;  %v2322_v24 = vld [vmem:[%s2615_s11 + $0x268] ss:$16 sps:$4 sm:$0xff]   ;;  %v2327_v25 = vld [vmem:[%s2615_s11 + $0x284] ss:$16 sps:$4 sm:$0xff]   ;;  %v2330_v26 = vld [vmem:[%s2615_s11 + $0x28c] ss:$16 sps:$4 sm:$0xff]  }
  0x44   : > { %v2325_v27 = vld [vmem:[%s2615_s11 + $0x280] ss:$16 sps:$4 sm:$0xff]   ;;  %v2328_v28 = vld [vmem:[%s2615_s11 + $0x288] ss:$16 sps:$4 sm:$0xff]   ;;  %v2333_v29 = vld [vmem:[%s2615_s11 + $0x2a4] ss:$16 sps:$4 sm:$0xff]  }
  0x45   : > { %v2336_v30 = vld [vmem:[%s2615_s11 + $0x2ac] ss:$16 sps:$4 sm:$0xff]   ;;  %v2331_v31 = vld [vmem:[%s2615_s11 + $0x2a0] ss:$16 sps:$4 sm:$0xff]   ;;  %v2334_v32 = vld [vmem:[%s2615_s11 + $0x2a8] ss:$16 sps:$4 sm:$0xff]  }
  0x46   : > { %1498 = vmatpush1.bf16.msra.mxu0 %v2248_v37  ;;  %1627 = vmatpush1.bf16.msra.mxu1 %v2249_v38  ;;  %v2339_v33 = vld [vmem:[%s2615_s11 + $0x2c4] ss:$16 sps:$4 sm:$0xff]   ;;  %v2342_v34 = vld [vmem:[%s2615_s11 + $0x2cc] ss:$16 sps:$4 sm:$0xff]   ;;  %v2337_v35 = vld [vmem:[%s2615_s11 + $0x2c0] ss:$16 sps:$4 sm:$0xff]  }
  0x47   : > { %1499 = vmatprep.subr.bf16.mxu0 %v2250_v39  ;;  %1628 = vmatprep.subr.bf16.mxu1 %v2252_v40  ;;  %v2340_v36 = vld [vmem:[%s2615_s11 + $0x2c8] ss:$16 sps:$4 sm:$0xff]   ;;  %v2399_v37 = vld [vmem:[%s2617_s12 + $0xc] ss:$24 sps:$4 sm:$0xff]   ;;  %v2343_v40 = vld [vmem:[%s2615_s11 + $0x2e0] ss:$16 sps:$4 sm:$0xff]  }
  0x48   : > { %v2345_v38 = vld [vmem:[%s2615_s11 + $0x2e4] ss:$16 sps:$4 sm:$0xff]   ;;  %v2348_v39 = vld [vmem:[%s2615_s11 + $0x2ec] ss:$16 sps:$4 sm:$0xff]   ;;  %p2136_p11 = scmp.ne.s32.totalorder %s2529_s17, 5 }
  0x49   : > { %v2372_v55 = vld [vmem:[%s2615_s11 + $0x36c] ss:$16 sps:$4 sm:$0xff]  }
  0x4a   : > { %1500 = vmatpush1.bf16.msra.mxu0 %v2254_v41  ;;  %1629 = vmatpush1.bf16.msra.mxu1 %v2255_v42  ;;  %v2346_v41 = vld [vmem:[%s2615_s11 + $0x2e8] ss:$16 sps:$4 sm:$0xff]   ;;  %v2351_v42 = vld [vmem:[%s2615_s11 + $0x304] ss:$16 sps:$4 sm:$0xff]  }
  0x4b   : > { %1501 = vmatprep.subr.bf16.mxu0 %v2256_v43  ;;  %1630 = vmatprep.subr.bf16.mxu1 %v2258_v44  ;;  %v2354_v43 = vld [vmem:[%s2615_s11 + $0x30c] ss:$16 sps:$4 sm:$0xff]   ;;  %v2349_v44 = vld [vmem:[%s2615_s11 + $0x300] ss:$16 sps:$4 sm:$0xff]  }
  0x4e   : > { %1502 = vmatpush1.bf16.msra.mxu0 %v2260_v45  ;;  %1631 = vmatpush1.bf16.msra.mxu1 %v2261_v46  ;;  %v2352_v45 = vld [vmem:[%s2615_s11 + $0x308] ss:$16 sps:$4 sm:$0xff]   ;;  %v2357_v46 = vld [vmem:[%s2615_s11 + $0x324] ss:$16 sps:$4 sm:$0xff]  }
  0x4f   : > { %1503 = vmatprep.subr.bf16.mxu0 %v2262_v47  ;;  %1632 = vmatprep.subr.bf16.mxu1 %v2264_v48  ;;  %v2360_v47 = vld [vmem:[%s2615_s11 + $0x32c] ss:$16 sps:$4 sm:$0xff]   ;;  %v2355_v48 = vld [vmem:[%s2615_s11 + $0x320] ss:$16 sps:$4 sm:$0xff]  }
  0x52   : > { %1504 = vmatpush1.bf16.msra.mxu0 %v2266_v49  ;;  %1633 = vmatpush1.bf16.msra.mxu1 %v2267_v50  ;;  %v2358_v49 = vld [vmem:[%s2615_s11 + $0x328] ss:$16 sps:$4 sm:$0xff]   ;;  %v2363_v50 = vld [vmem:[%s2615_s11 + $0x344] ss:$16 sps:$4 sm:$0xff]  }
  0x53   : > { %1505 = vmatprep.subr.bf16.mxu0 %v2268_v51  ;;  %1634 = vmatprep.subr.bf16.mxu1 %v2270_v52  ;;  %v2366_v51 = vld [vmem:[%s2615_s11 + $0x34c] ss:$16 sps:$4 sm:$0xff]   ;;  %v2361_v52 = vld [vmem:[%s2615_s11 + $0x340] ss:$16 sps:$4 sm:$0xff]  }
  0x56   : > { %1506 = vmatpush1.bf16.msra.mxu0 %v2272_v53  ;;  %1635 = vmatpush1.bf16.msra.mxu1 %v2273_v54  ;;  %v2364_v53 = vld [vmem:[%s2615_s11 + $0x348] ss:$16 sps:$4 sm:$0xff]   ;;  %v2369_v54 = vld [vmem:[%s2615_s11 + $0x364] ss:$16 sps:$4 sm:$0xff]  }
  0x57   : > { %1507 = vmatprep.subr.bf16.mxu0 %v2274_v56  ;;  %1636 = vmatprep.subr.bf16.mxu1 %v2276_v57  ;;  %v2367_v56 = vld [vmem:[%s2615_s11 + $0x360] ss:$16 sps:$4 sm:$0xff]   ;;  %v2370_v57 = vld [vmem:[%s2615_s11 + $0x368] ss:$16 sps:$4 sm:$0xff]  }
  0x5a   : > { %1508 = vmatpush1.bf16.msra.mxu0 %v2278_v58  ;;  %1637 = vmatpush1.bf16.msra.mxu1 %v2279_v59  ;;  %v2375_v58 = vld [vmem:[%s2615_s11 + $0x384] ss:$16 sps:$4 sm:$0xff]   ;;  %v2378_v59 = vld [vmem:[%s2615_s11 + $0x38c] ss:$16 sps:$4 sm:$0xff]  }
  0x5b   : > { %1509 = vmatprep.subr.bf16.mxu0 %v2280_v60  ;;  %1638 = vmatprep.subr.bf16.mxu1 %v2282_v61  ;;  %v2373_v60 = vld [vmem:[%s2615_s11 + $0x380] ss:$16 sps:$4 sm:$0xff]   ;;  %v2376_v61 = vld [vmem:[%s2615_s11 + $0x388] ss:$16 sps:$4 sm:$0xff]  }
  0x5e   : > { %1510 = vmatpush1.bf16.msra.mxu0 %v2284_v62  ;;  %1639 = vmatpush1.bf16.msra.mxu1 %v2285_v63  ;;  %v2381_v62 = vld [vmem:[%s2615_s11 + $0x3a4] ss:$16 sps:$4 sm:$0xff]   ;;  %v2384_v63 = vld [vmem:[%s2615_s11 + $0x3ac] ss:$16 sps:$4 sm:$0xff]  }
  0x5f   : > { %1511 = vmatprep.subr.bf16.mxu0 %v2286_v0  ;;  %1640 = vmatprep.subr.bf16.mxu1 %v2288_v1  ;;  %v2379_v0 = vld [vmem:[%s2615_s11 + $0x3a0] ss:$16 sps:$4 sm:$0xff]   ;;  %v2382_v1 = vld [vmem:[%s2615_s11 + $0x3a8] ss:$16 sps:$4 sm:$0xff]  }
  0x62   : > { %1512 = vmatpush1.bf16.msra.mxu0 %v2290_v2  ;;  %1641 = vmatpush1.bf16.msra.mxu1 %v2291_v3  ;;  %v2387_v2 = vld [vmem:[%s2615_s11 + $0x3c4] ss:$16 sps:$4 sm:$0xff]   ;;  %v2390_v3 = vld [vmem:[%s2615_s11 + $0x3cc] ss:$16 sps:$4 sm:$0xff]  }
  0x63   : > { %1513 = vmatprep.subr.bf16.mxu0 %v2292_v4  ;;  %1642 = vmatprep.subr.bf16.mxu1 %v2294_v5  ;;  %v2385_v4 = vld [vmem:[%s2615_s11 + $0x3c0] ss:$16 sps:$4 sm:$0xff]   ;;  %v2388_v5 = vld [vmem:[%s2615_s11 + $0x3c8] ss:$16 sps:$4 sm:$0xff]  }
  0x66   : > { %1514 = vmatpush1.bf16.msra.mxu0 %v2296_v6  ;;  %1643 = vmatpush1.bf16.msra.mxu1 %v2297_v7  ;;  %v2393_v6 = vld [vmem:[%s2615_s11 + $0x3e4] ss:$16 sps:$4 sm:$0xff]   ;;  %v2396_v7 = vld [vmem:[%s2615_s11 + $0x3ec] ss:$16 sps:$4 sm:$0xff]  }
  0x67   : > { %1526 = vmatprep.subr.bf16.mxu0 %v2303_v8  ;;  %1655 = vmatprep.subr.bf16.mxu1 %v2306_v9  ;;  %v2391_v8 = vld [vmem:[%s2615_s11 + $0x3e0] ss:$16 sps:$4 sm:$0xff]   ;;  %v2394_v9 = vld [vmem:[%s2615_s11 + $0x3e8] ss:$16 sps:$4 sm:$0xff]  }
  0x69   : > { %1516 = vmatmul.mubr.bf16.vlgmr.msra.gmra.mrb[0].mxu0 %v2298_v10  ;;  %1645 = vmatmul.mubr.bf16.vlgmr.msra.gmra.mrb[0].mxu1 %v2298_v10  ;;  %v2402_v10 = vld [vmem:[%s2615_s11 + $0x404] ss:$16 sps:$4 sm:$0xff]  }
  0x6a   : > { %1527 = vmatpush1.bf16.msra.mxu0 %v2301_v11  ;;  %1656 = vmatpush1.bf16.msra.mxu1 %v2304_v12  ;;  %v2405_v11 = vld [vmem:[%s2615_s11 + $0x40c] ss:$16 sps:$4 sm:$0xff]   ;;  %v2397_v12 = vld [vmem:[%s2617_s12 + $0x8] ss:$24 sps:$4 sm:$0xff]  }
  0x6b   : > { %1528 = vmatprep.subr.bf16.mxu0 %v2309_v13  ;;  %1657 = vmatprep.subr.bf16.mxu1 %v2312_v14  ;;  %v2400_v13 = vld [vmem:[%s2615_s11 + $0x400] ss:$16 sps:$4 sm:$0xff]   ;;  %v2403_v14 = vld [vmem:[%s2615_s11 + $0x408] ss:$16 sps:$4 sm:$0xff]  }
  0x6c   : > { %1558 = vmatprep.mubr.bf16.mxu0 %v2399_v37  ;;  %1687 = vmatprep.mubr.bf16.mxu1 %v2399_v37  ;;  %v2441_v37 = vld [vmem:[%s2615_s11 + $0x4cc] ss:$16 sps:$4 sm:$0xff]  }
  0x6e   : > { %1529 = vmatpush1.bf16.msra.mxu0 %v2307_v15  ;;  %1658 = vmatpush1.bf16.msra.mxu1 %v2310_v16  ;;  %v2408_v15 = vld [vmem:[%s2615_s11 + $0x424] ss:$16 sps:$4 sm:$0xff]   ;;  %v2411_v16 = vld [vmem:[%s2615_s11 + $0x42c] ss:$16 sps:$4 sm:$0xff]  }
  0x6f   : > { %1530 = vmatprep.subr.bf16.mxu0 %v2315_v17  ;;  %1659 = vmatprep.subr.bf16.mxu1 %v2318_v18  ;;  %v2498_v17 = vld [vmem:[%s2617_s12 + $0x14] ss:$24 sps:$4 sm:$0xff]   ;;  %v2406_v18 = vld [vmem:[%s2615_s11 + $0x420] ss:$16 sps:$4 sm:$0xff]  }
  0x72   : > { %1531 = vmatpush1.bf16.msra.mxu0 %v2313_v19  ;;  %1660 = vmatpush1.bf16.msra.mxu1 %v2316_v20  ;;  %v2409_v19 = vld [vmem:[%s2615_s11 + $0x428] ss:$16 sps:$4 sm:$0xff]   ;;  %v2414_v20 = vld [vmem:[%s2615_s11 + $0x444] ss:$16 sps:$4 sm:$0xff]  }
  0x73   : > { %1532 = vmatprep.subr.bf16.mxu0 %v2321_v21  ;;  %1661 = vmatprep.subr.bf16.mxu1 %v2324_v22  ;;  %v2417_v21 = vld [vmem:[%s2615_s11 + $0x44c] ss:$16 sps:$4 sm:$0xff]   ;;  %v2412_v22 = vld [vmem:[%s2615_s11 + $0x440] ss:$16 sps:$4 sm:$0xff]  }
  0x76   : > { %1533 = vmatpush1.bf16.msra.mxu0 %v2319_v23  ;;  %1662 = vmatpush1.bf16.msra.mxu1 %v2322_v24  ;;  %v2415_v23 = vld [vmem:[%s2615_s11 + $0x448] ss:$16 sps:$4 sm:$0xff]   ;;  %v2420_v24 = vld [vmem:[%s2615_s11 + $0x464] ss:$16 sps:$4 sm:$0xff]  }
  0x77   : > { %1534 = vmatprep.subr.bf16.mxu0 %v2327_v25  ;;  %1663 = vmatprep.subr.bf16.mxu1 %v2330_v26  ;;  %v2423_v25 = vld [vmem:[%s2615_s11 + $0x46c] ss:$16 sps:$4 sm:$0xff]   ;;  %v2418_v26 = vld [vmem:[%s2615_s11 + $0x460] ss:$16 sps:$4 sm:$0xff]  }
  0x7a   : > { %1535 = vmatpush1.bf16.msra.mxu0 %v2325_v27  ;;  %1664 = vmatpush1.bf16.msra.mxu1 %v2328_v28  ;;  %v2421_v27 = vld [vmem:[%s2615_s11 + $0x468] ss:$16 sps:$4 sm:$0xff]   ;;  %v2426_v28 = vld [vmem:[%s2615_s11 + $0x484] ss:$16 sps:$4 sm:$0xff]  }
  0x7b   : > { %1536 = vmatprep.subr.bf16.mxu0 %v2333_v29  ;;  %1665 = vmatprep.subr.bf16.mxu1 %v2336_v30  ;;  %v2429_v29 = vld [vmem:[%s2615_s11 + $0x48c] ss:$16 sps:$4 sm:$0xff]   ;;  %v2424_v30 = vld [vmem:[%s2615_s11 + $0x480] ss:$16 sps:$4 sm:$0xff]  }
  0x7e   : > { %1537 = vmatpush1.bf16.msra.mxu0 %v2331_v31  ;;  %1666 = vmatpush1.bf16.msra.mxu1 %v2334_v32  ;;  %v2427_v31 = vld [vmem:[%s2615_s11 + $0x488] ss:$16 sps:$4 sm:$0xff]   ;;  %v2432_v32 = vld [vmem:[%s2615_s11 + $0x4a4] ss:$16 sps:$4 sm:$0xff]  }
  0x7f   : > { %1538 = vmatprep.subr.bf16.mxu0 %v2339_v33  ;;  %1667 = vmatprep.subr.bf16.mxu1 %v2342_v34  ;;  %v2435_v33 = vld [vmem:[%s2615_s11 + $0x4ac] ss:$16 sps:$4 sm:$0xff]   ;;  %v2430_v34 = vld [vmem:[%s2615_s11 + $0x4a0] ss:$16 sps:$4 sm:$0xff]  }
  0x82   : > { %1539 = vmatpush1.bf16.msra.mxu0 %v2337_v35  ;;  %1668 = vmatpush1.bf16.msra.mxu1 %v2340_v36  ;;  %v2433_v35 = vld [vmem:[%s2615_s11 + $0x4a8] ss:$16 sps:$4 sm:$0xff]   ;;  %v2438_v36 = vld [vmem:[%s2615_s11 + $0x4c4] ss:$16 sps:$4 sm:$0xff]  }
  0x83   : > { %1540 = vmatprep.subr.bf16.mxu0 %v2345_v38  ;;  %1669 = vmatprep.subr.bf16.mxu1 %v2348_v39  ;;  %v2436_v38 = vld [vmem:[%s2615_s11 + $0x4c0] ss:$16 sps:$4 sm:$0xff]   ;;  %v2439_v39 = vld [vmem:[%s2615_s11 + $0x4c8] ss:$16 sps:$4 sm:$0xff]  }
  0x86   : > { %1541 = vmatpush1.bf16.msra.mxu0 %v2343_v40  ;;  %1670 = vmatpush1.bf16.msra.mxu1 %v2346_v41  ;;  %v2444_v40 = vld [vmem:[%s2615_s11 + $0x4e4] ss:$16 sps:$4 sm:$0xff]   ;;  %v2447_v41 = vld [vmem:[%s2615_s11 + $0x4ec] ss:$16 sps:$4 sm:$0xff]  }
  0x87   : > { %1542 = vmatprep.subr.bf16.mxu0 %v2351_v42  ;;  %1671 = vmatprep.subr.bf16.mxu1 %v2354_v43  ;;  %v2442_v42 = vld [vmem:[%s2615_s11 + $0x4e0] ss:$16 sps:$4 sm:$0xff]   ;;  %v2445_v43 = vld [vmem:[%s2615_s11 + $0x4e8] ss:$16 sps:$4 sm:$0xff]  }
  0x8a   : > { %1543 = vmatpush1.bf16.msra.mxu0 %v2349_v44  ;;  %1672 = vmatpush1.bf16.msra.mxu1 %v2352_v45  ;;  %v2450_v44 = vld [vmem:[%s2615_s11 + $0x504] ss:$16 sps:$4 sm:$0xff]   ;;  %v2453_v45 = vld [vmem:[%s2615_s11 + $0x50c] ss:$16 sps:$4 sm:$0xff]  }
  0x8b   : > { %1544 = vmatprep.subr.bf16.mxu0 %v2357_v46  ;;  %1673 = vmatprep.subr.bf16.mxu1 %v2360_v47  ;;  %v2448_v46 = vld [vmem:[%s2615_s11 + $0x500] ss:$16 sps:$4 sm:$0xff]   ;;  %v2451_v47 = vld [vmem:[%s2615_s11 + $0x508] ss:$16 sps:$4 sm:$0xff]  }
  0x8e   : > { %1545 = vmatpush1.bf16.msra.mxu0 %v2355_v48  ;;  %1674 = vmatpush1.bf16.msra.mxu1 %v2358_v49  ;;  %v2456_v48 = vld [vmem:[%s2615_s11 + $0x524] ss:$16 sps:$4 sm:$0xff]   ;;  %v2459_v49 = vld [vmem:[%s2615_s11 + $0x52c] ss:$16 sps:$4 sm:$0xff]  }
  0x8f   : > { %1546 = vmatprep.subr.bf16.mxu0 %v2363_v50  ;;  %1675 = vmatprep.subr.bf16.mxu1 %v2366_v51  ;;  %v2454_v50 = vld [vmem:[%s2615_s11 + $0x520] ss:$16 sps:$4 sm:$0xff]   ;;  %v2457_v51 = vld [vmem:[%s2615_s11 + $0x528] ss:$16 sps:$4 sm:$0xff]  }
  0x92   : > { %1547 = vmatpush1.bf16.msra.mxu0 %v2361_v52  ;;  %1676 = vmatpush1.bf16.msra.mxu1 %v2364_v53  ;;  %v2462_v52 = vld [vmem:[%s2615_s11 + $0x544] ss:$16 sps:$4 sm:$0xff]   ;;  %v2465_v53 = vld [vmem:[%s2615_s11 + $0x54c] ss:$16 sps:$4 sm:$0xff]  }
  0x93   : > { %1548 = vmatprep.subr.bf16.mxu0 %v2369_v54  ;;  %1677 = vmatprep.subr.bf16.mxu1 %v2372_v55  ;;  %v2460_v54 = vld [vmem:[%s2615_s11 + $0x540] ss:$16 sps:$4 sm:$0xff]   ;;  %v2463_v55 = vld [vmem:[%s2615_s11 + $0x548] ss:$16 sps:$4 sm:$0xff]  }
  0x96   : > { %1549 = vmatpush1.bf16.msra.mxu0 %v2367_v56  ;;  %1678 = vmatpush1.bf16.msra.mxu1 %v2370_v57  ;;  %v2468_v56 = vld [vmem:[%s2615_s11 + $0x564] ss:$16 sps:$4 sm:$0xff]   ;;  %v2471_v57 = vld [vmem:[%s2615_s11 + $0x56c] ss:$16 sps:$4 sm:$0xff]  }
  0x97   : > { %1550 = vmatprep.subr.bf16.mxu0 %v2375_v58  ;;  %1679 = vmatprep.subr.bf16.mxu1 %v2378_v59  ;;  %v2466_v58 = vld [vmem:[%s2615_s11 + $0x560] ss:$16 sps:$4 sm:$0xff]   ;;  %v2469_v59 = vld [vmem:[%s2615_s11 + $0x568] ss:$16 sps:$4 sm:$0xff]  }
  0x9a   : > { %1551 = vmatpush1.bf16.msra.mxu0 %v2373_v60  ;;  %1680 = vmatpush1.bf16.msra.mxu1 %v2376_v61  ;;  %v2474_v60 = vld [vmem:[%s2615_s11 + $0x584] ss:$16 sps:$4 sm:$0xff]   ;;  %v2477_v61 = vld [vmem:[%s2615_s11 + $0x58c] ss:$16 sps:$4 sm:$0xff]  }
  0x9b   : > { %1552 = vmatprep.subr.bf16.mxu0 %v2381_v62  ;;  %1681 = vmatprep.subr.bf16.mxu1 %v2384_v63  ;;  %v2472_v62 = vld [vmem:[%s2615_s11 + $0x580] ss:$16 sps:$4 sm:$0xff]   ;;  %v2475_v63 = vld [vmem:[%s2615_s11 + $0x588] ss:$16 sps:$4 sm:$0xff]  }
  0x9e   : > { %1553 = vmatpush1.bf16.msra.mxu0 %v2379_v0  ;;  %1682 = vmatpush1.bf16.msra.mxu1 %v2382_v1  ;;  %v2480_v0 = vld [vmem:[%s2615_s11 + $0x5a4] ss:$16 sps:$4 sm:$0xff]   ;;  %v2483_v1 = vld [vmem:[%s2615_s11 + $0x5ac] ss:$16 sps:$4 sm:$0xff]  }
  0x9f   : > { %1554 = vmatprep.subr.bf16.mxu0 %v2387_v2  ;;  %1683 = vmatprep.subr.bf16.mxu1 %v2390_v3  ;;  %v2478_v2 = vld [vmem:[%s2615_s11 + $0x5a0] ss:$16 sps:$4 sm:$0xff]   ;;  %v2481_v3 = vld [vmem:[%s2615_s11 + $0x5a8] ss:$16 sps:$4 sm:$0xff]  }
  0xa2   : > { %1555 = vmatpush1.bf16.msra.mxu0 %v2385_v4  ;;  %1684 = vmatpush1.bf16.msra.mxu1 %v2388_v5  ;;  %v2486_v4 = vld [vmem:[%s2615_s11 + $0x5c4] ss:$16 sps:$4 sm:$0xff]   ;;  %v2489_v5 = vld [vmem:[%s2615_s11 + $0x5cc] ss:$16 sps:$4 sm:$0xff]  }
  0xa3   : > { %1556 = vmatprep.subr.bf16.mxu0 %v2393_v6  ;;  %1685 = vmatprep.subr.bf16.mxu1 %v2396_v7  ;;  %v2484_v6 = vld [vmem:[%s2615_s11 + $0x5c0] ss:$16 sps:$4 sm:$0xff]   ;;  %v2487_v7 = vld [vmem:[%s2615_s11 + $0x5c8] ss:$16 sps:$4 sm:$0xff]  }
  0xa6   : > { %1557 = vmatpush1.bf16.msra.mxu0 %v2391_v8  ;;  %1686 = vmatpush1.bf16.msra.mxu1 %v2394_v9  ;;  %v2492_v8 = vld [vmem:[%s2615_s11 + $0x5e4] ss:$16 sps:$4 sm:$0xff]   ;;  %v2495_v9 = vld [vmem:[%s2615_s11 + $0x5ec] ss:$16 sps:$4 sm:$0xff]  }
  0xa7   : > { %1569 = vmatprep.subr.bf16.mxu0 %v2402_v10  ;;  %1698 = vmatprep.subr.bf16.mxu1 %v2405_v11  ;;  %v2490_v10 = vld [vmem:[%s2615_s11 + $0x5e0] ss:$16 sps:$4 sm:$0xff]   ;;  %v2493_v11 = vld [vmem:[%s2615_s11 + $0x5e8] ss:$16 sps:$4 sm:$0xff]  }
  0xa9   : > { %1559 = vmatmul.mubr.bf16.vlgmr.msra.gmra.mrb[0].mxu0 %v2397_v12  ;;  %1688 = vmatmul.mubr.bf16.vlgmr.msra.gmra.mrb[0].mxu1 %v2397_v12  ;;  %v2496_v12 = vld [vmem:[%s2617_s12 + $0x10] ss:$24 sps:$4 sm:$0xff]  }
  0xaa   : > { %1570 = vmatpush1.bf16.msra.mxu0 %v2400_v13  ;;  %1699 = vmatpush1.bf16.msra.mxu1 %v2403_v14  ;;  %v287_v13 = vld [vmem:[%s2964_s4] sm:$0xff]  ;;  %v289_v14 = vld [vmem:[%s2964_s4 + $0x10] sm:$0xff] }
  0xab   : > { %1571 = vmatprep.subr.bf16.mxu0 %v2408_v15  ;;  %1700 = vmatprep.subr.bf16.mxu1 %v2411_v16  ;;  %v288_v15 = vld [vmem:[%s2964_s4 + $0x8] sm:$0xff]  ;;  %v290_v16 = vld [vmem:[%s2964_s4 + $0x18] sm:$0xff] }
  0xac   : > { %1601 = vmatprep.mubr.bf16.mxu0 %v2498_v17  ;;  %1730 = vmatprep.mubr.bf16.mxu1 %v2498_v17 }
  0xae   : > { %1572 = vmatpush1.bf16.msra.mxu0 %v2406_v18  ;;  %1701 = vmatpush1.bf16.msra.mxu1 %v2409_v19  ;;  %v291_v19 = vld [vmem:[%s2964_s4 + $0x20] sm:$0xff] }
  0xaf   : > { %1573 = vmatprep.subr.bf16.mxu0 %v2414_v20  ;;  %1702 = vmatprep.subr.bf16.mxu1 %v2417_v21  ;;  %v293_v20 = vld [vmem:[%s2964_s4 + $0x30] sm:$0xff] }
  0xb2   : > { %1574 = vmatpush1.bf16.msra.mxu0 %v2412_v22  ;;  %1703 = vmatpush1.bf16.msra.mxu1 %v2415_v23 }
  0xb3   : > { %1575 = vmatprep.subr.bf16.mxu0 %v2420_v24  ;;  %1704 = vmatprep.subr.bf16.mxu1 %v2423_v25  ;;  %v292_v25 = vld [vmem:[%s2964_s4 + $0x28] sm:$0xff] }
  0xb6   : > { %1576 = vmatpush1.bf16.msra.mxu0 %v2418_v26  ;;  %1705 = vmatpush1.bf16.msra.mxu1 %v2421_v27  ;;  %v294_v26 = vld [vmem:[%s2964_s4 + $0x38] sm:$0xff] }
  0xb7   : > { %1577 = vmatprep.subr.bf16.mxu0 %v2426_v28  ;;  %1706 = vmatprep.subr.bf16.mxu1 %v2429_v29 }
  0xba   : > { %1578 = vmatpush1.bf16.msra.mxu0 %v2424_v30  ;;  %1707 = vmatpush1.bf16.msra.mxu1 %v2427_v31 }
  0xbb   : > { %1579 = vmatprep.subr.bf16.mxu0 %v2432_v32  ;;  %1708 = vmatprep.subr.bf16.mxu1 %v2435_v33 }
  0xbe   : > { %1580 = vmatpush1.bf16.msra.mxu0 %v2430_v34  ;;  %1709 = vmatpush1.bf16.msra.mxu1 %v2433_v35 }
  0xbf   : > { %1581 = vmatprep.subr.bf16.mxu0 %v2438_v36  ;;  %1710 = vmatprep.subr.bf16.mxu1 %v2441_v37  ;;  %v1772_v37 = vlaneseq (!%p2136_p11) }
  0xc2   : > { %1582 = vmatpush1.bf16.msra.mxu0 %v2436_v38  ;;  %1711 = vmatpush1.bf16.msra.mxu1 %v2439_v39  ;;  %v1773_v38 = vshrl.u32 (!%p2136_p11), %v1772_v37, 7  ;;  %v1769_v39 = vld [vmem:[%s2962_s2] sm:$0xf] (!%p2136_p11) }
  0xc3   : > { %1583 = vmatprep.subr.bf16.mxu0 %v2444_v40  ;;  %1712 = vmatprep.subr.bf16.mxu1 %v2447_v41  ;;  %v1770_v40 = vld [vmem:[%s2963_s3] sm:$0xf] (!%p2136_p11) }
  0xc6   : > { %1584 = vmatpush1.bf16.msra.mxu0 %v2442_v42  ;;  %1713 = vmatpush1.bf16.msra.mxu1 %v2445_v43  ;;  %v1774_v42 = vsub.s32 (!%p2136_p11), 0, %v1773_v38 }
  0xc7   : > { %1585 = vmatprep.subr.bf16.mxu0 %v2450_v44  ;;  %1714 = vmatprep.subr.bf16.mxu1 %v2453_v45  ;;  %v1778_v44 = vsub.s32 (!%p2136_p11), 1, %v1773_v38  ;;  %v1782_v45 = vsub.s32 (!%p2136_p11), 2, %v1773_v38 }
  0xca   : > { %1586 = vmatpush1.bf16.msra.mxu0 %v2448_v46  ;;  %1715 = vmatpush1.bf16.msra.mxu1 %v2451_v47  ;;  %v1786_v46 = vsub.s32 (!%p2136_p11), 3, %v1773_v38 }
  0xcb   : > { %1587 = vmatprep.subr.bf16.mxu0 %v2456_v48  ;;  %1716 = vmatprep.subr.bf16.mxu1 %v2459_v49 }
  0xce   : > { %1588 = vmatpush1.bf16.msra.mxu0 %v2454_v50  ;;  %1717 = vmatpush1.bf16.msra.mxu1 %v2457_v51  ;;  %v1775_v50 = vrot.slane (!%p2136_p11), %v1769_v39, %v1774_v42  ;;  %v1804_v51 = vrot.slane (!%p2136_p11), %v1770_v40, %v1774_v42 }
  0xcf   : > { %1589 = vmatprep.subr.bf16.mxu0 %v2462_v52  ;;  %1718 = vmatprep.subr.bf16.mxu1 %v2465_v53  ;;  %v1779_v52 = vrot.slane (!%p2136_p11), %v1769_v39, %v1778_v44  ;;  %v1808_v53 = vrot.slane (!%p2136_p11), %v1770_v40, %v1778_v44 }
  0xd2   : > { %1590 = vmatpush1.bf16.msra.mxu0 %v2460_v54  ;;  %1719 = vmatpush1.bf16.msra.mxu1 %v2463_v55 }
  0xd3   : > { %1591 = vmatprep.subr.bf16.mxu0 %v2468_v56  ;;  %1720 = vmatprep.subr.bf16.mxu1 %v2471_v57  ;;  %v1783_v57 = vrot.slane (!%p2136_p11), %v1769_v39, %v1782_v45 }
  0xd6   : > { %1592 = vmatpush1.bf16.msra.mxu0 %v2466_v58  ;;  %1721 = vmatpush1.bf16.msra.mxu1 %v2469_v59  ;;  %v1812_v58 = vrot.slane (!%p2136_p11), %v1770_v40, %v1782_v45  ;;  %v1787_v59 = vrot.slane (!%p2136_p11), %v1769_v39, %v1786_v46 }
  0xd7   : > { %1593 = vmatprep.subr.bf16.mxu0 %v2474_v60  ;;  %1722 = vmatprep.subr.bf16.mxu1 %v2477_v61  ;;  %v1816_v60 = vrot.slane (!%p2136_p11), %v1770_v40, %v1786_v46 }
  0xda   : > { %1594 = vmatpush1.bf16.msra.mxu0 %v2472_v62  ;;  %1723 = vmatpush1.bf16.msra.mxu1 %v2475_v63 }
  0xdb   : > { %1595 = vmatprep.subr.bf16.mxu0 %v2480_v0  ;;  %1724 = vmatprep.subr.bf16.mxu1 %v2483_v1 }
  0xde   : > { %1596 = vmatpush1.bf16.msra.mxu0 %v2478_v2  ;;  %1725 = vmatpush1.bf16.msra.mxu1 %v2481_v3 }
  0xdf   : > { %1597 = vmatprep.subr.bf16.mxu0 %v2486_v4  ;;  %1726 = vmatprep.subr.bf16.mxu1 %v2489_v5 }
  0xe2   : > { %1598 = vmatpush1.bf16.msra.mxu0 %v2484_v6  ;;  %1727 = vmatpush1.bf16.msra.mxu1 %v2487_v7 }
  0xe3   : > { %1599 = vmatprep.subr.bf16.mxu0 %v2492_v8  ;;  %1728 = vmatprep.subr.bf16.mxu1 %v2495_v9 }
  0xe6   : > { %1600 = vmatpush1.bf16.msra.mxu0 %v2490_v10  ;;  %1729 = vmatpush1.bf16.msra.mxu1 %v2493_v11 }
  0xe9   : > { %1602 = vmatmul.mubr.bf16.vlgmr.msra.gmra.mrb[0].mxu0 %v2496_v12  ;;  %1731 = vmatmul.mubr.bf16.vlgmr.msra.gmra.mrb[0].mxu1 %v2496_v12 }
 0x1bc   : > { %v1603_v17 = vpop.f32.mrb[0].mxu0  ;;  %v1732_v18 = vpop.f32.mrb[0].mxu1  ;;  %1760 = sbr.rel (%p2136_p11) target bundleno = 465 (0x1d1), region = 67 }
 0x1bd   : > { %v1741_v21 = vadd.f32 %v1603_v17, %v287_v13  ;;  %v1743_v22 = vadd.f32 %v1732_v18, %v289_v14  ;;  %v1605_v23 = vpop.f32.mrb[1].mxu0  ;;  %v1734_v24 = vpop.f32.mrb[1].mxu1 }
 0x1be   : > { %v1742_v27 = vadd.f32 %v1605_v23, %v288_v15  ;;  %v1744_v28 = vadd.f32 %v1734_v24, %v290_v16  ;;  %v1607_v29 = vpop.f32.mrb[2].mxu0  ;;  %v1736_v30 = vpop.f32.mrb[2].mxu1 }
 0x1bf   : > { %1749 = vst [vmem:[%s2964_s4] sm:$0xff] %v1741_v21  ;;  %1751 = vst [vmem:[%s2964_s4 + $0x10] sm:$0xff] %v1743_v22  ;;  %v1745_v31 = vadd.f32 %v1607_v29, %v291_v19  ;;  %v1747_v32 = vadd.f32 %v1736_v30, %v293_v20  ;;  %v1609_v33 = vpop.f32.mrb[3].mxu0  ;;  %v1738_v34 = vpop.f32.mrb[3].mxu1 }
 0x1c0   : > { %1750 = vst [vmem:[%s2964_s4 + $0x8] sm:$0xff] %v1742_v27  ;;  %1752 = vst [vmem:[%s2964_s4 + $0x18] sm:$0xff] %v1744_v28  ;;  %v1746_v35 = vadd.f32 %v1609_v33, %v292_v25  ;;  %v1748_v36 = vadd.f32 %v1738_v34, %v294_v26 }
 0x1c1   : > { %1753 = vst [vmem:[%s2964_s4 + $0x20] sm:$0xff] %v1745_v31  ;;  %1755 = vst [vmem:[%s2964_s4 + $0x30] sm:$0xff] %v1747_v32 }
 0x1c2   : > { %1754 = vst [vmem:[%s2964_s4 + $0x28] sm:$0xff] %v1746_v35  ;;  %1756 = vst [vmem:[%s2964_s4 + $0x38] sm:$0xff] %v1748_v36 }
 0x1c6   : > { %v1761_v41 = vld [vmem:[%s2964_s4] sm:$0xff]  ;;  %v1763_v47 = vld [vmem:[%s2964_s4 + $0x10] sm:$0xff] }
 0x1c7   : > { %v1762_v43 = vld [vmem:[%s2964_s4 + $0x8] sm:$0xff]  ;;  %v1764_v54 = vld [vmem:[%s2964_s4 + $0x18] sm:$0xff]  ;;  %v1792_v61 = vmul.f32 %v1775_v50, %v1761_v41  ;;  %v1794_v1 = vmul.f32 %v1783_v57, %v1763_v47 }
 0x1c8   : > { %v1765_v48 = vld [vmem:[%s2964_s4 + $0x20] sm:$0xff]  ;;  %v1767_v55 = vld [vmem:[%s2964_s4 + $0x30] sm:$0xff]  ;;  %v1793_v62 = vmul.f32 %v1779_v52, %v1762_v43  ;;  %v1795_v2 = vmul.f32 %v1787_v59, %v1764_v54 }
 0x1c9   : > { %v1766_v49 = vld [vmem:[%s2964_s4 + $0x28] sm:$0xff]  ;;  %v1768_v56 = vld [vmem:[%s2964_s4 + $0x38] sm:$0xff]  ;;  %v1796_v63 = vmul.f32 %v1775_v50, %v1765_v48  ;;  %v1798_v3 = vmul.f32 %v1783_v57, %v1767_v55  ;;  %v1821_v5 = vadd.f32 %v1804_v51, %v1792_v61  ;;  %v1823_v9 = vadd.f32 %v1812_v58, %v1794_v1 }
 0x1ca   : > { %v1797_v0 = vmul.f32 %v1779_v52, %v1766_v49  ;;  %v1799_v4 = vmul.f32 %v1787_v59, %v1768_v56  ;;  %v1822_v6 = vadd.f32 %v1808_v53, %v1793_v62  ;;  %v1824_v10 = vadd.f32 %v1816_v60, %v1795_v2 }
 0x1cb   : > { %v1825_v7 = vadd.f32 %v1804_v51, %v1796_v63  ;;  %v1827_v11 = vadd.f32 %v1812_v58, %v1798_v3  ;;  %v1829_v13 = vmax.f32 %v1821_v5, 0.0  ;;  %v1831_v17 = vmax.f32 %v1823_v9, 0.0 }
 0x1cc   : > { %v1826_v8 = vadd.f32 %v1808_v53, %v1797_v0  ;;  %v1828_v12 = vadd.f32 %v1816_v60, %v1799_v4  ;;  %v1830_v14 = vmax.f32 %v1822_v6, 0.0  ;;  %v1832_v18 = vmax.f32 %v1824_v10, 0.0 }
 0x1cd   : > { %v1833_v15 = vmax.f32 %v1825_v7, 0.0  ;;  %v1835_v19 = vmax.f32 %v1827_v11, 0.0  ;;  %1837 = vst [vmem:[%s2964_s4] sm:$0xff] %v1829_v13  ;;  %1839 = vst [vmem:[%s2964_s4 + $0x10] sm:$0xff] %v1831_v17 }
 0x1ce   : > { %v1834_v16 = vmax.f32 %v1826_v8, 0.0  ;;  %v1836_v20 = vmax.f32 %v1828_v12, 0.0  ;;  %1838 = vst [vmem:[%s2964_s4 + $0x8] sm:$0xff] %v1830_v14  ;;  %1840 = vst [vmem:[%s2964_s4 + $0x18] sm:$0xff] %v1832_v18 }
 0x1cf   : > { %1841 = vst [vmem:[%s2964_s4 + $0x20] sm:$0xff] %v1833_v15  ;;  %1843 = vst [vmem:[%s2964_s4 + $0x30] sm:$0xff] %v1835_v19 }
 0x1d0   : > { %1842 = vst [vmem:[%s2964_s4 + $0x28] sm:$0xff] %v1834_v16  ;;  %1844 = vst [vmem:[%s2964_s4 + $0x38] sm:$0xff] %v1836_v20 }
 0x1d1 PF: > { %s14_s19 = sadd.s32 1, %s2537_s19   ;;  %s2965_s15 = smov %s2525_s16 }
 0x1d2   : > { %p11_p12 = scmp.ge.s32.totalorder %s14_s19, 8   ;;  %s2966_s16 = smov %s2600_s23 }
 0x1d3   : > { %s2967_s17 = smov %s2533_s18  ;;  %s2968_s18 = smov %s2970_s20 }
 0x1d4   :  { %13 = sbr.rel (!%p11_p12) target bundleno = 3 (0x3), region = 105 }

// kernel: resnet_feature_forward.40
= control target key start
LH: loop header
LB: loop body
LE: loop exit
PB: predicated region body
PF: predicated region fallthrough
CT: control target
= control target key end

     0   :  { %s2654_s18 = smov 0   ;;  %s2656_s19 = smov 0   ;;  %s3073_s0 = inlined_call_operand.vmem [shape: bf16[16,4608], index: 0, kind: input, shape index: {}]   ;;  %s3074_s1 = inlined_call_operand.vmem [shape: bf16[4608,512], index: 1, kind: input, shape index: {}]   ;;  %s3075_s2 = inlined_call_operand.vmem [shape: f32[1,512], index: 2, kind: input, shape index: {}]   ;;  %s3076_s3 = inlined_call_operand.vmem [shape: f32[1,512], index: 3, kind: input, shape index: {}]   ;;  %s3077_s4 = inlined_call_operand.vmem [shape: f32[16,512], index: 4, kind: input, shape index: {}]   ;;  %s3078_s5 = inlined_call_operand.vmem [shape: f32[16,512], index: 5, kind: output, shape index: {}]  }
   0x1   :  { %s2658_s20 = smov 0   ;;  %s2660_s21 = smov 0  }
   0x2   :  { %s2662_s22 = smov 0  }
   0x3 LB: > { %s24_s23 = sadd.s32 1, %s2617_s21  ;;  %p43_p1 = scmp.ne.s32.totalorder %s2609_s19, %s2605_s18  ;;  %s2621_s22 = sphi %s2662_s22, %s15_s22   ;;  %s2617_s21 = sphi %s2660_s21, %s3082_s21   ;;  %s2613_s20 = sphi %s2658_s20, %s3081_s20   ;;  %s2609_s19 = sphi %s2656_s19, %s3080_s19   ;;  %s2605_s18 = sphi %s2654_s18, %s3079_s18  }
   0x4   : > { %p25_p0 = scmp.ge.s32.totalorder %s24_s23, 6  ;;  %p44_p2 = scmp.eq.s32.totalorder %s2621_s22, 0 }
   0x5   : > { %s36_s25 = sadd.s32 1, %s2609_s19  ;;  %p2016_p5 = scmp.ge.s32.totalorder %s2621_s22, 6 }
   0x6   : > { %s3084_s23 = smov (%p25_p0, %s24_s23), 0  ;;  %p45_p3 = por %p44_p2, %p43_p1 }
   0x7   : > { %s32_s24 = ssub.s32 %s2617_s21, %s3084_s23  ;;  %205 = sbr.rel (%p2016_p5) target bundleno = 22 (0x16), region = 28 }
   0x8   : > { %p34_p4 = scmp.eq.s32.totalorder %s32_s24, 0 }
   0xa   : > { %s2689_s26 = scalar_select %p34_p4, %s2609_s19, %s36_s25  }
   0xe   : > { %208 = sbr.rel (!%p45_p3) target bundleno = 22 (0x16), region = 32  ;;  %s210_s27 = sand.u32 (%p45_p3), 1, %s2609_s19  }
   0xf   : > { %s2225_s28 = smul.u32 (%p45_p3), 24, %s2617_s21 }
  0x10   : > { %s2243_s29 = smul.u32 (%p45_p3), 48, %s210_s27 }
  0x11   : > { %s218_s7 = scalar_lea.vmem (%p45_p3), %s3073_s0, %s2225_s28 }
  0x12   : > { %v231_v0 = vld [vmem:[%s218_s7] sm:$0xff] (%p45_p3)  ;;  %v233_v1 = vld [vmem:[%s218_s7 + $0x8] sm:$0xff] (%p45_p3)  ;;  %v235_v2 = vld [vmem:[%s218_s7 + $0x10] sm:$0xff] (%p45_p3)  ;;  %s212_s8 = scalar_lea.vmem (%p45_p3), [#allocation2], %s2243_s29 }
  0x13   : > { %232 = vst [vmem:[%s212_s8] sm:$0xff] (%p45_p3), %v231_v0  ;;  %234 = vst [vmem:[%s212_s8 + $0x8] sm:$0xff] (%p45_p3), %v233_v1  ;;  %v237_v3 = vld [vmem:[%s218_s7 + $0x90] sm:$0xff] (%p45_p3)  ;;  %v239_v4 = vld [vmem:[%s218_s7 + $0x98] sm:$0xff] (%p45_p3) }
  0x14   : > { %236 = vst [vmem:[%s212_s8 + $0x10] sm:$0xff] (%p45_p3), %v235_v2  ;;  %v241_v5 = vld [vmem:[%s218_s7 + $0xa0] sm:$0xff] (%p45_p3)  ;;  %238 = vst [vmem:[%s212_s8 + $0x18] sm:$0xff] (%p45_p3), %v237_v3 }
  0x15   : > { %240 = vst [vmem:[%s212_s8 + $0x20] sm:$0xff] %v239_v4  ;;  %242 = vst [vmem:[%s212_s8 + $0x28] sm:$0xff] %v241_v5 }
  0x16 PF: > { %p2018_p6 = scmp.ge.s32.totalorder %s2621_s22, 1  ;;  %p257_p7 = scmp.lt.s32.totalorder %s2621_s22, 7 }
  0x18   : > { %p258_p8 = pnand %p2018_p6, %p257_p7 }
  0x19   : > { %s264_s9 = sand.u32 (!%p258_p8), 1, %s2605_s18   ;;  %s306_s10 = smul.u32 (!%p258_p8), 96, %s2613_s20 }
  0x1a   : > { %261 = sbr.rel (%p258_p8) target bundleno = 467 (0x1d3), region = 59  ;;  %p2021_p10 = scmp.ne.s32.totalorder (!%p258_p8), %s2613_s20, 0 }
  0x1b   : > { %s2244_s11 = smul.u32 (!%p258_p8), 48, %s264_s9  ;;  %p307_p9 = scmp.lt.s32.totalorder (!%p258_p8), %s306_s10, 575 }
  0x1d   : > { %s2706_s16 = scalar_lea.vmem (!%p258_p8), [#allocation2], %s2244_s11 }
  0x21   : > { %s3086_s10 = smov (!%p307_p9, %s306_s10), 575  ;;  %330 = sbr.rel (%p2021_p10) target bundleno = 40 (0x28), region = 67 }
  0x22   : > { %s2226_s12 = sshll.u32 %s3086_s10, 4  ;;  %v2623_v6 = vmov (!%p2021_p10), 0.0  }
  0x23   : > { %s2704_s15 = scalar_lea.vmem %s3074_s1, %s2226_s12  ;;  %331 = vst [vmem:[%s3078_s5] sm:$0xff] (!%p2021_p10), %v2623_v6  ;;  %332 = vst [vmem:[%s3078_s5 + $0x8] sm:$0xff] (!%p2021_p10), %v2623_v6 }
  0x24   : > { %333 = vst [vmem:[%s3078_s5 + $0x10] sm:$0xff] (!%p2021_p10), %v2623_v6  ;;  %334 = vst [vmem:[%s3078_s5 + $0x18] sm:$0xff] (!%p2021_p10), %v2623_v6 }
  0x25   : > { %335 = vst [vmem:[%s3078_s5 + $0x20] sm:$0xff] (!%p2021_p10), %v2623_v6  ;;  %336 = vst [vmem:[%s3078_s5 + $0x28] sm:$0xff] (!%p2021_p10), %v2623_v6 }
  0x26   : > { %337 = vst [vmem:[%s3078_s5 + $0x30] sm:$0xff] (!%p2021_p10), %v2623_v6  ;;  %338 = vst [vmem:[%s3078_s5 + $0x38] sm:$0xff] (!%p2021_p10), %v2623_v6 }
  0x28 PF: > { %v2286_v7 = vld [vmem:[%s2704_s15 + $0x4] ss:$16 sps:$4 sm:$0xff]   ;;  %v2288_v8 = vld [vmem:[%s2704_s15 + $0xc] ss:$16 sps:$4 sm:$0xff]   ;;  %v2290_v9 = vld [vmem:[%s2704_s15] ss:$16 sps:$4 sm:$0xff]  }
  0x29   : > { %1535 = vmatprep.subr.bf16.mxu0 %v2286_v7  ;;  %v2291_v10 = vld [vmem:[%s2704_s15 + $0x8] ss:$16 sps:$4 sm:$0xff]   ;;  %1664 = vmatprep.subr.bf16.mxu1 %v2288_v8  ;;  %v2292_v11 = vld [vmem:[%s2704_s15 + $0x24] ss:$16 sps:$4 sm:$0xff]   ;;  %v2294_v12 = vld [vmem:[%s2704_s15 + $0x2c] ss:$16 sps:$4 sm:$0xff]  }
  0x2a   : > { %1536 = vmatpush1.bf16.msra.mxu0 %v2290_v9  ;;  %1665 = vmatpush1.bf16.msra.mxu1 %v2291_v10  ;;  %v2296_v13 = vld [vmem:[%s2704_s15 + $0x20] ss:$16 sps:$4 sm:$0xff]   ;;  %v2297_v14 = vld [vmem:[%s2704_s15 + $0x28] ss:$16 sps:$4 sm:$0xff]   ;;  %v2298_v15 = vld [vmem:[%s2704_s15 + $0x44] ss:$16 sps:$4 sm:$0xff]  }
  0x2b   : > { %1537 = vmatprep.subr.bf16.mxu0 %v2292_v11  ;;  %1666 = vmatprep.subr.bf16.mxu1 %v2294_v12  ;;  %v2300_v16 = vld [vmem:[%s2704_s15 + $0x4c] ss:$16 sps:$4 sm:$0xff]   ;;  %v2302_v17 = vld [vmem:[%s2704_s15 + $0x40] ss:$16 sps:$4 sm:$0xff]   ;;  %v2303_v18 = vld [vmem:[%s2704_s15 + $0x48] ss:$16 sps:$4 sm:$0xff]  }
  0x2c   : > { %v2304_v19 = vld [vmem:[%s2704_s15 + $0x64] ss:$16 sps:$4 sm:$0xff]   ;;  %v2306_v20 = vld [vmem:[%s2704_s15 + $0x6c] ss:$16 sps:$4 sm:$0xff]   ;;  %v2308_v21 = vld [vmem:[%s2704_s15 + $0x60] ss:$16 sps:$4 sm:$0xff]  }
  0x2d   : > { %v2309_v22 = vld [vmem:[%s2704_s15 + $0x68] ss:$16 sps:$4 sm:$0xff]   ;;  %v2310_v23 = vld [vmem:[%s2704_s15 + $0x84] ss:$16 sps:$4 sm:$0xff]   ;;  %v2312_v24 = vld [vmem:[%s2704_s15 + $0x8c] ss:$16 sps:$4 sm:$0xff]  }
  0x2e   : > { %1538 = vmatpush1.bf16.msra.mxu0 %v2296_v13  ;;  %1667 = vmatpush1.bf16.msra.mxu1 %v2297_v14  ;;  %v2314_v25 = vld [vmem:[%s2704_s15 + $0x80] ss:$16 sps:$4 sm:$0xff]   ;;  %v2315_v26 = vld [vmem:[%s2704_s15 + $0x88] ss:$16 sps:$4 sm:$0xff]   ;;  %v2316_v27 = vld [vmem:[%s2704_s15 + $0xa4] ss:$16 sps:$4 sm:$0xff]  }
  0x2f   : > { %1539 = vmatprep.subr.bf16.mxu0 %v2298_v15  ;;  %1668 = vmatprep.subr.bf16.mxu1 %v2300_v16  ;;  %v2318_v28 = vld [vmem:[%s2704_s15 + $0xac] ss:$16 sps:$4 sm:$0xff]   ;;  %v2320_v29 = vld [vmem:[%s2704_s15 + $0xa0] ss:$16 sps:$4 sm:$0xff]   ;;  %v2321_v30 = vld [vmem:[%s2704_s15 + $0xa8] ss:$16 sps:$4 sm:$0xff]  }
  0x30   : > { %v2322_v31 = vld [vmem:[%s2704_s15 + $0xc4] ss:$16 sps:$4 sm:$0xff]   ;;  %v2324_v32 = vld [vmem:[%s2704_s15 + $0xcc] ss:$16 sps:$4 sm:$0xff]   ;;  %v2326_v33 = vld [vmem:[%s2704_s15 + $0xc0] ss:$16 sps:$4 sm:$0xff]  }
  0x31   : > { %v2327_v34 = vld [vmem:[%s2704_s15 + $0xc8] ss:$16 sps:$4 sm:$0xff]   ;;  %v2328_v35 = vld [vmem:[%s2704_s15 + $0xe4] ss:$16 sps:$4 sm:$0xff]   ;;  %v2330_v36 = vld [vmem:[%s2704_s15 + $0xec] ss:$16 sps:$4 sm:$0xff]  }
  0x32   : > { %1540 = vmatpush1.bf16.msra.mxu0 %v2302_v17  ;;  %1669 = vmatpush1.bf16.msra.mxu1 %v2303_v18  ;;  %v2332_v37 = vld [vmem:[%s2704_s15 + $0xe0] ss:$16 sps:$4 sm:$0xff]   ;;  %v2333_v38 = vld [vmem:[%s2704_s15 + $0xe8] ss:$16 sps:$4 sm:$0xff]   ;;  %v2334_v39 = vld [vmem:[%s2704_s15 + $0x104] ss:$16 sps:$4 sm:$0xff]  }
  0x33   : > { %1541 = vmatprep.subr.bf16.mxu0 %v2304_v19  ;;  %1670 = vmatprep.subr.bf16.mxu1 %v2306_v20  ;;  %v2336_v40 = vld [vmem:[%s2704_s15 + $0x10c] ss:$16 sps:$4 sm:$0xff]   ;;  %v2338_v41 = vld [vmem:[%s2704_s15 + $0x100] ss:$16 sps:$4 sm:$0xff]   ;;  %v2339_v42 = vld [vmem:[%s2704_s15 + $0x108] ss:$16 sps:$4 sm:$0xff]  }
  0x34   : > { %v2340_v43 = vld [vmem:[%s2704_s15 + $0x124] ss:$16 sps:$4 sm:$0xff]   ;;  %v2342_v44 = vld [vmem:[%s2704_s15 + $0x12c] ss:$16 sps:$4 sm:$0xff]   ;;  %v2344_v45 = vld [vmem:[%s2704_s15 + $0x120] ss:$16 sps:$4 sm:$0xff]  }
  0x35   : > { %v2345_v46 = vld [vmem:[%s2704_s15 + $0x128] ss:$16 sps:$4 sm:$0xff]   ;;  %v2346_v47 = vld [vmem:[%s2704_s15 + $0x144] ss:$16 sps:$4 sm:$0xff]   ;;  %v2348_v48 = vld [vmem:[%s2704_s15 + $0x14c] ss:$16 sps:$4 sm:$0xff]  }
  0x36   : > { %1542 = vmatpush1.bf16.msra.mxu0 %v2308_v21  ;;  %1671 = vmatpush1.bf16.msra.mxu1 %v2309_v22  ;;  %v2350_v49 = vld [vmem:[%s2704_s15 + $0x140] ss:$16 sps:$4 sm:$0xff]   ;;  %v2351_v50 = vld [vmem:[%s2704_s15 + $0x148] ss:$16 sps:$4 sm:$0xff]   ;;  %v2352_v51 = vld [vmem:[%s2704_s15 + $0x164] ss:$16 sps:$4 sm:$0xff]  }
  0x37   : > { %1543 = vmatprep.subr.bf16.mxu0 %v2310_v23  ;;  %1672 = vmatprep.subr.bf16.mxu1 %v2312_v24  ;;  %v2354_v52 = vld [vmem:[%s2704_s15 + $0x16c] ss:$16 sps:$4 sm:$0xff]   ;;  %v2356_v53 = vld [vmem:[%s2704_s15 + $0x160] ss:$16 sps:$4 sm:$0xff]   ;;  %v2357_v54 = vld [vmem:[%s2704_s15 + $0x168] ss:$16 sps:$4 sm:$0xff]  }
  0x38   : > { %v2384_v55 = vld [vmem:[%s2706_s16 + $0x4] ss:$24 sps:$4 sm:$0xff]   ;;  %v2362_v58 = vld [vmem:[%s2704_s15 + $0x180] ss:$16 sps:$4 sm:$0xff]   ;;  %v2363_v59 = vld [vmem:[%s2704_s15 + $0x188] ss:$16 sps:$4 sm:$0xff]  }
  0x39   : > { %v2358_v56 = vld [vmem:[%s2704_s15 + $0x184] ss:$16 sps:$4 sm:$0xff]   ;;  %v2360_v57 = vld [vmem:[%s2704_s15 + $0x18c] ss:$16 sps:$4 sm:$0xff]   ;;  %1567 = vmatprep.mubr.bf16.mxu0 %v2384_v55  ;;  %1696 = vmatprep.mubr.bf16.mxu1 %v2384_v55  ;;  %v2368_v62 = vld [vmem:[%s2704_s15 + $0x1a0] ss:$16 sps:$4 sm:$0xff]  }
  0x3a   : > { %1544 = vmatpush1.bf16.msra.mxu0 %v2314_v25  ;;  %1673 = vmatpush1.bf16.msra.mxu1 %v2315_v26  ;;  %v2364_v60 = vld [vmem:[%s2704_s15 + $0x1a4] ss:$16 sps:$4 sm:$0xff]   ;;  %v2366_v61 = vld [vmem:[%s2704_s15 + $0x1ac] ss:$16 sps:$4 sm:$0xff]   ;;  %v2369_v63 = vld [vmem:[%s2704_s15 + $0x1a8] ss:$16 sps:$4 sm:$0xff]  }
  0x3b   : > { %1545 = vmatprep.subr.bf16.mxu0 %v2316_v27  ;;  %1674 = vmatprep.subr.bf16.mxu1 %v2318_v28  ;;  %v2370_v0 = vld [vmem:[%s2704_s15 + $0x1c4] ss:$16 sps:$4 sm:$0xff]   ;;  %v2372_v1 = vld [vmem:[%s2704_s15 + $0x1cc] ss:$16 sps:$4 sm:$0xff]   ;;  %v2374_v2 = vld [vmem:[%s2704_s15 + $0x1c0] ss:$16 sps:$4 sm:$0xff]  }
  0x3c   : > { %v2375_v3 = vld [vmem:[%s2704_s15 + $0x1c8] ss:$16 sps:$4 sm:$0xff]   ;;  %v2376_v4 = vld [vmem:[%s2704_s15 + $0x1e4] ss:$16 sps:$4 sm:$0xff]   ;;  %v2378_v5 = vld [vmem:[%s2704_s15 + $0x1ec] ss:$16 sps:$4 sm:$0xff]  }
  0x3d   : > { %v2380_v6 = vld [vmem:[%s2704_s15 + $0x1e0] ss:$16 sps:$4 sm:$0xff]   ;;  %v2381_v7 = vld [vmem:[%s2704_s15 + $0x1e8] ss:$16 sps:$4 sm:$0xff]   ;;  %v2387_v8 = vld [vmem:[%s2704_s15 + $0x204] ss:$16 sps:$4 sm:$0xff]  }
  0x3e   : > { %1546 = vmatpush1.bf16.msra.mxu0 %v2320_v29  ;;  %1675 = vmatpush1.bf16.msra.mxu1 %v2321_v30  ;;  %v2390_v9 = vld [vmem:[%s2704_s15 + $0x20c] ss:$16 sps:$4 sm:$0xff]   ;;  %v2382_v10 = vld [vmem:[%s2706_s16] ss:$24 sps:$4 sm:$0xff]   ;;  %v2393_v13 = vld [vmem:[%s2704_s15 + $0x224] ss:$16 sps:$4 sm:$0xff]  }
  0x3f   : > { %1547 = vmatprep.subr.bf16.mxu0 %v2322_v31  ;;  %1676 = vmatprep.subr.bf16.mxu1 %v2324_v32  ;;  %v2385_v11 = vld [vmem:[%s2704_s15 + $0x200] ss:$16 sps:$4 sm:$0xff]   ;;  %v2388_v12 = vld [vmem:[%s2704_s15 + $0x208] ss:$16 sps:$4 sm:$0xff]   ;;  %v2396_v14 = vld [vmem:[%s2704_s15 + $0x22c] ss:$16 sps:$4 sm:$0xff]  }
  0x40   : > { %v2391_v15 = vld [vmem:[%s2704_s15 + $0x220] ss:$16 sps:$4 sm:$0xff]   ;;  %v2394_v16 = vld [vmem:[%s2704_s15 + $0x228] ss:$16 sps:$4 sm:$0xff]   ;;  %v2399_v17 = vld [vmem:[%s2704_s15 + $0x244] ss:$16 sps:$4 sm:$0xff]  }
  0x41   : > { %v2402_v18 = vld [vmem:[%s2704_s15 + $0x24c] ss:$16 sps:$4 sm:$0xff]   ;;  %v2397_v19 = vld [vmem:[%s2704_s15 + $0x240] ss:$16 sps:$4 sm:$0xff]   ;;  %v2400_v20 = vld [vmem:[%s2704_s15 + $0x248] ss:$16 sps:$4 sm:$0xff]  }
  0x42   : > { %1548 = vmatpush1.bf16.msra.mxu0 %v2326_v33  ;;  %1677 = vmatpush1.bf16.msra.mxu1 %v2327_v34  ;;  %v2405_v21 = vld [vmem:[%s2704_s15 + $0x264] ss:$16 sps:$4 sm:$0xff]   ;;  %v2408_v22 = vld [vmem:[%s2704_s15 + $0x26c] ss:$16 sps:$4 sm:$0xff]   ;;  %v2403_v23 = vld [vmem:[%s2704_s15 + $0x260] ss:$16 sps:$4 sm:$0xff]  }
  0x43   : > { %1549 = vmatprep.subr.bf16.mxu0 %v2328_v35  ;;  %1678 = vmatprep.subr.bf16.mxu1 %v2330_v36  ;;  %v2406_v24 = vld [vmem:[%s2704_s15 + $0x268] ss:$16 sps:$4 sm:$0xff]   ;;  %v2411_v25 = vld [vmem:[%s2704_s15 + $0x284] ss:$16 sps:$4 sm:$0xff]   ;;  %v2414_v26 = vld [vmem:[%s2704_s15 + $0x28c] ss:$16 sps:$4 sm:$0xff]  }
  0x44   : > { %v2409_v27 = vld [vmem:[%s2704_s15 + $0x280] ss:$16 sps:$4 sm:$0xff]   ;;  %v2412_v28 = vld [vmem:[%s2704_s15 + $0x288] ss:$16 sps:$4 sm:$0xff]   ;;  %v2417_v29 = vld [vmem:[%s2704_s15 + $0x2a4] ss:$16 sps:$4 sm:$0xff]  }
  0x45   : > { %v2420_v30 = vld [vmem:[%s2704_s15 + $0x2ac] ss:$16 sps:$4 sm:$0xff]   ;;  %v2415_v31 = vld [vmem:[%s2704_s15 + $0x2a0] ss:$16 sps:$4 sm:$0xff]   ;;  %v2418_v32 = vld [vmem:[%s2704_s15 + $0x2a8] ss:$16 sps:$4 sm:$0xff]  }
  0x46   : > { %1550 = vmatpush1.bf16.msra.mxu0 %v2332_v37  ;;  %1679 = vmatpush1.bf16.msra.mxu1 %v2333_v38  ;;  %v2423_v33 = vld [vmem:[%s2704_s15 + $0x2c4] ss:$16 sps:$4 sm:$0xff]   ;;  %v2426_v34 = vld [vmem:[%s2704_s15 + $0x2cc] ss:$16 sps:$4 sm:$0xff]   ;;  %v2421_v35 = vld [vmem:[%s2704_s15 + $0x2c0] ss:$16 sps:$4 sm:$0xff]  }
  0x47   : > { %1551 = vmatprep.subr.bf16.mxu0 %v2334_v39  ;;  %1680 = vmatprep.subr.bf16.mxu1 %v2336_v40  ;;  %v2424_v36 = vld [vmem:[%s2704_s15 + $0x2c8] ss:$16 sps:$4 sm:$0xff]   ;;  %v2483_v37 = vld [vmem:[%s2706_s16 + $0xc] ss:$24 sps:$4 sm:$0xff]   ;;  %v2427_v40 = vld [vmem:[%s2704_s15 + $0x2e0] ss:$16 sps:$4 sm:$0xff]  }
  0x48   : > { %v2429_v38 = vld [vmem:[%s2704_s15 + $0x2e4] ss:$16 sps:$4 sm:$0xff]   ;;  %v2432_v39 = vld [vmem:[%s2704_s15 + $0x2ec] ss:$16 sps:$4 sm:$0xff]   ;;  %p2220_p11 = scmp.ne.s32.totalorder %s2613_s20, 5 }
  0x49   : > { %v2456_v55 = vld [vmem:[%s2704_s15 + $0x36c] ss:$16 sps:$4 sm:$0xff]  }
  0x4a   : > { %1552 = vmatpush1.bf16.msra.mxu0 %v2338_v41  ;;  %1681 = vmatpush1.bf16.msra.mxu1 %v2339_v42  ;;  %v2430_v41 = vld [vmem:[%s2704_s15 + $0x2e8] ss:$16 sps:$4 sm:$0xff]   ;;  %v2435_v42 = vld [vmem:[%s2704_s15 + $0x304] ss:$16 sps:$4 sm:$0xff]  }
  0x4b   : > { %1553 = vmatprep.subr.bf16.mxu0 %v2340_v43  ;;  %1682 = vmatprep.subr.bf16.mxu1 %v2342_v44  ;;  %v2438_v43 = vld [vmem:[%s2704_s15 + $0x30c] ss:$16 sps:$4 sm:$0xff]   ;;  %v2433_v44 = vld [vmem:[%s2704_s15 + $0x300] ss:$16 sps:$4 sm:$0xff]  }
  0x4e   : > { %1554 = vmatpush1.bf16.msra.mxu0 %v2344_v45  ;;  %1683 = vmatpush1.bf16.msra.mxu1 %v2345_v46  ;;  %v2436_v45 = vld [vmem:[%s2704_s15 + $0x308] ss:$16 sps:$4 sm:$0xff]   ;;  %v2441_v46 = vld [vmem:[%s2704_s15 + $0x324] ss:$16 sps:$4 sm:$0xff]  }
  0x4f   : > { %1555 = vmatprep.subr.bf16.mxu0 %v2346_v47  ;;  %1684 = vmatprep.subr.bf16.mxu1 %v2348_v48  ;;  %v2444_v47 = vld [vmem:[%s2704_s15 + $0x32c] ss:$16 sps:$4 sm:$0xff]   ;;  %v2439_v48 = vld [vmem:[%s2704_s15 + $0x320] ss:$16 sps:$4 sm:$0xff]  }
  0x52   : > { %1556 = vmatpush1.bf16.msra.mxu0 %v2350_v49  ;;  %1685 = vmatpush1.bf16.msra.mxu1 %v2351_v50  ;;  %v2442_v49 = vld [vmem:[%s2704_s15 + $0x328] ss:$16 sps:$4 sm:$0xff]   ;;  %v2447_v50 = vld [vmem:[%s2704_s15 + $0x344] ss:$16 sps:$4 sm:$0xff]  }
  0x53   : > { %1557 = vmatprep.subr.bf16.mxu0 %v2352_v51  ;;  %1686 = vmatprep.subr.bf16.mxu1 %v2354_v52  ;;  %v2450_v51 = vld [vmem:[%s2704_s15 + $0x34c] ss:$16 sps:$4 sm:$0xff]   ;;  %v2445_v52 = vld [vmem:[%s2704_s15 + $0x340] ss:$16 sps:$4 sm:$0xff]  }
  0x56   : > { %1558 = vmatpush1.bf16.msra.mxu0 %v2356_v53  ;;  %1687 = vmatpush1.bf16.msra.mxu1 %v2357_v54  ;;  %v2448_v53 = vld [vmem:[%s2704_s15 + $0x348] ss:$16 sps:$4 sm:$0xff]   ;;  %v2453_v54 = vld [vmem:[%s2704_s15 + $0x364] ss:$16 sps:$4 sm:$0xff]  }
  0x57   : > { %1559 = vmatprep.subr.bf16.mxu0 %v2358_v56  ;;  %1688 = vmatprep.subr.bf16.mxu1 %v2360_v57  ;;  %v2451_v56 = vld [vmem:[%s2704_s15 + $0x360] ss:$16 sps:$4 sm:$0xff]   ;;  %v2454_v57 = vld [vmem:[%s2704_s15 + $0x368] ss:$16 sps:$4 sm:$0xff]  }
  0x5a   : > { %1560 = vmatpush1.bf16.msra.mxu0 %v2362_v58  ;;  %1689 = vmatpush1.bf16.msra.mxu1 %v2363_v59  ;;  %v2459_v58 = vld [vmem:[%s2704_s15 + $0x384] ss:$16 sps:$4 sm:$0xff]   ;;  %v2462_v59 = vld [vmem:[%s2704_s15 + $0x38c] ss:$16 sps:$4 sm:$0xff]  }
  0x5b   : > { %1561 = vmatprep.subr.bf16.mxu0 %v2364_v60  ;;  %1690 = vmatprep.subr.bf16.mxu1 %v2366_v61  ;;  %v2457_v60 = vld [vmem:[%s2704_s15 + $0x380] ss:$16 sps:$4 sm:$0xff]   ;;  %v2460_v61 = vld [vmem:[%s2704_s15 + $0x388] ss:$16 sps:$4 sm:$0xff]  }
  0x5e   : > { %1562 = vmatpush1.bf16.msra.mxu0 %v2368_v62  ;;  %1691 = vmatpush1.bf16.msra.mxu1 %v2369_v63  ;;  %v2465_v62 = vld [vmem:[%s2704_s15 + $0x3a4] ss:$16 sps:$4 sm:$0xff]   ;;  %v2468_v63 = vld [vmem:[%s2704_s15 + $0x3ac] ss:$16 sps:$4 sm:$0xff]  }
  0x5f   : > { %1563 = vmatprep.subr.bf16.mxu0 %v2370_v0  ;;  %1692 = vmatprep.subr.bf16.mxu1 %v2372_v1  ;;  %v2463_v0 = vld [vmem:[%s2704_s15 + $0x3a0] ss:$16 sps:$4 sm:$0xff]   ;;  %v2466_v1 = vld [vmem:[%s2704_s15 + $0x3a8] ss:$16 sps:$4 sm:$0xff]  }
  0x62   : > { %1564 = vmatpush1.bf16.msra.mxu0 %v2374_v2  ;;  %1693 = vmatpush1.bf16.msra.mxu1 %v2375_v3  ;;  %v2471_v2 = vld [vmem:[%s2704_s15 + $0x3c4] ss:$16 sps:$4 sm:$0xff]   ;;  %v2474_v3 = vld [vmem:[%s2704_s15 + $0x3cc] ss:$16 sps:$4 sm:$0xff]  }
  0x63   : > { %1565 = vmatprep.subr.bf16.mxu0 %v2376_v4  ;;  %1694 = vmatprep.subr.bf16.mxu1 %v2378_v5  ;;  %v2469_v4 = vld [vmem:[%s2704_s15 + $0x3c0] ss:$16 sps:$4 sm:$0xff]   ;;  %v2472_v5 = vld [vmem:[%s2704_s15 + $0x3c8] ss:$16 sps:$4 sm:$0xff]  }
  0x66   : > { %1566 = vmatpush1.bf16.msra.mxu0 %v2380_v6  ;;  %1695 = vmatpush1.bf16.msra.mxu1 %v2381_v7  ;;  %v2477_v6 = vld [vmem:[%s2704_s15 + $0x3e4] ss:$16 sps:$4 sm:$0xff]   ;;  %v2480_v7 = vld [vmem:[%s2704_s15 + $0x3ec] ss:$16 sps:$4 sm:$0xff]  }
  0x67   : > { %1578 = vmatprep.subr.bf16.mxu0 %v2387_v8  ;;  %1707 = vmatprep.subr.bf16.mxu1 %v2390_v9  ;;  %v2475_v8 = vld [vmem:[%s2704_s15 + $0x3e0] ss:$16 sps:$4 sm:$0xff]   ;;  %v2478_v9 = vld [vmem:[%s2704_s15 + $0x3e8] ss:$16 sps:$4 sm:$0xff]  }
  0x69   : > { %1568 = vmatmul.mubr.bf16.vlgmr.msra.gmra.mrb[0].mxu0 %v2382_v10  ;;  %1697 = vmatmul.mubr.bf16.vlgmr.msra.gmra.mrb[0].mxu1 %v2382_v10  ;;  %v2486_v10 = vld [vmem:[%s2704_s15 + $0x404] ss:$16 sps:$4 sm:$0xff]  }
  0x6a   : > { %1579 = vmatpush1.bf16.msra.mxu0 %v2385_v11  ;;  %1708 = vmatpush1.bf16.msra.mxu1 %v2388_v12  ;;  %v2489_v11 = vld [vmem:[%s2704_s15 + $0x40c] ss:$16 sps:$4 sm:$0xff]   ;;  %v2481_v12 = vld [vmem:[%s2706_s16 + $0x8] ss:$24 sps:$4 sm:$0xff]  }
  0x6b   : > { %1580 = vmatprep.subr.bf16.mxu0 %v2393_v13  ;;  %1709 = vmatprep.subr.bf16.mxu1 %v2396_v14  ;;  %v2484_v13 = vld [vmem:[%s2704_s15 + $0x400] ss:$16 sps:$4 sm:$0xff]   ;;  %v2487_v14 = vld [vmem:[%s2704_s15 + $0x408] ss:$16 sps:$4 sm:$0xff]  }
  0x6c   : > { %1610 = vmatprep.mubr.bf16.mxu0 %v2483_v37  ;;  %1739 = vmatprep.mubr.bf16.mxu1 %v2483_v37  ;;  %v2525_v37 = vld [vmem:[%s2704_s15 + $0x4cc] ss:$16 sps:$4 sm:$0xff]  }
  0x6e   : > { %1581 = vmatpush1.bf16.msra.mxu0 %v2391_v15  ;;  %1710 = vmatpush1.bf16.msra.mxu1 %v2394_v16  ;;  %v2492_v15 = vld [vmem:[%s2704_s15 + $0x424] ss:$16 sps:$4 sm:$0xff]   ;;  %v2495_v16 = vld [vmem:[%s2704_s15 + $0x42c] ss:$16 sps:$4 sm:$0xff]  }
  0x6f   : > { %1582 = vmatprep.subr.bf16.mxu0 %v2399_v17  ;;  %1711 = vmatprep.subr.bf16.mxu1 %v2402_v18  ;;  %v2582_v17 = vld [vmem:[%s2706_s16 + $0x14] ss:$24 sps:$4 sm:$0xff]   ;;  %v2490_v18 = vld [vmem:[%s2704_s15 + $0x420] ss:$16 sps:$4 sm:$0xff]  }
  0x72   : > { %1583 = vmatpush1.bf16.msra.mxu0 %v2397_v19  ;;  %1712 = vmatpush1.bf16.msra.mxu1 %v2400_v20  ;;  %v2493_v19 = vld [vmem:[%s2704_s15 + $0x428] ss:$16 sps:$4 sm:$0xff]   ;;  %v2498_v20 = vld [vmem:[%s2704_s15 + $0x444] ss:$16 sps:$4 sm:$0xff]  }
  0x73   : > { %1584 = vmatprep.subr.bf16.mxu0 %v2405_v21  ;;  %1713 = vmatprep.subr.bf16.mxu1 %v2408_v22  ;;  %v2501_v21 = vld [vmem:[%s2704_s15 + $0x44c] ss:$16 sps:$4 sm:$0xff]   ;;  %v2496_v22 = vld [vmem:[%s2704_s15 + $0x440] ss:$16 sps:$4 sm:$0xff]  }
  0x76   : > { %1585 = vmatpush1.bf16.msra.mxu0 %v2403_v23  ;;  %1714 = vmatpush1.bf16.msra.mxu1 %v2406_v24  ;;  %v2499_v23 = vld [vmem:[%s2704_s15 + $0x448] ss:$16 sps:$4 sm:$0xff]   ;;  %v2504_v24 = vld [vmem:[%s2704_s15 + $0x464] ss:$16 sps:$4 sm:$0xff]  }
  0x77   : > { %1586 = vmatprep.subr.bf16.mxu0 %v2411_v25  ;;  %1715 = vmatprep.subr.bf16.mxu1 %v2414_v26  ;;  %v2507_v25 = vld [vmem:[%s2704_s15 + $0x46c] ss:$16 sps:$4 sm:$0xff]   ;;  %v2502_v26 = vld [vmem:[%s2704_s15 + $0x460] ss:$16 sps:$4 sm:$0xff]  }
  0x7a   : > { %1587 = vmatpush1.bf16.msra.mxu0 %v2409_v27  ;;  %1716 = vmatpush1.bf16.msra.mxu1 %v2412_v28  ;;  %v2505_v27 = vld [vmem:[%s2704_s15 + $0x468] ss:$16 sps:$4 sm:$0xff]   ;;  %v2510_v28 = vld [vmem:[%s2704_s15 + $0x484] ss:$16 sps:$4 sm:$0xff]  }
  0x7b   : > { %1588 = vmatprep.subr.bf16.mxu0 %v2417_v29  ;;  %1717 = vmatprep.subr.bf16.mxu1 %v2420_v30  ;;  %v2513_v29 = vld [vmem:[%s2704_s15 + $0x48c] ss:$16 sps:$4 sm:$0xff]   ;;  %v2508_v30 = vld [vmem:[%s2704_s15 + $0x480] ss:$16 sps:$4 sm:$0xff]  }
  0x7e   : > { %1589 = vmatpush1.bf16.msra.mxu0 %v2415_v31  ;;  %1718 = vmatpush1.bf16.msra.mxu1 %v2418_v32  ;;  %v2511_v31 = vld [vmem:[%s2704_s15 + $0x488] ss:$16 sps:$4 sm:$0xff]   ;;  %v2516_v32 = vld [vmem:[%s2704_s15 + $0x4a4] ss:$16 sps:$4 sm:$0xff]  }
  0x7f   : > { %1590 = vmatprep.subr.bf16.mxu0 %v2423_v33  ;;  %1719 = vmatprep.subr.bf16.mxu1 %v2426_v34  ;;  %v2519_v33 = vld [vmem:[%s2704_s15 + $0x4ac] ss:$16 sps:$4 sm:$0xff]   ;;  %v2514_v34 = vld [vmem:[%s2704_s15 + $0x4a0] ss:$16 sps:$4 sm:$0xff]  }
  0x82   : > { %1591 = vmatpush1.bf16.msra.mxu0 %v2421_v35  ;;  %1720 = vmatpush1.bf16.msra.mxu1 %v2424_v36  ;;  %v2517_v35 = vld [vmem:[%s2704_s15 + $0x4a8] ss:$16 sps:$4 sm:$0xff]   ;;  %v2522_v36 = vld [vmem:[%s2704_s15 + $0x4c4] ss:$16 sps:$4 sm:$0xff]  }
  0x83   : > { %1592 = vmatprep.subr.bf16.mxu0 %v2429_v38  ;;  %1721 = vmatprep.subr.bf16.mxu1 %v2432_v39  ;;  %v2520_v38 = vld [vmem:[%s2704_s15 + $0x4c0] ss:$16 sps:$4 sm:$0xff]   ;;  %v2523_v39 = vld [vmem:[%s2704_s15 + $0x4c8] ss:$16 sps:$4 sm:$0xff]  }
  0x86   : > { %1593 = vmatpush1.bf16.msra.mxu0 %v2427_v40  ;;  %1722 = vmatpush1.bf16.msra.mxu1 %v2430_v41  ;;  %v2528_v40 = vld [vmem:[%s2704_s15 + $0x4e4] ss:$16 sps:$4 sm:$0xff]   ;;  %v2531_v41 = vld [vmem:[%s2704_s15 + $0x4ec] ss:$16 sps:$4 sm:$0xff]  }
  0x87   : > { %1594 = vmatprep.subr.bf16.mxu0 %v2435_v42  ;;  %1723 = vmatprep.subr.bf16.mxu1 %v2438_v43  ;;  %v2526_v42 = vld [vmem:[%s2704_s15 + $0x4e0] ss:$16 sps:$4 sm:$0xff]   ;;  %v2529_v43 = vld [vmem:[%s2704_s15 + $0x4e8] ss:$16 sps:$4 sm:$0xff]  }
  0x8a   : > { %1595 = vmatpush1.bf16.msra.mxu0 %v2433_v44  ;;  %1724 = vmatpush1.bf16.msra.mxu1 %v2436_v45  ;;  %v2534_v44 = vld [vmem:[%s2704_s15 + $0x504] ss:$16 sps:$4 sm:$0xff]   ;;  %v2537_v45 = vld [vmem:[%s2704_s15 + $0x50c] ss:$16 sps:$4 sm:$0xff]  }
  0x8b   : > { %1596 = vmatprep.subr.bf16.mxu0 %v2441_v46  ;;  %1725 = vmatprep.subr.bf16.mxu1 %v2444_v47  ;;  %v2532_v46 = vld [vmem:[%s2704_s15 + $0x500] ss:$16 sps:$4 sm:$0xff]   ;;  %v2535_v47 = vld [vmem:[%s2704_s15 + $0x508] ss:$16 sps:$4 sm:$0xff]  }
  0x8e   : > { %1597 = vmatpush1.bf16.msra.mxu0 %v2439_v48  ;;  %1726 = vmatpush1.bf16.msra.mxu1 %v2442_v49  ;;  %v2540_v48 = vld [vmem:[%s2704_s15 + $0x524] ss:$16 sps:$4 sm:$0xff]   ;;  %v2543_v49 = vld [vmem:[%s2704_s15 + $0x52c] ss:$16 sps:$4 sm:$0xff]  }
  0x8f   : > { %1598 = vmatprep.subr.bf16.mxu0 %v2447_v50  ;;  %1727 = vmatprep.subr.bf16.mxu1 %v2450_v51  ;;  %v2538_v50 = vld [vmem:[%s2704_s15 + $0x520] ss:$16 sps:$4 sm:$0xff]   ;;  %v2541_v51 = vld [vmem:[%s2704_s15 + $0x528] ss:$16 sps:$4 sm:$0xff]  }
  0x92   : > { %1599 = vmatpush1.bf16.msra.mxu0 %v2445_v52  ;;  %1728 = vmatpush1.bf16.msra.mxu1 %v2448_v53  ;;  %v2546_v52 = vld [vmem:[%s2704_s15 + $0x544] ss:$16 sps:$4 sm:$0xff]   ;;  %v2549_v53 = vld [vmem:[%s2704_s15 + $0x54c] ss:$16 sps:$4 sm:$0xff]  }
  0x93   : > { %1600 = vmatprep.subr.bf16.mxu0 %v2453_v54  ;;  %1729 = vmatprep.subr.bf16.mxu1 %v2456_v55  ;;  %v2544_v54 = vld [vmem:[%s2704_s15 + $0x540] ss:$16 sps:$4 sm:$0xff]   ;;  %v2547_v55 = vld [vmem:[%s2704_s15 + $0x548] ss:$16 sps:$4 sm:$0xff]  }
  0x96   : > { %1601 = vmatpush1.bf16.msra.mxu0 %v2451_v56  ;;  %1730 = vmatpush1.bf16.msra.mxu1 %v2454_v57  ;;  %v2552_v56 = vld [vmem:[%s2704_s15 + $0x564] ss:$16 sps:$4 sm:$0xff]   ;;  %v2555_v57 = vld [vmem:[%s2704_s15 + $0x56c] ss:$16 sps:$4 sm:$0xff]  }
  0x97   : > { %1602 = vmatprep.subr.bf16.mxu0 %v2459_v58  ;;  %1731 = vmatprep.subr.bf16.mxu1 %v2462_v59  ;;  %v2550_v58 = vld [vmem:[%s2704_s15 + $0x560] ss:$16 sps:$4 sm:$0xff]   ;;  %v2553_v59 = vld [vmem:[%s2704_s15 + $0x568] ss:$16 sps:$4 sm:$0xff]  }
  0x9a   : > { %1603 = vmatpush1.bf16.msra.mxu0 %v2457_v60  ;;  %1732 = vmatpush1.bf16.msra.mxu1 %v2460_v61  ;;  %v2558_v60 = vld [vmem:[%s2704_s15 + $0x584] ss:$16 sps:$4 sm:$0xff]   ;;  %v2561_v61 = vld [vmem:[%s2704_s15 + $0x58c] ss:$16 sps:$4 sm:$0xff]  }
  0x9b   : > { %1604 = vmatprep.subr.bf16.mxu0 %v2465_v62  ;;  %1733 = vmatprep.subr.bf16.mxu1 %v2468_v63  ;;  %v2556_v62 = vld [vmem:[%s2704_s15 + $0x580] ss:$16 sps:$4 sm:$0xff]   ;;  %v2559_v63 = vld [vmem:[%s2704_s15 + $0x588] ss:$16 sps:$4 sm:$0xff]  }
  0x9e   : > { %1605 = vmatpush1.bf16.msra.mxu0 %v2463_v0  ;;  %1734 = vmatpush1.bf16.msra.mxu1 %v2466_v1  ;;  %v2564_v0 = vld [vmem:[%s2704_s15 + $0x5a4] ss:$16 sps:$4 sm:$0xff]   ;;  %v2567_v1 = vld [vmem:[%s2704_s15 + $0x5ac] ss:$16 sps:$4 sm:$0xff]  }
  0x9f   : > { %1606 = vmatprep.subr.bf16.mxu0 %v2471_v2  ;;  %1735 = vmatprep.subr.bf16.mxu1 %v2474_v3  ;;  %v2562_v2 = vld [vmem:[%s2704_s15 + $0x5a0] ss:$16 sps:$4 sm:$0xff]   ;;  %v2565_v3 = vld [vmem:[%s2704_s15 + $0x5a8] ss:$16 sps:$4 sm:$0xff]  }
  0xa2   : > { %1607 = vmatpush1.bf16.msra.mxu0 %v2469_v4  ;;  %1736 = vmatpush1.bf16.msra.mxu1 %v2472_v5  ;;  %v2570_v4 = vld [vmem:[%s2704_s15 + $0x5c4] ss:$16 sps:$4 sm:$0xff]   ;;  %v2573_v5 = vld [vmem:[%s2704_s15 + $0x5cc] ss:$16 sps:$4 sm:$0xff]  }
  0xa3   : > { %1608 = vmatprep.subr.bf16.mxu0 %v2477_v6  ;;  %1737 = vmatprep.subr.bf16.mxu1 %v2480_v7  ;;  %v2568_v6 = vld [vmem:[%s2704_s15 + $0x5c0] ss:$16 sps:$4 sm:$0xff]   ;;  %v2571_v7 = vld [vmem:[%s2704_s15 + $0x5c8] ss:$16 sps:$4 sm:$0xff]  }
  0xa6   : > { %1609 = vmatpush1.bf16.msra.mxu0 %v2475_v8  ;;  %1738 = vmatpush1.bf16.msra.mxu1 %v2478_v9  ;;  %v2576_v8 = vld [vmem:[%s2704_s15 + $0x5e4] ss:$16 sps:$4 sm:$0xff]   ;;  %v2579_v9 = vld [vmem:[%s2704_s15 + $0x5ec] ss:$16 sps:$4 sm:$0xff]  }
  0xa7   : > { %1621 = vmatprep.subr.bf16.mxu0 %v2486_v10  ;;  %1750 = vmatprep.subr.bf16.mxu1 %v2489_v11  ;;  %v2574_v10 = vld [vmem:[%s2704_s15 + $0x5e0] ss:$16 sps:$4 sm:$0xff]   ;;  %v2577_v11 = vld [vmem:[%s2704_s15 + $0x5e8] ss:$16 sps:$4 sm:$0xff]  }
  0xa9   : > { %1611 = vmatmul.mubr.bf16.vlgmr.msra.gmra.mrb[0].mxu0 %v2481_v12  ;;  %1740 = vmatmul.mubr.bf16.vlgmr.msra.gmra.mrb[0].mxu1 %v2481_v12  ;;  %v2580_v12 = vld [vmem:[%s2706_s16 + $0x10] ss:$24 sps:$4 sm:$0xff]  }
  0xaa   : > { %1622 = vmatpush1.bf16.msra.mxu0 %v2484_v13  ;;  %1751 = vmatpush1.bf16.msra.mxu1 %v2487_v14  ;;  %v339_v13 = vld [vmem:[%s3078_s5] sm:$0xff]  ;;  %v341_v14 = vld [vmem:[%s3078_s5 + $0x10] sm:$0xff] }
  0xab   : > { %1623 = vmatprep.subr.bf16.mxu0 %v2492_v15  ;;  %1752 = vmatprep.subr.bf16.mxu1 %v2495_v16  ;;  %v340_v15 = vld [vmem:[%s3078_s5 + $0x8] sm:$0xff]  ;;  %v342_v16 = vld [vmem:[%s3078_s5 + $0x18] sm:$0xff] }
  0xac   : > { %1653 = vmatprep.mubr.bf16.mxu0 %v2582_v17  ;;  %1782 = vmatprep.mubr.bf16.mxu1 %v2582_v17 }
  0xae   : > { %1624 = vmatpush1.bf16.msra.mxu0 %v2490_v18  ;;  %1753 = vmatpush1.bf16.msra.mxu1 %v2493_v19  ;;  %v343_v19 = vld [vmem:[%s3078_s5 + $0x20] sm:$0xff] }
  0xaf   : > { %1625 = vmatprep.subr.bf16.mxu0 %v2498_v20  ;;  %1754 = vmatprep.subr.bf16.mxu1 %v2501_v21  ;;  %v345_v20 = vld [vmem:[%s3078_s5 + $0x30] sm:$0xff] }
  0xb2   : > { %1626 = vmatpush1.bf16.msra.mxu0 %v2496_v22  ;;  %1755 = vmatpush1.bf16.msra.mxu1 %v2499_v23 }
  0xb3   : > { %1627 = vmatprep.subr.bf16.mxu0 %v2504_v24  ;;  %1756 = vmatprep.subr.bf16.mxu1 %v2507_v25  ;;  %v344_v25 = vld [vmem:[%s3078_s5 + $0x28] sm:$0xff] }
  0xb6   : > { %1628 = vmatpush1.bf16.msra.mxu0 %v2502_v26  ;;  %1757 = vmatpush1.bf16.msra.mxu1 %v2505_v27  ;;  %v346_v26 = vld [vmem:[%s3078_s5 + $0x38] sm:$0xff] }
  0xb7   : > { %1629 = vmatprep.subr.bf16.mxu0 %v2510_v28  ;;  %1758 = vmatprep.subr.bf16.mxu1 %v2513_v29 }
  0xba   : > { %1630 = vmatpush1.bf16.msra.mxu0 %v2508_v30  ;;  %1759 = vmatpush1.bf16.msra.mxu1 %v2511_v31 }
  0xbb   : > { %1631 = vmatprep.subr.bf16.mxu0 %v2516_v32  ;;  %1760 = vmatprep.subr.bf16.mxu1 %v2519_v33 }
  0xbe   : > { %1632 = vmatpush1.bf16.msra.mxu0 %v2514_v34  ;;  %1761 = vmatpush1.bf16.msra.mxu1 %v2517_v35 }
  0xbf   : > { %1633 = vmatprep.subr.bf16.mxu0 %v2522_v36  ;;  %1762 = vmatprep.subr.bf16.mxu1 %v2525_v37  ;;  %v1832_v37 = vlaneseq (!%p2220_p11) }
  0xc2   : > { %1634 = vmatpush1.bf16.msra.mxu0 %v2520_v38  ;;  %1763 = vmatpush1.bf16.msra.mxu1 %v2523_v39  ;;  %v1833_v38 = vshrl.u32 (!%p2220_p11), %v1832_v37, 7  ;;  %v1821_v39 = vld [vmem:[%s3075_s2] sm:$0xf] (!%p2220_p11) }
  0xc3   : > { %1635 = vmatprep.subr.bf16.mxu0 %v2528_v40  ;;  %1764 = vmatprep.subr.bf16.mxu1 %v2531_v41  ;;  %v1822_v40 = vld [vmem:[%s3076_s3] sm:$0xf] (!%p2220_p11) }
  0xc6   : > { %1636 = vmatpush1.bf16.msra.mxu0 %v2526_v42  ;;  %1765 = vmatpush1.bf16.msra.mxu1 %v2529_v43  ;;  %v1834_v42 = vsub.s32 (!%p2220_p11), 0, %v1833_v38 }
  0xc7   : > { %1637 = vmatprep.subr.bf16.mxu0 %v2534_v44  ;;  %1766 = vmatprep.subr.bf16.mxu1 %v2537_v45  ;;  %v1838_v44 = vsub.s32 (!%p2220_p11), 1, %v1833_v38  ;;  %v1842_v45 = vsub.s32 (!%p2220_p11), 2, %v1833_v38 }
  0xca   : > { %1638 = vmatpush1.bf16.msra.mxu0 %v2532_v46  ;;  %1767 = vmatpush1.bf16.msra.mxu1 %v2535_v47  ;;  %v1846_v46 = vsub.s32 (!%p2220_p11), 3, %v1833_v38 }
  0xcb   : > { %1639 = vmatprep.subr.bf16.mxu0 %v2540_v48  ;;  %1768 = vmatprep.subr.bf16.mxu1 %v2543_v49 }
  0xce   : > { %1640 = vmatpush1.bf16.msra.mxu0 %v2538_v50  ;;  %1769 = vmatpush1.bf16.msra.mxu1 %v2541_v51  ;;  %v1835_v50 = vrot.slane (!%p2220_p11), %v1821_v39, %v1834_v42  ;;  %v1864_v51 = vrot.slane (!%p2220_p11), %v1822_v40, %v1834_v42 }
  0xcf   : > { %1641 = vmatprep.subr.bf16.mxu0 %v2546_v52  ;;  %1770 = vmatprep.subr.bf16.mxu1 %v2549_v53  ;;  %v1839_v52 = vrot.slane (!%p2220_p11), %v1821_v39, %v1838_v44  ;;  %v1868_v53 = vrot.slane (!%p2220_p11), %v1822_v40, %v1838_v44 }
  0xd2   : > { %1642 = vmatpush1.bf16.msra.mxu0 %v2544_v54  ;;  %1771 = vmatpush1.bf16.msra.mxu1 %v2547_v55 }
  0xd3   : > { %1643 = vmatprep.subr.bf16.mxu0 %v2552_v56  ;;  %1772 = vmatprep.subr.bf16.mxu1 %v2555_v57  ;;  %v1843_v57 = vrot.slane (!%p2220_p11), %v1821_v39, %v1842_v45 }
  0xd6   : > { %1644 = vmatpush1.bf16.msra.mxu0 %v2550_v58  ;;  %1773 = vmatpush1.bf16.msra.mxu1 %v2553_v59  ;;  %v1872_v58 = vrot.slane (!%p2220_p11), %v1822_v40, %v1842_v45  ;;  %v1847_v59 = vrot.slane (!%p2220_p11), %v1821_v39, %v1846_v46 }
  0xd7   : > { %1645 = vmatprep.subr.bf16.mxu0 %v2558_v60  ;;  %1774 = vmatprep.subr.bf16.mxu1 %v2561_v61  ;;  %v1876_v60 = vrot.slane (!%p2220_p11), %v1822_v40, %v1846_v46  ;;  %v1823_v61 = vld [vmem:[%s3077_s4] sm:$0xff] (!%p2220_p11) }
  0xda   : > { %1646 = vmatpush1.bf16.msra.mxu0 %v2556_v62  ;;  %1775 = vmatpush1.bf16.msra.mxu1 %v2559_v63  ;;  %v1824_v63 = vld [vmem:[%s3077_s4 + $0x8] sm:$0xff] (!%p2220_p11) }
  0xdb   : > { %1647 = vmatprep.subr.bf16.mxu0 %v2564_v0  ;;  %1776 = vmatprep.subr.bf16.mxu1 %v2567_v1 }
  0xde   : > { %1648 = vmatpush1.bf16.msra.mxu0 %v2562_v2  ;;  %1777 = vmatpush1.bf16.msra.mxu1 %v2565_v3  ;;  %v1825_v3 = vld [vmem:[%s3077_s4 + $0x10] sm:$0xff] (!%p2220_p11) }
  0xdf   : > { %1649 = vmatprep.subr.bf16.mxu0 %v2570_v4  ;;  %1778 = vmatprep.subr.bf16.mxu1 %v2573_v5 }
  0xe2   : > { %1650 = vmatpush1.bf16.msra.mxu0 %v2568_v6  ;;  %1779 = vmatpush1.bf16.msra.mxu1 %v2571_v7  ;;  %v1827_v6 = vld [vmem:[%s3077_s4 + $0x20] sm:$0xff] (!%p2220_p11)  ;;  %v1828_v7 = vld [vmem:[%s3077_s4 + $0x28] sm:$0xff] (!%p2220_p11) }
  0xe3   : > { %1651 = vmatprep.subr.bf16.mxu0 %v2576_v8  ;;  %1780 = vmatprep.subr.bf16.mxu1 %v2579_v9 }
  0xe6   : > { %1652 = vmatpush1.bf16.msra.mxu0 %v2574_v10  ;;  %1781 = vmatpush1.bf16.msra.mxu1 %v2577_v11 }
  0xe9   : > { %1654 = vmatmul.mubr.bf16.vlgmr.msra.gmra.mrb[0].mxu0 %v2580_v12  ;;  %1783 = vmatmul.mubr.bf16.vlgmr.msra.gmra.mrb[0].mxu1 %v2580_v12  ;;  %v1826_v12 = vld [vmem:[%s3077_s4 + $0x18] sm:$0xff] (!%p2220_p11) }
 0x1bc   : > { %v1655_v17 = vpop.f32.mrb[0].mxu0  ;;  %v1784_v18 = vpop.f32.mrb[0].mxu1  ;;  %1812 = sbr.rel (%p2220_p11) target bundleno = 467 (0x1d3), region = 71 }
 0x1bd   : > { %v1793_v21 = vadd.f32 %v1655_v17, %v339_v13  ;;  %v1795_v22 = vadd.f32 %v1784_v18, %v341_v14  ;;  %v1657_v23 = vpop.f32.mrb[1].mxu0  ;;  %v1786_v24 = vpop.f32.mrb[1].mxu1 }
 0x1be   : > { %v1794_v27 = vadd.f32 %v1657_v23, %v340_v15  ;;  %v1796_v28 = vadd.f32 %v1786_v24, %v342_v16  ;;  %v1659_v29 = vpop.f32.mrb[2].mxu0  ;;  %v1788_v30 = vpop.f32.mrb[2].mxu1  ;;  %v1829_v15 = vld [vmem:[%s3077_s4 + $0x30] sm:$0xff] (!%p2220_p11)  ;;  %v1830_v16 = vld [vmem:[%s3077_s4 + $0x38] sm:$0xff] (!%p2220_p11) }
 0x1bf   : > { %1801 = vst [vmem:[%s3078_s5] sm:$0xff] %v1793_v21  ;;  %1803 = vst [vmem:[%s3078_s5 + $0x10] sm:$0xff] %v1795_v22  ;;  %v1797_v31 = vadd.f32 %v1659_v29, %v343_v19  ;;  %v1799_v32 = vadd.f32 %v1788_v30, %v345_v20  ;;  %v1661_v33 = vpop.f32.mrb[3].mxu0  ;;  %v1790_v34 = vpop.f32.mrb[3].mxu1 }
 0x1c0   : > { %1802 = vst [vmem:[%s3078_s5 + $0x8] sm:$0xff] %v1794_v27  ;;  %1804 = vst [vmem:[%s3078_s5 + $0x18] sm:$0xff] %v1796_v28  ;;  %v1798_v35 = vadd.f32 %v1661_v33, %v344_v25  ;;  %v1800_v36 = vadd.f32 %v1790_v34, %v346_v26 }
 0x1c1   : > { %1805 = vst [vmem:[%s3078_s5 + $0x20] sm:$0xff] %v1797_v31  ;;  %1807 = vst [vmem:[%s3078_s5 + $0x30] sm:$0xff] %v1799_v32 }
 0x1c2   : > { %1806 = vst [vmem:[%s3078_s5 + $0x28] sm:$0xff] %v1798_v35  ;;  %1808 = vst [vmem:[%s3078_s5 + $0x38] sm:$0xff] %v1800_v36 }
 0x1c6   : > { %v1813_v41 = vld [vmem:[%s3078_s5] sm:$0xff]  ;;  %v1815_v47 = vld [vmem:[%s3078_s5 + $0x10] sm:$0xff] }
 0x1c7   : > { %v1814_v43 = vld [vmem:[%s3078_s5 + $0x8] sm:$0xff]  ;;  %v1816_v54 = vld [vmem:[%s3078_s5 + $0x18] sm:$0xff]  ;;  %v1852_v62 = vmul.f32 %v1835_v50, %v1813_v41  ;;  %v1854_v4 = vmul.f32 %v1843_v57, %v1815_v47 }
 0x1c8   : > { %v1817_v48 = vld [vmem:[%s3078_s5 + $0x20] sm:$0xff]  ;;  %v1819_v55 = vld [vmem:[%s3078_s5 + $0x30] sm:$0xff]  ;;  %v1853_v0 = vmul.f32 %v1839_v52, %v1814_v43  ;;  %v1855_v5 = vmul.f32 %v1847_v59, %v1816_v54 }
 0x1c9   : > { %v1818_v49 = vld [vmem:[%s3078_s5 + $0x28] sm:$0xff]  ;;  %v1820_v56 = vld [vmem:[%s3078_s5 + $0x38] sm:$0xff]  ;;  %v1856_v1 = vmul.f32 %v1835_v50, %v1817_v48  ;;  %v1858_v8 = vmul.f32 %v1843_v57, %v1819_v55  ;;  %v1881_v10 = vadd.f32 %v1864_v51, %v1852_v62  ;;  %v1883_v17 = vadd.f32 %v1872_v58, %v1854_v4 }
 0x1ca   : > { %v1857_v2 = vmul.f32 %v1839_v52, %v1818_v49  ;;  %v1859_v9 = vmul.f32 %v1847_v59, %v1820_v56  ;;  %v1882_v11 = vadd.f32 %v1868_v53, %v1853_v0  ;;  %v1884_v18 = vadd.f32 %v1876_v60, %v1855_v5 }
 0x1cb   : > { %v1885_v13 = vadd.f32 %v1864_v51, %v1856_v1  ;;  %v1887_v19 = vadd.f32 %v1872_v58, %v1858_v8  ;;  %v1889_v21 = vadd.f32 %v1881_v10, %v1823_v61  ;;  %v1891_v25 = vadd.f32 %v1883_v17, %v1825_v3 }
 0x1cc   : > { %v1886_v14 = vadd.f32 %v1868_v53, %v1857_v2  ;;  %v1888_v20 = vadd.f32 %v1876_v60, %v1859_v9  ;;  %v1890_v22 = vadd.f32 %v1882_v11, %v1824_v63  ;;  %v1892_v26 = vadd.f32 %v1884_v18, %v1826_v12 }
 0x1cd   : > { %v1893_v23 = vadd.f32 %v1885_v13, %v1827_v6  ;;  %v1895_v27 = vadd.f32 %v1887_v19, %v1829_v15  ;;  %v1897_v29 = vmax.f32 %v1889_v21, 0.0  ;;  %v1899_v33 = vmax.f32 %v1891_v25, 0.0 }
 0x1ce   : > { %v1894_v24 = vadd.f32 %v1886_v14, %v1828_v7  ;;  %v1896_v28 = vadd.f32 %v1888_v20, %v1830_v16  ;;  %v1898_v30 = vmax.f32 %v1890_v22, 0.0  ;;  %v1900_v34 = vmax.f32 %v1892_v26, 0.0 }
 0x1cf   : > { %v1901_v31 = vmax.f32 %v1893_v23, 0.0  ;;  %v1903_v35 = vmax.f32 %v1895_v27, 0.0  ;;  %1905 = vst [vmem:[%s3078_s5] sm:$0xff] %v1897_v29  ;;  %1907 = vst [vmem:[%s3078_s5 + $0x10] sm:$0xff] %v1899_v33 }
 0x1d0   : > { %v1902_v32 = vmax.f32 %v1894_v24, 0.0  ;;  %v1904_v36 = vmax.f32 %v1896_v28, 0.0  ;;  %1906 = vst [vmem:[%s3078_s5 + $0x8] sm:$0xff] %v1898_v30  ;;  %1908 = vst [vmem:[%s3078_s5 + $0x18] sm:$0xff] %v1900_v34 }
 0x1d1   : > { %1909 = vst [vmem:[%s3078_s5 + $0x20] sm:$0xff] %v1901_v31  ;;  %1911 = vst [vmem:[%s3078_s5 + $0x30] sm:$0xff] %v1903_v35 }
 0x1d2   : > { %1910 = vst [vmem:[%s3078_s5 + $0x28] sm:$0xff] %v1902_v32  ;;  %1912 = vst [vmem:[%s3078_s5 + $0x38] sm:$0xff] %v1904_v36 }
 0x1d3 PF: > { %s15_s22 = sadd.s32 1, %s2621_s22   ;;  %s3079_s18 = smov %s2609_s19 }
 0x1d4   : > { %p12_p12 = scmp.ge.s32.totalorder %s15_s22, 8   ;;  %s3080_s19 = smov %s2689_s26 }
 0x1d5   : > { %s3081_s20 = smov %s2617_s21  ;;  %s3082_s21 = smov %s3084_s23 }
 0x1d6   :  { %14 = sbr.rel (!%p12_p12) target bundleno = 3 (0x3), region = 112 }

// kernel: resnet_feature_forward.43
= control target key start
LH: loop header
LB: loop body
LE: loop exit
PB: predicated region body
PF: predicated region fallthrough
CT: control target
= control target key end

     0   :  { %s92_s0 = inlined_call_operand.vmem [shape: f32[2,1,512], index: 0, kind: input, shape index: {}]   ;;  %s93_s1 = inlined_call_operand.hbm [shape: f32[2,512], index: 1, kind: output, shape index: {}]  }
   0x1   :  { %v41_v0 = vld [vmem:[%s92_s0] sm:$0xff]  }
   0x2   :  { %6 = vsyncpa [#allocation3], 0  ;;  %s66_s8 = smov [#allocation2]   ;;  %39 = vst.sshfl [vmem:[#allocation2] sm:$0xff pattern:$0x75316420] %v41_v0 }
   0x3   :  { %s31_s9 = sshll.u32 %s66_s8, 4  ;;  %s32_s9 = int_to_ptr.vmem [resolvable:$true] %s31_s9 }
   0x4   :  { %s42_s10 = scalar_lea.vmem %s32_s9, 128  ;;  %p47_p1 = scmp.lt.s32.totalorder %s32_s9, %s32_s9 }
   0x5   :  { %p43_p0 = scmp.ne.s32.totalorder %s32_s9, %s42_s10  ;;  %p48_p2 = scmp.lt.s32.totalorder %s42_s10, %s42_s10 }
   0x7   :  { %p49_p3 = por %p48_p2, %p47_p1 }
   0x9   :  { %p50_p4 = pnand %p49_p3, %p43_p0 }
   0xb   :  { %53 = shalt.err (!%p50_p4)
}
   0xc   :  { %s54_s13 = scalar_lea.hbm %s93_s1, 128 }
   0xd   :  { %p55_p5 = scmp.ne.s32.totalorder %s93_s1, %s54_s13  ;;  %p58_p6 = scmp.lt.u32.totalorder %s54_s13, %s93_s1 }
   0xf   :  { %p60_p7 = pnand %p58_p6, %p55_p5 }
  0x11   :  { %63 = shalt.err (!%p60_p7)
}
  0x12   :  { %34 = dma.vmem_to_hbm [thread:$0]  %s32_s9, 128, %s93_s1, [#allocation3]  }
  0x13   :  { %64 = dma.done.wait [#allocation3], 128  }
  0x14   :  { %65 = vsyncadd [#allocation3], 4294967168 }
  0x15   :  { %38 = vsyncpa [#allocation3], 1 }

</bundles_post_ra>
